<compile_context>
chip_gen: v7x
topology: tpu7x:2x2x1
jax: 0.10.0
libtpu: 0.0.40
codegen_flags: <defaults>
</compile_context>

<pallas_src>
import functools

import jax
import jax.numpy as jnp
from jax import lax
from jax.experimental import pallas as pl
from jax.experimental.pallas import tpu as pltpu

# ----- small shapes consistent with the module (n_embd=384; NH * HS == n_embd) -----
B = 2
T = 128                           # sequence length (<= block_size=256 in the torch module)
N_EMBD = 384                      # embedding dim C (matches the torch module)
NUM_HEADS = 3
HEAD_SIZE = N_EMBD // NUM_HEADS   # 128 -> lane-aligned head tiles


# ---------------------------------------------------------------------------
# Fused kernel: one grid step = `batch_per_step` batch elements.
#   Wide QKV projection (batch folded into M) -> bf16 VMEM staging -> per-(batch,
#   head) causal attention -> concat into VMEM scratch -> output projection.
# ---------------------------------------------------------------------------
def _mha_fused_kernel(x_ref, wqkv_ref, wproj_ref, b_ref, o_ref, qkv_ref, cat_ref,
                      *, num_heads, head_size, seq_len, batch_per_step):
    t = seq_len
    c = num_heads * head_size

    # Single wide QKV projection over all rows of this step: (M, C) @ (C, 3C).
    # Downcast to bf16 right away and stage in VMEM scratch (no f32 spill traffic).
    qkv_ref[...] = jnp.dot(x_ref[...], wqkv_ref[...],
                           preferred_element_type=jnp.float32).astype(jnp.bfloat16)

    # Causal (lower-triangular) mask, shared across heads and batch elements.
    row = lax.broadcasted_iota(jnp.int32, (t, t), 0)
    col = lax.broadcasted_iota(jnp.int32, (t, t), 1)
    causal = col <= row

    for bi in range(batch_per_step):
        r0 = bi * t
        for h in range(num_heads):
            lo = h * head_size
            hi = lo + head_size
            # static, lane-aligned 128-wide slices of the bf16 staging buffer
            q = qkv_ref[r0:r0 + t, lo:hi]                 # C**-0.5 folded into Wq
            k = qkv_ref[r0:r0 + t, c + lo:c + hi]
            v = qkv_ref[r0:r0 + t, 2 * c + lo:2 * c + hi]

            # scores = q @ k^T  (f32 accumulation on the MXU)
            s = lax.dot_general(q, k, (((1,), (1,)), ((), ())),
                                preferred_element_type=jnp.float32)   # (T, T)
            s = jnp.where(causal, s, -jnp.inf)

            # numerically-stable softmax in f32 (diagonal always finite -> no NaN rows)
            m = jnp.max(s, axis=-1, keepdims=True)
            e = jnp.exp(s - m)
            wei = e * pl.reciprocal(jnp.sum(e, axis=-1, keepdims=True), approx=True)

            head_out = jnp.dot(wei.astype(jnp.bfloat16), v,
                               preferred_element_type=jnp.float32)    # (T, H)
            # write this (batch, head) tile directly into its concat slot
            cat_ref[r0:r0 + t, lo:hi] = head_out.astype(jnp.bfloat16)

    # Output projection over all rows of the step: (M, C) @ (C, C) + (1, C),
    # bias added to the f32 accumulator, lane-dense (M, C) store.
    y = jnp.dot(cat_ref[...], wproj_ref[...],
                preferred_element_type=jnp.float32) + b_ref[...]
    o_ref[...] = y.astype(o_ref.dtype)


def _default_batch_per_step(b):
    """v7x has 2 TensorCores -> keep >=2 parallel grid steps; single-TC chips
    (v5e/v6e) fold the whole batch into one step to amortize fixed step overhead."""
    kind = ""
    try:
        kind = jax.devices()[0].device_kind.lower()
    except Exception:
        pass
    bps = b // 2 if ("v7" in kind and b >= 2) else b
    bps = max(1, bps)
    while b % bps:          # ensure the step size divides the batch
        bps -= 1
    return bps


def multi_head_attention_forward(x, params, batch_per_step=None):
    """x: (B, T, C) bf16; params: packed bf16 weights. Returns (B, T, C) in x.dtype."""
    b, t, c = x.shape
    if batch_per_step is None:
        batch_per_step = _default_batch_per_step(b)
    assert b % batch_per_step == 0
    steps = b // batch_per_step
    m = batch_per_step * t                      # rows per grid step

    # Fold batch into M: (B, T, C) -> (B*T, C); contiguous, so the reshape is free.
    x2 = x.reshape(b * t, c)

    kernel = functools.partial(_mha_fused_kernel,
                               num_heads=NUM_HEADS, head_size=HEAD_SIZE,
                               seq_len=t, batch_per_step=batch_per_step)
    out = pl.pallas_call(
        kernel,
        out_shape=jax.ShapeDtypeStruct((b * t, c), x.dtype),
        grid_spec=pltpu.PrefetchScalarGridSpec(
            num_scalar_prefetch=0,
            grid=(steps,),
            in_specs=[
                pl.BlockSpec((m, c), lambda i: (i, 0)),            # x rows for this step
                pl.BlockSpec((c, 3 * c), lambda i: (0, 0)),        # Wqkv (VMEM-resident)
                pl.BlockSpec((c, c), lambda i: (0, 0)),            # Wproj (VMEM-resident)
                pl.BlockSpec((1, c), lambda i: (0, 0)),            # bias
            ],
            out_specs=pl.BlockSpec((m, c), lambda i: (i, 0)),
            scratch_shapes=[
                pltpu.VMEM((m, 3 * c), jnp.bfloat16),              # bf16 QKV staging
                pltpu.VMEM((m, c), jnp.bfloat16),                  # head-concat buffer
            ],
        ),
        compiler_params=pltpu.CompilerParams(
            dimension_semantics=("parallel",)),
    )(x2, params["w_qkv"], params["w_proj"], params["b_proj"])
    return out.reshape(b, t, c)


# ---------------------------------------------------------------------------
# Parameters
# ---------------------------------------------------------------------------
def init_raw_params(key):
    k1, k2, k3, k4, k5 = jax.random.split(key, 5)
    s = 0.02
    return {
        "wq": jax.random.normal(k1, (NUM_HEADS, N_EMBD, HEAD_SIZE), jnp.float32) * s,
        "wk": jax.random.normal(k2, (NUM_HEADS, N_EMBD, HEAD_SIZE), jnp.float32) * s,
        "wv": jax.random.normal(k3, (NUM_HEADS, N_EMBD, HEAD_SIZE), jnp.float32) * s,
        # stored as (in, out) so y = x @ W + b  (== torch x @ W_t.T + b)
        "w_proj": jax.random.normal(k4, (N_EMBD, N_EMBD), jnp.float32) * s,
        "b_proj": jax.random.normal(k5, (1, N_EMBD), jnp.float32) * s,
    }


def pack_params(raw):
    """Stack per-head Q/K/V into one (C, 3C) bf16 matrix; fold C**-0.5 into Wq."""
    scale = float(N_EMBD) ** -0.5

    def stack(w):  # (NH, C, H) -> (C, NH*H), head h occupies columns [h*H, (h+1)*H)
        return jnp.transpose(w, (1, 0, 2)).reshape(N_EMBD, NUM_HEADS * HEAD_SIZE)

    w_qkv = jnp.concatenate(
        [stack(raw["wq"]) * scale, stack(raw["wk"]), stack(raw["wv"])], axis=1)
    return {
        "w_qkv": w_qkv.astype(jnp.bfloat16),
        "w_proj": raw["w_proj"].astype(jnp.bfloat16),
        "b_proj": raw["b_proj"].astype(jnp.float32),   # added to the f32 accumulator
    }


# ---------------------------------------------------------------------------
# Pure-JAX f32 reference with the original torch-module semantics.
# ---------------------------------------------------------------------------
def ref_forward(x, raw):
    scale = float(N_EMBD) ** -0.5
    t = x.shape[1]
    mask = jnp.tril(jnp.ones((t, t), bool))
    outs = []
    for h in range(NUM_HEADS):
        q = x @ raw["wq"][h]
        k = x @ raw["wk"][h]
        v = x @ raw["wv"][h]
        s = (q @ jnp.swapaxes(k, -1, -2)) * scale
        s = jnp.where(mask, s, -jnp.inf)
        w = jax.nn.softmax(s, axis=-1)
        outs.append(w @ v)
    cat = jnp.concatenate(outs, axis=-1)
    return cat @ raw["w_proj"] + raw["b_proj"]


if __name__ == "__main__":
    key = jax.random.PRNGKey(0)
    kx, kp = jax.random.split(key)
    x_f32 = jax.random.normal(kx, (B, T, N_EMBD), jnp.float32)
    raw = init_raw_params(kp)
    params = pack_params(raw)

    x = x_f32.astype(jnp.bfloat16)
    out = multi_head_attention_forward(x, params)
    out = jax.block_until_ready(out)

    expected = ref_forward(x_f32, raw)
    assert out.shape == (B, T, N_EMBD)
    err = jnp.max(jnp.abs(out.astype(jnp.float32) - expected))
    # bf16 operands / f32 accumulation -> loosened tolerance vs. the f32 reference
    assert jnp.allclose(out.astype(jnp.float32), expected, atol=2e-2, rtol=2e-2), float(err)

    print("KERNEL_OK")
</pallas_src>

<mosaic_0001>
module attributes {stable_mosaic.version = 11 : i64} {
  func.func @_mha_fused_kernel(%arg0: i32, %arg1: memref<256x384xbf16, #tpu.memory_space<vmem>>, %arg2: memref<384x1152xbf16, #tpu.memory_space<vmem>>, %arg3: memref<384x384xbf16, #tpu.memory_space<vmem>>, %arg4: memref<1x384xf32, #tpu.memory_space<vmem>>, %arg5: memref<256x384xbf16, #tpu.memory_space<vmem>>, %arg6: memref<256x1152xbf16, #tpu.memory_space<vmem>>, %arg7: memref<256x384xbf16, #tpu.memory_space<vmem>>) attributes {dimension_semantics = [#tpu.dimension_semantics<parallel>], iteration_bounds = array<i64: 1>, scalar_prefetch = 0 : i64, scratch_operands = 2 : i64, tpu.core_type = #tpu.core_type<tc>, window_params = [{transform_indices = @transform_0, window_bounds = array<i64: 256, 384>}, {pipeline_mode = #tpu.pipeline_mode<synchronous>, transform_indices = @transform_1, window_bounds = array<i64: 384, 1152>}, {pipeline_mode = #tpu.pipeline_mode<synchronous>, transform_indices = @transform_2, window_bounds = array<i64: 384, 384>}, {pipeline_mode = #tpu.pipeline_mode<synchronous>, transform_indices = @transform_3, window_bounds = array<i64: 1, 384>}, {transform_indices = @transform_4, window_bounds = array<i64: 256, 384>}]} {
    %c0 = arith.constant 0 : index
    %c0_0 = arith.constant 0 : index
    %0 = vector.load %arg1[%c0, %c0_0] : memref<256x384xbf16, #tpu.memory_space<vmem>>, vector<256x384xbf16>
    %c0_1 = arith.constant 0 : index
    %c0_2 = arith.constant 0 : index
    %1 = vector.load %arg2[%c0_1, %c0_2] : memref<384x1152xbf16, #tpu.memory_space<vmem>>, vector<384x1152xbf16>
    %cst = arith.constant dense<0.000000e+00> : vector<256x1152xf32>
    %2 = tpu.matmul %0, %1, %cst {dimension_numbers = #tpu.dot_dimension_numbers<[1], [0], [0], [1], [0, 0, 1, 1], [], []>} : vector<256x384xbf16>, vector<384x1152xbf16>, vector<256x1152xf32> -> vector<256x1152xf32>
    %3 = arith.truncf %2 : vector<256x1152xf32> to vector<256x1152xbf16>
    %c0_3 = arith.constant 0 : index
    %c0_4 = arith.constant 0 : index
    %4 = vector.load %arg6[%c0_3, %c0_4] : memref<256x1152xbf16, #tpu.memory_space<vmem>>, vector<256x1152xbf16>
    tpu.vector_store %arg6[%c0_3, %c0_4], %3 {strides = array<i32>} : memref<256x1152xbf16, #tpu.memory_space<vmem>>, vector<256x1152xbf16>,
    %5 = tpu.iota {dimensions = array<i32: 0>} : vector<128x128xi32>
    %6 = tpu.iota {dimensions = array<i32: 1>} : vector<128x128xi32>
    %7 = arith.cmpi sle, %6, %5 : vector<128x128xi32>
    %c0_5 = arith.constant 0 : index
    %c0_6 = arith.constant 0 : index
    %8 = vector.load %arg6[%c0_5, %c0_6] : memref<256x1152xbf16, #tpu.memory_space<vmem>>, vector<128x128xbf16>
    %c0_7 = arith.constant 0 : index
    %c384 = arith.constant 384 : index
    %9 = vector.load %arg6[%c0_7, %c384] : memref<256x1152xbf16, #tpu.memory_space<vmem>>, vector<128x128xbf16>
    %c0_8 = arith.constant 0 : index
    %c768 = arith.constant 768 : index
    %10 = vector.load %arg6[%c0_8, %c768] : memref<256x1152xbf16, #tpu.memory_space<vmem>>, vector<128x128xbf16>
    %cst_9 = arith.constant dense<0.000000e+00> : vector<128x128xf32>
    %11 = tpu.matmul %8, %9, %cst_9 {dimension_numbers = #tpu.dot_dimension_numbers<[1], [1], [0], [0], [0, 0, 1, 0], [], []>} : vector<128x128xbf16>, vector<128x128xbf16>, vector<128x128xf32> -> vector<128x128xf32>
    %cst_10 = arith.constant 0xFF800000 : f32
    %12 = vector.broadcast %cst_10 : f32 to vector<128x128xf32>
    %13 = arith.select %7, %11, %12 : vector<128x128xi1>, vector<128x128xf32>
    %cst_11 = arith.constant dense<0xFF800000> : vector<128xf32>
    %14 = vector.multi_reduction <maximumf>, %13, %cst_11 [1] : vector<128x128xf32> to vector<128xf32>
    %15 = vector.shape_cast %14 : vector<128xf32> to vector<128x1xf32>
    %16 = vector.broadcast %15 : vector<128x1xf32> to vector<128x128xf32>
    %17 = arith.subf %13, %16 : vector<128x128xf32>
    %18 = math.exp %17 : vector<128x128xf32>
    %cst_12 = arith.constant dense<0.000000e+00> : vector<128xf32>
    %19 = vector.multi_reduction <add>, %18, %cst_12 [1] : vector<128x128xf32> to vector<128xf32>
    %20 = vector.shape_cast %19 : vector<128xf32> to vector<128x1xf32>
    %21 = tpu.reciprocal %20 {approx = true} : vector<128x1xf32> -> vector<128x1xf32>
    %22 = vector.broadcast %21 : vector<128x1xf32> to vector<128x128xf32>
    %23 = arith.mulf %18, %22 : vector<128x128xf32>
    %24 = arith.truncf %23 : vector<128x128xf32> to vector<128x128xbf16>
    %cst_13 = arith.constant dense<0.000000e+00> : vector<128x128xf32>
    %25 = tpu.matmul %24, %10, %cst_13 {dimension_numbers = #tpu.dot_dimension_numbers<[1], [0], [0], [1], [0, 0, 1, 1], [], []>} : vector<128x128xbf16>, vector<128x128xbf16>, vector<128x128xf32> -> vector<128x128xf32>
    %26 = arith.truncf %25 : vector<128x128xf32> to vector<128x128xbf16>
    %c0_14 = arith.constant 0 : index
    %c0_15 = arith.constant 0 : index
    %27 = vector.load %arg7[%c0_14, %c0_15] : memref<256x384xbf16, #tpu.memory_space<vmem>>, vector<128x128xbf16>
    tpu.vector_store %arg7[%c0_14, %c0_15], %26 {strides = array<i32>} : memref<256x384xbf16, #tpu.memory_space<vmem>>, vector<128x128xbf16>,
    %c0_16 = arith.constant 0 : index
    %c128 = arith.constant 128 : index
    %28 = vector.load %arg6[%c0_16, %c128] : memref<256x1152xbf16, #tpu.memory_space<vmem>>, vector<128x128xbf16>
    %c0_17 = arith.constant 0 : index
    %c512 = arith.constant 512 : index
    %29 = vector.load %arg6[%c0_17, %c512] : memref<256x1152xbf16, #tpu.memory_space<vmem>>, vector<128x128xbf16>
    %c0_18 = arith.constant 0 : index
    %c896 = arith.constant 896 : index
    %30 = vector.load %arg6[%c0_18, %c896] : memref<256x1152xbf16, #tpu.memory_space<vmem>>, vector<128x128xbf16>
    %cst_19 = arith.constant dense<0.000000e+00> : vector<128x128xf32>
    %31 = tpu.matmul %28, %29, %cst_19 {dimension_numbers = #tpu.dot_dimension_numbers<[1], [1], [0], [0], [0, 0, 1, 0], [], []>} : vector<128x128xbf16>, vector<128x128xbf16>, vector<128x128xf32> -> vector<128x128xf32>
    %cst_20 = arith.constant 0xFF800000 : f32
    %32 = vector.broadcast %cst_20 : f32 to vector<128x128xf32>
    %33 = arith.select %7, %31, %32 : vector<128x128xi1>, vector<128x128xf32>
    %cst_21 = arith.constant dense<0xFF800000> : vector<128xf32>
    %34 = vector.multi_reduction <maximumf>, %33, %cst_21 [1] : vector<128x128xf32> to vector<128xf32>
    %35 = vector.shape_cast %34 : vector<128xf32> to vector<128x1xf32>
    %36 = vector.broadcast %35 : vector<128x1xf32> to vector<128x128xf32>
    %37 = arith.subf %33, %36 : vector<128x128xf32>
    %38 = math.exp %37 : vector<128x128xf32>
    %cst_22 = arith.constant dense<0.000000e+00> : vector<128xf32>
    %39 = vector.multi_reduction <add>, %38, %cst_22 [1] : vector<128x128xf32> to vector<128xf32>
    %40 = vector.shape_cast %39 : vector<128xf32> to vector<128x1xf32>
    %41 = tpu.reciprocal %40 {approx = true} : vector<128x1xf32> -> vector<128x1xf32>
    %42 = vector.broadcast %41 : vector<128x1xf32> to vector<128x128xf32>
    %43 = arith.mulf %38, %42 : vector<128x128xf32>
    %44 = arith.truncf %43 : vector<128x128xf32> to vector<128x128xbf16>
    %cst_23 = arith.constant dense<0.000000e+00> : vector<128x128xf32>
    %45 = tpu.matmul %44, %30, %cst_23 {dimension_numbers = #tpu.dot_dimension_numbers<[1], [0], [0], [1], [0, 0, 1, 1], [], []>} : vector<128x128xbf16>, vector<128x128xbf16>, vector<128x128xf32> -> vector<128x128xf32>
    %46 = arith.truncf %45 : vector<128x128xf32> to vector<128x128xbf16>
    %c0_24 = arith.constant 0 : index
    %c128_25 = arith.constant 128 : index
    %47 = vector.load %arg7[%c0_24, %c128_25] : memref<256x384xbf16, #tpu.memory_space<vmem>>, vector<128x128xbf16>
    tpu.vector_store %arg7[%c0_24, %c128_25], %46 {strides = array<i32>} : memref<256x384xbf16, #tpu.memory_space<vmem>>, vector<128x128xbf16>,
    %c0_26 = arith.constant 0 : index
    %c256 = arith.constant 256 : index
    %48 = vector.load %arg6[%c0_26, %c256] : memref<256x1152xbf16, #tpu.memory_space<vmem>>, vector<128x128xbf16>
    %c0_27 = arith.constant 0 : index
    %c640 = arith.constant 640 : index
    %49 = vector.load %arg6[%c0_27, %c640] : memref<256x1152xbf16, #tpu.memory_space<vmem>>, vector<128x128xbf16>
    %c0_28 = arith.constant 0 : index
    %c1024 = arith.constant 1024 : index
    %50 = vector.load %arg6[%c0_28, %c1024] : memref<256x1152xbf16, #tpu.memory_space<vmem>>, vector<128x128xbf16>
    %cst_29 = arith.constant dense<0.000000e+00> : vector<128x128xf32>
    %51 = tpu.matmul %48, %49, %cst_29 {dimension_numbers = #tpu.dot_dimension_numbers<[1], [1], [0], [0], [0, 0, 1, 0], [], []>} : vector<128x128xbf16>, vector<128x128xbf16>, vector<128x128xf32> -> vector<128x128xf32>
    %cst_30 = arith.constant 0xFF800000 : f32
    %52 = vector.broadcast %cst_30 : f32 to vector<128x128xf32>
    %53 = arith.select %7, %51, %52 : vector<128x128xi1>, vector<128x128xf32>
    %cst_31 = arith.constant dense<0xFF800000> : vector<128xf32>
    %54 = vector.multi_reduction <maximumf>, %53, %cst_31 [1] : vector<128x128xf32> to vector<128xf32>
    %55 = vector.shape_cast %54 : vector<128xf32> to vector<128x1xf32>
    %56 = vector.broadcast %55 : vector<128x1xf32> to vector<128x128xf32>
    %57 = arith.subf %53, %56 : vector<128x128xf32>
    %58 = math.exp %57 : vector<128x128xf32>
    %cst_32 = arith.constant dense<0.000000e+00> : vector<128xf32>
    %59 = vector.multi_reduction <add>, %58, %cst_32 [1] : vector<128x128xf32> to vector<128xf32>
    %60 = vector.shape_cast %59 : vector<128xf32> to vector<128x1xf32>
    %61 = tpu.reciprocal %60 {approx = true} : vector<128x1xf32> -> vector<128x1xf32>
    %62 = vector.broadcast %61 : vector<128x1xf32> to vector<128x128xf32>
    %63 = arith.mulf %58, %62 : vector<128x128xf32>
    %64 = arith.truncf %63 : vector<128x128xf32> to vector<128x128xbf16>
    %cst_33 = arith.constant dense<0.000000e+00> : vector<128x128xf32>
    %65 = tpu.matmul %64, %50, %cst_33 {dimension_numbers = #tpu.dot_dimension_numbers<[1], [0], [0], [1], [0, 0, 1, 1], [], []>} : vector<128x128xbf16>, vector<128x128xbf16>, vector<128x128xf32> -> vector<128x128xf32>
    %66 = arith.truncf %65 : vector<128x128xf32> to vector<128x128xbf16>
    %c0_34 = arith.constant 0 : index
    %c256_35 = arith.constant 256 : index
    %67 = vector.load %arg7[%c0_34, %c256_35] : memref<256x384xbf16, #tpu.memory_space<vmem>>, vector<128x128xbf16>
    tpu.vector_store %arg7[%c0_34, %c256_35], %66 {strides = array<i32>} : memref<256x384xbf16, #tpu.memory_space<vmem>>, vector<128x128xbf16>,
    %c128_36 = arith.constant 128 : index
    %c0_37 = arith.constant 0 : index
    %68 = vector.load %arg6[%c128_36, %c0_37] : memref<256x1152xbf16, #tpu.memory_space<vmem>>, vector<128x128xbf16>
    %c128_38 = arith.constant 128 : index
    %c384_39 = arith.constant 384 : index
    %69 = vector.load %arg6[%c128_38, %c384_39] : memref<256x1152xbf16, #tpu.memory_space<vmem>>, vector<128x128xbf16>
    %c128_40 = arith.constant 128 : index
    %c768_41 = arith.constant 768 : index
    %70 = vector.load %arg6[%c128_40, %c768_41] : memref<256x1152xbf16, #tpu.memory_space<vmem>>, vector<128x128xbf16>
    %cst_42 = arith.constant dense<0.000000e+00> : vector<128x128xf32>
    %71 = tpu.matmul %68, %69, %cst_42 {dimension_numbers = #tpu.dot_dimension_numbers<[1], [1], [0], [0], [0, 0, 1, 0], [], []>} : vector<128x128xbf16>, vector<128x128xbf16>, vector<128x128xf32> -> vector<128x128xf32>
    %cst_43 = arith.constant 0xFF800000 : f32
    %72 = vector.broadcast %cst_43 : f32 to vector<128x128xf32>
    %73 = arith.select %7, %71, %72 : vector<128x128xi1>, vector<128x128xf32>
    %cst_44 = arith.constant dense<0xFF800000> : vector<128xf32>
    %74 = vector.multi_reduction <maximumf>, %73, %cst_44 [1] : vector<128x128xf32> to vector<128xf32>
    %75 = vector.shape_cast %74 : vector<128xf32> to vector<128x1xf32>
    %76 = vector.broadcast %75 : vector<128x1xf32> to vector<128x128xf32>
    %77 = arith.subf %73, %76 : vector<128x128xf32>
    %78 = math.exp %77 : vector<128x128xf32>
    %cst_45 = arith.constant dense<0.000000e+00> : vector<128xf32>
    %79 = vector.multi_reduction <add>, %78, %cst_45 [1] : vector<128x128xf32> to vector<128xf32>
    %80 = vector.shape_cast %79 : vector<128xf32> to vector<128x1xf32>
    %81 = tpu.reciprocal %80 {approx = true} : vector<128x1xf32> -> vector<128x1xf32>
    %82 = vector.broadcast %81 : vector<128x1xf32> to vector<128x128xf32>
    %83 = arith.mulf %78, %82 : vector<128x128xf32>
    %84 = arith.truncf %83 : vector<128x128xf32> to vector<128x128xbf16>
    %cst_46 = arith.constant dense<0.000000e+00> : vector<128x128xf32>
    %85 = tpu.matmul %84, %70, %cst_46 {dimension_numbers = #tpu.dot_dimension_numbers<[1], [0], [0], [1], [0, 0, 1, 1], [], []>} : vector<128x128xbf16>, vector<128x128xbf16>, vector<128x128xf32> -> vector<128x128xf32>
    %86 = arith.truncf %85 : vector<128x128xf32> to vector<128x128xbf16>
    %c128_47 = arith.constant 128 : index
    %c0_48 = arith.constant 0 : index
    %87 = vector.load %arg7[%c128_47, %c0_48] : memref<256x384xbf16, #tpu.memory_space<vmem>>, vector<128x128xbf16>
    tpu.vector_store %arg7[%c128_47, %c0_48], %86 {strides = array<i32>} : memref<256x384xbf16, #tpu.memory_space<vmem>>, vector<128x128xbf16>,
    %c128_49 = arith.constant 128 : index
    %c128_50 = arith.constant 128 : index
    %88 = vector.load %arg6[%c128_49, %c128_50] : memref<256x1152xbf16, #tpu.memory_space<vmem>>, vector<128x128xbf16>
    %c128_51 = arith.constant 128 : index
    %c512_52 = arith.constant 512 : index
    %89 = vector.load %arg6[%c128_51, %c512_52] : memref<256x1152xbf16, #tpu.memory_space<vmem>>, vector<128x128xbf16>
    %c128_53 = arith.constant 128 : index
    %c896_54 = arith.constant 896 : index
    %90 = vector.load %arg6[%c128_53, %c896_54] : memref<256x1152xbf16, #tpu.memory_space<vmem>>, vector<128x128xbf16>
    %cst_55 = arith.constant dense<0.000000e+00> : vector<128x128xf32>
    %91 = tpu.matmul %88, %89, %cst_55 {dimension_numbers = #tpu.dot_dimension_numbers<[1], [1], [0], [0], [0, 0, 1, 0], [], []>} : vector<128x128xbf16>, vector<128x128xbf16>, vector<128x128xf32> -> vector<128x128xf32>
    %cst_56 = arith.constant 0xFF800000 : f32
    %92 = vector.broadcast %cst_56 : f32 to vector<128x128xf32>
    %93 = arith.select %7, %91, %92 : vector<128x128xi1>, vector<128x128xf32>
    %cst_57 = arith.constant dense<0xFF800000> : vector<128xf32>
    %94 = vector.multi_reduction <maximumf>, %93, %cst_57 [1] : vector<128x128xf32> to vector<128xf32>
    %95 = vector.shape_cast %94 : vector<128xf32> to vector<128x1xf32>
    %96 = vector.broadcast %95 : vector<128x1xf32> to vector<128x128xf32>
    %97 = arith.subf %93, %96 : vector<128x128xf32>
    %98 = math.exp %97 : vector<128x128xf32>
    %cst_58 = arith.constant dense<0.000000e+00> : vector<128xf32>
    %99 = vector.multi_reduction <add>, %98, %cst_58 [1] : vector<128x128xf32> to vector<128xf32>
    %100 = vector.shape_cast %99 : vector<128xf32> to vector<128x1xf32>
    %101 = tpu.reciprocal %100 {approx = true} : vector<128x1xf32> -> vector<128x1xf32>
    %102 = vector.broadcast %101 : vector<128x1xf32> to vector<128x128xf32>
    %103 = arith.mulf %98, %102 : vector<128x128xf32>
    %104 = arith.truncf %103 : vector<128x128xf32> to vector<128x128xbf16>
    %cst_59 = arith.constant dense<0.000000e+00> : vector<128x128xf32>
    %105 = tpu.matmul %104, %90, %cst_59 {dimension_numbers = #tpu.dot_dimension_numbers<[1], [0], [0], [1], [0, 0, 1, 1], [], []>} : vector<128x128xbf16>, vector<128x128xbf16>, vector<128x128xf32> -> vector<128x128xf32>
    %106 = arith.truncf %105 : vector<128x128xf32> to vector<128x128xbf16>
    %c128_60 = arith.constant 128 : index
    %c128_61 = arith.constant 128 : index
    %107 = vector.load %arg7[%c128_60, %c128_61] : memref<256x384xbf16, #tpu.memory_space<vmem>>, vector<128x128xbf16>
    tpu.vector_store %arg7[%c128_60, %c128_61], %106 {strides = array<i32>} : memref<256x384xbf16, #tpu.memory_space<vmem>>, vector<128x128xbf16>,
    %c128_62 = arith.constant 128 : index
    %c256_63 = arith.constant 256 : index
    %108 = vector.load %arg6[%c128_62, %c256_63] : memref<256x1152xbf16, #tpu.memory_space<vmem>>, vector<128x128xbf16>
    %c128_64 = arith.constant 128 : index
    %c640_65 = arith.constant 640 : index
    %109 = vector.load %arg6[%c128_64, %c640_65] : memref<256x1152xbf16, #tpu.memory_space<vmem>>, vector<128x128xbf16>
    %c128_66 = arith.constant 128 : index
    %c1024_67 = arith.constant 1024 : index
    %110 = vector.load %arg6[%c128_66, %c1024_67] : memref<256x1152xbf16, #tpu.memory_space<vmem>>, vector<128x128xbf16>
    %cst_68 = arith.constant dense<0.000000e+00> : vector<128x128xf32>
    %111 = tpu.matmul %108, %109, %cst_68 {dimension_numbers = #tpu.dot_dimension_numbers<[1], [1], [0], [0], [0, 0, 1, 0], [], []>} : vector<128x128xbf16>, vector<128x128xbf16>, vector<128x128xf32> -> vector<128x128xf32>
    %cst_69 = arith.constant 0xFF800000 : f32
    %112 = vector.broadcast %cst_69 : f32 to vector<128x128xf32>
    %113 = arith.select %7, %111, %112 : vector<128x128xi1>, vector<128x128xf32>
    %cst_70 = arith.constant dense<0xFF800000> : vector<128xf32>
    %114 = vector.multi_reduction <maximumf>, %113, %cst_70 [1] : vector<128x128xf32> to vector<128xf32>
    %115 = vector.shape_cast %114 : vector<128xf32> to vector<128x1xf32>
    %116 = vector.broadcast %115 : vector<128x1xf32> to vector<128x128xf32>
    %117 = arith.subf %113, %116 : vector<128x128xf32>
    %118 = math.exp %117 : vector<128x128xf32>
    %cst_71 = arith.constant dense<0.000000e+00> : vector<128xf32>
    %119 = vector.multi_reduction <add>, %118, %cst_71 [1] : vector<128x128xf32> to vector<128xf32>
    %120 = vector.shape_cast %119 : vector<128xf32> to vector<128x1xf32>
    %121 = tpu.reciprocal %120 {approx = true} : vector<128x1xf32> -> vector<128x1xf32>
    %122 = vector.broadcast %121 : vector<128x1xf32> to vector<128x128xf32>
    %123 = arith.mulf %118, %122 : vector<128x128xf32>
    %124 = arith.truncf %123 : vector<128x128xf32> to vector<128x128xbf16>
    %cst_72 = arith.constant dense<0.000000e+00> : vector<128x128xf32>
    %125 = tpu.matmul %124, %110, %cst_72 {dimension_numbers = #tpu.dot_dimension_numbers<[1], [0], [0], [1], [0, 0, 1, 1], [], []>} : vector<128x128xbf16>, vector<128x128xbf16>, vector<128x128xf32> -> vector<128x128xf32>
    %126 = arith.truncf %125 : vector<128x128xf32> to vector<128x128xbf16>
    %c128_73 = arith.constant 128 : index
    %c256_74 = arith.constant 256 : index
    %127 = vector.load %arg7[%c128_73, %c256_74] : memref<256x384xbf16, #tpu.memory_space<vmem>>, vector<128x128xbf16>
    tpu.vector_store %arg7[%c128_73, %c256_74], %126 {strides = array<i32>} : memref<256x384xbf16, #tpu.memory_space<vmem>>, vector<128x128xbf16>,
    %c0_75 = arith.constant 0 : index
    %c0_76 = arith.constant 0 : index
    %128 = vector.load %arg7[%c0_75, %c0_76] : memref<256x384xbf16, #tpu.memory_space<vmem>>, vector<256x384xbf16>
    %c0_77 = arith.constant 0 : index
    %c0_78 = arith.constant 0 : index
    %129 = vector.load %arg3[%c0_77, %c0_78] : memref<384x384xbf16, #tpu.memory_space<vmem>>, vector<384x384xbf16>
    %cst_79 = arith.constant dense<0.000000e+00> : vector<256x384xf32>
    %130 = tpu.matmul %128, %129, %cst_79 {dimension_numbers = #tpu.dot_dimension_numbers<[1], [0], [0], [1], [0, 0, 1, 1], [], []>} : vector<256x384xbf16>, vector<384x384xbf16>, vector<256x384xf32> -> vector<256x384xf32>
    %c0_80 = arith.constant 0 : index
    %c0_81 = arith.constant 0 : index
    %131 = vector.load %arg4[%c0_80, %c0_81] : memref<1x384xf32, #tpu.memory_space<vmem>>, vector<1x384xf32>
    %132 = vector.broadcast %131 : vector<1x384xf32> to vector<256x384xf32>
    %133 = arith.addf %130, %132 : vector<256x384xf32>
    %134 = arith.truncf %133 : vector<256x384xf32> to vector<256x384xbf16>
    %c0_82 = arith.constant 0 : index
    %c0_83 = arith.constant 0 : index
    %135 = vector.load %arg5[%c0_82, %c0_83] : memref<256x384xbf16, #tpu.memory_space<vmem>>, vector<256x384xbf16>
    tpu.vector_store %arg5[%c0_82, %c0_83], %134 {strides = array<i32>} : memref<256x384xbf16, #tpu.memory_space<vmem>>, vector<256x384xbf16>,
    return
  }
  func.func @transform_0(%arg0: i32) -> (i32, i32) {
    %c0_i32 = arith.constant 0 : i32
    %c0_i32_0 = arith.constant 0 : i32
    return %arg0, %c0_i32 : i32, i32
  }
  func.func @transform_1(%arg0: i32) -> (i32, i32) {
    %c0_i32 = arith.constant 0 : i32
    %c0_i32_0 = arith.constant 0 : i32
    %c0_i32_1 = arith.constant 0 : i32
    return %c0_i32, %c0_i32_0 : i32, i32
  }
  func.func @transform_2(%arg0: i32) -> (i32, i32) {
    %c0_i32 = arith.constant 0 : i32
    %c0_i32_0 = arith.constant 0 : i32
    %c0_i32_1 = arith.constant 0 : i32
    return %c0_i32, %c0_i32_0 : i32, i32
  }
  func.func @transform_3(%arg0: i32) -> (i32, i32) {
    %c0_i32 = arith.constant 0 : i32
    %c0_i32_0 = arith.constant 0 : i32
    %c0_i32_1 = arith.constant 0 : i32
    return %c0_i32, %c0_i32_0 : i32, i32
  }
  func.func @transform_4(%arg0: i32) -> (i32, i32) {
    %c0_i32 = arith.constant 0 : i32
    %c0_i32_0 = arith.constant 0 : i32
    return %arg0, %c0_i32 : i32, i32
  }
}

</mosaic_0001>

<bundles_post_ra>
// kernel: tpu_custom_call.1
= control target key start
LH: loop header
LB: loop body
LE: loop exit
PB: predicated region body
PF: predicated region fallthrough
CT: control target
= control target key end

     0   :  { %9 = vsyncpa [#allocation5], 0  ;;  %s13720_s0 = inlined_call_operand.hbm [shape: bf16[256,384], index: 0, kind: input, shape index: {}]   ;;  %s13721_s1 = inlined_call_operand.hbm [shape: bf16[384,1152], index: 1, kind: input, shape index: {}]   ;;  %s13722_s2 = inlined_call_operand.hbm [shape: bf16[384,384], index: 2, kind: input, shape index: {}]   ;;  %s13723_s3 = inlined_call_operand.vmem [shape: f32[1,384], index: 3, kind: input, shape index: {}]   ;;  %s13724_s4 = inlined_call_operand.hbm [shape: bf16[256,384], index: 4, kind: output, shape index: {}]  }
   0x1   :  { %10 = vsyncpa [#allocation8], 0 }
   0x2   :  { %11 = vsyncpa [#allocation6], 0  ;;  %s10804_s15 = smov [#allocation7]   ;;  %s10710_s19 = scalar_lea.hbm %s13721_s1, 27648 }
   0x3   :  { %s29_s16 = sshll.u32 %s10804_s15, 4  ;;  %p10711_p0 = scmp.ne.s32.totalorder %s13721_s1, %s10710_s19  ;;  %s30_s16 = int_to_ptr.vmem [resolvable:$true] %s29_s16 }
   0x4   :  { %p10714_p1 = scmp.lt.u32.totalorder %s10710_s19, %s13721_s1 }
   0x6   :  { %p10716_p2 = pnand %p10714_p1, %p10711_p0 }
   0x8   :  { %10719 = shalt.err (!%p10716_p2)
}
   0x9   :  { %s10720_s24 = scalar_lea.vmem %s30_s16, 27648  ;;  %p10725_p4 = scmp.lt.s32.totalorder %s30_s16, %s30_s16 }
   0xa   :  { %p10721_p3 = scmp.ne.s32.totalorder %s30_s16, %s10720_s24  ;;  %p10726_p5 = scmp.lt.s32.totalorder %s10720_s24, %s10720_s24 }
   0xc   :  { %p10727_p6 = por %p10726_p5, %p10725_p4 }
   0xe   :  { %p10728_p7 = pnand %p10727_p6, %p10721_p3 }
  0x10   :  { %10731 = shalt.err (!%p10728_p7)
}
  0x11   :  { %s10805_s25 = smov 576   ;;  %s10806_s26 = smov 36  }
  0x12   :  { %35 = dma.hbm_to_vmem [thread:$0]  %s13721_s1, 27648, %s30_s16, [#allocation8], %s10805_s25, %s10805_s25, %s10806_s26  }
  0x13   :  { %s10807_s29 = smov [#allocation4]   ;;  %s10732_s7 = scalar_lea.hbm %s13720_s0, 6144 }
  0x14   :  { %s17_s30 = sshll.u32 %s10807_s29, 4  ;;  %p10733_p8 = scmp.ne.s32.totalorder %s13720_s0, %s10732_s7  ;;  %s18_s30 = int_to_ptr.vmem [resolvable:$true] %s17_s30 }
  0x15   :  { %p10736_p9 = scmp.lt.u32.totalorder %s10732_s7, %s13720_s0 }
  0x17   :  { %p10738_p10 = pnand %p10736_p9, %p10733_p8 }
  0x19   :  { %10741 = shalt.err (!%p10738_p10)
}
  0x1a   :  { %s10742_s12 = scalar_lea.vmem %s18_s30, 6144  ;;  %p10747_p12 = scmp.lt.s32.totalorder %s18_s30, %s18_s30 }
  0x1b   :  { %p10743_p11 = scmp.ne.s32.totalorder %s18_s30, %s10742_s12  ;;  %p10748_p13 = scmp.lt.s32.totalorder %s10742_s12, %s10742_s12 }
  0x1d   :  { %p10749_p0 = por %p10748_p13, %p10747_p12 }
  0x1f   :  { %p10750_p1 = pnand %p10749_p0, %p10743_p11 }
  0x21   :  { %10753 = shalt.err (!%p10750_p1)
}
  0x22   :  { %s10808_s1 = smov 192   ;;  %s10809_s13 = smov 12  }
  0x23   :  { %23 = dma.hbm_to_vmem [thread:$0]  %s13720_s0, 6144, %s18_s30, [#allocation5], %s10808_s1, %s10808_s1, %s10809_s13  }
  0x24   :  { %s10810_s16 = smov [#allocation9]   ;;  %s10754_s20 = scalar_lea.hbm %s13722_s2, 9216 }
  0x25   :  { %s41_s17 = sshll.u32 %s10810_s16, 4  ;;  %p10755_p2 = scmp.ne.s32.totalorder %s13722_s2, %s10754_s20  ;;  %s42_s17 = int_to_ptr.vmem [resolvable:$true] %s41_s17 }
  0x26   :  { %p10758_p3 = scmp.lt.u32.totalorder %s10754_s20, %s13722_s2 }
  0x28   :  { %p10760_p4 = pnand %p10758_p3, %p10755_p2 }
  0x2a   :  { %10763 = shalt.err (!%p10760_p4)
}
  0x2b   :  { %s10764_s25 = scalar_lea.vmem %s42_s17, 9216  ;;  %p10769_p6 = scmp.lt.s32.totalorder %s42_s17, %s42_s17 }
  0x2c   :  { %p10765_p5 = scmp.ne.s32.totalorder %s42_s17, %s10764_s25  ;;  %p10770_p7 = scmp.lt.s32.totalorder %s10764_s25, %s10764_s25 }
  0x2e   :  { %p10771_p8 = por %p10770_p7, %p10769_p6 }
  0x30   :  { %p10772_p9 = pnand %p10771_p8, %p10765_p5 }
  0x32   :  { %10775 = shalt.err (!%p10772_p9)
}
  0x33   :  { %47 = dma.hbm_to_vmem [thread:$0]  %s13722_s2, 9216, %s42_s17, [#allocation8], %s10808_s1, %s10808_s1, %s10809_s13  }
  0x34   :  { %10798 = dma.done.wait [#allocation5], 6144  }
  0x35   :  { %10799 = vsyncadd [#allocation5], 4294961152 }
  0x36   :  { %10800 = dma.done.wait [#allocation8], 36864  }
  0x37   :  { %10801 = vsyncadd [#allocation8], 4294930432  ;;  %v13725_v0 = vmov 0   ;;  %v9797_v1 = vld [vmem:[#allocation7 + $0x4] ss:$36 sps:$4 sm:$0xff]  }
  0x38   :  { %2029 = vmatprep.mubr.bf16.mxu1 %v13725_v0  ;;  %v10881_v2 = vld [vmem:[#allocation7 + $0x484] ss:$36 sps:$4 sm:$0xff]   ;;  %1724 = vmatprep.subr.bf16.mxu0 %v9797_v1  ;;  %v9803_v5 = vld [vmem:[#allocation7 + $0x4c] ss:$36 sps:$4 sm:$0xff]   ;;  %v9809_v9 = vld [vmem:[#allocation7 + $0x94] ss:$36 sps:$4 sm:$0xff]  }
  0x39   :  { %v9801_v3 = vld [vmem:[#allocation7] ss:$36 sps:$4 sm:$0xff]   ;;  %9388 = vmatprep.subr.bf16.mxu1 %v10881_v2  ;;  %v10887_v6 = vld [vmem:[#allocation7 + $0x4cc] ss:$36 sps:$4 sm:$0xff]   ;;  %v10892_v10 = vld [vmem:[#allocation7 + $0x514] ss:$36 sps:$4 sm:$0xff]  }
  0x3a   :  { %v10883_v4 = vld [vmem:[#allocation7 + $0x480] ss:$36 sps:$4 sm:$0xff]   ;;  %1725 = vmatpush1.bf16.msra.mxu0 %v9801_v3  ;;  %v9807_v7 = vld [vmem:[#allocation7 + $0x48] ss:$36 sps:$4 sm:$0xff]   ;;  %v9813_v11 = vld [vmem:[#allocation7 + $0x90] ss:$36 sps:$4 sm:$0xff]  }
  0x3b   :  { %9396 = vmatpush1.bf16.msra.mxu1 %v10883_v4  ;;  %1726 = vmatprep.subr.bf16.mxu0 %v9803_v5  ;;  %v10889_v8 = vld [vmem:[#allocation7 + $0x4c8] ss:$36 sps:$4 sm:$0xff]   ;;  %v10894_v12 = vld [vmem:[#allocation7 + $0x510] ss:$36 sps:$4 sm:$0xff]   ;;  %v9815_v13 = vld [vmem:[#allocation7 + $0xdc] ss:$36 sps:$4 sm:$0xff]  }
  0x3c   :  { %9389 = vmatprep.subr.bf16.mxu1 %v10887_v6  ;;  %v10898_v14 = vld [vmem:[#allocation7 + $0x55c] ss:$36 sps:$4 sm:$0xff]   ;;  %v9821_v17 = vld [vmem:[#allocation7 + $0x124] ss:$36 sps:$4 sm:$0xff]   ;;  %v9827_v21 = vld [vmem:[#allocation7 + $0x16c] ss:$36 sps:$4 sm:$0xff]  }
  0x3d   :  { %v9819_v15 = vld [vmem:[#allocation7 + $0xd8] ss:$36 sps:$4 sm:$0xff]   ;;  %v10904_v18 = vld [vmem:[#allocation7 + $0x5a4] ss:$36 sps:$4 sm:$0xff]   ;;  %v10910_v22 = vld [vmem:[#allocation7 + $0x5ec] ss:$36 sps:$4 sm:$0xff]  }
  0x3e   :  { %1727 = vmatpush1.bf16.msra.mxu0 %v9807_v7  ;;  %v10901_v16 = vld [vmem:[#allocation7 + $0x558] ss:$36 sps:$4 sm:$0xff]   ;;  %v9825_v19 = vld [vmem:[#allocation7 + $0x120] ss:$36 sps:$4 sm:$0xff]   ;;  %v9831_v23 = vld [vmem:[#allocation7 + $0x168] ss:$36 sps:$4 sm:$0xff]  }
  0x3f   :  { %9397 = vmatpush1.bf16.msra.mxu1 %v10889_v8  ;;  %1728 = vmatprep.subr.bf16.mxu0 %v9809_v9  ;;  %v10906_v20 = vld [vmem:[#allocation7 + $0x5a0] ss:$36 sps:$4 sm:$0xff]   ;;  %v10913_v24 = vld [vmem:[#allocation7 + $0x5e8] ss:$36 sps:$4 sm:$0xff]   ;;  %v9833_v25 = vld [vmem:[#allocation7 + $0x1b4] ss:$36 sps:$4 sm:$0xff]  }
  0x40   :  { %9390 = vmatprep.subr.bf16.mxu1 %v10892_v10  ;;  %v10916_v26 = vld [vmem:[#allocation7 + $0x634] ss:$36 sps:$4 sm:$0xff]   ;;  %v9839_v29 = vld [vmem:[#allocation7 + $0x1fc] ss:$36 sps:$4 sm:$0xff]   ;;  %v9845_v33 = vld [vmem:[#allocation7 + $0x244] ss:$36 sps:$4 sm:$0xff]  }
  0x41   :  { %v9837_v27 = vld [vmem:[#allocation7 + $0x1b0] ss:$36 sps:$4 sm:$0xff]   ;;  %v10922_v30 = vld [vmem:[#allocation7 + $0x67c] ss:$36 sps:$4 sm:$0xff]   ;;  %v9848_v36 = vld [vmem:[#allocation7 + $0x8] ss:$36 sps:$4 sm:$0xff]  }
  0x42   :  { %1729 = vmatpush1.bf16.msra.mxu0 %v9813_v11  ;;  %v10919_v28 = vld [vmem:[#allocation7 + $0x630] ss:$36 sps:$4 sm:$0xff]   ;;  %v9843_v31 = vld [vmem:[#allocation7 + $0x1f8] ss:$36 sps:$4 sm:$0xff]   ;;  %v9851_v37 = vld [vmem:[#allocation7 + $0x240] ss:$36 sps:$4 sm:$0xff]  }
  0x43   :  { %9398 = vmatpush1.bf16.msra.mxu1 %v10894_v12  ;;  %1730 = vmatprep.subr.bf16.mxu0 %v9815_v13  ;;  %v10924_v32 = vld [vmem:[#allocation7 + $0x678] ss:$36 sps:$4 sm:$0xff]   ;;  %v9850_v34 = vld [vmem:[#allocation7 + $0xc] ss:$36 sps:$4 sm:$0xff]   ;;  %v9847_v35 = vld [vmem:[#allocation4 + $0xc8] ss:$12 sps:$4 sm:$0xff]  }
  0x44   :  { %9391 = vmatprep.subr.bf16.mxu1 %v10898_v14  ;;  %v9852_v38 = vld [vmem:[#allocation7 + $0x28c] ss:$36 sps:$4 sm:$0xff]   ;;  %v9856_v39 = vld [vmem:[#allocation7 + $0x54] ss:$36 sps:$4 sm:$0xff]   ;;  %v9863_v43 = vld [vmem:[#allocation7 + $0x9c] ss:$36 sps:$4 sm:$0xff]  }
  0x45   :  { %v9854_v40 = vld [vmem:[#allocation7 + $0x50] ss:$36 sps:$4 sm:$0xff]   ;;  %v9857_v41 = vld [vmem:[#allocation7 + $0x288] ss:$36 sps:$4 sm:$0xff]   ;;  %v9861_v45 = vld [vmem:[#allocation7 + $0x98] ss:$36 sps:$4 sm:$0xff]  }
  0x46   :  { %1731 = vmatpush1.bf16.msra.mxu0 %v9819_v15  ;;  %v9858_v42 = vld [vmem:[#allocation7 + $0x2d4] ss:$36 sps:$4 sm:$0xff]   ;;  %v9860_v44 = vld [vmem:[#allocation4 + $0xe0] ss:$12 sps:$4 sm:$0xff]   ;;  %v9869_v48 = vld [vmem:[#allocation7 + $0xe4] ss:$36 sps:$4 sm:$0xff]  }
  0x47   :  { %9399 = vmatpush1.bf16.msra.mxu1 %v10901_v16  ;;  %1732 = vmatprep.subr.bf16.mxu0 %v9821_v17  ;;  %v9864_v46 = vld [vmem:[#allocation7 + $0x2d0] ss:$36 sps:$4 sm:$0xff]   ;;  %v9865_v47 = vld [vmem:[#allocation7 + $0x31c] ss:$36 sps:$4 sm:$0xff]   ;;  %v9871_v51 = vld [vmem:[#allocation7 + $0x364] ss:$36 sps:$4 sm:$0xff]  }
  0x48   :  { %9392 = vmatprep.subr.bf16.mxu1 %v10904_v18  ;;  %v9867_v49 = vld [vmem:[#allocation7 + $0xe0] ss:$36 sps:$4 sm:$0xff]   ;;  %v9870_v50 = vld [vmem:[#allocation7 + $0x318] ss:$36 sps:$4 sm:$0xff]   ;;  %v9876_v52 = vld [vmem:[#allocation7 + $0x12c] ss:$36 sps:$4 sm:$0xff]  }
  0x49   :  { %v9873_v53 = vld [vmem:[#allocation4 + $0xf8] ss:$12 sps:$4 sm:$0xff]   ;;  %v9874_v54 = vld [vmem:[#allocation7 + $0x128] ss:$36 sps:$4 sm:$0xff]   ;;  %v9880_v59 = vld [vmem:[#allocation7 + $0x170] ss:$36 sps:$4 sm:$0xff]  }
  0x4a   :  { %1733 = vmatpush1.bf16.msra.mxu0 %v9825_v19  ;;  %v9877_v55 = vld [vmem:[#allocation7 + $0x360] ss:$36 sps:$4 sm:$0xff]   ;;  %v9878_v57 = vld [vmem:[#allocation7 + $0x3ac] ss:$36 sps:$4 sm:$0xff]   ;;  %v9882_v58 = vld [vmem:[#allocation7 + $0x174] ss:$36 sps:$4 sm:$0xff]  }
  0x4b   :  { %9400 = vmatpush1.bf16.msra.mxu1 %v10906_v20  ;;  %1734 = vmatprep.subr.bf16.mxu0 %v9827_v21  ;;  %v10931_v56 = vld [vmem:[#allocation4 + $0x4] ss:$12 sps:$4 sm:$0xff]   ;;  %v9883_v60 = vld [vmem:[#allocation7 + $0x3a8] ss:$36 sps:$4 sm:$0xff]   ;;  %v9884_v61 = vld [vmem:[#allocation7 + $0x3f4] ss:$36 sps:$4 sm:$0xff]  }
  0x4c   :  { %9393 = vmatprep.subr.bf16.mxu1 %v10910_v22  ;;  %1756 = vmatprep.mubr.bf16.mxu0 %v10931_v56  ;;  %v9889_v62 = vld [vmem:[#allocation7 + $0x1bc] ss:$36 sps:$4 sm:$0xff]   ;;  %v9890_v3 = vld [vmem:[#allocation7 + $0x3f0] ss:$36 sps:$4 sm:$0xff]   ;;  %v9895_v7 = vld [vmem:[#allocation7 + $0x204] ss:$36 sps:$4 sm:$0xff]  }
  0x4d   :  { %v9886_v63 = vld [vmem:[#allocation4 + $0x110] ss:$12 sps:$4 sm:$0xff]   ;;  %v9893_v9 = vld [vmem:[#allocation7 + $0x200] ss:$36 sps:$4 sm:$0xff]   ;;  %v9900_v17 = vld [vmem:[#allocation4 + $0x128] ss:$12 sps:$4 sm:$0xff]  }
  0x4e   :  { %1735 = vmatpush1.bf16.msra.mxu0 %v9831_v23  ;;  %v9887_v1 = vld [vmem:[#allocation7 + $0x1b8] ss:$36 sps:$4 sm:$0xff]   ;;  %v9903_v13 = vld [vmem:[#allocation7 + $0x24c] ss:$36 sps:$4 sm:$0xff]  }
  0x4f   :  { %9401 = vmatpush1.bf16.msra.mxu1 %v10913_v24  ;;  %1736 = vmatprep.subr.bf16.mxu0 %v9833_v25  ;;  %v9891_v5 = vld [vmem:[#allocation7 + $0x43c] ss:$36 sps:$4 sm:$0xff]   ;;  %v9901_v19 = vld [vmem:[#allocation7 + $0x248] ss:$36 sps:$4 sm:$0xff]   ;;  %v9906_v23 = vld [vmem:[#allocation7 + $0x294] ss:$36 sps:$4 sm:$0xff]  }
  0x50   :  { %9394 = vmatprep.subr.bf16.mxu1 %v10916_v26  ;;  %v9896_v11 = vld [vmem:[#allocation7 + $0x438] ss:$36 sps:$4 sm:$0xff]   ;;  %v10936_v15 = vld [vmem:[#allocation4] ss:$12 sps:$4 sm:$0xff]   ;;  %v9904_v25 = vld [vmem:[#allocation7 + $0x290] ss:$36 sps:$4 sm:$0xff]  }
  0x51   :  { %v10938_v21 = vld [vmem:[#allocation4 + $0x1c] ss:$12 sps:$4 sm:$0xff]  }
  0x52   :  { %1737 = vmatpush1.bf16.msra.mxu0 %v9837_v27  ;;  %v9913_v27 = vld [vmem:[#allocation7 + $0x2dc] ss:$36 sps:$4 sm:$0xff]  }
  0x53   :  { %9402 = vmatpush1.bf16.msra.mxu1 %v10919_v28  ;;  %1738 = vmatprep.subr.bf16.mxu0 %v9839_v29  ;;  %v10944_v29 = vld [vmem:[#allocation4 + $0x18] ss:$12 sps:$4 sm:$0xff]  }
  0x54   :  { %9395 = vmatprep.subr.bf16.mxu1 %v10922_v30 }
  0x56   :  { %1739 = vmatpush1.bf16.msra.mxu0 %v9843_v31  ;;  %v9910_v31 = vld [vmem:[#allocation4 + $0x140] ss:$12 sps:$4 sm:$0xff]  }
  0x57   :  { %9403 = vmatpush1.bf16.msra.mxu1 %v10924_v32  ;;  %1740 = vmatprep.subr.bf16.mxu0 %v9845_v33  ;;  %v10948_v33 = vld [vmem:[#allocation4 + $0x34] ss:$12 sps:$4 sm:$0xff]  }
  0x58   :  { %2110 = vmatprep.subr.bf16.mxu1 %v9850_v34  ;;  %v9916_v34 = vld [vmem:[#allocation7 + $0x324] ss:$36 sps:$4 sm:$0xff]  }
  0x5a   :  { %2030 = vmatmul.mubr.bf16.vlgmr.msra.gmra.mrb[0].mxu1 %v9847_v35  ;;  %1741 = vmatpush1.bf16.msra.mxu0 %v9851_v37  ;;  %v9914_v35 = vld [vmem:[#allocation7 + $0x320] ss:$36 sps:$4 sm:$0xff]   ;;  %v10958_v37 = vld [vmem:[#allocation4 + $0x4c] ss:$12 sps:$4 sm:$0xff]  }
  0x5b   :  { %2111 = vmatpush1.bf16.msra.mxu1 %v9848_v36  ;;  %1742 = vmatprep.subr.bf16.mxu0 %v9852_v38  ;;  %v9920_v36 = vld [vmem:[#allocation4 + $0x158] ss:$12 sps:$4 sm:$0xff]  }
  0x5c   :  { %2112 = vmatprep.subr.bf16.mxu1 %v9856_v39  ;;  %2039 = vmatprep.mubr.bf16.mxu1 %v13725_v0  ;;  %v9926_v38 = vld [vmem:[#allocation7 + $0x3b4] ss:$36 sps:$4 sm:$0xff]  }
  0x5d   :  { %v9924_v39 = vld [vmem:[#allocation7 + $0x3b0] ss:$36 sps:$4 sm:$0xff]  }
  0x5e   :  { %1743 = vmatpush1.bf16.msra.mxu0 %v9857_v41  ;;  %v10968_v41 = vld [vmem:[#allocation4 + $0x64] ss:$12 sps:$4 sm:$0xff]  }
  0x5f   :  { %2113 = vmatpush1.bf16.msra.mxu1 %v9854_v40  ;;  %1744 = vmatprep.subr.bf16.mxu0 %v9858_v42  ;;  %v9930_v40 = vld [vmem:[#allocation4 + $0x170] ss:$12 sps:$4 sm:$0xff]   ;;  %v9936_v42 = vld [vmem:[#allocation7 + $0x444] ss:$36 sps:$4 sm:$0xff]  }
  0x60   :  { %2114 = vmatprep.subr.bf16.mxu1 %v9863_v43  ;;  %v9934_v43 = vld [vmem:[#allocation7 + $0x440] ss:$36 sps:$4 sm:$0xff]  }
  0x62   :  { %2040 = vmatmul.mubr.bf16.gmra.mrb[4].mxu1 %v9860_v44  ;;  %1745 = vmatpush1.bf16.msra.mxu0 %v9864_v46  ;;  %v10978_v44 = vld [vmem:[#allocation4 + $0x7c] ss:$12 sps:$4 sm:$0xff]   ;;  %v9942_v46 = vld [vmem:[#allocation4 + $0x78] ss:$12 sps:$4 sm:$0xff]  }
  0x63   :  { %2115 = vmatpush1.bf16.msra.mxu1 %v9861_v45  ;;  %1746 = vmatprep.subr.bf16.mxu0 %v9865_v47  ;;  %v9959_v45 = vld [vmem:[#allocation7 + $0x4d4] ss:$36 sps:$4 sm:$0xff]  }
  0x64   :  { %2116 = vmatprep.subr.bf16.mxu1 %v9869_v48  ;;  %2049 = vmatprep.mubr.bf16.mxu1 %v13725_v0  ;;  %v9943_v47 = vld [vmem:[#allocation4 + $0x94] ss:$12 sps:$4 sm:$0xff]   ;;  %v9966_v48 = vld [vmem:[#allocation7 + $0x518] ss:$36 sps:$4 sm:$0xff]  }
  0x66   :  { %1747 = vmatpush1.bf16.msra.mxu0 %v9870_v50  ;;  %v9945_v50 = vld [vmem:[#allocation4 + $0x90] ss:$12 sps:$4 sm:$0xff]  }
  0x67   :  { %2117 = vmatpush1.bf16.msra.mxu1 %v9867_v49  ;;  %1748 = vmatprep.subr.bf16.mxu0 %v9871_v51  ;;  %v9977_v49 = vld [vmem:[#allocation7 + $0x564] ss:$36 sps:$4 sm:$0xff]   ;;  %v9946_v51 = vld [vmem:[#allocation4 + $0xac] ss:$12 sps:$4 sm:$0xff]  }
  0x68   :  { %2118 = vmatprep.subr.bf16.mxu1 %v9876_v52  ;;  %v9984_v52 = vld [vmem:[#allocation7 + $0x5a8] ss:$36 sps:$4 sm:$0xff]  }
  0x6a   :  { %2050 = vmatmul.mubr.bf16.gmra.mrb[8].mxu1 %v9873_v53  ;;  %1749 = vmatpush1.bf16.msra.mxu0 %v9877_v55  ;;  %v9997_v53 = vld [vmem:[#allocation7 + $0x5f4] ss:$36 sps:$4 sm:$0xff]   ;;  %v10014_v55 = vld [vmem:[#allocation7 + $0x63c] ss:$36 sps:$4 sm:$0xff]  }
  0x6b   :  { %2119 = vmatpush1.bf16.msra.mxu1 %v9874_v54  ;;  %1750 = vmatprep.subr.bf16.mxu0 %v9878_v57  ;;  %v9951_v54 = vld [vmem:[#allocation4 + $0xa8] ss:$12 sps:$4 sm:$0xff]   ;;  %v10012_v57 = vld [vmem:[#allocation7 + $0x638] ss:$36 sps:$4 sm:$0xff]  }
  0x6c   :  { %2120 = vmatprep.subr.bf16.mxu1 %v9882_v58  ;;  %2059 = vmatprep.mubr.bf16.mxu1 %v13725_v0  ;;  %v10021_v58 = vld [vmem:[#allocation7 + $0x684] ss:$36 sps:$4 sm:$0xff]  }
  0x6e   :  { %1751 = vmatpush1.bf16.msra.mxu0 %v9883_v60  ;;  %v10048_v60 = vld [vmem:[#allocation7 + $0x1c] ss:$36 sps:$4 sm:$0xff]  }
  0x6f   :  { %2121 = vmatpush1.bf16.msra.mxu1 %v9880_v59  ;;  %1752 = vmatprep.subr.bf16.mxu0 %v9884_v61  ;;  %v10019_v59 = vld [vmem:[#allocation7 + $0x680] ss:$36 sps:$4 sm:$0xff]  }
  0x70   :  { %2122 = vmatprep.subr.bf16.mxu1 %v9889_v62  ;;  %v9954_v61 = vld [vmem:[#allocation4 + $0xc0] ss:$12 sps:$4 sm:$0xff]   ;;  %v10994_v62 = vld [vmem:[#allocation4 + $0xdc] ss:$12 sps:$4 sm:$0xff]  }
  0x72   :  { %2060 = vmatmul.mubr.bf16.gmra.mrb[12].mxu1 %v9886_v63  ;;  %1753 = vmatpush1.bf16.msra.mxu0 %v9890_v3  ;;  %v10999_v63 = vld [vmem:[#allocation4 + $0xd8] ss:$12 sps:$4 sm:$0xff]   ;;  %v11005_v3 = vld [vmem:[#allocation4 + $0xf0] ss:$12 sps:$4 sm:$0xff]  }
  0x73   :  { %2123 = vmatpush1.bf16.msra.mxu1 %v9887_v1  ;;  %1754 = vmatprep.subr.bf16.mxu0 %v9891_v5  ;;  %v11001_v1 = vld [vmem:[#allocation4 + $0xf4] ss:$12 sps:$4 sm:$0xff]   ;;  %v11007_v5 = vld [vmem:[#allocation4 + $0x10c] ss:$12 sps:$4 sm:$0xff]  }
  0x74   :  { %2124 = vmatprep.subr.bf16.mxu1 %v9895_v7  ;;  %2069 = vmatprep.mubr.bf16.mxu1 %v13725_v0  ;;  %v11011_v7 = vld [vmem:[#allocation4 + $0x108] ss:$12 sps:$4 sm:$0xff]  }
  0x76   :  { %1755 = vmatpush1.bf16.msra.mxu0 %v9896_v11  ;;  %v11017_v11 = vld [vmem:[#allocation4 + $0x120] ss:$12 sps:$4 sm:$0xff]  }
  0x77   :  { %2125 = vmatpush1.bf16.msra.mxu1 %v9893_v9  ;;  %1917 = vmatprep.subr.bf16.mxu0 %v10881_v2  ;;  %v9911_v2 = vld [vmem:[#allocation7 + $0x2d8] ss:$36 sps:$4 sm:$0xff]   ;;  %v11013_v9 = vld [vmem:[#allocation4 + $0x124] ss:$12 sps:$4 sm:$0xff]  }
  0x78   :  { %2126 = vmatprep.subr.bf16.mxu1 %v9903_v13  ;;  %v11019_v13 = vld [vmem:[#allocation4 + $0x13c] ss:$12 sps:$4 sm:$0xff]  }
  0x79   :  { %1757 = vmatmul.mubr.bf16.vlgmr.msra.gmra.mrb[0].mxu0 %v10936_v15 }
  0x7a   :  { %2070 = vmatmul.mubr.bf16.gmra.mrb[16].mxu1 %v9900_v17  ;;  %1766 = vmatprep.mubr.bf16.mxu0 %v10938_v21  ;;  %v11026_v17 = vld [vmem:[#allocation4 + $0x154] ss:$12 sps:$4 sm:$0xff]  }
  0x7b   :  { %2127 = vmatpush1.bf16.msra.mxu1 %v9901_v19  ;;  %2079 = vmatprep.mubr.bf16.mxu1 %v13725_v0  ;;  %v11032_v19 = vld [vmem:[#allocation4 + $0x150] ss:$12 sps:$4 sm:$0xff]  }
  0x7c   :  { %2128 = vmatprep.subr.bf16.mxu1 %v9906_v23  ;;  %1918 = vmatpush1.bf16.msra.mxu0 %v10883_v4  ;;  %v9923_v4 = vld [vmem:[#allocation7 + $0x36c] ss:$36 sps:$4 sm:$0xff]   ;;  %v11040_v23 = vld [vmem:[#allocation4 + $0x168] ss:$12 sps:$4 sm:$0xff]  }
  0x7d   :  { %1919 = vmatprep.subr.bf16.mxu0 %v10887_v6  ;;  %v10954_v6 = vld [vmem:[#allocation4 + $0x30] ss:$12 sps:$4 sm:$0xff]  }
  0x7f   :  { %2129 = vmatpush1.bf16.msra.mxu1 %v9904_v25  ;;  %v11046_v25 = vld [vmem:[#allocation4 + $0x8] ss:$12 sps:$4 sm:$0xff]  }
  0x80   :  { %2130 = vmatprep.subr.bf16.mxu1 %v9913_v27  ;;  %1920 = vmatpush1.bf16.msra.mxu0 %v10889_v8  ;;  %v9921_v8 = vld [vmem:[#allocation7 + $0x368] ss:$36 sps:$4 sm:$0xff]   ;;  %v9989_v27 = vld [vmem:[#allocation7 + $0x10] ss:$36 sps:$4 sm:$0xff]  }
  0x81   :  { %1767 = vmatmul.mubr.bf16.gmra.mrb[4].mxu0 %v10944_v29  ;;  %1921 = vmatprep.subr.bf16.mxu0 %v10892_v10  ;;  %v9933_v10 = vld [vmem:[#allocation7 + $0x3fc] ss:$36 sps:$4 sm:$0xff]  }
  0x82   :  { %2080 = vmatmul.mubr.bf16.gmra.mrb[20].mxu1 %v9910_v31  ;;  %1776 = vmatprep.mubr.bf16.mxu0 %v10948_v33  ;;  %v9992_v31 = vld [vmem:[#allocation7 + $0x58] ss:$36 sps:$4 sm:$0xff]  }
  0x83   :  { %2131 = vmatpush1.bf16.msra.mxu1 %v9911_v2  ;;  %2089 = vmatprep.mubr.bf16.mxu1 %v13725_v0  ;;  %v10001_v2 = vld [vmem:[#allocation7 + $0xa4] ss:$36 sps:$4 sm:$0xff]  }
  0x84   :  { %2132 = vmatprep.subr.bf16.mxu1 %v9916_v34  ;;  %1922 = vmatpush1.bf16.msra.mxu0 %v10894_v12  ;;  %v10964_v12 = vld [vmem:[#allocation4 + $0x48] ss:$12 sps:$4 sm:$0xff]   ;;  %v9999_v34 = vld [vmem:[#allocation7 + $0xa0] ss:$36 sps:$4 sm:$0xff]  }
  0x85   :  { %1923 = vmatprep.subr.bf16.mxu0 %v10898_v14  ;;  %v9931_v14 = vld [vmem:[#allocation7 + $0x3f8] ss:$36 sps:$4 sm:$0xff]  }
  0x87   :  { %2133 = vmatpush1.bf16.msra.mxu1 %v9914_v35  ;;  %v10004_v35 = vld [vmem:[#allocation7 + $0xec] ss:$36 sps:$4 sm:$0xff]  }
  0x88   :  { %2134 = vmatprep.subr.bf16.mxu1 %v9923_v4  ;;  %1924 = vmatpush1.bf16.msra.mxu0 %v10901_v16  ;;  %v9950_v16 = vld [vmem:[#allocation7 + $0x48c] ss:$36 sps:$4 sm:$0xff]  }
  0x89   :  { %1777 = vmatmul.mubr.bf16.gmra.mrb[8].mxu0 %v10954_v6  ;;  %1925 = vmatprep.subr.bf16.mxu0 %v10904_v18  ;;  %v10975_v18 = vld [vmem:[#allocation4 + $0x60] ss:$12 sps:$4 sm:$0xff]  }
  0x8a   :  { %2090 = vmatmul.mubr.bf16.gmra.mrb[24].mxu1 %v9920_v36  ;;  %1786 = vmatprep.mubr.bf16.mxu0 %v10958_v37  ;;  %v10002_v4 = vld [vmem:[#allocation7 + $0xe8] ss:$36 sps:$4 sm:$0xff]   ;;  %v11058_v36 = vld [vmem:[#allocation4 + $0x38] ss:$12 sps:$4 sm:$0xff]  }
  0x8b   :  { %2135 = vmatpush1.bf16.msra.mxu1 %v9921_v8  ;;  %2099 = vmatprep.mubr.bf16.mxu1 %v13725_v0  ;;  %13981 = vst [vmem:[#allocation14_spill] sm:$0xff] %v11058_v36  ;;  %v10006_v8 = vld [vmem:[#allocation7 + $0x130] ss:$36 sps:$4 sm:$0xff]  }
  0x8c   :  { %2136 = vmatprep.subr.bf16.mxu1 %v9926_v38  ;;  %1926 = vmatpush1.bf16.msra.mxu0 %v10906_v20  ;;  %v9948_v20 = vld [vmem:[#allocation7 + $0x488] ss:$36 sps:$4 sm:$0xff]   ;;  %v10009_v38 = vld [vmem:[#allocation7 + $0x178] ss:$36 sps:$4 sm:$0xff]  }
  0x8d   :  { %1927 = vmatprep.subr.bf16.mxu0 %v10910_v22  ;;  %v9957_v22 = vld [vmem:[#allocation7 + $0x4d0] ss:$36 sps:$4 sm:$0xff]  }
  0x8f   :  { %2137 = vmatpush1.bf16.msra.mxu1 %v9924_v39  ;;  %v10018_v39 = vld [vmem:[#allocation7 + $0x1c4] ss:$36 sps:$4 sm:$0xff]  }
  0x90   :  { %2138 = vmatprep.subr.bf16.mxu1 %v9933_v10  ;;  %1928 = vmatpush1.bf16.msra.mxu0 %v10913_v24  ;;  %v9968_v24 = vld [vmem:[#allocation7 + $0x51c] ss:$36 sps:$4 sm:$0xff]  }
  0x91   :  { %1787 = vmatmul.mubr.bf16.gmra.mrb[12].mxu0 %v10964_v12  ;;  %1929 = vmatprep.subr.bf16.mxu0 %v10916_v26  ;;  %v9991_v26 = vld [vmem:[#allocation7 + $0x14] ss:$36 sps:$4 sm:$0xff]   ;;  %v11064_v10 = vld [vmem:[#allocation4 + $0x50] ss:$12 sps:$4 sm:$0xff]  }
  0x92   :  { %2100 = vmatmul.mubr.bf16.gmra.mrb[28].mxu1 %v9930_v40  ;;  %1796 = vmatprep.mubr.bf16.mxu0 %v10968_v41  ;;  %13982 = vst [vmem:[#allocation15_spill] sm:$0xff] %v11064_v10  ;;  %v10024_v40 = vld [vmem:[#allocation7 + $0x20c] ss:$36 sps:$4 sm:$0xff]  }
  0x93   :  { %2139 = vmatpush1.bf16.msra.mxu1 %v9931_v14  ;;  %2142 = vmatprep.mubr.bf16.mxu1 %v10931_v56  ;;  %v9952_v56 = vld [vmem:[#allocation4 + $0xc4] ss:$12 sps:$4 sm:$0xff]   ;;  %v10022_v14 = vld [vmem:[#allocation7 + $0x208] ss:$36 sps:$4 sm:$0xff]  }
  0x94   :  { %2140 = vmatprep.subr.bf16.mxu1 %v9936_v42  ;;  %1930 = vmatpush1.bf16.msra.mxu0 %v10919_v28  ;;  %v9975_v28 = vld [vmem:[#allocation7 + $0x560] ss:$36 sps:$4 sm:$0xff]   ;;  %v11070_v42 = vld [vmem:[#allocation4 + $0x68] ss:$12 sps:$4 sm:$0xff]  }
  0x95   :  { %1931 = vmatprep.subr.bf16.mxu0 %v10922_v30  ;;  %v9986_v30 = vld [vmem:[#allocation7 + $0x5ac] ss:$36 sps:$4 sm:$0xff]   ;;  %13983 = vst [vmem:[#allocation16_spill] sm:$0xff] %v11070_v42 }
  0x97   :  { %2141 = vmatpush1.bf16.msra.mxu1 %v9934_v43  ;;  %v10026_v43 = vld [vmem:[#allocation7 + $0x250] ss:$36 sps:$4 sm:$0xff]  }
  0x98   :  { %2303 = vmatprep.subr.bf16.mxu1 %v9950_v16  ;;  %1932 = vmatpush1.bf16.msra.mxu0 %v10924_v32  ;;  %v9995_v32 = vld [vmem:[#allocation7 + $0x5f0] ss:$36 sps:$4 sm:$0xff]   ;;  %v10031_v16 = vld [vmem:[#allocation7 + $0x29c] ss:$36 sps:$4 sm:$0xff]  }
  0x99   :  { %1797 = vmatmul.mubr.bf16.gmra.mrb[16].mxu0 %v10975_v18  ;;  %2496 = vmatprep.subr.bf16.mxu0 %v9991_v26  ;;  %v10033_v26 = vld [vmem:[#allocation7 + $0x2e0] ss:$36 sps:$4 sm:$0xff]  }
  0x9a   :  { %2143 = vmatmul.mubr.bf16.vlgmr.msra.gmra.mrb[32].mxu1 %v10936_v15  ;;  %1806 = vmatprep.mubr.bf16.mxu0 %v10978_v44  ;;  %v11024_v15 = vld [vmem:[#allocation4 + $0x138] ss:$12 sps:$4 sm:$0xff]  }
  0x9b   :  { %2152 = vmatprep.mubr.bf16.mxu1 %v10938_v21  ;;  %2304 = vmatpush1.bf16.msra.mxu1 %v9948_v20  ;;  %v11034_v21 = vld [vmem:[#allocation4 + $0x16c] ss:$12 sps:$4 sm:$0xff]  }
  0x9c   :  { %2305 = vmatprep.subr.bf16.mxu1 %v9959_v45  ;;  %v10029_v20 = vld [vmem:[#allocation7 + $0x298] ss:$36 sps:$4 sm:$0xff]   ;;  %v10035_v45 = vld [vmem:[#allocation7 + $0x2e4] ss:$36 sps:$4 sm:$0xff]  }
  0x9f   :  { %2306 = vmatpush1.bf16.msra.mxu1 %v9957_v22  ;;  %v10056_v22 = vld [vmem:[#allocation7 + $0x60] ss:$36 sps:$4 sm:$0xff]  }
  0xa0   :  { %2307 = vmatprep.subr.bf16.mxu1 %v9968_v24  ;;  %v11076_v24 = vld [vmem:[#allocation4 + $0x80] ss:$12 sps:$4 sm:$0xff]  }
  0xa1   :  { %1807 = vmatmul.mubr.bf16.gmra.mrb[20].mxu0 %v9942_v46  ;;  %13984 = vst [vmem:[#allocation17_spill] sm:$0xff] %v11076_v24 }
  0xa2   :  { %2153 = vmatmul.mubr.bf16.gmra.mrb[36].mxu1 %v10944_v29  ;;  %1816 = vmatprep.mubr.bf16.mxu0 %v9943_v47  ;;  %v9994_v29 = vld [vmem:[#allocation7 + $0x5c] ss:$36 sps:$4 sm:$0xff]  }
  0xa3   :  { %2162 = vmatprep.mubr.bf16.mxu1 %v10948_v33  ;;  %2308 = vmatpush1.bf16.msra.mxu1 %v9966_v48  ;;  %v11052_v33 = vld [vmem:[#allocation4 + $0x20] ss:$12 sps:$4 sm:$0xff]  }
  0xa4   :  { %2309 = vmatprep.subr.bf16.mxu1 %v9977_v49  ;;  %v10059_v48 = vld [vmem:[#allocation7 + $0xa8] ss:$36 sps:$4 sm:$0xff]  }
  0xa5   :  { %v10036_v49 = vld [vmem:[#allocation7 + $0x328] ss:$36 sps:$4 sm:$0xff]  }
  0xa7   :  { %2310 = vmatpush1.bf16.msra.mxu1 %v9975_v28  ;;  %v10064_v28 = vld [vmem:[#allocation7 + $0xf4] ss:$36 sps:$4 sm:$0xff]  }
  0xa8   :  { %2311 = vmatprep.subr.bf16.mxu1 %v9986_v30  ;;  %v10042_v30 = vld [vmem:[#allocation7 + $0x374] ss:$36 sps:$4 sm:$0xff]  }
  0xa9   :  { %1817 = vmatmul.mubr.bf16.gmra.mrb[24].mxu0 %v9945_v50 }
  0xaa   :  { %2163 = vmatmul.mubr.bf16.gmra.mrb[40].mxu1 %v10954_v6  ;;  %1826 = vmatprep.mubr.bf16.mxu0 %v9946_v51  ;;  %v10008_v6 = vld [vmem:[#allocation7 + $0x134] ss:$36 sps:$4 sm:$0xff]  }
  0xab   :  { %2172 = vmatprep.mubr.bf16.mxu1 %v10958_v37  ;;  %2312 = vmatpush1.bf16.msra.mxu1 %v9984_v52  ;;  %v10011_v37 = vld [vmem:[#allocation7 + $0x17c] ss:$36 sps:$4 sm:$0xff]  }
  0xac   :  { %2313 = vmatprep.subr.bf16.mxu1 %v9997_v53  ;;  %v10045_v52 = vld [vmem:[#allocation7 + $0x3bc] ss:$36 sps:$4 sm:$0xff]   ;;  %v10062_v53 = vld [vmem:[#allocation7 + $0xf0] ss:$36 sps:$4 sm:$0xff]  }
  0xaf   :  { %2314 = vmatpush1.bf16.msra.mxu1 %v9995_v32  ;;  %v10067_v32 = vld [vmem:[#allocation7 + $0x13c] ss:$36 sps:$4 sm:$0xff]  }
  0xb0   :  { %2315 = vmatprep.subr.bf16.mxu1 %v10014_v55  ;;  %v10052_v55 = vld [vmem:[#allocation7 + $0x404] ss:$36 sps:$4 sm:$0xff]  }
  0xb1   :  { %1827 = vmatmul.mubr.bf16.gmra.mrb[28].mxu0 %v9951_v54 }
  0xb2   :  { %2173 = vmatmul.mubr.bf16.gmra.mrb[44].mxu1 %v10964_v12  ;;  %1836 = vmatprep.mubr.bf16.mxu0 %v9952_v56  ;;  %v10016_v12 = vld [vmem:[#allocation7 + $0x1c0] ss:$36 sps:$4 sm:$0xff]  }
  0xb3   :  { %2182 = vmatprep.mubr.bf16.mxu1 %v10968_v41  ;;  %2316 = vmatpush1.bf16.msra.mxu1 %v10012_v57  ;;  %v10028_v41 = vld [vmem:[#allocation7 + $0x254] ss:$36 sps:$4 sm:$0xff]  }
  0xb4   :  { %2317 = vmatprep.subr.bf16.mxu1 %v10021_v58  ;;  %v10065_v57 = vld [vmem:[#allocation7 + $0x138] ss:$36 sps:$4 sm:$0xff]  }
  0xb5   :  { %v11090_v58 = vld [vmem:[#allocation4 + $0xb0] ss:$12 sps:$4 sm:$0xff]  }
  0xb6   :  { %13986 = vst [vmem:[#allocation19_spill] sm:$0xff] %v11090_v58 }
  0xb7   :  { %2318 = vmatpush1.bf16.msra.mxu1 %v10019_v59 }
  0xb8   :  { %2882 = vmatprep.subr.bf16.mxu1 %v10048_v60  ;;  %v10050_v60 = vld [vmem:[#allocation7 + $0x400] ss:$36 sps:$4 sm:$0xff]  }
  0xb9   :  { %1837 = vmatmul.mubr.bf16.gmra.mrb[32].mxu0 %v9954_v61 }
  0xba   :  { %2183 = vmatmul.mubr.bf16.gmra.mrb[48].mxu1 %v10975_v18  ;;  %1846 = vmatprep.mubr.bf16.mxu0 %v10994_v62  ;;  %v10046_v18 = vld [vmem:[#allocation7 + $0x18] ss:$36 sps:$4 sm:$0xff]  }
  0xbb   :  { %2192 = vmatprep.mubr.bf16.mxu1 %v10978_v44  ;;  %v10058_v44 = vld [vmem:[#allocation7 + $0x64] ss:$36 sps:$4 sm:$0xff]  }
  0xc1   :  { %1847 = vmatmul.mubr.bf16.gmra.mrb[36].mxu0 %v10999_v63 }
  0xc2   :  { %2193 = vmatmul.mubr.bf16.gmra.mrb[52].mxu1 %v9942_v46  ;;  %1856 = vmatprep.mubr.bf16.mxu0 %v11001_v1  ;;  %v10038_v46 = vld [vmem:[#allocation7 + $0x32c] ss:$36 sps:$4 sm:$0xff]  }
  0xc3   :  { %2202 = vmatprep.mubr.bf16.mxu1 %v9943_v47  ;;  %v10061_v47 = vld [vmem:[#allocation7 + $0xac] ss:$36 sps:$4 sm:$0xff]  }
  0xc9   :  { %1857 = vmatmul.mubr.bf16.gmra.mrb[40].mxu0 %v11005_v3 }
  0xca   :  { %2203 = vmatmul.mubr.bf16.gmra.mrb[56].mxu1 %v9945_v50  ;;  %1866 = vmatprep.mubr.bf16.mxu0 %v11007_v5  ;;  %v11082_v50 = vld [vmem:[#allocation4 + $0x98] ss:$12 sps:$4 sm:$0xff]  }
  0xcb   :  { %2212 = vmatprep.mubr.bf16.mxu1 %v9946_v51  ;;  %13985 = vst [vmem:[#allocation18_spill] sm:$0xff] %v11082_v50  ;;  %v10040_v51 = vld [vmem:[#allocation7 + $0x370] ss:$36 sps:$4 sm:$0xff]  }
  0xd1   :  { %1867 = vmatmul.mubr.bf16.gmra.mrb[44].mxu0 %v11011_v7 }
  0xd2   :  { %2213 = vmatmul.mubr.bf16.gmra.mrb[60].mxu1 %v9951_v54  ;;  %1876 = vmatprep.mubr.bf16.mxu0 %v11013_v9  ;;  %v10043_v54 = vld [vmem:[#allocation7 + $0x3b8] ss:$36 sps:$4 sm:$0xff]  }
  0xd3   :  { %2222 = vmatprep.mubr.bf16.mxu1 %v9952_v56 }
  0xd9   :  { %1877 = vmatmul.mubr.bf16.gmra.mrb[48].mxu0 %v11017_v11 }
  0xda   :  { %2223 = vmatmul.mubr.bf16.gmra.mrb[64].mxu1 %v9954_v61  ;;  %1886 = vmatprep.mubr.bf16.mxu0 %v11019_v13 }
  0xdb   :  { %2232 = vmatprep.mubr.bf16.mxu1 %v10994_v62 }
  0xe1   :  { %1887 = vmatmul.mubr.bf16.gmra.mrb[52].mxu0 %v11024_v15 }
  0xe2   :  { %2233 = vmatmul.mubr.bf16.gmra.mrb[68].mxu1 %v10999_v63  ;;  %1896 = vmatprep.mubr.bf16.mxu0 %v11026_v17 }
  0xe3   :  { %2242 = vmatprep.mubr.bf16.mxu1 %v11001_v1 }
  0xe9   :  { %1897 = vmatmul.mubr.bf16.gmra.mrb[56].mxu0 %v11032_v19 }
  0xea   :  { %2243 = vmatmul.mubr.bf16.gmra.mrb[72].mxu1 %v11005_v3  ;;  %1906 = vmatprep.mubr.bf16.mxu0 %v11034_v21 }
  0xeb   :  { %2252 = vmatprep.mubr.bf16.mxu1 %v11007_v5 }
  0xf1   :  { %1907 = vmatmul.mubr.bf16.gmra.mrb[60].mxu0 %v11040_v23 }
  0xf2   :  { %2253 = vmatmul.mubr.bf16.gmra.mrb[76].mxu1 %v11011_v7  ;;  %1949 = vmatprep.mubr.bf16.mxu0 %v13725_v0 }
  0xf3   :  { %2262 = vmatprep.mubr.bf16.mxu1 %v11013_v9 }
  0xf9   :  { %1950 = vmatmul.mubr.bf16.vlgmr.msra.gmra.mrb[0].mxu0 %v11046_v25 }
  0xfa   :  { %2263 = vmatmul.mubr.bf16.gmra.mrb[80].mxu1 %v11017_v11  ;;  %2497 = vmatpush1.bf16.msra.mxu0 %v9989_v27  ;;  %v10055_v27 = vld [vmem:[#allocation7 + $0x44c] ss:$36 sps:$4 sm:$0xff]  }
  0xfb   :  { %1959 = vmatprep.mubr.bf16.mxu0 %v13725_v0  ;;  %2498 = vmatprep.subr.bf16.mxu0 %v9994_v29 }
  0xfc   :  { %2272 = vmatprep.mubr.bf16.mxu1 %v11019_v13 }
  0xfe   :  { %2499 = vmatpush1.bf16.msra.mxu0 %v9992_v31  ;;  %v10070_v31 = vld [vmem:[#allocation7 + $0x184] ss:$36 sps:$4 sm:$0xff]  }
  0xff   :  { %2500 = vmatprep.subr.bf16.mxu0 %v10001_v2  ;;  %v10068_v2 = vld [vmem:[#allocation7 + $0x180] ss:$36 sps:$4 sm:$0xff]  }
 0x101   :  { %1960 = vmatmul.mubr.bf16.gmra.mrb[4].mxu0 %v11052_v33 }
 0x102   :  { %2273 = vmatmul.mubr.bf16.gmra.mrb[84].mxu1 %v11024_v15  ;;  %2501 = vmatpush1.bf16.msra.mxu0 %v9999_v34  ;;  %v10053_v34 = vld [vmem:[#allocation7 + $0x448] ss:$36 sps:$4 sm:$0xff]  }
 0x103   :  { %1969 = vmatprep.mubr.bf16.mxu0 %v13725_v0  ;;  %2502 = vmatprep.subr.bf16.mxu0 %v10004_v35  ;;  %v10073_v35 = vld [vmem:[#allocation7 + $0x1cc] ss:$36 sps:$4 sm:$0xff]  }
 0x104   :  { %2282 = vmatprep.mubr.bf16.mxu1 %v11026_v17 }
 0x106   :  { %2503 = vmatpush1.bf16.msra.mxu0 %v10002_v4  ;;  %v11101_v4 = vld [vmem:[#allocation4 + $0x4] ss:$12 sps:$4 sm:$0xff]  }
 0x107   :  { %2504 = vmatprep.subr.bf16.mxu0 %v10008_v6  ;;  %v10085_v6 = vld [vmem:[#allocation7 + $0x494] ss:$36 sps:$4 sm:$0xff]  }
 0x109   :  { %1970 = vmatmul.mubr.bf16.gmra.mrb[8].mxu0 %v11058_v36 }
 0x10a   :  { %2283 = vmatmul.mubr.bf16.gmra.mrb[88].mxu1 %v11032_v19  ;;  %2505 = vmatpush1.bf16.msra.mxu0 %v10006_v8 }
 0x10b   :  { %1979 = vmatprep.mubr.bf16.mxu0 %v13725_v0  ;;  %2506 = vmatprep.subr.bf16.mxu0 %v10011_v37 }
 0x10c   :  { %2292 = vmatprep.mubr.bf16.mxu1 %v11034_v21 }
 0x10e   :  { %2507 = vmatpush1.bf16.msra.mxu0 %v10009_v38 }
 0x10f   :  { %2508 = vmatprep.subr.bf16.mxu0 %v10018_v39 }
 0x111   :  { %1980 = vmatmul.mubr.bf16.gmra.mrb[12].mxu0 %v11064_v10 }
 0x112   :  { %2293 = vmatmul.mubr.bf16.gmra.mrb[92].mxu1 %v11040_v23  ;;  %2509 = vmatpush1.bf16.msra.mxu0 %v10016_v12  ;;  %v10071_v12 = vld [vmem:[#allocation7 + $0x1c8] ss:$36 sps:$4 sm:$0xff]  }
 0x113   :  { %1989 = vmatprep.mubr.bf16.mxu0 %v13725_v0  ;;  %2510 = vmatprep.subr.bf16.mxu0 %v10024_v40  ;;  %v10083_v40 = vld [vmem:[#allocation7 + $0x490] ss:$36 sps:$4 sm:$0xff]  }
 0x114   :  { %2335 = vmatprep.mubr.bf16.mxu1 %v13725_v0 }
 0x116   :  { %2511 = vmatpush1.bf16.msra.mxu0 %v10022_v14  ;;  %v10076_v14 = vld [vmem:[#allocation7 + $0x214] ss:$36 sps:$4 sm:$0xff]  }
 0x117   :  { %2512 = vmatprep.subr.bf16.mxu0 %v10028_v41  ;;  %v10094_v41 = vld [vmem:[#allocation7 + $0x4dc] ss:$36 sps:$4 sm:$0xff]  }
 0x119   :  { %1990 = vmatmul.mubr.bf16.gmra.mrb[16].mxu0 %v11070_v42 }
 0x11a   :  { %2336 = vmatmul.mubr.bf16.vlgmr.msra.gmra.mrb[32].mxu1 %v11046_v25  ;;  %2513 = vmatpush1.bf16.msra.mxu0 %v10026_v43  ;;  %v11113_v43 = vld [vmem:[#allocation4] ss:$12 sps:$4 sm:$0xff]  }
 0x11b   :  { %1999 = vmatprep.mubr.bf16.mxu0 %v13725_v0  ;;  %2514 = vmatprep.subr.bf16.mxu0 %v10031_v16  ;;  %v11117_v16 = vld [vmem:[#allocation4 + $0x1c] ss:$12 sps:$4 sm:$0xff]  }
 0x11c   :  { %2345 = vmatprep.mubr.bf16.mxu1 %v13725_v0  ;;  %2883 = vmatpush1.bf16.msra.mxu1 %v10046_v18  ;;  %v10074_v18 = vld [vmem:[#allocation7 + $0x210] ss:$36 sps:$4 sm:$0xff]  }
 0x11d   :  { %2884 = vmatprep.subr.bf16.mxu1 %v10058_v44  ;;  %v10092_v44 = vld [vmem:[#allocation7 + $0x4d8] ss:$36 sps:$4 sm:$0xff]  }
 0x11e   :  { %2515 = vmatpush1.bf16.msra.mxu0 %v10029_v20 }
 0x11f   :  { %2516 = vmatprep.subr.bf16.mxu0 %v10035_v45  ;;  %v10079_v45 = vld [vmem:[#allocation7 + $0x25c] ss:$36 sps:$4 sm:$0xff]  }
 0x120   :  { %2885 = vmatpush1.bf16.msra.mxu1 %v10056_v22  ;;  %v10109_v22 = vld [vmem:[#allocation7 + $0x524] ss:$36 sps:$4 sm:$0xff]  }
 0x121   :  { %2000 = vmatmul.mubr.bf16.gmra.mrb[20].mxu0 %v11076_v24  ;;  %2886 = vmatprep.subr.bf16.mxu1 %v10061_v47 }
 0x122   :  { %2346 = vmatmul.mubr.bf16.gmra.mrb[36].mxu1 %v11052_v33  ;;  %2517 = vmatpush1.bf16.msra.mxu0 %v10033_v26 }
 0x123   :  { %2009 = vmatprep.mubr.bf16.mxu0 %v13725_v0  ;;  %2518 = vmatprep.subr.bf16.mxu0 %v10038_v46 }
 0x124   :  { %2355 = vmatprep.mubr.bf16.mxu1 %v13725_v0  ;;  %2887 = vmatpush1.bf16.msra.mxu1 %v10059_v48  ;;  %v10077_v48 = vld [vmem:[#allocation7 + $0x258] ss:$36 sps:$4 sm:$0xff]  }
 0x125   :  { %2888 = vmatprep.subr.bf16.mxu1 %v10064_v28  ;;  %v10082_v28 = vld [vmem:[#allocation7 + $0x2a4] ss:$36 sps:$4 sm:$0xff]  }
 0x126   :  { %2519 = vmatpush1.bf16.msra.mxu0 %v10036_v49  ;;  %v10107_v49 = vld [vmem:[#allocation7 + $0x520] ss:$36 sps:$4 sm:$0xff]  }
 0x127   :  { %2520 = vmatprep.subr.bf16.mxu0 %v10042_v30  ;;  %v10112_v30 = vld [vmem:[#allocation7 + $0x56c] ss:$36 sps:$4 sm:$0xff]  }
 0x128   :  { %2889 = vmatpush1.bf16.msra.mxu1 %v10062_v53  ;;  %v10080_v53 = vld [vmem:[#allocation7 + $0x2a0] ss:$36 sps:$4 sm:$0xff]  }
 0x129   :  { %2010 = vmatmul.mubr.bf16.gmra.mrb[24].mxu0 %v11082_v50  ;;  %2890 = vmatprep.subr.bf16.mxu1 %v10067_v32  ;;  %v10110_v32 = vld [vmem:[#allocation7 + $0x568] ss:$36 sps:$4 sm:$0xff]  }
 0x12a   :  { %2356 = vmatmul.mubr.bf16.gmra.mrb[40].mxu1 %v11058_v36  ;;  %2521 = vmatpush1.bf16.msra.mxu0 %v10040_v51  ;;  %v11129_v51 = vld [vmem:[#allocation4 + $0x18] ss:$12 sps:$4 sm:$0xff]  }
 0x12b   :  { %2019 = vmatprep.mubr.bf16.mxu0 %v13725_v0  ;;  %2522 = vmatprep.subr.bf16.mxu0 %v10045_v52  ;;  %v11133_v52 = vld [vmem:[#allocation4 + $0x34] ss:$12 sps:$4 sm:$0xff]   ;;  %v11212_v36 = vld [vmem:[#allocation4 + $0xf8] ss:$12 sps:$4 sm:$0xff]  }
 0x12c   :  { %2365 = vmatprep.mubr.bf16.mxu1 %v13725_v0  ;;  %2891 = vmatpush1.bf16.msra.mxu1 %v10065_v57  ;;  %v10115_v57 = vld [vmem:[#allocation7 + $0x5b4] ss:$36 sps:$4 sm:$0xff]   ;;  %13994 = vst [vmem:[#allocation26_spill] sm:$0xff] %v11212_v36 }
 0x12d   :  { %v11088_v56 = vpop.f32.mrb[0].mxu1  ;;  %2892 = vmatprep.subr.bf16.mxu1 %v10070_v31 }
 0x12e   :  { %v11092_v59 = vpop.f32.mrb[1].mxu1  ;;  %2523 = vmatpush1.bf16.msra.mxu0 %v10043_v54 }
 0x12f   :  { %v11094_v61 = vpop.f32.mrb[2].mxu1  ;;  %2524 = vmatprep.subr.bf16.mxu0 %v10052_v55  ;;  %v10088_v55 = vld [vmem:[#allocation7 + $0x2ec] ss:$36 sps:$4 sm:$0xff]  }
 0x130   :  { %v11096_v29 = vpop.f32.mrb[3].mxu1  ;;  %2893 = vmatpush1.bf16.msra.mxu1 %v10068_v2  ;;  %v10086_v2 = vld [vmem:[#allocation7 + $0x2e8] ss:$36 sps:$4 sm:$0xff]  }
 0x131   :  { %2020 = vmatmul.mubr.bf16.gmra.mrb[28].mxu0 %v11090_v58  ;;  %2894 = vmatprep.subr.bf16.mxu1 %v10073_v35  ;;  %v10091_v35 = vld [vmem:[#allocation7 + $0x334] ss:$36 sps:$4 sm:$0xff]  }
 0x132   :  { %2366 = vmatmul.mubr.bf16.gmra.mrb[44].mxu1 %v11064_v10  ;;  %2525 = vmatpush1.bf16.msra.mxu0 %v10050_v60 }
 0x133   :  { %2375 = vmatprep.mubr.bf16.mxu1 %v13725_v0  ;;  %2526 = vmatprep.subr.bf16.mxu0 %v10055_v27 }
 0x134   :  { %2528 = vmatprep.mubr.bf16.mxu0 %v11101_v4  ;;  %2895 = vmatpush1.bf16.msra.mxu1 %v10071_v12  ;;  %v11145_v12 = vld [vmem:[#allocation4 + $0x30] ss:$12 sps:$4 sm:$0xff]  }
 0x135   :  { %v11104_v8 = vpop.f32.mrb[4].mxu1  ;;  %2896 = vmatprep.subr.bf16.mxu1 %v10076_v14  ;;  %v10089_v14 = vld [vmem:[#allocation7 + $0x330] ss:$36 sps:$4 sm:$0xff]  }
 0x136   :  { %v11106_v37 = vpop.f32.mrb[5].mxu1  ;;  %2527 = vmatpush1.bf16.msra.mxu0 %v10053_v34  ;;  %v10113_v34 = vld [vmem:[#allocation7 + $0x5b0] ss:$36 sps:$4 sm:$0xff]  }
 0x137   :  { %v11108_v38 = vpop.f32.mrb[6].mxu1  ;;  %2689 = vmatprep.subr.bf16.mxu0 %v10085_v6  ;;  %v10118_v6 = vld [vmem:[#allocation7 + $0x5fc] ss:$36 sps:$4 sm:$0xff]  }
 0x138   :  { %v11110_v39 = vpop.f32.mrb[7].mxu1  ;;  %2897 = vmatpush1.bf16.msra.mxu1 %v10074_v18 }
 0x139   :  { %2529 = vmatmul.mubr.bf16.vlgmr.msra.gmra.mrb[64].mxu0 %v11113_v43  ;;  %2898 = vmatprep.subr.bf16.mxu1 %v10079_v45  ;;  %v10124_v45 = vld [vmem:[#allocation7 + $0x644] ss:$36 sps:$4 sm:$0xff]  }
 0x13a   :  { %2376 = vmatmul.mubr.bf16.gmra.mrb[48].mxu1 %v11070_v42  ;;  %2538 = vmatprep.mubr.bf16.mxu0 %v11117_v16  ;;  %v11197_v42 = vld [vmem:[#allocation4 + $0x78] ss:$12 sps:$4 sm:$0xff]  }
 0x13b   :  { %2385 = vmatprep.mubr.bf16.mxu1 %v13725_v0  ;;  %2690 = vmatpush1.bf16.msra.mxu0 %v10083_v40  ;;  %v11149_v40 = vld [vmem:[#allocation4 + $0x4c] ss:$12 sps:$4 sm:$0xff]   ;;  %13990 = vst [vmem:[#allocation22_spill] sm:$0xff] %v11197_v42 }
 0x13c   :  { %2691 = vmatprep.subr.bf16.mxu0 %v10094_v41  ;;  %2899 = vmatpush1.bf16.msra.mxu1 %v10077_v48  ;;  %v10116_v41 = vld [vmem:[#allocation7 + $0x5f8] ss:$36 sps:$4 sm:$0xff]  }
 0x13d   :  { %v11120_v20 = vpop.f32.mrb[8].mxu1  ;;  %2900 = vmatprep.subr.bf16.mxu1 %v10082_v28  ;;  %v10095_v28 = vld [vmem:[#allocation7 + $0x378] ss:$36 sps:$4 sm:$0xff]  }
 0x13e   :  { %v11122_v26 = vpop.f32.mrb[9].mxu1 }
 0x13f   :  { %v11124_v46 = vpop.f32.mrb[10].mxu1  ;;  %2692 = vmatpush1.bf16.msra.mxu0 %v10092_v44  ;;  %v10097_v44 = vld [vmem:[#allocation7 + $0x37c] ss:$36 sps:$4 sm:$0xff]  }
 0x140   :  { %v11126_v47 = vpop.f32.mrb[11].mxu1  ;;  %2693 = vmatprep.subr.bf16.mxu0 %v10109_v22  ;;  %2901 = vmatpush1.bf16.msra.mxu1 %v10080_v53  ;;  %v10100_v53 = vld [vmem:[#allocation7 + $0x3c4] ss:$36 sps:$4 sm:$0xff]  }
 0x141   :  { %2539 = vmatmul.mubr.bf16.gmra.mrb[68].mxu0 %v11129_v51  ;;  %2902 = vmatprep.subr.bf16.mxu1 %v10088_v55  ;;  %v11161_v55 = vld [vmem:[#allocation4 + $0x48] ss:$12 sps:$4 sm:$0xff]  }
 0x142   :  { %2386 = vmatmul.mubr.bf16.gmra.mrb[52].mxu1 %v11076_v24  ;;  %2548 = vmatprep.mubr.bf16.mxu0 %v11133_v52  ;;  %v11194_v24 = vld [vmem:[#allocation4 + $0xe0] ss:$12 sps:$4 sm:$0xff]  }
 0x143   :  { %2395 = vmatprep.mubr.bf16.mxu1 %v13725_v0  ;;  %2694 = vmatpush1.bf16.msra.mxu0 %v10107_v49  ;;  %13989 = vst [vmem:[#allocation21_spill] sm:$0xff] %v11194_v24 }
 0x144   :  { %2695 = vmatprep.subr.bf16.mxu0 %v10112_v30  ;;  %2903 = vmatpush1.bf16.msra.mxu1 %v10086_v2  ;;  %v10122_v30 = vld [vmem:[#allocation7 + $0x640] ss:$36 sps:$4 sm:$0xff]  }
 0x145   :  { %v11136_v54 = vpop.f32.mrb[12].mxu1  ;;  %2904 = vmatprep.subr.bf16.mxu1 %v10091_v35  ;;  %v10098_v2 = vld [vmem:[#allocation7 + $0x3c0] ss:$36 sps:$4 sm:$0xff]  }
 0x146   :  { %v11138_v60 = vpop.f32.mrb[13].mxu1 }
 0x147   :  { %v11140_v27 = vpop.f32.mrb[14].mxu1  ;;  %2696 = vmatpush1.bf16.msra.mxu0 %v10110_v32  ;;  %v10127_v32 = vld [vmem:[#allocation7 + $0x68c] ss:$36 sps:$4 sm:$0xff]  }
 0x148   :  { %v11142_v31 = vpop.f32.mrb[15].mxu1  ;;  %2697 = vmatprep.subr.bf16.mxu0 %v10115_v57  ;;  %2905 = vmatpush1.bf16.msra.mxu1 %v10089_v14  ;;  %v11165_v57 = vld [vmem:[#allocation4 + $0x64] ss:$12 sps:$4 sm:$0xff]  }
 0x149   :  { %2549 = vmatmul.mubr.bf16.gmra.mrb[72].mxu0 %v11145_v12  ;;  %2906 = vmatprep.subr.bf16.mxu1 %v10097_v44 }
 0x14a   :  { %2396 = vmatmul.mubr.bf16.gmra.mrb[56].mxu1 %v11082_v50  ;;  %2558 = vmatprep.mubr.bf16.mxu0 %v11149_v40 }
 0x14b   :  { %2405 = vmatprep.mubr.bf16.mxu1 %v13725_v0  ;;  %2698 = vmatpush1.bf16.msra.mxu0 %v10113_v34  ;;  %v10125_v34 = vld [vmem:[#allocation7 + $0x688] ss:$36 sps:$4 sm:$0xff]  }
 0x14c   :  { %2699 = vmatprep.subr.bf16.mxu0 %v10118_v6  ;;  %2907 = vmatpush1.bf16.msra.mxu1 %v10095_v28  ;;  %v10103_v6 = vld [vmem:[#allocation7 + $0x40c] ss:$36 sps:$4 sm:$0xff]   ;;  %v11176_v28 = vld [vmem:[#allocation4 + $0xc8] ss:$12 sps:$4 sm:$0xff]  }
 0x14d   :  { %v11152_v18 = vpop.f32.mrb[16].mxu1  ;;  %2908 = vmatprep.subr.bf16.mxu1 %v10100_v53  ;;  %13987 = vst [vmem:[#allocation20_spill] sm:$0xff] %v11176_v28  ;;  %v13988_v53 = vmov 0  }
 0x14e   :  { %v11154_v22 = vpop.f32.mrb[17].mxu1 }
 0x14f   :  { %v11156_v48 = vpop.f32.mrb[18].mxu1  ;;  %2700 = vmatpush1.bf16.msra.mxu0 %v10116_v41 }
 0x150   :  { %v11158_v49 = vpop.f32.mrb[19].mxu1  ;;  %2701 = vmatprep.subr.bf16.mxu0 %v10124_v45  ;;  %2909 = vmatpush1.bf16.msra.mxu1 %v10098_v2  ;;  %v10101_v45 = vld [vmem:[#allocation7 + $0x408] ss:$36 sps:$4 sm:$0xff]   ;;  %v10104_v2 = vld [vmem:[#allocation7 + $0x450] ss:$36 sps:$4 sm:$0xff]  }
 0x151   :  { %2559 = vmatmul.mubr.bf16.gmra.mrb[76].mxu0 %v11161_v55  ;;  %2910 = vmatprep.subr.bf16.mxu1 %v10103_v6 }
 0x152   :  { %2406 = vmatmul.mubr.bf16.gmra.mrb[60].mxu1 %v11090_v58  ;;  %2568 = vmatprep.mubr.bf16.mxu0 %v11165_v57 }
 0x153   :  { %2415 = vmatprep.mubr.bf16.mxu1 %v13725_v0  ;;  %2702 = vmatpush1.bf16.msra.mxu0 %v10122_v30  ;;  %v10106_v0 = vld [vmem:[#allocation7 + $0x454] ss:$36 sps:$4 sm:$0xff]   ;;  %v11179_v30 = vld [vmem:[#allocation4 + $0x60] ss:$12 sps:$4 sm:$0xff]  }
 0x154   :  { %2703 = vmatprep.subr.bf16.mxu0 %v10127_v32  ;;  %v11183_v32 = vld [vmem:[#allocation4 + $0x7c] ss:$12 sps:$4 sm:$0xff]   ;;  %2911 = vmatpush1.bf16.msra.mxu1 %v10101_v45 }
 0x155   :  { %v11168_v35 = vpop.f32.mrb[20].mxu1  ;;  %2912 = vmatprep.subr.bf16.mxu1 %v10106_v0  ;;  %v11201_v0 = vld [vmem:[#allocation4 + $0x94] ss:$12 sps:$4 sm:$0xff]  }
 0x156   :  { %v11170_v14 = vpop.f32.mrb[21].mxu1 }
 0x157   :  { %v11172_v41 = vpop.f32.mrb[22].mxu1  ;;  %2704 = vmatpush1.bf16.msra.mxu0 %v10125_v34  ;;  %v10121_v34 = vld [vmem:[#allocation7 + $0x49c] ss:$36 sps:$4 sm:$0xff]  }
 0x158   :  { %v11174_v44 = vpop.f32.mrb[23].mxu1  ;;  %2913 = vmatpush1.bf16.msra.mxu1 %v10104_v2 }
 0x159   :  { %2569 = vmatmul.mubr.bf16.gmra.mrb[80].mxu0 %v11179_v30  ;;  %3075 = vmatprep.subr.bf16.mxu1 %v10121_v34 }
 0x15a   :  { %2416 = vmatmul.mubr.bf16.gmra.mrb[64].mxu1 %v11176_v28  ;;  %2578 = vmatprep.mubr.bf16.mxu0 %v11183_v32 }
 0x15b   :  { %2425 = vmatprep.mubr.bf16.mxu1 %v13988_v53 }
 0x15d   :  { %v11186_v58 = vpop.f32.mrb[24].mxu1 }
 0x15e   :  { %v11188_v6 = vpop.f32.mrb[25].mxu1 }
 0x15f   :  { %v11190_v50 = vpop.f32.mrb[26].mxu1 }
 0x160   :  { %v11192_v28 = vpop.f32.mrb[27].mxu1 }
 0x161   :  { %2579 = vmatmul.mubr.bf16.gmra.mrb[84].mxu0 %v11197_v42  ;;  %v11219_v42 = vld [vmem:[#allocation4 + $0xac] ss:$12 sps:$4 sm:$0xff]  }
 0x162   :  { %2426 = vmatmul.mubr.bf16.gmra.mrb[68].mxu1 %v11194_v24  ;;  %2588 = vmatprep.mubr.bf16.mxu0 %v11201_v0  ;;  %v11215_v24 = vld [vmem:[#allocation4 + $0x90] ss:$12 sps:$4 sm:$0xff]  }
 0x163   :  { %2435 = vmatprep.mubr.bf16.mxu1 %v13988_v53  ;;  %13995 = vst [vmem:[#allocation27_spill] sm:$0xff] %v11215_v24 }
 0x165   :  { %v11204_v45 = vpop.f32.mrb[28].mxu1 }
 0x166   :  { %13991 = vst [vmem:[#allocation23_spill] sm:$0xff] %v11204_v45  ;;  %v11206_v10 = vpop.f32.mrb[29].mxu1  ;;  %v11222_v45 = vld [vmem:[#allocation4 + $0x110] ss:$12 sps:$4 sm:$0xff]  }
 0x167   :  { %v11208_v2 = vpop.f32.mrb[30].mxu1  ;;  %13996 = vst [vmem:[#allocation28_spill] sm:$0xff] %v11222_v45 }
 0x168   :  { %13992 = vst [vmem:[#allocation24_spill] sm:$0xff] %v11208_v2  ;;  %v11210_v34 = vpop.f32.mrb[31].mxu1  ;;  %v11225_v2 = vld [vmem:[#allocation4 + $0xa8] ss:$12 sps:$4 sm:$0xff]  }
 0x169   :  { %13993 = vst [vmem:[#allocation25_spill] sm:$0xff] %v11210_v34  ;;  %2589 = vmatmul.mubr.bf16.gmra.mrb[88].mxu0 %v11215_v24  ;;  %13997 = vst [vmem:[#allocation29_spill] sm:$0xff] %v11225_v2  ;;  %v11232_v24 = vld [vmem:[#allocation4 + $0x128] ss:$12 sps:$4 sm:$0xff]   ;;  %v11235_v34 = vld [vmem:[#allocation4 + $0xc0] ss:$12 sps:$4 sm:$0xff]  }
 0x16a   :  { %2436 = vmatmul.mubr.bf16.gmra.mrb[72].mxu1 %v11212_v36  ;;  %2598 = vmatprep.mubr.bf16.mxu0 %v11219_v42  ;;  %v11229_v36 = vld [vmem:[#allocation4 + $0xc4] ss:$12 sps:$4 sm:$0xff]   ;;  %13999 = vst [vmem:[#allocation31_spill] sm:$0xff] %v11232_v24  ;;  %14000 = vst [vmem:[#allocation32_spill] sm:$0xff] %v11235_v34 }
 0x16b   :  { %2445 = vmatprep.mubr.bf16.mxu1 %v13988_v53  ;;  %13998 = vst [vmem:[#allocation30_spill] sm:$0xff] %v11229_v36 }
 0x171   :  { %2599 = vmatmul.mubr.bf16.gmra.mrb[92].mxu0 %v11225_v2 }
 0x172   :  { %2446 = vmatmul.mubr.bf16.gmra.mrb[76].mxu1 %v11222_v45  ;;  %2608 = vmatprep.mubr.bf16.mxu0 %v11229_v36  ;;  %v11240_v45 = vld [vmem:[#allocation4 + $0x140] ss:$12 sps:$4 sm:$0xff]   ;;  %v11246_v36 = vld [vmem:[#allocation4 + $0x158] ss:$12 sps:$4 sm:$0xff]  }
 0x173   :  { %2455 = vmatprep.mubr.bf16.mxu1 %v13988_v53  ;;  %14001 = vst [vmem:[#allocation33_spill] sm:$0xff] %v11240_v45  ;;  %14002 = vst [vmem:[#allocation34_spill] sm:$0xff] %v11246_v36 }
 0x179   :  { %2609 = vmatmul.mubr.bf16.gmra.mrb[96].mxu0 %v11235_v34 }
 0x17a   :  { %2456 = vmatmul.mubr.bf16.gmra.mrb[80].mxu1 %v11232_v24  ;;  %2618 = vmatprep.mubr.bf16.mxu0 %v10994_v62 }
 0x17b   :  { %2465 = vmatprep.mubr.bf16.mxu1 %v13988_v53 }
 0x181   :  { %2619 = vmatmul.mubr.bf16.gmra.mrb[100].mxu0 %v10999_v63 }
 0x182   :  { %2466 = vmatmul.mubr.bf16.gmra.mrb[84].mxu1 %v11240_v45  ;;  %2628 = vmatprep.mubr.bf16.mxu0 %v11001_v1 }
 0x183   :  { %2475 = vmatprep.mubr.bf16.mxu1 %v13988_v53 }
 0x189   :  { %2629 = vmatmul.mubr.bf16.gmra.mrb[104].mxu0 %v11005_v3  ;;  %v11264_v3 = vld [vmem:[#allocation4 + $0x170] ss:$12 sps:$4 sm:$0xff]  }
 0x18a   :  { %2476 = vmatmul.mubr.bf16.gmra.mrb[88].mxu1 %v11246_v36  ;;  %2638 = vmatprep.mubr.bf16.mxu0 %v11007_v5  ;;  %v10146_v5 = vld [vmem:[#allocation7 + $0x260] ss:$36 sps:$4 sm:$0xff]  }
 0x18b   :  { %2485 = vmatprep.mubr.bf16.mxu1 %v13988_v53  ;;  %8444 = vmatprep.subr.bf16.mxu0 %v10146_v5 }
 0x18c   :  { %v1838_v62 = vpop.f32.mrb[32].mxu0 }
 0x18d   :  { %v11253_v24 = vadd.f32 %v11088_v56, %v1838_v62  ;;  %v1840_v45 = vpop.f32.mrb[33].mxu0 }
 0x18e   :  { %v11256_v63 = vadd.f32 %v11092_v59, %v1840_v45  ;;  %v1842_v34 = vpop.f32.mrb[34].mxu0 }
 0x18f   :  { %14003 = vst [vmem:[#allocation35_spill] sm:$0xff] %v11253_v24  ;;  %v11259_v1 = vadd.f32 %v11094_v61, %v1842_v34  ;;  %v1844_v2 = vpop.f32.mrb[35].mxu0  ;;  %v10130_v24 = vld [vmem:[#allocation7 + $0x4e4] ss:$36 sps:$4 sm:$0xff]  }
 0x190   :  { %14004 = vst [vmem:[#allocation36_spill] sm:$0xff] %v11256_v63  ;;  %v11262_v36 = vadd.f32 %v11096_v29, %v1844_v2 }
 0x191   :  { %14005 = vst [vmem:[#allocation37_spill] sm:$0xff] %v11259_v1  ;;  %2639 = vmatmul.mubr.bf16.gmra.mrb[108].mxu0 %v11011_v7  ;;  %v14075_v1 = vld [vmem:[#allocation20_spill] sm:$0xff] }
 0x192   :  { %14006 = vst [vmem:[#allocation38_spill] sm:$0xff] %v11262_v36  ;;  %2486 = vmatmul.mubr.bf16.gmra.mrb[92].mxu1 %v11264_v3  ;;  %2648 = vmatprep.mubr.bf16.mxu0 %v11013_v9  ;;  %v10119_v9 = vld [vmem:[#allocation7 + $0x498] ss:$36 sps:$4 sm:$0xff]   ;;  %v11516_v36 = vld [vmem:[#allocation4 + $0x124] ss:$12 sps:$4 sm:$0xff]  }
 0x193   :  { %2914 = vmatprep.mubr.bf16.mxu1 %v11101_v4 }
 0x194   :  { %v1848_v61 = vpop.f32.mrb[36].mxu0 }
 0x195   :  { %v11275_v29 = vadd.f32 %v11104_v8, %v1848_v61  ;;  %v1850_v45 = vpop.f32.mrb[37].mxu0 }
 0x196   :  { %v11278_v2 = vadd.f32 %v11106_v37, %v1850_v45  ;;  %v1852_v7 = vpop.f32.mrb[38].mxu0  ;;  %v10128_v37 = vld [vmem:[#allocation7 + $0x4e0] ss:$36 sps:$4 sm:$0xff]  }
 0x197   :  { %14007 = vst [vmem:[#allocation39_spill] sm:$0xff] %v11275_v29  ;;  %v11281_v34 = vadd.f32 %v11108_v38, %v1852_v7  ;;  %v1854_v62 = vpop.f32.mrb[39].mxu0 }
 0x198   :  { %14008 = vst [vmem:[#allocation40_spill] sm:$0xff] %v11278_v2  ;;  %v11284_v56 = vadd.f32 %v11110_v39, %v1854_v62  ;;  %v10133_v39 = vld [vmem:[#allocation7 + $0x52c] ss:$36 sps:$4 sm:$0xff]  }
 0x199   :  { %14009 = vst [vmem:[#allocation41_spill] sm:$0xff] %v11281_v34  ;;  %2649 = vmatmul.mubr.bf16.gmra.mrb[112].mxu0 %v11017_v11 }
 0x19a   :  { %14010 = vst [vmem:[#allocation42_spill] sm:$0xff] %v11284_v56  ;;  %2915 = vmatmul.mubr.bf16.vlgmr.msra.gmra.mrb[96].mxu1 %v11113_v43  ;;  %2658 = vmatprep.mubr.bf16.mxu0 %v11019_v13  ;;  %v10131_v13 = vld [vmem:[#allocation7 + $0x528] ss:$36 sps:$4 sm:$0xff]  }
 0x19b   :  { %2924 = vmatprep.mubr.bf16.mxu1 %v11117_v16  ;;  %3076 = vmatpush1.bf16.msra.mxu1 %v10119_v9 }
 0x19c   :  { %v1858_v38 = vpop.f32.mrb[40].mxu0  ;;  %3077 = vmatprep.subr.bf16.mxu1 %v10130_v24  ;;  %v10136_v24 = vld [vmem:[#allocation7 + $0x574] ss:$36 sps:$4 sm:$0xff]  }
 0x19d   :  { %v11295_v61 = vadd.f32 %v11120_v20, %v1858_v38  ;;  %v1860_v45 = vpop.f32.mrb[41].mxu0  ;;  %v10172_v20 = vld [vmem:[#allocation7 + $0x218] ss:$36 sps:$4 sm:$0xff]  }
 0x19e   :  { %v11298_v11 = vadd.f32 %v11122_v26, %v1860_v45  ;;  %v1862_v7 = vpop.f32.mrb[42].mxu0  ;;  %v10157_v26 = vld [vmem:[#allocation7 + $0xb0] ss:$36 sps:$4 sm:$0xff]  }
 0x19f   :  { %14011 = vst [vmem:[#allocation43_spill] sm:$0xff] %v11295_v61  ;;  %v11301_v62 = vadd.f32 %v11124_v46, %v1862_v7  ;;  %v1864_v8 = vpop.f32.mrb[43].mxu0  ;;  %3078 = vmatpush1.bf16.msra.mxu1 %v10128_v37  ;;  %v10134_v46 = vld [vmem:[#allocation7 + $0x570] ss:$36 sps:$4 sm:$0xff]   ;;  %v10137_v7 = vld [vmem:[#allocation7 + $0x5b8] ss:$36 sps:$4 sm:$0xff]  }
 0x1a0   :  { %14012 = vst [vmem:[#allocation44_spill] sm:$0xff] %v11298_v11  ;;  %v11304_v9 = vadd.f32 %v11126_v47, %v1864_v8  ;;  %3079 = vmatprep.subr.bf16.mxu1 %v10133_v39  ;;  %v10139_v8 = vld [vmem:[#allocation7 + $0x5bc] ss:$36 sps:$4 sm:$0xff]  }
 0x1a1   :  { %14013 = vst [vmem:[#allocation45_spill] sm:$0xff] %v11301_v62  ;;  %2659 = vmatmul.mubr.bf16.gmra.mrb[116].mxu0 %v11024_v15  ;;  %v11484_v11 = vld [vmem:[#allocation4 + $0xf0] ss:$12 sps:$4 sm:$0xff]  }
 0x1a2   :  { %14014 = vst [vmem:[#allocation46_spill] sm:$0xff] %v11304_v9  ;;  %2925 = vmatmul.mubr.bf16.gmra.mrb[100].mxu1 %v11129_v51  ;;  %2668 = vmatprep.mubr.bf16.mxu0 %v11026_v17  ;;  %v11488_v9 = vld [vmem:[#allocation4 + $0x10c] ss:$12 sps:$4 sm:$0xff]  }
 0x1a3   :  { %2934 = vmatprep.mubr.bf16.mxu1 %v11133_v52  ;;  %3080 = vmatpush1.bf16.msra.mxu1 %v10131_v13 }
 0x1a4   :  { %v1868_v47 = vpop.f32.mrb[44].mxu0  ;;  %3081 = vmatprep.subr.bf16.mxu1 %v10136_v24  ;;  %v10142_v24 = vld [vmem:[#allocation7 + $0x604] ss:$36 sps:$4 sm:$0xff]  }
 0x1a5   :  { %v11315_v37 = vadd.f32 %v11136_v54, %v1868_v47  ;;  %v1870_v15 = vpop.f32.mrb[45].mxu0  ;;  %v14045_v54 = vld [vmem:[#allocation30_spill] sm:$0xff] }
 0x1a6   :  { %v11318_v38 = vadd.f32 %v11138_v60, %v1870_v15  ;;  %v1872_v39 = vpop.f32.mrb[46].mxu0  ;;  %v10147_v60 = vld [vmem:[#allocation7 + $0x20] ss:$36 sps:$4 sm:$0xff]  }
 0x1a7   :  { %14015 = vst [vmem:[#allocation47_spill] sm:$0xff] %v11315_v37  ;;  %v11321_v17 = vadd.f32 %v11140_v27, %v1872_v39  ;;  %v1874_v45 = vpop.f32.mrb[47].mxu0  ;;  %3082 = vmatpush1.bf16.msra.mxu1 %v10134_v46  ;;  %v10140_v27 = vld [vmem:[#allocation7 + $0x600] ss:$36 sps:$4 sm:$0xff]   ;;  %v10145_v46 = vld [vmem:[#allocation7 + $0x64c] ss:$36 sps:$4 sm:$0xff]  }
 0x1a8   :  { %14016 = vst [vmem:[#allocation48_spill] sm:$0xff] %v11318_v38  ;;  %v11324_v13 = vadd.f32 %v11142_v31, %v1874_v45  ;;  %3083 = vmatprep.subr.bf16.mxu1 %v10139_v8  ;;  %v10143_v45 = vld [vmem:[#allocation7 + $0x648] ss:$36 sps:$4 sm:$0xff]  }
 0x1a9   :  { %14017 = vst [vmem:[#allocation49_spill] sm:$0xff] %v11321_v17  ;;  %2669 = vmatmul.mubr.bf16.gmra.mrb[120].mxu0 %v11032_v19  ;;  %v11544_v37 = vld [vmem:[#allocation4 + $0x13c] ss:$12 sps:$4 sm:$0xff]  }
 0x1aa   :  { %14018 = vst [vmem:[#allocation50_spill] sm:$0xff] %v11324_v13  ;;  %2935 = vmatmul.mubr.bf16.gmra.mrb[104].mxu1 %v11145_v12  ;;  %2678 = vmatprep.mubr.bf16.mxu0 %v11034_v21  ;;  %v14061_v13 = vld [vmem:[#allocation18_spill] sm:$0xff] }
 0x1ab   :  { %2944 = vmatprep.mubr.bf16.mxu1 %v11149_v40  ;;  %3084 = vmatpush1.bf16.msra.mxu1 %v10137_v7 }
 0x1ac   :  { %v1878_v31 = vpop.f32.mrb[48].mxu0  ;;  %3085 = vmatprep.subr.bf16.mxu1 %v10142_v24  ;;  %v10150_v24 = vld [vmem:[#allocation7 + $0x694] ss:$36 sps:$4 sm:$0xff]  }
 0x1ad   :  { %v11335_v47 = vadd.f32 %v11152_v18, %v1878_v31  ;;  %v1880_v8 = vpop.f32.mrb[49].mxu0  ;;  %v14040_v18 = vld [vmem:[#allocation27_spill] sm:$0xff] }
 0x1ae   :  { %v11338_v19 = vadd.f32 %v11154_v22, %v1880_v8  ;;  %v1882_v15 = vpop.f32.mrb[50].mxu0 }
 0x1af   :  { %14019 = vst [vmem:[#allocation51_spill] sm:$0xff] %v11335_v47  ;;  %v11341_v21 = vadd.f32 %v11156_v48, %v1882_v15  ;;  %v1884_v39 = vpop.f32.mrb[51].mxu0  ;;  %3086 = vmatpush1.bf16.msra.mxu1 %v10140_v27  ;;  %v10148_v48 = vld [vmem:[#allocation7 + $0x690] ss:$36 sps:$4 sm:$0xff]   ;;  %v11354_v27 = vld [vmem:[#allocation7 + $0x4a0] ss:$36 sps:$4 sm:$0xff]  }
 0x1b0   :  { %14020 = vst [vmem:[#allocation52_spill] sm:$0xff] %v11338_v19  ;;  %v11344_v7 = vadd.f32 %v11158_v49, %v1884_v39  ;;  %3087 = vmatprep.subr.bf16.mxu1 %v10145_v46  ;;  %v11512_v47 = vld [vmem:[#allocation4 + $0x108] ss:$12 sps:$4 sm:$0xff]  }
 0x1b1   :  { %14021 = vst [vmem:[#allocation53_spill] sm:$0xff] %v11341_v21  ;;  %2679 = vmatmul.mubr.bf16.gmra.mrb[124].mxu0 %v11040_v23 }
 0x1b2   :  { %14022 = vst [vmem:[#allocation54_spill] sm:$0xff] %v11344_v7  ;;  %2945 = vmatmul.mubr.bf16.gmra.mrb[108].mxu1 %v11161_v55  ;;  %2721 = vmatprep.mubr.bf16.mxu0 %v13988_v53 }
 0x1b3   :  { %2954 = vmatprep.mubr.bf16.mxu1 %v11165_v57  ;;  %3088 = vmatpush1.bf16.msra.mxu1 %v10143_v45 }
 0x1b4   :  { %v1888_v49 = vpop.f32.mrb[52].mxu0  ;;  %3089 = vmatprep.subr.bf16.mxu1 %v10150_v24  ;;  %v10153_v24 = vld [vmem:[#allocation7 + $0x2a8] ss:$36 sps:$4 sm:$0xff]  }
 0x1b5   :  { %v11357_v23 = vadd.f32 %v11168_v35, %v1888_v49  ;;  %v1890_v31 = vpop.f32.mrb[53].mxu0  ;;  %v10163_v35 = vld [vmem:[#allocation7 + $0x140] ss:$36 sps:$4 sm:$0xff]  }
 0x1b6   :  { %v11360_v46 = vadd.f32 %v11170_v14, %v1890_v31  ;;  %v1892_v8 = vpop.f32.mrb[54].mxu0  ;;  %v14035_v14 = vld [vmem:[#allocation24_spill] sm:$0xff] }
 0x1b7   :  { %14023 = vst [vmem:[#allocation55_spill] sm:$0xff] %v11357_v23  ;;  %v11363_v15 = vadd.f32 %v11172_v41, %v1892_v8  ;;  %v1894_v39 = vpop.f32.mrb[55].mxu0  ;;  %3090 = vmatpush1.bf16.msra.mxu1 %v10148_v48  ;;  %v10154_v41 = vld [vmem:[#allocation7 + $0x68] ss:$36 sps:$4 sm:$0xff]   ;;  %v10156_v48 = vld [vmem:[#allocation7 + $0x2f0] ss:$36 sps:$4 sm:$0xff]  }
 0x1b8   :  { %14024 = vst [vmem:[#allocation56_spill] sm:$0xff] %v11360_v46  ;;  %v11366_v45 = vadd.f32 %v11174_v44, %v1894_v39  ;;  %8908 = vmatprep.subr.bf16.mxu1 %v11354_v27  ;;  %v11464_v46 = vld [vmem:[#allocation4 + $0xd8] ss:$12 sps:$4 sm:$0xff]  }
 0x1b9   :  { %14025 = vst [vmem:[#allocation57_spill] sm:$0xff] %v11363_v15  ;;  %2722 = vmatmul.mubr.bf16.vlgmr.msra.gmra.mrb[64].mxu0 %v11046_v25  ;;  %v14068_v15 = vld [vmem:[#allocation19_spill] sm:$0xff] }
 0x1ba   :  { %14026 = vst [vmem:[#allocation58_spill] sm:$0xff] %v11366_v45  ;;  %2955 = vmatmul.mubr.bf16.gmra.mrb[112].mxu1 %v11179_v30  ;;  %2731 = vmatprep.mubr.bf16.mxu0 %v13988_v53  ;;  %v11468_v45 = vld [vmem:[#allocation4 + $0xf4] ss:$12 sps:$4 sm:$0xff]  }
 0x1bb   :  { %2964 = vmatprep.mubr.bf16.mxu1 %v11183_v32  ;;  %8445 = vmatpush3.bf16.msra.mxu0 %v10147_v60 }
 0x1bc   :  { %v1898_v44 = vpop.f32.mrb[56].mxu0  ;;  %8446 = vmatprep.subr.bf16.mxu0 %v10153_v24  ;;  %v10159_v24 = vld [vmem:[#allocation7 + $0x338] ss:$36 sps:$4 sm:$0xff]  }
 0x1bd   :  { %v11378_v49 = vadd.f32 %v11186_v58, %v1898_v44  ;;  %v1900_v31 = vpop.f32.mrb[57].mxu0  ;;  %v14031_v58 = vld [vmem:[#allocation22_spill] sm:$0xff]  ;;  %v14032_v44 = vld [vmem:[#allocation23_spill] sm:$0xff] }
 0x1be   :  { %v11381_v25 = vadd.f32 %v11188_v6, %v1900_v31  ;;  %v1902_v8 = vpop.f32.mrb[58].mxu0 }
 0x1bf   :  { %14027 = vst [vmem:[#allocation59_spill] sm:$0xff] %v11378_v49  ;;  %v11384_v39 = vadd.f32 %v11190_v50, %v1902_v8  ;;  %v1904_v22 = vpop.f32.mrb[59].mxu0  ;;  %8447 = vmatpush3.bf16.msra.mxu0 %v10154_v41  ;;  %v10160_v41 = vld [vmem:[#allocation7 + $0xf8] ss:$36 sps:$4 sm:$0xff]  }
 0x1c0   :  { %14028 = vst [vmem:[#allocation60_spill] sm:$0xff] %v11381_v25  ;;  %v11387_v60 = vadd.f32 %v11192_v28, %v1904_v22  ;;  %8448 = vmatprep.subr.bf16.mxu0 %v10156_v48  ;;  %v10162_v22 = vld [vmem:[#allocation7 + $0x380] ss:$36 sps:$4 sm:$0xff]   ;;  %v14037_v50 = vld [vmem:[#allocation25_spill] sm:$0xff] }
 0x1c1   :  { %14029 = vst [vmem:[#allocation61_spill] sm:$0xff] %v11384_v39  ;;  %2732 = vmatmul.mubr.bf16.gmra.mrb[68].mxu0 %v11052_v33 }
 0x1c2   :  { %14030 = vst [vmem:[#allocation62_spill] sm:$0xff] %v11387_v60  ;;  %2965 = vmatmul.mubr.bf16.gmra.mrb[116].mxu1 %v14031_v58  ;;  %2741 = vmatprep.mubr.bf16.mxu0 %v13988_v53  ;;  %v14056_v60 = vld [vmem:[#allocation17_spill] sm:$0xff] }
 0x1c3   :  { %2974 = vmatprep.mubr.bf16.mxu1 %v11201_v0  ;;  %8449 = vmatpush3.bf16.msra.mxu0 %v10157_v26 }
 0x1c4   :  { %v1908_v28 = vpop.f32.mrb[60].mxu0  ;;  %8450 = vmatprep.subr.bf16.mxu0 %v10159_v24  ;;  %v10165_v24 = vld [vmem:[#allocation7 + $0x3c8] ss:$36 sps:$4 sm:$0xff]  }
 0x1c5   :  { %v11398_v48 = vadd.f32 %v14032_v44, %v1908_v28  ;;  %v1910_v33 = vpop.f32.mrb[61].mxu0  ;;  %v14039_v44 = vld [vmem:[#allocation14_spill] sm:$0xff]  ;;  %v14043_v28 = vld [vmem:[#allocation15_spill] sm:$0xff] }
 0x1c6   :  { %v11401_v31 = vadd.f32 %v11206_v10, %v1910_v33  ;;  %v1912_v8 = vpop.f32.mrb[62].mxu0 }
 0x1c7   :  { %14033 = vst [vmem:[#allocation22_spill] sm:$0xff] %v11398_v48  ;;  %v11404_v59 = vadd.f32 %v14035_v14, %v1912_v8  ;;  %v1914_v6 = vpop.f32.mrb[63].mxu0  ;;  %8451 = vmatpush3.bf16.msra.mxu0 %v10160_v41  ;;  %v10166_v14 = vld [vmem:[#allocation7 + $0x188] ss:$36 sps:$4 sm:$0xff]  }
 0x1c8   :  { %14034 = vst [vmem:[#allocation23_spill] sm:$0xff] %v11401_v31  ;;  %v11407_v26 = vadd.f32 %v14037_v50, %v1914_v6  ;;  %8452 = vmatprep.subr.bf16.mxu0 %v10162_v22  ;;  %v10168_v50 = vld [vmem:[#allocation7 + $0x410] ss:$36 sps:$4 sm:$0xff]  }
 0x1c9   :  { %14036 = vst [vmem:[#allocation24_spill] sm:$0xff] %v11404_v59  ;;  %2742 = vmatmul.mubr.bf16.gmra.mrb[72].mxu0 %v14039_v44  ;;  %v10169_v44 = vld [vmem:[#allocation7 + $0x1d0] ss:$36 sps:$4 sm:$0xff]  }
 0x1ca   :  { %14038 = vst [vmem:[#allocation25_spill] sm:$0xff] %v11407_v26  ;;  %2975 = vmatmul.mubr.bf16.gmra.mrb[120].mxu1 %v14040_v18  ;;  %2751 = vmatprep.mubr.bf16.mxu0 %v13988_v53  ;;  %v14050_v31 = vld [vmem:[#allocation16_spill] sm:$0xff] }
 0x1cb   :  { %2984 = vmatprep.mubr.bf16.mxu1 %v11219_v42  ;;  %8453 = vmatpush3.bf16.msra.mxu0 %v10163_v35  ;;  %v10171_v35 = vld [vmem:[#allocation7 + $0x458] ss:$36 sps:$4 sm:$0xff]  }
 0x1cc   :  { %v11417_v6 = vpop.f32.mrb[0].mxu0  ;;  %8454 = vmatprep.subr.bf16.mxu0 %v10165_v24  ;;  %v14044_v24 = vld [vmem:[#allocation29_spill] sm:$0xff] }
 0x1cd   :  { %14041 = vst [vmem:[#allocation14_spill] sm:$0xff] %v11417_v6  ;;  %v11419_v41 = vpop.f32.mrb[1].mxu0 }
 0x1ce   :  { %v11421_v22 = vpop.f32.mrb[2].mxu0 }
 0x1cf   :  { %14042 = vst [vmem:[#allocation27_spill] sm:$0xff] %v11421_v22  ;;  %v11425_v8 = vpop.f32.mrb[3].mxu0  ;;  %8455 = vmatpush3.bf16.msra.mxu0 %v10166_v14  ;;  %v11655_v22 = vld [vmem:[#allocation4 + $0x38] ss:$12 sps:$4 sm:$0xff]  }
 0x1d0   :  { %8456 = vmatprep.subr.bf16.mxu0 %v10168_v50 }
 0x1d1   :  { %2752 = vmatmul.mubr.bf16.gmra.mrb[76].mxu0 %v14043_v28 }
 0x1d2   :  { %2985 = vmatmul.mubr.bf16.gmra.mrb[124].mxu1 %v14044_v24  ;;  %2761 = vmatprep.mubr.bf16.mxu0 %v13988_v53 }
 0x1d3   :  { %2994 = vmatprep.mubr.bf16.mxu1 %v14045_v54  ;;  %8457 = vmatpush3.bf16.msra.mxu0 %v10169_v44  ;;  %v14051_v44 = vld [vmem:[#allocation32_spill] sm:$0xff] }
 0x1d4   :  { %v11433_v5 = vpop.f32.mrb[4].mxu0  ;;  %8458 = vmatprep.subr.bf16.mxu0 %v10171_v35  ;;  %v11448_v35 = vld [vmem:[#allocation4 + $0xdc] ss:$12 sps:$4 sm:$0xff]  }
 0x1d5   :  { %14046 = vst [vmem:[#allocation15_spill] sm:$0xff] %v11433_v5  ;;  %v11435_v14 = vpop.f32.mrb[5].mxu0 }
 0x1d6   :  { %14047 = vst [vmem:[#allocation29_spill] sm:$0xff] %v11435_v14  ;;  %v11437_v33 = vpop.f32.mrb[6].mxu0 }
 0x1d7   :  { %14048 = vst [vmem:[#allocation30_spill] sm:$0xff] %v11437_v33  ;;  %v11441_v10 = vpop.f32.mrb[7].mxu0  ;;  %8459 = vmatpush3.bf16.msra.mxu0 %v10172_v20 }
 0x1d8   :  { %14049 = vst [vmem:[#allocation63_spill] sm:$0xff] %v11441_v10 }
 0x1d9   :  { %2762 = vmatmul.mubr.bf16.gmra.mrb[80].mxu0 %v14050_v31 }
 0x1da   :  { %2995 = vmatmul.mubr.bf16.gmra.mrb[128].mxu1 %v14051_v44  ;;  %2771 = vmatprep.mubr.bf16.mxu0 %v13988_v53 }
 0x1db   :  { %3004 = vmatprep.mubr.bf16.mxu1 %v11448_v35 }
 0x1dc   :  { %v11451_v26 = vpop.f32.mrb[8].mxu0 }
 0x1dd   :  { %14052 = vst [vmem:[#allocation16_spill] sm:$0xff] %v11451_v26  ;;  %v11453_v25 = vpop.f32.mrb[9].mxu0  ;;  %v11596_v26 = vld [vmem:[#allocation4 + $0x150] ss:$12 sps:$4 sm:$0xff]  }
 0x1de   :  { %14053 = vst [vmem:[#allocation32_spill] sm:$0xff] %v11453_v25  ;;  %v11455_v50 = vpop.f32.mrb[10].mxu0  ;;  %v11641_v25 = vld [vmem:[#allocation4 + $0x20] ss:$12 sps:$4 sm:$0xff]  }
 0x1df   :  { %14054 = vst [vmem:[#allocation64_spill] sm:$0xff] %v11455_v50  ;;  %v11459_v28 = vpop.f32.mrb[11].mxu0 }
 0x1e0   :  { %14055 = vst [vmem:[#allocation65_spill] sm:$0xff] %v11459_v28 }
 0x1e1   :  { %2772 = vmatmul.mubr.bf16.gmra.mrb[84].mxu0 %v14056_v60 }
 0x1e2   :  { %3005 = vmatmul.mubr.bf16.gmra.mrb[132].mxu1 %v11464_v46  ;;  %2781 = vmatprep.mubr.bf16.mxu0 %v13988_v53 }
 0x1e3   :  { %3014 = vmatprep.mubr.bf16.mxu1 %v11468_v45 }
 0x1e4   :  { %v11471_v19 = vpop.f32.mrb[12].mxu0 }
 0x1e5   :  { %14057 = vst [vmem:[#allocation17_spill] sm:$0xff] %v11471_v19  ;;  %v11473_v20 = vpop.f32.mrb[13].mxu0  ;;  %v11568_v19 = vld [vmem:[#allocation4 + $0x138] ss:$12 sps:$4 sm:$0xff]  }
 0x1e6   :  { %14058 = vst [vmem:[#allocation66_spill] sm:$0xff] %v11473_v20  ;;  %v11475_v7 = vpop.f32.mrb[14].mxu0  ;;  %v11626_v20 = vld [vmem:[#allocation4 + $0x8] ss:$12 sps:$4 sm:$0xff]  }
 0x1e7   :  { %14059 = vst [vmem:[#allocation67_spill] sm:$0xff] %v11475_v7  ;;  %v11479_v60 = vpop.f32.mrb[15].mxu0 }
 0x1e8   :  { %14060 = vst [vmem:[#allocation68_spill] sm:$0xff] %v11479_v60  ;;  %v10155_v60 = vld [vmem:[#allocation7 + $0x530] ss:$36 sps:$4 sm:$0xff]  }
 0x1e9   :  { %2782 = vmatmul.mubr.bf16.gmra.mrb[88].mxu0 %v14061_v13 }
 0x1ea   :  { %3015 = vmatmul.mubr.bf16.gmra.mrb[136].mxu1 %v11484_v11  ;;  %2791 = vmatprep.mubr.bf16.mxu0 %v13988_v53 }
 0x1eb   :  { %3024 = vmatprep.mubr.bf16.mxu1 %v11488_v9 }
 0x1ec   :  { %v11491_v2 = vpop.f32.mrb[16].mxu0 }
 0x1ed   :  { %14062 = vst [vmem:[#allocation18_spill] sm:$0xff] %v11491_v2  ;;  %v11493_v31 = vpop.f32.mrb[32].mxu1  ;;  %v11495_v56 = vpop.f32.mrb[17].mxu0 }
 0x1ee   :  { %14063 = vst [vmem:[#allocation69_spill] sm:$0xff] %v11493_v31  ;;  %14064 = vst [vmem:[#allocation70_spill] sm:$0xff] %v11495_v56  ;;  %v2339_v63 = vpop.f32.mrb[33].mxu1  ;;  %v11497_v38 = vpop.f32.mrb[18].mxu0  ;;  %v11540_v31 = vld [vmem:[#allocation4 + $0x120] ss:$12 sps:$4 sm:$0xff]  }
 0x1ef   :  { %14065 = vst [vmem:[#allocation71_spill] sm:$0xff] %v11497_v38  ;;  %v11499_v13 = vpop.f32.mrb[34].mxu1  ;;  %v11503_v48 = vpop.f32.mrb[19].mxu0 }
 0x1f0   :  { %14066 = vst [vmem:[#allocation72_spill] sm:$0xff] %v11499_v13  ;;  %14067 = vst [vmem:[#allocation73_spill] sm:$0xff] %v11503_v48  ;;  %v2343_v59 = vpop.f32.mrb[35].mxu1  ;;  %v11572_v13 = vld [vmem:[#allocation4 + $0x154] ss:$12 sps:$4 sm:$0xff]  }
 0x1f1   :  { %v11507_v39 = vpack.c.bf16 %v2343_v59, %v2339_v63  ;;  %2792 = vmatmul.mubr.bf16.gmra.mrb[92].mxu0 %v14068_v15  ;;  %v14089_v48 = vld [vmem:[#allocation26_spill] sm:$0xff] }
 0x1f2   :  { %3025 = vmatmul.mubr.bf16.gmra.mrb[140].mxu1 %v11512_v47  ;;  %2801 = vmatprep.mubr.bf16.mxu0 %v13988_v53 }
 0x1f3   :  { %3034 = vmatprep.mubr.bf16.mxu1 %v11516_v36 }
 0x1f4   :  { %v11519_v21 = vpop.f32.mrb[20].mxu0 }
 0x1f5   :  { %14069 = vst [vmem:[#allocation19_spill] sm:$0xff] %v11519_v21  ;;  %v11521_v49 = vpop.f32.mrb[36].mxu1  ;;  %v11523_v63 = vpop.f32.mrb[21].mxu0 }
 0x1f6   :  { %14070 = vst [vmem:[#allocation74_spill] sm:$0xff] %v11521_v49  ;;  %14071 = vst [vmem:[#allocation75_spill] sm:$0xff] %v11523_v63  ;;  %v2349_v59 = vpop.f32.mrb[37].mxu1  ;;  %v11525_v23 = vpop.f32.mrb[22].mxu0 }
 0x1f7   :  { %14072 = vst [vmem:[#allocation76_spill] sm:$0xff] %v11525_v23  ;;  %v11527_v15 = vpop.f32.mrb[38].mxu1  ;;  %v11531_v17 = vpop.f32.mrb[23].mxu0 }
 0x1f8   :  { %14073 = vst [vmem:[#allocation77_spill] sm:$0xff] %v11527_v15  ;;  %14074 = vst [vmem:[#allocation78_spill] sm:$0xff] %v11531_v17  ;;  %v2353_v61 = vpop.f32.mrb[39].mxu1  ;;  %v14082_v17 = vld [vmem:[#allocation21_spill] sm:$0xff] }
 0x1f9   :  { %v11535_v29 = vpack.c.bf16 %v2353_v61, %v2349_v59  ;;  %2802 = vmatmul.mubr.bf16.gmra.mrb[96].mxu0 %v14075_v1 }
 0x1fa   :  { %3035 = vmatmul.mubr.bf16.gmra.mrb[144].mxu1 %v11540_v31  ;;  %2811 = vmatprep.mubr.bf16.mxu0 %v13988_v53 }
 0x1fb   :  { %3044 = vmatprep.mubr.bf16.mxu1 %v11544_v37 }
 0x1fc   :  { %v11547_v49 = vpop.f32.mrb[24].mxu0 }
 0x1fd   :  { %14076 = vst [vmem:[#allocation20_spill] sm:$0xff] %v11547_v49  ;;  %v11549_v62 = vpop.f32.mrb[40].mxu1  ;;  %v11551_v61 = vpop.f32.mrb[25].mxu0  ;;  %v11600_v49 = vld [vmem:[#allocation4 + $0x16c] ss:$12 sps:$4 sm:$0xff]  }
 0x1fe   :  { %14077 = vst [vmem:[#allocation79_spill] sm:$0xff] %v11549_v62  ;;  %14078 = vst [vmem:[#allocation80_spill] sm:$0xff] %v11551_v61  ;;  %v2359_v59 = vpop.f32.mrb[41].mxu1  ;;  %v11553_v34 = vpop.f32.mrb[26].mxu0 }
 0x1ff   :  { %14079 = vst [vmem:[#allocation81_spill] sm:$0xff] %v11553_v34  ;;  %v11555_v15 = vpop.f32.mrb[42].mxu1  ;;  %v11559_v21 = vpop.f32.mrb[27].mxu0 }
 0x200   :  { %14080 = vst [vmem:[#allocation82_spill] sm:$0xff] %v11555_v15  ;;  %14081 = vst [vmem:[#allocation83_spill] sm:$0xff] %v11559_v21  ;;  %v2363_v23 = vpop.f32.mrb[43].mxu1 }
 0x201   :  { %v11563_v38 = vpack.c.bf16 %v2363_v23, %v2359_v59  ;;  %2812 = vmatmul.mubr.bf16.gmra.mrb[100].mxu0 %v14082_v17 }
 0x202   :  { %3045 = vmatmul.mubr.bf16.gmra.mrb[148].mxu1 %v11568_v19  ;;  %2821 = vmatprep.mubr.bf16.mxu0 %v13988_v53 }
 0x203   :  { %3054 = vmatprep.mubr.bf16.mxu1 %v11572_v13 }
 0x204   :  { %v11575_v62 = vpop.f32.mrb[28].mxu0 }
 0x205   :  { %14083 = vst [vmem:[#allocation21_spill] sm:$0xff] %v11575_v62  ;;  %v11577_v2 = vpop.f32.mrb[44].mxu1  ;;  %v11579_v23 = vpop.f32.mrb[29].mxu0  ;;  %v14092_v62 = vld [vmem:[#allocation28_spill] sm:$0xff] }
 0x206   :  { %14084 = vst [vmem:[#allocation84_spill] sm:$0xff] %v11577_v2  ;;  %14085 = vst [vmem:[#allocation85_spill] sm:$0xff] %v11579_v23  ;;  %v2369_v59 = vpop.f32.mrb[45].mxu1  ;;  %v11581_v63 = vpop.f32.mrb[30].mxu0 }
 0x207   :  { %14086 = vst [vmem:[#allocation86_spill] sm:$0xff] %v11581_v63  ;;  %v11583_v15 = vpop.f32.mrb[46].mxu1  ;;  %v11587_v34 = vpop.f32.mrb[31].mxu0  ;;  %v11612_v63 = vld [vmem:[#allocation4 + $0x168] ss:$12 sps:$4 sm:$0xff]  }
 0x208   :  { %14087 = vst [vmem:[#allocation87_spill] sm:$0xff] %v11583_v15  ;;  %14088 = vst [vmem:[#allocation88_spill] sm:$0xff] %v11587_v34  ;;  %v2373_v61 = vpop.f32.mrb[47].mxu1 }
 0x209   :  { %v11591_v7 = vpack.c.bf16 %v2373_v61, %v2369_v59  ;;  %2822 = vmatmul.mubr.bf16.gmra.mrb[104].mxu0 %v14089_v48 }
 0x20a   :  { %3055 = vmatmul.mubr.bf16.gmra.mrb[152].mxu1 %v11596_v26  ;;  %2831 = vmatprep.mubr.bf16.mxu0 %v13988_v53 }
 0x20b   :  { %3064 = vmatprep.mubr.bf16.mxu1 %v11600_v49 }
 0x20d   :  { %v11603_v2 = vpop.f32.mrb[48].mxu1 }
 0x20e   :  { %14090 = vst [vmem:[#allocation26_spill] sm:$0xff] %v11603_v2  ;;  %v2379_v21 = vpop.f32.mrb[49].mxu1 }
 0x20f   :  { %v11605_v61 = vpop.f32.mrb[50].mxu1 }
 0x210   :  { %14091 = vst [vmem:[#allocation89_spill] sm:$0xff] %v11605_v61  ;;  %v2383_v56 = vpop.f32.mrb[51].mxu1  ;;  %v14095_v61 = vld [vmem:[#allocation31_spill] sm:$0xff] }
 0x211   :  { %v11609_v15 = vpack.c.bf16 %v2383_v56, %v2379_v21  ;;  %2832 = vmatmul.mubr.bf16.gmra.mrb[108].mxu0 %v14092_v62  ;;  %v10152_v21 = vld [vmem:[#allocation7 + $0x4e8] ss:$36 sps:$4 sm:$0xff]  }
 0x212   :  { %3065 = vmatmul.mubr.bf16.gmra.mrb[156].mxu1 %v11612_v63  ;;  %2841 = vmatprep.mubr.bf16.mxu0 %v13988_v53 }
 0x213   :  { %3107 = vmatprep.mubr.bf16.mxu1 %v13988_v53 }
 0x215   :  { %v11617_v23 = vpop.f32.mrb[52].mxu1 }
 0x216   :  { %14093 = vst [vmem:[#allocation28_spill] sm:$0xff] %v11617_v23  ;;  %v2389_v34 = vpop.f32.mrb[53].mxu1 }
 0x217   :  { %v11619_v50 = vpop.f32.mrb[54].mxu1 }
 0x218   :  { %14094 = vst [vmem:[#allocation90_spill] sm:$0xff] %v11619_v50  ;;  %v2393_v56 = vpop.f32.mrb[55].mxu1  ;;  %v10158_v50 = vld [vmem:[#allocation7 + $0x578] ss:$36 sps:$4 sm:$0xff]  }
 0x219   :  { %v11623_v2 = vpack.c.bf16 %v2393_v56, %v2389_v34  ;;  %2842 = vmatmul.mubr.bf16.gmra.mrb[112].mxu0 %v14095_v61 }
 0x21a   :  { %3108 = vmatmul.mubr.bf16.vlgmr.msra.gmra.mrb[96].mxu1 %v11626_v20  ;;  %2851 = vmatprep.mubr.bf16.mxu0 %v13988_v53 }
 0x21b   :  { %8909 = vmatpush3.bf16.msra.mxu1 %v11354_v27  ;;  %3117 = vmatprep.mubr.bf16.mxu1 %v13988_v53  ;;  %v14098_v27 = vld [vmem:[#allocation33_spill] sm:$0xff] }
 0x21c   :  { %8910 = vmatprep.subr.bf16.mxu1 %v10152_v21 }
 0x21d   :  { %v11632_v5 = vpop.f32.mrb[56].mxu1 }
 0x21e   :  { %14096 = vst [vmem:[#allocation31_spill] sm:$0xff] %v11632_v5  ;;  %v2399_v59 = vpop.f32.mrb[57].mxu1 }
 0x21f   :  { %8911 = vmatpush3.bf16.msra.mxu1 %v10152_v21  ;;  %v11634_v34 = vpop.f32.mrb[58].mxu1  ;;  %v10161_v21 = vld [vmem:[#allocation7 + $0x5c0] ss:$36 sps:$4 sm:$0xff]  }
 0x220   :  { %14097 = vst [vmem:[#allocation91_spill] sm:$0xff] %v11634_v34  ;;  %v2403_v23 = vpop.f32.mrb[59].mxu1  ;;  %8912 = vmatprep.subr.bf16.mxu1 %v10155_v60  ;;  %v10164_v34 = vld [vmem:[#allocation7 + $0x608] ss:$36 sps:$4 sm:$0xff]  }
 0x221   :  { %v11638_v33 = vpack.c.bf16 %v2403_v23, %v2399_v59  ;;  %2852 = vmatmul.mubr.bf16.gmra.mrb[116].mxu0 %v14098_v27 }
 0x222   :  { %3118 = vmatmul.mubr.bf16.gmra.mrb[100].mxu1 %v11641_v25  ;;  %2861 = vmatprep.mubr.bf16.mxu0 %v13988_v53 }
 0x223   :  { %8913 = vmatpush3.bf16.msra.mxu1 %v10155_v60  ;;  %3127 = vmatprep.mubr.bf16.mxu1 %v13988_v53  ;;  %v14101_v60 = vld [vmem:[#allocation34_spill] sm:$0xff] }
 0x224   :  { %8914 = vmatprep.subr.bf16.mxu1 %v10158_v50 }
 0x225   :  { %v11646_v28 = vpop.f32.mrb[60].mxu1 }
 0x226   :  { %14099 = vst [vmem:[#allocation33_spill] sm:$0xff] %v11646_v28  ;;  %v2409_v56 = vpop.f32.mrb[61].mxu1 }
 0x227   :  { %8915 = vmatpush3.bf16.msra.mxu1 %v10158_v50  ;;  %v11648_v5 = vpop.f32.mrb[62].mxu1  ;;  %v10167_v50 = vld [vmem:[#allocation7 + $0x650] ss:$36 sps:$4 sm:$0xff]  }
 0x228   :  { %14100 = vst [vmem:[#allocation92_spill] sm:$0xff] %v11648_v5  ;;  %v2413_v59 = vpop.f32.mrb[63].mxu1  ;;  %8916 = vmatprep.subr.bf16.mxu1 %v10161_v21  ;;  %v10170_v5 = vld [vmem:[#allocation7 + $0x698] ss:$36 sps:$4 sm:$0xff]  }
 0x229   :  { %v11652_v6 = vpack.c.bf16 %v2413_v59, %v2409_v56  ;;  %2862 = vmatmul.mubr.bf16.gmra.mrb[120].mxu0 %v14101_v60 }
 0x22a   :  { %3128 = vmatmul.mubr.bf16.gmra.mrb[104].mxu1 %v11655_v22  ;;  %2871 = vmatprep.mubr.bf16.mxu0 %v13988_v53 }
 0x22b   :  { %8917 = vmatpush3.bf16.msra.mxu1 %v10161_v21  ;;  %3137 = vmatprep.mubr.bf16.mxu1 %v13988_v53  ;;  %v11669_v21 = vld [vmem:[#allocation4 + $0x50] ss:$12 sps:$4 sm:$0xff]  }
 0x22c   :  { %8918 = vmatprep.subr.bf16.mxu1 %v10164_v34 }
 0x22d   :  { %v11660_v14 = vpop.f32.mrb[64].mxu1 }
 0x22e   :  { %14102 = vst [vmem:[#allocation34_spill] sm:$0xff] %v11660_v14  ;;  %v2419_v23 = vpop.f32.mrb[65].mxu1 }
 0x22f   :  { %8919 = vmatpush3.bf16.msra.mxu1 %v10164_v34  ;;  %v11662_v28 = vpop.f32.mrb[66].mxu1 }
 0x230   :  { %14103 = vst [vmem:[#allocation93_spill] sm:$0xff] %v11662_v28  ;;  %v2423_v59 = vpop.f32.mrb[67].mxu1  ;;  %8920 = vmatprep.subr.bf16.mxu1 %v10167_v50 }
 0x231   :  { %v11666_v10 = vpack.c.bf16 %v2423_v59, %v2419_v23  ;;  %2872 = vmatmul.mubr.bf16.gmra.mrb[124].mxu0 %v11264_v3 }
 0x232   :  { %3138 = vmatmul.mubr.bf16.gmra.mrb[108].mxu1 %v11669_v21  ;;  %3300 = vmatprep.mubr.bf16.mxu0 %v11101_v4 }
 0x233   :  { %14104 = vst [vmem:[#allocation94_spill] sm:$0xff] %v11666_v10  ;;  %8921 = vmatpush3.bf16.msra.mxu1 %v10167_v50  ;;  %3147 = vmatprep.mubr.bf16.mxu1 %v13988_v53  ;;  %v11683_v50 = vld [vmem:[#allocation4 + $0x68] ss:$12 sps:$4 sm:$0xff]  }
 0x234   :  { %8922 = vmatprep.subr.bf16.mxu1 %v10170_v5 }
 0x235   :  { %v11674_v34 = vpop.f32.mrb[68].mxu1 }
 0x236   :  { %14105 = vst [vmem:[#allocation95_spill] sm:$0xff] %v11674_v34  ;;  %v2429_v56 = vpop.f32.mrb[69].mxu1  ;;  %v11697_v34 = vld [vmem:[#allocation4 + $0x80] ss:$12 sps:$4 sm:$0xff]  }
 0x237   :  { %8923 = vmatpush3.bf16.msra.mxu1 %v10170_v5  ;;  %v11676_v14 = vpop.f32.mrb[70].mxu1 }
 0x238   :  { %14106 = vst [vmem:[#allocation96_spill] sm:$0xff] %v11676_v14  ;;  %8956 = vmatprep.subr.bf16.mxu1 %v11507_v39  ;;  %v2433_v59 = vpop.f32.mrb[71].mxu1 }
 0x239   :  { %v11681_v28 = vpack.c.bf16 %v2433_v59, %v2429_v56  ;;  %3301 = vmatmul.mubr.bf16.vlgmr.msra.gmra.mrb[128].mxu0 %v11113_v43 }
 0x23a   :  { %3148 = vmatmul.mubr.bf16.gmra.mrb[112].mxu1 %v11683_v50  ;;  %3308 = vmatprep.mubr.bf16.mxu0 %v11117_v16 }
 0x23b   :  { %14107 = vst [vmem:[#allocation97_spill] sm:$0xff] %v11681_v28  ;;  %3157 = vmatprep.mubr.bf16.mxu1 %v13988_v53 }
 0x23d   :  { %v11689_v4 = vpop.f32.mrb[72].mxu1 }
 0x23e   :  { %14108 = vst [vmem:[#allocation98_spill] sm:$0xff] %v11689_v4  ;;  %v2439_v5 = vpop.f32.mrb[73].mxu1  ;;  %v11711_v4 = vld [vmem:[#allocation4 + $0x98] ss:$12 sps:$4 sm:$0xff]  }
 0x23f   :  { %v11691_v10 = vpop.f32.mrb[74].mxu1 }
 0x240   :  { %14109 = vst [vmem:[#allocation99_spill] sm:$0xff] %v11691_v10  ;;  %v2443_v56 = vpop.f32.mrb[75].mxu1 }
 0x241   :  { %v11695_v59 = vpack.c.bf16 %v2443_v56, %v2439_v5  ;;  %3309 = vmatmul.mubr.bf16.gmra.mrb[132].mxu0 %v11129_v51 }
 0x242   :  { %3158 = vmatmul.mubr.bf16.gmra.mrb[116].mxu1 %v11697_v34  ;;  %3316 = vmatprep.mubr.bf16.mxu0 %v11133_v52 }
 0x243   :  { %14110 = vst [vmem:[#allocation100_spill] sm:$0xff] %v11695_v59  ;;  %3167 = vmatprep.mubr.bf16.mxu1 %v13988_v53  ;;  %v14281_v59 = vmov 0 }
 0x245   :  { %v11703_v43 = vpop.f32.mrb[76].mxu1 }
 0x246   :  { %14111 = vst [vmem:[#allocation101_spill] sm:$0xff] %v11703_v43  ;;  %v2449_v16 = vpop.f32.mrb[77].mxu1  ;;  %v11725_v43 = vld [vmem:[#allocation4 + $0xb0] ss:$12 sps:$4 sm:$0xff]  }
 0x247   :  { %v11705_v14 = vpop.f32.mrb[78].mxu1 }
 0x248   :  { %14112 = vst [vmem:[#allocation102_spill] sm:$0xff] %v11705_v14  ;;  %v2453_v5 = vpop.f32.mrb[79].mxu1 }
 0x249   :  { %v11709_v56 = vpack.c.bf16 %v2453_v5, %v2449_v16  ;;  %3317 = vmatmul.mubr.bf16.gmra.mrb[136].mxu0 %v11145_v12 }
 0x24a   :  { %3168 = vmatmul.mubr.bf16.gmra.mrb[120].mxu1 %v11711_v4  ;;  %3324 = vmatprep.mubr.bf16.mxu0 %v11149_v40 }
 0x24b   :  { %14113 = vst [vmem:[#allocation103_spill] sm:$0xff] %v11709_v56  ;;  %3177 = vmatprep.mubr.bf16.mxu1 %v13988_v53 }
 0x24d   :  { %v11717_v51 = vpop.f32.mrb[80].mxu1 }
 0x24e   :  { %14114 = vst [vmem:[#allocation104_spill] sm:$0xff] %v11717_v51  ;;  %v2459_v52 = vpop.f32.mrb[81].mxu1 }
 0x24f   :  { %v11719_v10 = vpop.f32.mrb[82].mxu1 }
 0x250   :  { %14115 = vst [vmem:[#allocation105_spill] sm:$0xff] %v11719_v10  ;;  %v2463_v16 = vpop.f32.mrb[83].mxu1 }
 0x251   :  { %v11723_v5 = vpack.c.bf16 %v2463_v16, %v2459_v52  ;;  %3325 = vmatmul.mubr.bf16.gmra.mrb[140].mxu0 %v11161_v55 }
 0x252   :  { %3178 = vmatmul.mubr.bf16.gmra.mrb[124].mxu1 %v11725_v43  ;;  %3332 = vmatprep.mubr.bf16.mxu0 %v11165_v57 }
 0x253   :  { %14116 = vst [vmem:[#allocation106_spill] sm:$0xff] %v11723_v5  ;;  %3187 = vmatprep.mubr.bf16.mxu1 %v13988_v53 }
 0x255   :  { %v11731_v12 = vpop.f32.mrb[84].mxu1 }
 0x256   :  { %14117 = vst [vmem:[#allocation107_spill] sm:$0xff] %v11731_v12  ;;  %v2469_v40 = vpop.f32.mrb[85].mxu1 }
 0x257   :  { %v11733_v14 = vpop.f32.mrb[86].mxu1 }
 0x258   :  { %14118 = vst [vmem:[#allocation108_spill] sm:$0xff] %v11733_v14  ;;  %v2473_v52 = vpop.f32.mrb[87].mxu1 }
 0x259   :  { %v11737_v16 = vpack.c.bf16 %v2473_v52, %v2469_v40  ;;  %3333 = vmatmul.mubr.bf16.gmra.mrb[144].mxu0 %v11179_v30 }
 0x25a   :  { %3188 = vmatmul.mubr.bf16.gmra.mrb[128].mxu1 %v14075_v1  ;;  %3340 = vmatprep.mubr.bf16.mxu0 %v11183_v32 }
 0x25b   :  { %14119 = vst [vmem:[#allocation109_spill] sm:$0xff] %v11737_v16  ;;  %3197 = vmatprep.mubr.bf16.mxu1 %v13988_v53 }
 0x25d   :  { %v11743_v55 = vpop.f32.mrb[88].mxu1 }
 0x25e   :  { %14120 = vst [vmem:[#allocation110_spill] sm:$0xff] %v11743_v55  ;;  %v2479_v57 = vpop.f32.mrb[89].mxu1 }
 0x25f   :  { %v11745_v51 = vpop.f32.mrb[90].mxu1 }
 0x260   :  { %14121 = vst [vmem:[#allocation111_spill] sm:$0xff] %v11745_v51  ;;  %v2483_v23 = vpop.f32.mrb[91].mxu1 }
 0x261   :  { %v11749_v12 = vpack.c.bf16 %v2483_v23, %v2479_v57  ;;  %3341 = vmatmul.mubr.bf16.gmra.mrb[148].mxu0 %v14031_v58 }
 0x262   :  { %3198 = vmatmul.mubr.bf16.gmra.mrb[132].mxu1 %v14082_v17  ;;  %3348 = vmatprep.mubr.bf16.mxu0 %v11201_v0 }
 0x263   :  { %14122 = vst [vmem:[#allocation112_spill] sm:$0xff] %v11749_v12  ;;  %3207 = vmatprep.mubr.bf16.mxu1 %v13988_v53 }
 0x265   :  { %v11755_v30 = vpop.f32.mrb[92].mxu1 }
 0x266   :  { %14123 = vst [vmem:[#allocation113_spill] sm:$0xff] %v11755_v30  ;;  %v2489_v32 = vpop.f32.mrb[93].mxu1 }
 0x267   :  { %v11757_v1 = vpop.f32.mrb[94].mxu1 }
 0x268   :  { %14124 = vst [vmem:[#allocation114_spill] sm:$0xff] %v11757_v1  ;;  %v2493_v52 = vpop.f32.mrb[95].mxu1 }
 0x269   :  { %v11761_v10 = vpack.c.bf16 %v2493_v52, %v2489_v32  ;;  %3349 = vmatmul.mubr.bf16.gmra.mrb[152].mxu0 %v14040_v18 }
 0x26a   :  { %3208 = vmatmul.mubr.bf16.gmra.mrb[136].mxu1 %v14089_v48  ;;  %3356 = vmatprep.mubr.bf16.mxu0 %v11219_v42 }
 0x26b   :  { %14125 = vst [vmem:[#allocation115_spill] sm:$0xff] %v11761_v10  ;;  %3217 = vmatprep.mubr.bf16.mxu1 %v13988_v53 }
 0x271   :  { %3357 = vmatmul.mubr.bf16.gmra.mrb[156].mxu0 %v14044_v24 }
 0x272   :  { %3218 = vmatmul.mubr.bf16.gmra.mrb[140].mxu1 %v14092_v62  ;;  %3364 = vmatprep.mubr.bf16.mxu0 %v14045_v54 }
 0x273   :  { %3227 = vmatprep.mubr.bf16.mxu1 %v13988_v53 }
 0x279   :  { %3365 = vmatmul.mubr.bf16.gmra.mrb[160].mxu0 %v14051_v44 }
 0x27a   :  { %3228 = vmatmul.mubr.bf16.gmra.mrb[144].mxu1 %v14095_v61  ;;  %3372 = vmatprep.mubr.bf16.mxu0 %v11448_v35 }
 0x27b   :  { %3237 = vmatprep.mubr.bf16.mxu1 %v13988_v53 }
 0x281   :  { %3373 = vmatmul.mubr.bf16.gmra.mrb[164].mxu0 %v11464_v46 }
 0x282   :  { %3238 = vmatmul.mubr.bf16.gmra.mrb[148].mxu1 %v14098_v27  ;;  %3380 = vmatprep.mubr.bf16.mxu0 %v11468_v45 }
 0x283   :  { %3247 = vmatprep.mubr.bf16.mxu1 %v13988_v53 }
 0x289   :  { %3381 = vmatmul.mubr.bf16.gmra.mrb[168].mxu0 %v11484_v11 }
 0x28a   :  { %3248 = vmatmul.mubr.bf16.gmra.mrb[152].mxu1 %v14101_v60  ;;  %3388 = vmatprep.mubr.bf16.mxu0 %v11488_v9 }
 0x28b   :  { %3257 = vmatprep.mubr.bf16.mxu1 %v13988_v53 }
 0x28c   :  { %v2723_v42 = vpop.f32.mrb[64].mxu0 }
 0x28d   :  { %v2725_v0 = vpop.f32.mrb[65].mxu0 }
 0x28e   :  { %v2727_v62 = vpop.f32.mrb[66].mxu0 }
 0x28f   :  { %v2729_v17 = vpop.f32.mrb[67].mxu0  ;;  %v3594_v54 = vpack.c.bf16 %v2727_v62, %v2723_v42  ;;  %v10704_v42 = vld [vmem:[#allocation4 + $0x110] ss:$12 sps:$4 sm:$0xff]  }
 0x290   :  { %v11783_v18 = vpack.c.bf16 %v2729_v17, %v2725_v0  ;;  %v10705_v0 = vld [vmem:[#allocation4 + $0x128] ss:$12 sps:$4 sm:$0xff]  }
 0x291   :  { %3389 = vmatmul.mubr.bf16.gmra.mrb[172].mxu0 %v11512_v47  ;;  %9020 = vmatprep.subr.bf16.mxu0 %v3594_v54 }
 0x292   :  { %3258 = vmatmul.mubr.bf16.gmra.mrb[156].mxu1 %v11264_v3  ;;  %3396 = vmatprep.mubr.bf16.mxu0 %v11516_v36 }
 0x293   :  { %9021 = vmatpush3.bf16.xpose.msra.mxu0 %v3594_v54  ;;  %8924 = vmatprep.mubr.bf16.mxu1 %v11626_v20 }
 0x294   :  { %v2733_v11 = vpop.f32.mrb[68].mxu0 }
 0x295   :  { %v2735_v46 = vpop.f32.mrb[69].mxu0 }
 0x296   :  { %v2737_v9 = vpop.f32.mrb[70].mxu0 }
 0x297   :  { %v2739_v45 = vpop.f32.mrb[71].mxu0  ;;  %v3603_v58 = vpack.c.bf16 %v2737_v9, %v2733_v11  ;;  %v10706_v9 = vld [vmem:[#allocation4 + $0x140] ss:$12 sps:$4 sm:$0xff]  }
 0x298   :  { %v11789_v48 = vpack.c.bf16 %v2739_v45, %v2735_v46  ;;  %v10707_v45 = vld [vmem:[#allocation4 + $0x158] ss:$12 sps:$4 sm:$0xff]  }
 0x299   :  { %3397 = vmatmul.mubr.bf16.gmra.mrb[176].mxu0 %v11540_v31  ;;  %9022 = vmatprep.subr.bf16.mxu0 %v3603_v58 }
 0x29a   :  { %8925 = vmatmul.mubr.bf16.vlgmr.msra.gmra.mrb[160].mxu1 %v11641_v25  ;;  %3404 = vmatprep.mubr.bf16.mxu0 %v11544_v37 }
 0x29b   :  { %8957 = vmatpush3.bf16.xpose.msra.mxu1 %v11507_v39  ;;  %9023 = vmatpush3.bf16.xpose.msra.mxu0 %v3603_v58 }
 0x29c   :  { %8958 = vmatprep.subr.bf16.mxu1 %v11535_v29  ;;  %v2743_v36 = vpop.f32.mrb[72].mxu0  ;;  %8928 = vmatprep.mubr.bf16.mxu1 %v11655_v22 }
 0x29d   :  { %v2745_v3 = vpop.f32.mrb[73].mxu0 }
 0x29e   :  { %v2747_v47 = vpop.f32.mrb[74].mxu0 }
 0x29f   :  { %v2749_v24 = vpop.f32.mrb[75].mxu0  ;;  %v3612_v44 = vpack.c.bf16 %v2747_v47, %v2743_v36 }
 0x2a0   :  { %v11797_v35 = vpack.c.bf16 %v2749_v24, %v2745_v3 }
 0x2a1   :  { %3405 = vmatmul.mubr.bf16.gmra.mrb[180].mxu0 %v11568_v19  ;;  %9024 = vmatprep.subr.bf16.mxu0 %v3612_v44 }
 0x2a2   :  { %8929 = vmatmul.mubr.bf16.gmra.mrb[164].mxu1 %v11669_v21  ;;  %3412 = vmatprep.mubr.bf16.mxu0 %v11572_v13 }
 0x2a3   :  { %8959 = vmatpush3.bf16.xpose.msra.mxu1 %v11535_v29  ;;  %9025 = vmatpush3.bf16.xpose.msra.mxu0 %v3612_v44  ;;  %v10708_v44 = vld [vmem:[#allocation4 + $0x170] ss:$12 sps:$4 sm:$0xff]  }
 0x2a4   :  { %8960 = vmatprep.subr.bf16.mxu1 %v11563_v38  ;;  %v2753_v25 = vpop.f32.mrb[76].mxu0  ;;  %8932 = vmatprep.mubr.bf16.mxu1 %v11683_v50 }
 0x2a5   :  { %v2755_v37 = vpop.f32.mrb[77].mxu0 }
 0x2a6   :  { %v2757_v39 = vpop.f32.mrb[78].mxu0 }
 0x2a7   :  { %v2759_v22 = vpop.f32.mrb[79].mxu0  ;;  %v3621_v20 = vpack.c.bf16 %v2757_v39, %v2753_v25  ;;  %v14130_v25 = vld [vmem:[#allocation29_spill] sm:$0xff]  ;;  %v14132_v39 = vld [vmem:[#allocation27_spill] sm:$0xff] }
 0x2a8   :  { %v11805_v31 = vpack.c.bf16 %v2759_v22, %v2755_v37  ;;  %v14133_v22 = vld [vmem:[#allocation14_spill] sm:$0xff] }
 0x2a9   :  { %3413 = vmatmul.mubr.bf16.gmra.mrb[184].mxu0 %v11596_v26  ;;  %9026 = vmatprep.subr.bf16.mxu0 %v3621_v20  ;;  %v10701_v26 = vld [vmem:[#allocation4 + $0xc8] ss:$12 sps:$4 sm:$0xff]  }
 0x2aa   :  { %8933 = vmatmul.mubr.bf16.gmra.mrb[168].mxu1 %v11697_v34  ;;  %3420 = vmatprep.mubr.bf16.mxu0 %v11600_v49 }
 0x2ab   :  { %8961 = vmatpush3.bf16.xpose.msra.mxu1 %v11563_v38  ;;  %9027 = vmatpush3.bf16.xpose.msra.mxu0 %v3621_v20  ;;  %v14126_v38 = vpack.c.bf16 %v11425_v8, %v11419_v41  ;;  %v14134_v20 = vpack.c.bf16 %v14132_v39, %v14133_v22 }
 0x2ac   :  { %8962 = vmatprep.subr.bf16.mxu1 %v11591_v7  ;;  %v2763_v29 = vpop.f32.mrb[80].mxu0  ;;  %8936 = vmatprep.mubr.bf16.mxu1 %v11711_v4  ;;  %v10702_v4 = vld [vmem:[#allocation4 + $0xe0] ss:$12 sps:$4 sm:$0xff]  }
 0x2ad   :  { %v2765_v19 = vpop.f32.mrb[81].mxu0 }
 0x2ae   :  { %v2767_v13 = vpop.f32.mrb[82].mxu0 }
 0x2af   :  { %v3630_v61 = vpack.c.bf16 %v2767_v13, %v2763_v29  ;;  %v2769_v27 = vpop.f32.mrb[83].mxu0  ;;  %v14135_v29 = vld [vmem:[#allocation65_spill] sm:$0xff] }
 0x2b0   :  { %v11813_v60 = vpack.c.bf16 %v2769_v27, %v2765_v19  ;;  %v14136_v19 = vld [vmem:[#allocation32_spill] sm:$0xff] }
 0x2b1   :  { %3421 = vmatmul.mubr.bf16.gmra.mrb[188].mxu0 %v11612_v63  ;;  %9028 = vmatprep.subr.bf16.mxu0 %v3630_v61  ;;  %v14137_v13 = vpack.c.bf16 %v14135_v29, %v14136_v19 }
 0x2b2   :  { %8937 = vmatmul.mubr.bf16.gmra.mrb[172].mxu1 %v11725_v43  ;;  %9036 = vmatprep.mubr.bf16.mxu0 %v14126_v38 }
 0x2b3   :  { %8963 = vmatpush3.bf16.xpose.msra.mxu1 %v11591_v7  ;;  %9029 = vmatpush3.bf16.xpose.msra.mxu0 %v3630_v61  ;;  %v10703_v7 = vld [vmem:[#allocation4 + $0xf8] ss:$12 sps:$4 sm:$0xff]  }
 0x2b4   :  { %8964 = vmatprep.subr.bf16.mxu1 %v11609_v15  ;;  %v2773_v49 = vpop.f32.mrb[84].mxu0  ;;  %8940 = vmatprep.mubr.bf16.mxu1 %v10701_v26 }
 0x2b5   :  { %v2775_v21 = vpop.f32.mrb[85].mxu0 }
 0x2b6   :  { %v2777_v34 = vpop.f32.mrb[86].mxu0 }
 0x2b7   :  { %v3639_v23 = vpack.c.bf16 %v2777_v34, %v2773_v49  ;;  %v2779_v50 = vpop.f32.mrb[87].mxu0  ;;  %v14141_v34 = vld [vmem:[#allocation15_spill] sm:$0xff] }
 0x2b8   :  { %v11822_v63 = vpack.c.bf16 %v2779_v50, %v2775_v21  ;;  %v14140_v21 = vld [vmem:[#allocation30_spill] sm:$0xff]  ;;  %v14143_v50 = vld [vmem:[#allocation68_spill] sm:$0xff] }
 0x2b9   :  { %9030 = vmatprep.subr.bf16.mxu0 %v3639_v23 }
 0x2ba   :  { %8941 = vmatmul.mubr.bf16.gmra.mrb[176].mxu1 %v10702_v4  ;;  %v14144_v4 = vld [vmem:[#allocation66_spill] sm:$0xff] }
 0x2bb   :  { %8965 = vmatpush3.bf16.xpose.msra.mxu1 %v11609_v15  ;;  %8944 = vmatprep.mubr.bf16.mxu1 %v10703_v7  ;;  %v14145_v7 = vpack.c.bf16 %v14143_v50, %v14144_v4  ;;  %v14177_v4 = vld [vmem:[#allocation72_spill] sm:$0xff] }
 0x2bc   :  { %8966 = vmatprep.subr.bf16.mxu1 %v11623_v2  ;;  %9031 = vmatpush3.bf16.xpose.msra.mxu0 %v3639_v23  ;;  %v2783_v41 = vpop.f32.mrb[88].mxu0  ;;  %v14142_v23 = vpack.c.bf16 %v14140_v21, %v14141_v34  ;;  %v14172_v21 = vld [vmem:[#allocation85_spill] sm:$0xff] }
 0x2bd   :  { %v2785_v8 = vpop.f32.mrb[89].mxu0 }
 0x2be   :  { %v2787_v43 = vpop.f32.mrb[90].mxu0 }
 0x2bf   :  { %v3648_v57 = vpack.c.bf16 %v2787_v43, %v2783_v41  ;;  %v2789_v32 = vpop.f32.mrb[91].mxu0  ;;  %v14146_v41 = vld [vmem:[#allocation64_spill] sm:$0xff]  ;;  %v14149_v43 = vld [vmem:[#allocation73_spill] sm:$0xff] }
 0x2c0   :  { %v11826_v52 = vpack.c.bf16 %v2789_v32, %v2785_v8 }
 0x2c1   :  { %9032 = vmatprep.subr.bf16.mxu0 %v3648_v57 }
 0x2c2   :  { %8945 = vmatmul.mubr.bf16.gmra.mrb[180].mxu1 %v10704_v42 }
 0x2c3   :  { %8967 = vmatpush3.bf16.xpose.msra.mxu1 %v11623_v2  ;;  %8948 = vmatprep.mubr.bf16.mxu1 %v10705_v0 }
 0x2c4   :  { %8968 = vmatprep.subr.bf16.mxu1 %v11638_v33  ;;  %9033 = vmatpush3.bf16.xpose.msra.mxu0 %v3648_v57  ;;  %v2793_v15 = vpop.f32.mrb[92].mxu0  ;;  %v14150_v57 = vld [vmem:[#allocation70_spill] sm:$0xff] }
 0x2c5   :  { %v2795_v62 = vpop.f32.mrb[93].mxu0  ;;  %v14151_v32 = vpack.c.bf16 %v14149_v43, %v14150_v57 }
 0x2c6   :  { %v2797_v17 = vpop.f32.mrb[94].mxu0 }
 0x2c7   :  { %v3657_v54 = vpack.c.bf16 %v2797_v17, %v2793_v15  ;;  %v2799_v11 = vpop.f32.mrb[95].mxu0 }
 0x2c8   :  { %v11830_v46 = vpack.c.bf16 %v2799_v11, %v2795_v62  ;;  %v14154_v11 = vld [vmem:[#allocation67_spill] sm:$0xff] }
 0x2c9   :  { %9034 = vmatprep.subr.bf16.mxu0 %v3657_v54 }
 0x2ca   :  { %8949 = vmatmul.mubr.bf16.gmra.mrb[184].mxu1 %v10706_v9  ;;  %v14155_v9 = vld [vmem:[#allocation17_spill] sm:$0xff] }
 0x2cb   :  { %8969 = vmatpush3.bf16.xpose.msra.mxu1 %v11638_v33  ;;  %8952 = vmatprep.mubr.bf16.mxu1 %v10707_v45  ;;  %v14129_v33 = vld [vmem:[#allocation63_spill] sm:$0xff]  ;;  %v14156_v45 = vpack.c.bf16 %v14154_v11, %v14155_v9 }
 0x2cc   :  { %8970 = vmatprep.subr.bf16.mxu1 %v11652_v6  ;;  %9035 = vmatpush3.bf16.xpose.msra.mxu0 %v3657_v54  ;;  %v2803_v2 = vpop.f32.mrb[96].mxu0  ;;  %v14131_v37 = vpack.c.bf16 %v14129_v33, %v14130_v25  ;;  %v14163_v33 = vld [vmem:[#allocation83_spill] sm:$0xff]  ;;  %v14164_v25 = vld [vmem:[#allocation80_spill] sm:$0xff] }
 0x2cd   :  { %9084 = vmatprep.subr.bf16.mxu0 %v11783_v18  ;;  %v2805_v58 = vpop.f32.mrb[97].mxu0 }
 0x2ce   :  { %v2807_v36 = vpop.f32.mrb[98].mxu0 }
 0x2cf   :  { %v11835_v3 = vpack.c.bf16 %v2807_v36, %v2803_v2  ;;  %v2809_v47 = vpop.f32.mrb[99].mxu0  ;;  %v14157_v2 = vld [vmem:[#allocation78_spill] sm:$0xff] }
 0x2d0   :  { %v11837_v24 = vpack.c.bf16 %v2809_v47, %v2805_v58  ;;  %v14158_v58 = vld [vmem:[#allocation75_spill] sm:$0xff] }
 0x2d1   :  { %14127 = vst [vmem:[#allocation116_spill] sm:$0xff] %v11835_v3  ;;  %v14159_v36 = vpack.c.bf16 %v14157_v2, %v14158_v58  ;;  %v14160_v47 = vld [vmem:[#allocation71_spill] sm:$0xff]  ;;  %v14183_v2 = vld [vmem:[#allocation86_spill] sm:$0xff]  ;;  %v14184_v58 = vld [vmem:[#allocation21_spill] sm:$0xff] }
 0x2d2   :  { %14128 = vst [vmem:[#allocation117_spill] sm:$0xff] %v11837_v24  ;;  %8953 = vmatmul.mubr.bf16.gmra.mrb[188].mxu1 %v10708_v44 }
 0x2d3   :  { %8971 = vmatpush3.bf16.xpose.msra.mxu1 %v11652_v6  ;;  %9037 = vmatmul.mubr.bf16.vlgmr.msra.gmra.mrb[192].mxu0 %v14131_v37  ;;  %v14165_v37 = vpack.c.bf16 %v14163_v33, %v14164_v25 }
 0x2d4   :  { %8972 = vmatprep.mubr.bf16.mxu1 %v14134_v20  ;;  %9040 = vmatprep.mubr.bf16.mxu0 %v14137_v13  ;;  %v2813_v61 = vpop.f32.mrb[100].mxu0 }
 0x2d5   :  { %9085 = vmatpush3.bf16.xpose.msra.mxu0 %v11783_v18  ;;  %v2815_v27 = vpop.f32.mrb[101].mxu0  ;;  %v14147_v18 = vld [vmem:[#allocation16_spill] sm:$0xff] }
 0x2d6   :  { %9086 = vmatprep.subr.bf16.mxu0 %v11789_v48  ;;  %v2817_v38 = vpop.f32.mrb[102].mxu0  ;;  %v14148_v8 = vpack.c.bf16 %v14146_v41, %v14147_v18 }
 0x2d7   :  { %v11851_v6 = vpack.c.bf16 %v2817_v38, %v2813_v61  ;;  %v2819_v49 = vpop.f32.mrb[103].mxu0  ;;  %v14168_v61 = vld [vmem:[#allocation76_spill] sm:$0xff] }
 0x2d8   :  { %v11853_v26 = vpack.c.bf16 %v2819_v49, %v2815_v27  ;;  %v14169_v27 = vld [vmem:[#allocation19_spill] sm:$0xff]  ;;  %v14171_v49 = vld [vmem:[#allocation88_spill] sm:$0xff] }
 0x2d9   :  { %14138 = vst [vmem:[#allocation63_spill] sm:$0xff] %v11851_v6  ;;  %v14170_v38 = vpack.c.bf16 %v14168_v61, %v14169_v27  ;;  %v14173_v34 = vpack.c.bf16 %v14171_v49, %v14172_v21 }
 0x2da   :  { %14139 = vst [vmem:[#allocation29_spill] sm:$0xff] %v11853_v26  ;;  %8973 = vmatmul.mubr.bf16.vlgmr.msra.gmra.mrb[192].mxu1 %v14142_v23  ;;  %v14174_v23 = vld [vmem:[#allocation81_spill] sm:$0xff] }
 0x2db   :  { %9041 = vmatmul.mubr.bf16.gmra.mrb[196].mxu0 %v14145_v7  ;;  %8976 = vmatprep.mubr.bf16.mxu1 %v14148_v8  ;;  %v14178_v7 = vld [vmem:[#allocation69_spill] sm:$0xff] }
 0x2dc   :  { %9044 = vmatprep.mubr.bf16.mxu0 %v14151_v32  ;;  %v2823_v42 = vpop.f32.mrb[104].mxu0  ;;  %v14179_v41 = vpack.c.bf16 %v14177_v4, %v14178_v7 }
 0x2dd   :  { %9087 = vmatpush3.bf16.xpose.msra.mxu0 %v11789_v48  ;;  %v2825_v0 = vpop.f32.mrb[105].mxu0  ;;  %v14161_v48 = vld [vmem:[#allocation18_spill] sm:$0xff] }
 0x2de   :  { %9088 = vmatprep.subr.bf16.mxu0 %v11797_v35  ;;  %v2827_v15 = vpop.f32.mrb[106].mxu0  ;;  %v14162_v44 = vpack.c.bf16 %v14160_v47, %v14161_v48 }
 0x2df   :  { %v11869_v62 = vpack.c.bf16 %v2827_v15, %v2823_v42  ;;  %v2829_v17 = vpop.f32.mrb[107].mxu0 }
 0x2e0   :  { %v11871_v54 = vpack.c.bf16 %v2829_v17, %v2825_v0 }
 0x2e1   :  { %14152 = vst [vmem:[#allocation27_spill] sm:$0xff] %v11869_v62 }
 0x2e2   :  { %14153 = vst [vmem:[#allocation14_spill] sm:$0xff] %v11871_v54  ;;  %8977 = vmatmul.mubr.bf16.gmra.mrb[196].mxu1 %v14156_v45 }
 0x2e3   :  { %9045 = vmatmul.mubr.bf16.gmra.mrb[200].mxu0 %v14159_v36  ;;  %8980 = vmatprep.mubr.bf16.mxu1 %v14162_v44 }
 0x2e4   :  { %9048 = vmatprep.mubr.bf16.mxu0 %v14165_v37  ;;  %v2833_v39 = vpop.f32.mrb[108].mxu0 }
 0x2e5   :  { %9089 = vmatpush3.bf16.xpose.msra.mxu0 %v11797_v35  ;;  %v2835_v22 = vpop.f32.mrb[109].mxu0  ;;  %v14175_v35 = vld [vmem:[#allocation20_spill] sm:$0xff] }
 0x2e6   :  { %9090 = vmatprep.subr.bf16.mxu0 %v11805_v31  ;;  %v2837_v20 = vpop.f32.mrb[110].mxu0  ;;  %v14176_v50 = vpack.c.bf16 %v14174_v23, %v14175_v35 }
 0x2e7   :  { %v11887_v29 = vpack.c.bf16 %v2837_v20, %v2833_v39  ;;  %v2839_v19 = vpop.f32.mrb[111].mxu0 }
 0x2e8   :  { %v11889_v13 = vpack.c.bf16 %v2839_v19, %v2835_v22 }
 0x2e9   :  { %14166 = vst [vmem:[#allocation65_spill] sm:$0xff] %v11887_v29 }
 0x2ea   :  { %14167 = vst [vmem:[#allocation32_spill] sm:$0xff] %v11889_v13  ;;  %8981 = vmatmul.mubr.bf16.gmra.mrb[200].mxu1 %v14170_v38 }
 0x2eb   :  { %9049 = vmatmul.mubr.bf16.gmra.mrb[204].mxu0 %v14173_v34  ;;  %8984 = vmatprep.mubr.bf16.mxu1 %v14176_v50 }
 0x2ec   :  { %9100 = vmatprep.mubr.bf16.mxu0 %v14179_v41  ;;  %v2843_v18 = vpop.f32.mrb[112].mxu0 }
 0x2ed   :  { %9091 = vmatpush3.bf16.xpose.msra.mxu0 %v11805_v31  ;;  %v3109_v8 = vpop.f32.mrb[96].mxu1  ;;  %v2845_v43 = vpop.f32.mrb[113].mxu0  ;;  %v14185_v31 = vpack.c.bf16 %v14183_v2, %v14184_v58 }
 0x2ee   :  { %9092 = vmatprep.subr.bf16.mxu0 %v11813_v60  ;;  %v3111_v57 = vpop.f32.mrb[97].mxu1  ;;  %v2847_v32 = vpop.f32.mrb[114].mxu0 }
 0x2ef   :  { %v3113_v42 = vpop.f32.mrb[98].mxu1  ;;  %v11905_v0 = vpack.c.bf16 %v2847_v32, %v2843_v18  ;;  %v2849_v17 = vpop.f32.mrb[115].mxu0 }
 0x2f0   :  { %v3596_v15 = vpack.c.bf16 %v3113_v42, %v3109_v8  ;;  %v3115_v11 = vpop.f32.mrb[99].mxu1  ;;  %v11907_v9 = vpack.c.bf16 %v2849_v17, %v2845_v43 }
 0x2f1   :  { %14180 = vst [vmem:[#allocation30_spill] sm:$0xff] %v11905_v0  ;;  %v11909_v45 = vpack.c.bf16 %v3115_v11, %v3111_v57 }
 0x2f2   :  { %14181 = vst [vmem:[#allocation15_spill] sm:$0xff] %v11907_v9  ;;  %8985 = vmatmul.mubr.bf16.gmra.mrb[204].mxu1 %v14185_v31  ;;  %8988 = vmatprep.subr.bf16.mxu1 %v3596_v15 }
 0x2f3   :  { %14182 = vst [vmem:[#allocation68_spill] sm:$0xff] %v11909_v45  ;;  %8989 = vmatpush3.bf16.msra.mxu1 %v3596_v15 }
 0x2f4   :  { %v2853_v36 = vpop.f32.mrb[116].mxu0 }
 0x2f5   :  { %9093 = vmatpush3.bf16.xpose.msra.mxu0 %v11813_v60  ;;  %v3119_v47 = vpop.f32.mrb[100].mxu1  ;;  %v2855_v48 = vpop.f32.mrb[117].mxu0 }
 0x2f6   :  { %9094 = vmatprep.subr.bf16.mxu0 %v11822_v63  ;;  %v3121_v44 = vpop.f32.mrb[101].mxu1  ;;  %v2857_v33 = vpop.f32.mrb[118].mxu0 }
 0x2f7   :  { %v3123_v25 = vpop.f32.mrb[102].mxu1  ;;  %v11916_v37 = vpack.c.bf16 %v2857_v33, %v2853_v36  ;;  %v2859_v22 = vpop.f32.mrb[119].mxu0 }
 0x2f8   :  { %v3605_v39 = vpack.c.bf16 %v3123_v25, %v3119_v47  ;;  %v3125_v20 = vpop.f32.mrb[103].mxu1  ;;  %v11918_v19 = vpack.c.bf16 %v2859_v22, %v2855_v48 }
 0x2f9   :  { %14186 = vst [vmem:[#allocation66_spill] sm:$0xff] %v11916_v37  ;;  %v11920_v61 = vpack.c.bf16 %v3125_v20, %v3121_v44 }
 0x2fa   :  { %14187 = vst [vmem:[#allocation64_spill] sm:$0xff] %v11918_v19  ;;  %8990 = vmatprep.subr.bf16.mxu1 %v3605_v39 }
 0x2fb   :  { %14188 = vst [vmem:[#allocation16_spill] sm:$0xff] %v11920_v61  ;;  %8991 = vmatpush3.bf16.msra.mxu1 %v3605_v39 }
 0x2fc   :  { %v2863_v60 = vpop.f32.mrb[120].mxu0 }
 0x2fd   :  { %9095 = vmatpush3.bf16.xpose.msra.mxu0 %v11822_v63  ;;  %v3129_v27 = vpop.f32.mrb[104].mxu1  ;;  %v2865_v38 = vpop.f32.mrb[121].mxu0 }
 0x2fe   :  { %9096 = vmatprep.subr.bf16.mxu0 %v11826_v52  ;;  %v3131_v49 = vpop.f32.mrb[105].mxu1  ;;  %v2867_v21 = vpop.f32.mrb[122].mxu0 }
 0x2ff   :  { %v3133_v34 = vpop.f32.mrb[106].mxu1  ;;  %v11924_v23 = vpack.c.bf16 %v2867_v21, %v2863_v60  ;;  %v2869_v50 = vpop.f32.mrb[123].mxu0  ;;  %v14200_v21 = vld [vmem:[#allocation79_spill] sm:$0xff] }
 0x300   :  { %v3614_v35 = vpack.c.bf16 %v3133_v34, %v3129_v27  ;;  %v3135_v4 = vpop.f32.mrb[107].mxu1  ;;  %v11926_v7 = vpack.c.bf16 %v2869_v50, %v2865_v38  ;;  %v14196_v27 = vld [vmem:[#allocation77_spill] sm:$0xff]  ;;  %v14197_v38 = vld [vmem:[#allocation74_spill] sm:$0xff] }
 0x301   :  { %14189 = vst [vmem:[#allocation73_spill] sm:$0xff] %v11924_v23  ;;  %v11928_v41 = vpack.c.bf16 %v3135_v4, %v3131_v49  ;;  %v14199_v49 = vld [vmem:[#allocation82_spill] sm:$0xff] }
 0x302   :  { %14190 = vst [vmem:[#allocation70_spill] sm:$0xff] %v11926_v7  ;;  %8992 = vmatprep.subr.bf16.mxu1 %v3614_v35  ;;  %v14201_v34 = vpack.c.bf16 %v14199_v49, %v14200_v21 }
 0x303   :  { %14191 = vst [vmem:[#allocation67_spill] sm:$0xff] %v11928_v41  ;;  %8993 = vmatpush3.bf16.msra.mxu1 %v3614_v35 }
 0x304   :  { %v2873_v63 = vpop.f32.mrb[124].mxu0 }
 0x305   :  { %9097 = vmatpush3.bf16.xpose.msra.mxu0 %v11826_v52  ;;  %v3139_v18 = vpop.f32.mrb[108].mxu1  ;;  %v2875_v8 = vpop.f32.mrb[125].mxu0 }
 0x306   :  { %9098 = vmatprep.subr.bf16.mxu0 %v11830_v46  ;;  %v3141_v43 = vpop.f32.mrb[109].mxu1  ;;  %v2877_v57 = vpop.f32.mrb[126].mxu0 }
 0x307   :  { %v3143_v32 = vpop.f32.mrb[110].mxu1  ;;  %v11932_v42 = vpack.c.bf16 %v2877_v57, %v2873_v63  ;;  %v2879_v17 = vpop.f32.mrb[127].mxu0 }
 0x308   :  { %v3623_v15 = vpack.c.bf16 %v3143_v32, %v3139_v18  ;;  %v3145_v11 = vpop.f32.mrb[111].mxu1  ;;  %v11934_v2 = vpack.c.bf16 %v2879_v17, %v2875_v8 }
 0x309   :  { %14192 = vst [vmem:[#allocation17_spill] sm:$0xff] %v11932_v42  ;;  %v11936_v58 = vpack.c.bf16 %v3145_v11, %v3141_v43 }
 0x30a   :  { %14193 = vst [vmem:[#allocation78_spill] sm:$0xff] %v11934_v2  ;;  %8994 = vmatprep.subr.bf16.mxu1 %v3623_v15 }
 0x30b   :  { %14194 = vst [vmem:[#allocation75_spill] sm:$0xff] %v11936_v58  ;;  %8995 = vmatpush3.bf16.msra.mxu1 %v3623_v15 }
 0x30c   :  { %v8460_v31 = vpop.f32.mrb[128].mxu0 }
 0x30d   :  { %9099 = vmatpush3.bf16.xpose.msra.mxu0 %v11830_v46  ;;  %v3149_v52 = vpop.f32.mrb[112].mxu1  ;;  %v8461_v47 = vpop.f32.mrb[129].mxu0  ;;  %v14198_v46 = vpack.c.bf16 %v14196_v27, %v14197_v38 }
 0x30e   :  { %v3151_v36 = vpop.f32.mrb[113].mxu1  ;;  %v11939_v44 = vadd.f32 %v8461_v47, %v8460_v31  ;;  %v8463_v33 = vpop.f32.mrb[130].mxu0  ;;  %v14204_v31 = vld [vmem:[#allocation84_spill] sm:$0xff]  ;;  %v14206_v47 = vld [vmem:[#allocation89_spill] sm:$0xff] }
 0x30f   :  { %v3153_v48 = vpop.f32.mrb[114].mxu1  ;;  %v8464_v22 = vpop.f32.mrb[131].mxu0 }
 0x310   :  { %v3632_v25 = vpack.c.bf16 %v3153_v48, %v3149_v52  ;;  %v3155_v39 = vpop.f32.mrb[115].mxu1  ;;  %v11943_v60 = vadd.f32 %v8464_v22, %v8463_v33  ;;  %v14203_v52 = vld [vmem:[#allocation87_spill] sm:$0xff]  ;;  %v14207_v48 = vld [vmem:[#allocation26_spill] sm:$0xff] }
 0x311   :  { %v11941_v20 = vpack.c.bf16 %v3155_v39, %v3151_v36  ;;  %v14205_v36 = vpack.c.bf16 %v14203_v52, %v14204_v31  ;;  %v14208_v33 = vpack.c.bf16 %v14206_v47, %v14207_v48 }
 0x312   :  { %8996 = vmatprep.subr.bf16.mxu1 %v3632_v25 }
 0x313   :  { %14195 = vst [vmem:[#allocation71_spill] sm:$0xff] %v11941_v20  ;;  %8997 = vmatpush3.bf16.msra.mxu1 %v3632_v25 }
 0x314   :  { %9101 = vmatmul.mubr.bf16.vlgmr.msra.gmra.mrb[208].mxu0 %v14198_v46  ;;  %v8466_v50 = vpop.f32.mrb[132].mxu0 }
 0x315   :  { %9104 = vmatprep.mubr.bf16.mxu0 %v14201_v34  ;;  %v3159_v35 = vpop.f32.mrb[116].mxu1  ;;  %v8467_v63 = vpop.f32.mrb[133].mxu0 }
 0x316   :  { %v3161_v4 = vpop.f32.mrb[117].mxu1  ;;  %v11951_v8 = vadd.f32 %v8467_v63, %v8466_v50  ;;  %v8469_v43 = vpop.f32.mrb[134].mxu0  ;;  %v14210_v63 = vld [vmem:[#allocation90_spill] sm:$0xff] }
 0x317   :  { %v3163_v18 = vpop.f32.mrb[118].mxu1  ;;  %v8470_v15 = vpop.f32.mrb[135].mxu0 }
 0x318   :  { %v3641_v57 = vpack.c.bf16 %v3163_v18, %v3159_v35  ;;  %v3165_v32 = vpop.f32.mrb[119].mxu1  ;;  %v11955_v11 = vadd.f32 %v8470_v15, %v8469_v43  ;;  %v14211_v18 = vld [vmem:[#allocation28_spill] sm:$0xff] }
 0x319   :  { %v11953_v17 = vpack.c.bf16 %v3165_v32, %v3161_v4  ;;  %v14212_v43 = vpack.c.bf16 %v14210_v63, %v14211_v18  ;;  %v14214_v32 = vld [vmem:[#allocation31_spill] sm:$0xff] }
 0x31a   :  { %8998 = vmatprep.subr.bf16.mxu1 %v3641_v57 }
 0x31b   :  { %14202 = vst [vmem:[#allocation18_spill] sm:$0xff] %v11953_v17  ;;  %8999 = vmatpush3.bf16.msra.mxu1 %v3641_v57  ;;  %v14213_v57 = vld [vmem:[#allocation91_spill] sm:$0xff] }
 0x31c   :  { %9105 = vmatmul.mubr.bf16.gmra.mrb[212].mxu0 %v14205_v36  ;;  %v8472_v39 = vpop.f32.mrb[136].mxu0  ;;  %v14215_v15 = vpack.c.bf16 %v14213_v57, %v14214_v32 }
 0x31d   :  { %9108 = vmatprep.mubr.bf16.mxu0 %v14208_v33  ;;  %v3169_v25 = vpop.f32.mrb[120].mxu1  ;;  %v8473_v27 = vpop.f32.mrb[137].mxu0 }
 0x31e   :  { %v3171_v22 = vpop.f32.mrb[121].mxu1  ;;  %v11963_v46 = vadd.f32 %v8473_v27, %v8472_v39  ;;  %v8475_v49 = vpop.f32.mrb[138].mxu0 }
 0x31f   :  { %v3173_v38 = vpop.f32.mrb[122].mxu1  ;;  %v8476_v35 = vpop.f32.mrb[139].mxu0 }
 0x320   :  { %v3650_v21 = vpack.c.bf16 %v3173_v38, %v3169_v25  ;;  %v3175_v34 = vpop.f32.mrb[123].mxu1  ;;  %v11967_v4 = vadd.f32 %v8476_v35, %v8475_v49  ;;  %v14218_v35 = vld [vmem:[#allocation33_spill] sm:$0xff] }
 0x321   :  { %v11965_v50 = vpack.c.bf16 %v3175_v34, %v3171_v22  ;;  %v14217_v34 = vld [vmem:[#allocation92_spill] sm:$0xff] }
 0x322   :  { %9000 = vmatprep.subr.bf16.mxu1 %v3650_v21  ;;  %v14219_v63 = vpack.c.bf16 %v14217_v34, %v14218_v35 }
 0x323   :  { %14209 = vst [vmem:[#allocation83_spill] sm:$0xff] %v11965_v50  ;;  %9001 = vmatpush3.bf16.msra.mxu1 %v3650_v21  ;;  %v13847_v21 = vlaneseq }
 0x324   :  { %9109 = vmatmul.mubr.bf16.gmra.mrb[216].mxu0 %v14212_v43  ;;  %v8478_v31 = vpop.f32.mrb[140].mxu0 }
 0x325   :  { %9112 = vmatprep.mubr.bf16.mxu0 %v14215_v15  ;;  %v3179_v52 = vpop.f32.mrb[124].mxu1  ;;  %v8479_v47 = vpop.f32.mrb[141].mxu0  ;;  %v11986_v57 = vshrl.u32 %v13847_v21, 7 }
 0x326   :  { %v3181_v36 = vpop.f32.mrb[125].mxu1  ;;  %v11975_v33 = vadd.f32 %v8479_v47, %v8478_v31  ;;  %v8481_v25 = vpop.f32.mrb[142].mxu0 }
 0x327   :  { %v3183_v48 = vpop.f32.mrb[126].mxu1  ;;  %v8482_v27 = vpop.f32.mrb[143].mxu0  ;;  %14220 = vst [vmem:[#allocation76_spill] sm:$0xff] %v11986_v57  ;;  %v6473_v47 = vsub.s32 0, %v11986_v57  ;;  %v3893_v5 = vadd.s32 112, %v11986_v57 }
 0x328   :  { %v3659_v39 = vpack.c.bf16 %v3183_v48, %v3179_v52  ;;  %v3185_v22 = vpop.f32.mrb[127].mxu1  ;;  %v11979_v49 = vadd.f32 %v8482_v27, %v8481_v25  ;;  %v6477_v48 = vsub.s32 1, %v11986_v57  ;;  %v6469_v27 = vld [vmem:[%s13723_s3] sm:$0x7] }
 0x329   :  { %v11977_v38 = vpack.c.bf16 %v3185_v22, %v3181_v36 }
 0x32a   :  { %9002 = vmatprep.subr.bf16.mxu1 %v3659_v39 }
 0x32b   :  { %14216 = vst [vmem:[#allocation80_spill] sm:$0xff] %v11977_v38  ;;  %9003 = vmatpush3.bf16.msra.mxu1 %v3659_v39 }
 0x32c   :  { %9113 = vmatmul.mubr.bf16.gmra.mrb[220].mxu0 %v14219_v63  ;;  %9052 = vmatprep.subr.bf16.mxu1 %v11909_v45  ;;  %v8484_v43 = vpop.f32.mrb[144].mxu0  ;;  %v11999_v63 = vrot.slane %v6469_v27, %v6473_v47 }
 0x32d   :  { %v3189_v18 = vpop.f32.mrb[128].mxu1  ;;  %v8485_v15 = vpop.f32.mrb[145].mxu0 }
 0x32e   :  { %v3191_v32 = vpop.f32.mrb[129].mxu1  ;;  %v11988_v31 = vadd.f32 %v8485_v15, %v8484_v43  ;;  %v8487_v36 = vpop.f32.mrb[146].mxu0  ;;  %14222 = vst [vmem:[#allocation88_spill] sm:$0xff] %v11999_v63  ;;  %v12001_v43 = vrot.slane %v6469_v27, %v6477_v48 }
 0x32f   :  { %v3193_v52 = vpop.f32.mrb[130].mxu1  ;;  %v8488_v22 = vpop.f32.mrb[147].mxu0 }
 0x330   :  { %v3668_v25 = vpack.c.bf16 %v3193_v52, %v3189_v18  ;;  %v3195_v39 = vpop.f32.mrb[131].mxu1  ;;  %v11997_v35 = vadd.f32 %v8488_v22, %v8487_v36  ;;  %14223 = vst [vmem:[#allocation85_spill] sm:$0xff] %v12001_v43 }
 0x331   :  { %v11995_v34 = vpack.c.bf16 %v3195_v39, %v3191_v32 }
 0x332   :  { %9180 = vmatprep.subr.bf16.mxu0 %v3668_v25 }
 0x333   :  { %14221 = vst [vmem:[#allocation19_spill] sm:$0xff] %v11995_v34  ;;  %9181 = vmatpush3.bf16.msra.mxu0 %v3668_v25  ;;  %v14275_v34 = vmov 0 }
 0x334   :  { %v8490_v40 = vpop.f32.mrb[148].mxu0 }
 0x335   :  { %v3199_v15 = vpop.f32.mrb[132].mxu1  ;;  %v8491_v18 = vpop.f32.mrb[149].mxu0 }
 0x336   :  { %v3201_v21 = vpop.f32.mrb[133].mxu1  ;;  %v12003_v53 = vadd.f32 %v8491_v18, %v8490_v40  ;;  %v8493_v30 = vpop.f32.mrb[150].mxu0 }
 0x337   :  { %v3203_v52 = vpop.f32.mrb[134].mxu1  ;;  %v8494_v32 = vpop.f32.mrb[151].mxu0 }
 0x338   :  { %v3677_v1 = vpack.c.bf16 %v3203_v52, %v3199_v15  ;;  %v3205_v55 = vpop.f32.mrb[135].mxu1  ;;  %v12007_v36 = vadd.f32 %v8494_v32, %v8493_v30 }
 0x339   :  { %v12005_v39 = vpack.c.bf16 %v3205_v55, %v3201_v21 }
 0x33a   :  { %9182 = vmatprep.subr.bf16.mxu0 %v3677_v1 }
 0x33b   :  { %14224 = vst [vmem:[#allocation81_spill] sm:$0xff] %v12005_v39  ;;  %9183 = vmatpush3.bf16.msra.mxu0 %v3677_v1 }
 0x33c   :  { %v8496_v48 = vpop.f32.mrb[152].mxu0 }
 0x33d   :  { %v3209_v47 = vpop.f32.mrb[136].mxu1  ;;  %v8497_v22 = vpop.f32.mrb[153].mxu0 }
 0x33e   :  { %v3211_v25 = vpop.f32.mrb[137].mxu1  ;;  %v12009_v43 = vadd.f32 %v8497_v22, %v8496_v48  ;;  %v8499_v63 = vpop.f32.mrb[154].mxu0 }
 0x33f   :  { %v3213_v27 = vpop.f32.mrb[138].mxu1  ;;  %v8500_v51 = vpop.f32.mrb[155].mxu0 }
 0x340   :  { %v3686_v40 = vpack.c.bf16 %v3213_v27, %v3209_v47  ;;  %v3215_v18 = vpop.f32.mrb[139].mxu1  ;;  %v12013_v52 = vadd.f32 %v8500_v51, %v8499_v63 }
 0x341   :  { %v12011_v15 = vpack.c.bf16 %v3215_v18, %v3211_v25 }
 0x342   :  { %9184 = vmatprep.subr.bf16.mxu0 %v3686_v40 }
 0x343   :  { %14225 = vst [vmem:[#allocation20_spill] sm:$0xff] %v12011_v15  ;;  %9185 = vmatpush3.bf16.msra.mxu0 %v3686_v40  ;;  %v3887_v15 = vadd.s32 64, %v11986_v57 }
 0x344   :  { %v8502_v30 = vpop.f32.mrb[156].mxu0 }
 0x345   :  { %v3219_v55 = vpop.f32.mrb[140].mxu1  ;;  %v8503_v21 = vpop.f32.mrb[157].mxu0 }
 0x346   :  { %v3221_v1 = vpop.f32.mrb[141].mxu1  ;;  %v12015_v14 = vadd.f32 %v8503_v21, %v8502_v30  ;;  %v8505_v2 = vpop.f32.mrb[158].mxu0 }
 0x347   :  { %v3223_v32 = vpop.f32.mrb[142].mxu1  ;;  %v8506_v7 = vpop.f32.mrb[159].mxu0 }
 0x348   :  { %v3695_v48 = vpack.c.bf16 %v3223_v32, %v3219_v55  ;;  %v3225_v22 = vpop.f32.mrb[143].mxu1  ;;  %v12019_v27 = vadd.f32 %v8506_v7, %v8505_v2 }
 0x349   :  { %v12017_v47 = vpack.c.bf16 %v3225_v22, %v3221_v1 }
 0x34a   :  { %9186 = vmatprep.subr.bf16.mxu0 %v3695_v48 }
 0x34b   :  { %14226 = vst [vmem:[#allocation72_spill] sm:$0xff] %v12017_v47  ;;  %9187 = vmatpush3.bf16.msra.mxu0 %v3695_v48 }
 0x34c   :  { %v8508_v63 = vpop.f32.mrb[160].mxu0 }
 0x34d   :  { %v3229_v51 = vpop.f32.mrb[144].mxu1  ;;  %v8509_v40 = vpop.f32.mrb[161].mxu0 }
 0x34e   :  { %v3231_v25 = vpop.f32.mrb[145].mxu1  ;;  %v12021_v19 = vadd.f32 %v8509_v40, %v8508_v63  ;;  %v8511_v9 = vpop.f32.mrb[162].mxu0 }
 0x34f   :  { %v3233_v18 = vpop.f32.mrb[146].mxu1  ;;  %v8512_v13 = vpop.f32.mrb[163].mxu0 }
 0x350   :  { %v3704_v30 = vpack.c.bf16 %v3233_v18, %v3229_v51  ;;  %v3235_v21 = vpop.f32.mrb[147].mxu1  ;;  %v12025_v32 = vadd.f32 %v8512_v13, %v8511_v9 }
 0x351   :  { %v12023_v55 = vpack.c.bf16 %v3235_v21, %v3231_v25 }
 0x352   :  { %9188 = vmatprep.subr.bf16.mxu0 %v3704_v30 }
 0x353   :  { %14227 = vst [vmem:[#allocation69_spill] sm:$0xff] %v12023_v55  ;;  %9189 = vmatpush3.bf16.msra.mxu0 %v3704_v30 }
 0x354   :  { %v8514_v2 = vpop.f32.mrb[164].mxu0 }
 0x355   :  { %v3239_v7 = vpop.f32.mrb[148].mxu1  ;;  %v8515_v48 = vpop.f32.mrb[165].mxu0 }
 0x356   :  { %v3241_v1 = vpop.f32.mrb[149].mxu1  ;;  %v12027_v54 = vadd.f32 %v8515_v48, %v8514_v2  ;;  %v8517_v26 = vpop.f32.mrb[166].mxu0 }
 0x357   :  { %v3243_v22 = vpop.f32.mrb[150].mxu1  ;;  %v8518_v42 = vpop.f32.mrb[167].mxu0 }
 0x358   :  { %v3713_v63 = vpack.c.bf16 %v3243_v22, %v3239_v7  ;;  %v3245_v40 = vpop.f32.mrb[151].mxu1  ;;  %v12031_v18 = vadd.f32 %v8518_v42, %v8517_v26 }
 0x359   :  { %v12029_v51 = vpack.c.bf16 %v3245_v40, %v3241_v1 }
 0x35a   :  { %9190 = vmatprep.subr.bf16.mxu0 %v3713_v63 }
 0x35b   :  { %14228 = vst [vmem:[#allocation86_spill] sm:$0xff] %v12029_v51  ;;  %9191 = vmatpush3.bf16.msra.mxu0 %v3713_v63 }
 0x35c   :  { %v8520_v9 = vpop.f32.mrb[168].mxu0 }
 0x35d   :  { %v3249_v13 = vpop.f32.mrb[152].mxu1  ;;  %v8521_v30 = vpop.f32.mrb[169].mxu0 }
 0x35e   :  { %v3251_v25 = vpop.f32.mrb[153].mxu1  ;;  %v12033_v23 = vadd.f32 %v8521_v30, %v8520_v9  ;;  %v8523_v37 = vpop.f32.mrb[170].mxu0 }
 0x35f   :  { %v3253_v21 = vpop.f32.mrb[154].mxu1  ;;  %v8524_v0 = vpop.f32.mrb[171].mxu0 }
 0x360   :  { %v3722_v2 = vpack.c.bf16 %v3253_v21, %v3249_v13  ;;  %v3255_v48 = vpop.f32.mrb[155].mxu1  ;;  %v12037_v22 = vadd.f32 %v8524_v0, %v8523_v37 }
 0x361   :  { %v12035_v7 = vpack.c.bf16 %v3255_v48, %v3251_v25 }
 0x362   :  { %9192 = vmatprep.subr.bf16.mxu0 %v3722_v2 }
 0x363   :  { %14229 = vst [vmem:[#allocation21_spill] sm:$0xff] %v12035_v7  ;;  %9193 = vmatpush3.bf16.msra.mxu0 %v3722_v2 }
 0x364   :  { %v8526_v42 = vpop.f32.mrb[172].mxu0 }
 0x365   :  { %v3259_v26 = vpop.f32.mrb[156].mxu1  ;;  %v8527_v63 = vpop.f32.mrb[173].mxu0 }
 0x366   :  { %v3261_v1 = vpop.f32.mrb[157].mxu1  ;;  %v12039_v29 = vadd.f32 %v8527_v63, %v8526_v42  ;;  %v8529_v62 = vpop.f32.mrb[174].mxu0 }
 0x367   :  { %v3263_v40 = vpop.f32.mrb[158].mxu1  ;;  %v8530_v6 = vpop.f32.mrb[175].mxu0 }
 0x368   :  { %v3731_v9 = vpack.c.bf16 %v3263_v40, %v3259_v26  ;;  %v3265_v30 = vpop.f32.mrb[159].mxu1  ;;  %v12043_v21 = vadd.f32 %v8530_v6, %v8529_v62 }
 0x369   :  { %v12041_v13 = vpack.c.bf16 %v3265_v30, %v3261_v1 }
 0x36a   :  { %9194 = vmatprep.subr.bf16.mxu0 %v3731_v9 }
 0x36b   :  { %14230 = vst [vmem:[#allocation77_spill] sm:$0xff] %v12041_v13  ;;  %9195 = vmatpush3.bf16.msra.mxu0 %v3731_v9 }
 0x36c   :  { %9212 = vmatprep.subr.bf16.mxu0 %v11835_v3  ;;  %v8532_v37 = vpop.f32.mrb[176].mxu0 }
 0x36d   :  { %v8926_v0 = vpop.f32.mrb[160].mxu1  ;;  %v8533_v48 = vpop.f32.mrb[177].mxu0 }
 0x36e   :  { %v3472_v25 = vadd.f32 %v8926_v0, %v11951_v8  ;;  %v3463_v2 = vpop.f32.mrb[161].mxu1  ;;  %v12048_v26 = vadd.f32 %v8533_v48, %v8532_v37  ;;  %v8535_v40 = vpop.f32.mrb[178].mxu0 }
 0x36f   :  { %v3464_v42 = vadd.f32 %v11939_v44, %v3463_v2  ;;  %v8927_v63 = vpop.f32.mrb[162].mxu1  ;;  %v8536_v62 = vpop.f32.mrb[179].mxu0 }
 0x370   :  { %v3475_v1 = vadd.f32 %v8927_v63, %v11955_v11  ;;  %v3466_v6 = vpop.f32.mrb[163].mxu1  ;;  %v12052_v30 = vadd.f32 %v8536_v62, %v8535_v40 }
 0x371   :  { %v3467_v9 = vadd.f32 %v11943_v60, %v3466_v6 }
 0x372   :  { %v12054_v3 = vpack.c.bf16 %v3475_v1, %v3472_v25 }
 0x373   :  { %v12056_v24 = vpack.c.bf16 %v3467_v9, %v3464_v42 }
 0x374   :  { %14231 = vst [vmem:[#allocation74_spill] sm:$0xff] %v12054_v3  ;;  %v8538_v0 = vpop.f32.mrb[180].mxu0 }
 0x375   :  { %14232 = vst [vmem:[#allocation82_spill] sm:$0xff] %v12056_v24  ;;  %v8930_v8 = vpop.f32.mrb[164].mxu1  ;;  %v8539_v37 = vpop.f32.mrb[181].mxu0 }
 0x376   :  { %v3488_v44 = vadd.f32 %v8930_v8, %v11975_v33  ;;  %v3479_v2 = vpop.f32.mrb[165].mxu1  ;;  %v8540_v11 = vadd.f32 %v8539_v37, %v8538_v0  ;;  %v8541_v63 = vpop.f32.mrb[182].mxu0 }
 0x377   :  { %v3480_v48 = vadd.f32 %v11963_v46, %v3479_v2  ;;  %v8931_v13 = vpop.f32.mrb[166].mxu1  ;;  %v8542_v40 = vpop.f32.mrb[183].mxu0 }
 0x378   :  { %v3491_v7 = vadd.f32 %v8931_v13, %v11979_v49  ;;  %v3482_v60 = vpop.f32.mrb[167].mxu1  ;;  %v8543_v1 = vadd.f32 %v8542_v40, %v8541_v63 }
 0x379   :  { %v3483_v25 = vadd.f32 %v11967_v4, %v3482_v60 }
 0x37a   :  { %v12062_v42 = vpack.c.bf16 %v3491_v7, %v3488_v44 }
 0x37b   :  { %v12064_v6 = vpack.c.bf16 %v3483_v25, %v3480_v48 }
 0x37c   :  { %14233 = vst [vmem:[#allocation79_spill] sm:$0xff] %v12062_v42  ;;  %v8544_v33 = vpop.f32.mrb[184].mxu0 }
 0x37d   :  { %14234 = vst [vmem:[#allocation87_spill] sm:$0xff] %v12064_v6  ;;  %v8934_v62 = vpop.f32.mrb[168].mxu1  ;;  %v8545_v46 = vpop.f32.mrb[185].mxu0 }
 0x37e   :  { %v3504_v9 = vadd.f32 %v8934_v62, %v12003_v53  ;;  %v3495_v8 = vpop.f32.mrb[169].mxu1  ;;  %v8546_v37 = vadd.f32 %v8545_v46, %v8544_v33  ;;  %v8547_v49 = vpop.f32.mrb[186].mxu0 }
 0x37f   :  { %v3496_v0 = vadd.f32 %v11988_v31, %v3495_v8  ;;  %v8935_v2 = vpop.f32.mrb[170].mxu1  ;;  %v8548_v4 = vpop.f32.mrb[187].mxu0 }
 0x380   :  { %v3507_v13 = vadd.f32 %v8935_v2, %v12007_v36  ;;  %v3498_v51 = vpop.f32.mrb[171].mxu1  ;;  %v8549_v44 = vadd.f32 %v8548_v4, %v8547_v49 }
 0x381   :  { %v3499_v7 = vadd.f32 %v11997_v35, %v3498_v51 }
 0x382   :  { %v12070_v48 = vpack.c.bf16 %v3507_v13, %v3504_v9 }
 0x383   :  { %v12072_v63 = vpack.c.bf16 %v3499_v7, %v3496_v0 }
 0x384   :  { %14235 = vst [vmem:[#allocation84_spill] sm:$0xff] %v12070_v48  ;;  %v8550_v53 = vpop.f32.mrb[188].mxu0 }
 0x385   :  { %14236 = vst [vmem:[#allocation89_spill] sm:$0xff] %v12072_v63  ;;  %v8938_v60 = vpop.f32.mrb[172].mxu1  ;;  %v8551_v31 = vpop.f32.mrb[189].mxu0  ;;  %v3892_v63 = vadd.s32 104, %v11986_v57 }
 0x386   :  { %v3520_v40 = vadd.f32 %v8938_v60, %v12015_v14  ;;  %v3511_v25 = vpop.f32.mrb[173].mxu1  ;;  %v8552_v8 = vadd.f32 %v8551_v31, %v8550_v53  ;;  %v8553_v36 = vpop.f32.mrb[190].mxu0 }
 0x387   :  { %v3512_v62 = vadd.f32 %v12009_v43, %v3511_v25  ;;  %v8939_v33 = vpop.f32.mrb[174].mxu1  ;;  %v8554_v35 = vpop.f32.mrb[191].mxu0 }
 0x388   :  { %v3523_v46 = vadd.f32 %v8939_v33, %v12019_v27  ;;  %v3514_v2 = vpop.f32.mrb[175].mxu1  ;;  %v8555_v9 = vadd.f32 %v8554_v35, %v8553_v36 }
 0x389   :  { %v3515_v51 = vadd.f32 %v12013_v52, %v3514_v2 }
 0x38a   :  { %v12078_v0 = vpack.c.bf16 %v3523_v46, %v3520_v40 }
 0x38b   :  { %v12080_v49 = vpack.c.bf16 %v3515_v51, %v3512_v62 }
 0x38c   :  { %14237 = vst [vmem:[#allocation26_spill] sm:$0xff] %v12078_v0 }
 0x38d   :  { %14238 = vst [vmem:[#allocation90_spill] sm:$0xff] %v12080_v49  ;;  %v8942_v13 = vpop.f32.mrb[176].mxu1  ;;  %v3891_v49 = vadd.s32 96, %v11986_v57 }
 0x38e   :  { %v3536_v14 = vadd.f32 %v8942_v13, %v12027_v54  ;;  %v3527_v4 = vpop.f32.mrb[177].mxu1 }
 0x38f   :  { %v3528_v43 = vadd.f32 %v12021_v19, %v3527_v4  ;;  %v8943_v7 = vpop.f32.mrb[178].mxu1 }
 0x390   :  { %v3539_v60 = vadd.f32 %v8943_v7, %v12031_v18  ;;  %v3530_v53 = vpop.f32.mrb[179].mxu1 }
 0x391   :  { %v3531_v27 = vadd.f32 %v12025_v32, %v3530_v53 }
 0x392   :  { %v12086_v25 = vpack.c.bf16 %v3539_v60, %v3536_v14 }
 0x393   :  { %v12088_v52 = vpack.c.bf16 %v3531_v27, %v3528_v43 }
 0x394   :  { %14239 = vst [vmem:[#allocation28_spill] sm:$0xff] %v12086_v25  ;;  %v14269_v25 = vmov 0 }
 0x395   :  { %14240 = vst [vmem:[#allocation91_spill] sm:$0xff] %v12088_v52  ;;  %v8946_v40 = vpop.f32.mrb[180].mxu1 }
 0x396   :  { %v3552_v31 = vadd.f32 %v8946_v40, %v12039_v29  ;;  %v3543_v62 = vpop.f32.mrb[181].mxu1 }
 0x397   :  { %v3544_v33 = vadd.f32 %v12033_v23, %v3543_v62  ;;  %v8947_v54 = vpop.f32.mrb[182].mxu1 }
 0x398   :  { %v3555_v36 = vadd.f32 %v8947_v54, %v12043_v21  ;;  %v3546_v19 = vpop.f32.mrb[183].mxu1  ;;  %v14245_v54 = vlaneseq }
 0x399   :  { %v3547_v46 = vadd.f32 %v12037_v22, %v3546_v19 }
 0x39a   :  { %v12094_v18 = vpack.c.bf16 %v3555_v36, %v3552_v31  ;;  %v12114_v36 = vand.u32 127, %v14245_v54  ;;  %v14260_v54 = vmov 0 }
 0x39b   :  { %v12096_v2 = vpack.c.bf16 %v3547_v46, %v3544_v33  ;;  %v3881_v33 = vadd.s32 16, %v11986_v57 }
 0x39c   :  { %14241 = vst [vmem:[#allocation31_spill] sm:$0xff] %v12094_v18  ;;  %vm12134_vm1 = vcmp.le.s32.totalorder %v12114_v36, %v11986_v57  ;;  %v14266_v18 = vmov 0  ;;  %vm12253_vm10 = vcmp.le.s32.totalorder %v12114_v36, %v3887_v15  ;;  %vm12274_vm12 = vcmp.le.s32.totalorder %v12114_v36, %v3893_v5 }
 0x39d   :  { %14242 = vst [vmem:[#allocation92_spill] sm:$0xff] %v12096_v2  ;;  %v8950_v32 = vpop.f32.mrb[184].mxu1  ;;  %vm12121_vm0 = vcmp.le.s32.totalorder %v12114_v36, %v3881_v33  ;;  %vm12296_vm14 = vcmp.le.s32.totalorder %v12114_v36, %v3891_v49  ;;  %vm12305_vm15 = vcmp.le.s32.totalorder %v12114_v36, %v3892_v63 }
 0x39e   :  { %v3568_v35 = vadd.f32 %v8950_v32, %v8540_v11  ;;  %v3559_v51 = vpop.f32.mrb[185].mxu1 }
 0x39f   :  { %v3560_v13 = vadd.f32 %v12048_v26, %v3559_v51  ;;  %v8951_v14 = vpop.f32.mrb[186].mxu1  ;;  %v14251_v51 = vmov 0 }
 0x3a0   :  { %v3571_v29 = vadd.f32 %v8951_v14, %v8543_v1  ;;  %v3562_v4 = vpop.f32.mrb[187].mxu1  ;;  %v14252_v51 = vsel %vm12134_vm1, 4294967295, %v14251_v51 }
 0x3a1   :  { %v3563_v23 = vadd.f32 %v12052_v30, %v3562_v4  ;;  %14253 = vst [vmem:[#allocation122_spill] sm:$0xff] %v14252_v51 }
 0x3a2   :  { %v12100_v43 = vpack.c.bf16 %v3571_v29, %v3568_v35 }
 0x3a3   :  { %v12102_v21 = vpack.c.bf16 %v3563_v23, %v3560_v13  ;;  %v3880_v13 = vadd.s32 8, %v11986_v57 }
 0x3a4   :  { %14243 = vst [vmem:[#allocation33_spill] sm:$0xff] %v12100_v43 }
 0x3a5   :  { %14244 = vst [vmem:[#allocation118_spill] sm:$0xff] %v12102_v21  ;;  %v8954_v7 = vpop.f32.mrb[188].mxu1  ;;  %vm12162_vm3 = vcmp.le.s32.totalorder %v12114_v36, %v3880_v13  ;;  %v3883_v13 = vadd.s32 32, %v11986_v57 }
 0x3a6   :  { %v12104_v22 = vpop.f32.mrb[192].mxu0  ;;  %v3584_v60 = vadd.f32 %v8954_v7, %v8552_v8  ;;  %v3575_v53 = vpop.f32.mrb[189].mxu1 }
 0x3a7   :  { %v12106_v27 = vpop.f32.mrb[193].mxu0  ;;  %v3576_v11 = vadd.f32 %v8546_v37, %v3575_v53  ;;  %v8955_v40 = vpop.f32.mrb[190].mxu1  ;;  %v14248_v37 = vmov 0  ;;  %v14254_v53 = vmov 0  ;;  %vm12205_vm6 = vcmp.le.s32.totalorder %v12114_v36, %v3883_v13 }
 0x3a8   :  { %v12108_v31 = vpop.f32.mrb[194].mxu0  ;;  %v3587_v26 = vadd.f32 %v8955_v40, %v8555_v9  ;;  %v3578_v1 = vpop.f32.mrb[191].mxu1  ;;  %v14249_v37 = vsel %vm12121_vm0, 4294967295, %v14248_v37  ;;  %v3882_v9 = vadd.s32 24, %v11986_v57  ;;  %v14267_v18 = vsel %vm12205_vm6, 4294967295, %v14266_v18 }
 0x3a9   :  { %v12110_v62 = vpop.f32.mrb[195].mxu0  ;;  %v3579_v30 = vadd.f32 %v8549_v44, %v3578_v1  ;;  %14250 = vst [vmem:[#allocation121_spill] sm:$0xff] %v14249_v37  ;;  %14268 = vst [vmem:[#allocation127_spill] sm:$0xff] %v14267_v18  ;;  %v12318_v49 = vsel %vm12134_vm1, %v12106_v27, -inf }
 0x3aa   :  { %v12116_v19 = vpack.c.bf16 %v3587_v26, %v3584_v60  ;;  %vm12152_vm2 = vcmp.le.s32.totalorder %v12114_v36, %v3882_v9  ;;  %v14257_v26 = vmov 0  ;;  %v12324_v63 = vsel %vm12162_vm3, %v12110_v62, -inf }
 0x3ab   :  { %v12118_v8 = vpack.c.bf16 %v3579_v30, %v3576_v11  ;;  %v14255_v53 = vsel %vm12152_vm2, 4294967295, %v14254_v53  ;;  %v3885_v11 = vadd.s32 48, %v11986_v57  ;;  %v14258_v26 = vsel %vm12162_vm3, 4294967295, %v14257_v26 }
 0x3ac   :  { %14246 = vst [vmem:[#allocation119_spill] sm:$0xff] %v12116_v19  ;;  %14256 = vst [vmem:[#allocation123_spill] sm:$0xff] %v14255_v53  ;;  %v3886_v30 = vadd.s32 56, %v11986_v57  ;;  %v14263_v19 = vmov 0  ;;  %v12336_v27 = vsel %vm12152_vm2, %v12108_v31, -inf }
 0x3ad   :  { %14247 = vst [vmem:[#allocation120_spill] sm:$0xff] %v12118_v8  ;;  %v8974_v46 = vpop.f32.mrb[192].mxu1  ;;  %14259 = vst [vmem:[#allocation124_spill] sm:$0xff] %v14258_v26  ;;  %vm12174_vm4 = vcmp.le.s32.totalorder %v12114_v36, %v3885_v11  ;;  %v3884_v11 = vadd.s32 40, %v11986_v57 }
 0x3ae   :  { %v12126_v32 = vpop.f32.mrb[196].mxu0  ;;  %v3971_v44 = vpop.f32.mrb[193].mxu1  ;;  %v12130_v35 = vsel %vm12121_vm0, %v8974_v46, -inf  ;;  %v14261_v54 = vsel %vm12174_vm4, 4294967295, %v14260_v54  ;;  %vm12188_vm5 = vcmp.le.s32.totalorder %v12114_v36, %v3886_v30  ;;  %v3889_v30 = vadd.s32 80, %v11986_v57 }
 0x3af   :  { %v12139_v14 = vpop.f32.mrb[197].mxu0  ;;  %4054 = vmax.xlane.f32.xlu1 %v12130_v35  ;;  %v8975_v29 = vpop.f32.mrb[194].mxu1  ;;  %v12144_v4 = vsel %vm12134_vm1, %v3971_v44, -inf  ;;  %14262 = vst [vmem:[#allocation125_spill] sm:$0xff] %v14261_v54  ;;  %v14264_v19 = vsel %vm12188_vm5, 4294967295, %v14263_v19  ;;  %vm12214_vm7 = vcmp.le.s32.totalorder %v12114_v36, %v3884_v11  ;;  %v12354_v31 = vsel %vm12174_vm4, %v12126_v32, -inf }
 0x3b0   :  { %v12146_v23 = vpop.f32.mrb[198].mxu0  ;;  %4050 = vmax.xlane.f32.xlu0 %v12144_v4  ;;  %v3974_v7 = vpop.f32.mrb[195].mxu1  ;;  %v12159_v40 = vsel %vm12152_vm2, %v8975_v29, -inf  ;;  %14265 = vst [vmem:[#allocation126_spill] sm:$0xff] %v14264_v19  ;;  %v14270_v25 = vsel %vm12214_vm7, 4294967295, %v14269_v25  ;;  %vm12226_vm8 = vcmp.le.s32.totalorder %v12114_v36, %v3889_v30  ;;  %v3888_v30 = vadd.s32 72, %v11986_v57 }
 0x3b1   :  { %v12149_v60 = vpop.f32.mrb[199].mxu0  ;;  %v12169_v1 = vsel %vm12162_vm3, %v3974_v7, -inf  ;;  %14271 = vst [vmem:[#allocation128_spill] sm:$0xff] %v14270_v25  ;;  %v12342_v62 = vsel %vm12205_vm6, %v12139_v14, -inf  ;;  %v12360_v14 = vsel %vm12188_vm5, %v12146_v23, -inf }
 0x3b2   :  { %vm12262_vm11 = vcmp.le.s32.totalorder %v12114_v36, %v3888_v30 }
 0x3b3   :  { %4056 = vmax.xlane.f32.xlu1 %v12159_v40  ;;  %v14282_v59 = vsel %vm12262_vm11, 4294967295, %v14281_v59 }
 0x3b4   :  { %4052 = vmax.xlane.f32.xlu0 %v12169_v1  ;;  %14283 = vst [vmem:[#allocation132_spill] sm:$0xff] %v14282_v59 }
 0x3b5   :  { %v8978_v33 = vpop.f32.mrb[196].mxu1 }
 0x3b6   :  { %v12178_v46 = vpop.f32.mrb[200].mxu0  ;;  %v3987_v9 = vpop.f32.mrb[197].mxu1  ;;  %v12182_v44 = vsel %vm12174_vm4, %v8978_v33, -inf }
 0x3b7   :  { %v12185_v29 = vpop.f32.mrb[201].mxu0  ;;  %v8979_v7 = vpop.f32.mrb[198].mxu1  ;;  %v12211_v2 = vsel %vm12205_vm6, %v3987_v9, -inf  ;;  %v14272_v9 = vmov 0  ;;  %v12378_v23 = vsel %vm12226_vm8, %v12178_v46, -inf }
 0x3b8   :  { %v12193_v8 = vpop.f32.mrb[202].mxu0  ;;  %4062 = vmax.xlane.f32.xlu0 %v12182_v44  ;;  %v3990_v43 = vpop.f32.mrb[199].mxu1  ;;  %v12198_v33 = vsel %vm12188_vm5, %v8979_v7, -inf  ;;  %v3890_v7 = vadd.s32 88, %v11986_v57  ;;  %v14273_v9 = vsel %vm12226_vm8, 4294967295, %v14272_v9 }
 0x3b9   :  { %v12200_v21 = vpop.f32.mrb[203].mxu0  ;;  %4064 = vmax.xlane.f32.xlu1 %v12198_v33  ;;  %v12222_v52 = vsel %vm12214_vm7, %v3990_v43, -inf  ;;  %14274 = vst [vmem:[#allocation129_spill] sm:$0xff] %v14273_v9 }
 0x3ba   :  { %vm12238_vm9 = vcmp.le.s32.totalorder %v12114_v36, %v3890_v7  ;;  %v14278_v7 = vmov 0  ;;  %v12372_v32 = vsel %vm12262_vm11, %v12200_v21, -inf }
 0x3bb   :  { %v14276_v34 = vsel %vm12238_vm9, 4294967295, %v14275_v34  ;;  %v14279_v7 = vsel %vm12253_vm10, 4294967295, %v14278_v7 }
 0x3bc   :  { %4058 = vmax.xlane.f32.xlu0 %v12211_v2  ;;  %14277 = vst [vmem:[#allocation130_spill] sm:$0xff] %v14276_v34  ;;  %14280 = vst [vmem:[#allocation131_spill] sm:$0xff] %v14279_v7 }
 0x3bd   :  { %4060 = vmax.xlane.f32.xlu1 %v12222_v52  ;;  %v8982_v13 = vpop.f32.mrb[200].mxu1 }
 0x3be   :  { %v12230_v11 = vpop.f32.mrb[204].mxu0  ;;  %v4003_v55 = vpop.f32.mrb[201].mxu1  ;;  %v12234_v47 = vsel %vm12226_vm8, %v8982_v13, -inf }
 0x3bf   :  { %v4421_v39 = vpop.f32.mrb[205].mxu0  ;;  %v8983_v43 = vpop.f32.mrb[202].mxu1  ;;  %v12259_v56 = vsel %vm12253_vm10, %v4003_v55, -inf  ;;  %v14284_v55 = vmov 0 }
 0x3c0   :  { %v12243_v10 = vpop.f32.mrb[206].mxu0  ;;  %4070 = vmax.xlane.f32.xlu0 %v12234_v47  ;;  %v4006_v12 = vpop.f32.mrb[203].mxu1  ;;  %v12248_v13 = vsel %vm12238_vm9, %v8983_v43, -inf  ;;  %v3894_v43 = vadd.s32 120, %v11986_v57  ;;  %v14285_v55 = vsel %vm12274_vm12, 4294967295, %v14284_v55  ;;  %v14293_v57 = vmov 0 }
 0x3c1   :  { %v4424_v16 = vpop.f32.mrb[207].mxu0  ;;  %4072 = vmax.xlane.f32.xlu1 %v12248_v13  ;;  %v12270_v28 = vsel %vm12262_vm11, %v4006_v12, -inf  ;;  %14286 = vst [vmem:[#allocation133_spill] sm:$0xff] %v14285_v55  ;;  %v14287_v12 = vmov 0  ;;  %v14294_v57 = vsel %vm12305_vm15, 4294967295, %v14293_v57  ;;  %v12389_v21 = vsel %vm12296_vm14, %v4421_v39, -inf }
 0x3c2   :  { %vm12284_vm13 = vcmp.le.s32.totalorder %v12114_v36, %v3894_v43  ;;  %14295 = vst [vmem:[#allocation136_spill] sm:$0xff] %v14294_v57  ;;  %v12330_v36 = vsel %vm12121_vm0, %v12104_v22, -inf  ;;  %v12348_v22 = vsel %vm12214_vm7, %v12149_v60, -inf  ;;  %v12366_v60 = vsel %vm12253_vm10, %v12185_v29, -inf }
 0x3c3   :  { %v14288_v12 = vsel %vm12284_vm13, 4294967295, %v14287_v12  ;;  %v12384_v29 = vsel %vm12238_vm9, %v12193_v8, -inf  ;;  %v12394_v46 = vsel %vm12305_vm15, %v4424_v16, -inf  ;;  %v12400_v8 = vsel %vm12274_vm12, %v12230_v11, -inf }
 0x3c4   :  { %4066 = vmax.xlane.f32.xlu0 %v12259_v56  ;;  %14289 = vst [vmem:[#allocation134_spill] sm:$0xff] %v14288_v12  ;;  %v12406_v39 = vsel %vm12284_vm13, %v12243_v10, -inf }
 0x3c5   :  { %4068 = vmax.xlane.f32.xlu1 %v12270_v28  ;;  %v8986_v15 = vpop.f32.mrb[204].mxu1 }
 0x3c6   :  { %v4019_v30 = vpop.f32.mrb[205].mxu1  ;;  %v12280_v0 = vsel %vm12274_vm12, %v8986_v15, -inf  ;;  %v14290_v15 = vmov 0 }
 0x3c7   :  { %v8987_v48 = vpop.f32.mrb[206].mxu1  ;;  %v14291_v15 = vsel %vm12296_vm14, 4294967295, %v14290_v15  ;;  %v12302_v43 = vsel %vm12296_vm14, %v4019_v30, -inf }
 0x3c8   :  { %4078 = vmax.xlane.f32.xlu0 %v12280_v0  ;;  %v4022_v5 = vpop.f32.mrb[207].mxu1  ;;  %v12292_v42 = vsel %vm12284_vm13, %v8987_v48, -inf  ;;  %14292 = vst [vmem:[#allocation135_spill] sm:$0xff] %v14291_v15 }
 0x3c9   :  { %4080 = vmax.xlane.f32.xlu1 %v12292_v42  ;;  %v12312_v48 = vsel %vm12305_vm15, %v4022_v5, -inf }
 0x3cc   :  { %4074 = vmax.xlane.f32.xlu0 %v12302_v43 }
 0x3cd   :  { %4076 = vmax.xlane.f32.xlu1 %v12312_v48 }
 0x3d0   :  { %4452 = vmax.xlane.f32.xlu0 %v12318_v49 }
 0x3d1   :  { %4454 = vmax.xlane.f32.xlu1 %v12324_v63 }
 0x3d4   :  { %4456 = vmax.xlane.f32.xlu0 %v12330_v36 }
 0x3d5   :  { %4458 = vmax.xlane.f32.xlu1 %v12336_v27 }
 0x3d8   :  { %4460 = vmax.xlane.f32.xlu0 %v12342_v62 }
 0x3d9   :  { %4462 = vmax.xlane.f32.xlu1 %v12348_v22 }
 0x3dc   :  { %4464 = vmax.xlane.f32.xlu0 %v12354_v31 }
 0x3dd   :  { %4466 = vmax.xlane.f32.xlu1 %v12360_v14 }
 0x3e0   :  { %4468 = vmax.xlane.f32.xlu0 %v12366_v60 }
 0x3e1   :  { %4470 = vmax.xlane.f32.xlu1 %v12372_v32 }
 0x3e4   :  { %4472 = vmax.xlane.f32.xlu0 %v12378_v23 }
 0x3e5   :  { %4474 = vmax.xlane.f32.xlu1 %v12384_v29 }
 0x3e7   :  { %v9102_v30 = vpop.f32.mrb[208].mxu0 }
 0x3e8   :  { %v4775_v5 = vpop.f32.mrb[209].mxu0  ;;  %4476 = vmax.xlane.f32.xlu0 %v12389_v21  ;;  %v12411_v24 = vsel %vm12121_vm0, %v9102_v30, -inf }
 0x3e9   :  { %v9103_v6 = vpop.f32.mrb[210].mxu0  ;;  %4478 = vmax.xlane.f32.xlu1 %v12394_v46  ;;  %v12421_v10 = vsel %vm12134_vm1, %v4775_v5, -inf }
 0x3ea   :  { %v4778_v3 = vpop.f32.mrb[211].mxu0  ;;  %v12416_v11 = vsel %vm12152_vm2, %v9103_v6, -inf }
 0x3eb   :  { %v12426_v30 = vsel %vm12162_vm3, %v4778_v3, -inf }
 0x3ec   :  { %4480 = vmax.xlane.f32.xlu0 %v12400_v8 }
 0x3ed   :  { %4482 = vmax.xlane.f32.xlu1 %v12406_v39 }
 0x3ef   :  { %v9106_v16 = vpop.f32.mrb[212].mxu0 }
 0x3f0   :  { %v4791_v38 = vpop.f32.mrb[213].mxu0  ;;  %4858 = vmax.xlane.f32.xlu0 %v12411_v24  ;;  %v12431_v6 = vsel %vm12174_vm4, %v9106_v16, -inf }
 0x3f1   :  { %v9107_v50 = vpop.f32.mrb[214].mxu0  ;;  %4860 = vmax.xlane.f32.xlu1 %v12416_v11  ;;  %v12441_v3 = vsel %vm12205_vm6, %v4791_v38, -inf }
 0x3f2   :  { %v4794_v17 = vpop.f32.mrb[215].mxu0  ;;  %v12436_v5 = vsel %vm12188_vm5, %v9107_v50, -inf }
 0x3f3   :  { %v12446_v16 = vsel %vm12214_vm7, %v4794_v17, -inf }
 0x3f4   :  { %4854 = vmax.xlane.f32.xlu0 %v12421_v10 }
 0x3f5   :  { %4856 = vmax.xlane.f32.xlu1 %v12426_v30 }
 0x3f7   :  { %v9110_v37 = vpop.f32.mrb[216].mxu0 }
 0x3f8   :  { %v4807_v53 = vpop.f32.mrb[217].mxu0  ;;  %4866 = vmax.xlane.f32.xlu0 %v12431_v6  ;;  %v12453_v50 = vsel %vm12226_vm8, %v9110_v37, -inf }
 0x3f9   :  { %v9111_v51 = vpop.f32.mrb[218].mxu0  ;;  %4868 = vmax.xlane.f32.xlu1 %v12436_v5  ;;  %14296 = vst [vmem:[#allocation137_spill] sm:$0xff] %v12453_v50  ;;  %v12469_v25 = vsel %vm12253_vm10, %v4807_v53, -inf }
 0x3fa   :  { %v4810_v26 = vpop.f32.mrb[219].mxu0  ;;  %v12460_v38 = vsel %vm12238_vm9, %v9111_v51, -inf }
 0x3fb   :  { %14297 = vst [vmem:[#allocation138_spill] sm:$0xff] %v12460_v38  ;;  %v12474_v37 = vsel %vm12262_vm11, %v4810_v26, -inf }
 0x3fc   :  { %4862 = vmax.xlane.f32.xlu0 %v12441_v3 }
 0x3fd   :  { %4864 = vmax.xlane.f32.xlu1 %v12446_v16 }
 0x3ff   :  { %v12449_v54 = vpop.f32.mrb[220].mxu0 }
 0x400   :  { %v12455_v19 = vpop.f32.mrb[221].mxu0  ;;  %4874 = vmax.xlane.f32.xlu0 %v12453_v50 }
 0x401   :  { %v12462_v18 = vpop.f32.mrb[222].mxu0  ;;  %4876 = vmax.xlane.f32.xlu1 %v12460_v38 }
 0x402   :  { %v12465_v17 = vpop.f32.mrb[223].mxu0 }
 0x404   :  { %4870 = vmax.xlane.f32.xlu0 %v12469_v25 }
 0x405   :  { %4872 = vmax.xlane.f32.xlu1 %v12474_v37 }
 0x43c   :  { %v4055_v51 = vpop.xlane.xlu1 %4054 }
 0x43d   :  { %v4084_v34 = vsub.f32 %v12130_v35, %v4055_v51  ;;  %v4051_v9 = vpop.xlane.xlu0 %4050 }
 0x43e   :  { %v4082_v20 = vsub.f32 %v12144_v4, %v4051_v9 }
 0x43f   :  { %v4102_v58 = vmul.f32 1.442695, %v4084_v34 }
 0x440   :  { %v4098_v41 = vmul.f32 1.442695, %v4082_v20  ;;  %v4057_v61 = vpop.xlane.xlu1 %4056 }
 0x441   :  { %10269 = vpow2.f32 %v4102_v58  ;;  %v4085_v53 = vsub.f32 %v12159_v40, %v4057_v61  ;;  %v4053_v7 = vpop.xlane.xlu0 %4052 }
 0x442   :  { %v4083_v45 = vsub.f32 %v12169_v1, %v4053_v7  ;;  %10271 = vpow2.f32 %v4098_v41 }
 0x443   :  { %v4104_v59 = vmul.f32 1.442695, %v4085_v53 }
 0x444   :  { %v4100_v26 = vmul.f32 1.442695, %v4083_v45 }
 0x445   :  { %10273 = vpow2.f32 %v4104_v59  ;;  %v4063_v38 = vpop.xlane.xlu0 %4062 }
 0x446   :  { %v4088_v50 = vsub.f32 %v12182_v44, %v4063_v38  ;;  %v4065_v35 = vpop.xlane.xlu1 %4064  ;;  %10275 = vpow2.f32 %v4100_v26 }
 0x447   :  { %v4089_v51 = vsub.f32 %v12198_v33, %v4065_v35 }
 0x448   :  { %v4110_v4 = vmul.f32 1.442695, %v4088_v50 }
 0x449   :  { %v4112_v20 = vmul.f32 1.442695, %v4089_v51  ;;  %v4059_v34 = vpop.xlane.xlu0 %4058 }
 0x44a   :  { %10277 = vpow2.f32 %v4110_v4  ;;  %v4086_v61 = vsub.f32 %v12211_v2, %v4059_v34  ;;  %v4061_v58 = vpop.xlane.xlu1 %4060 }
 0x44b   :  { %v12484_v40 = vpop.eup %10269  ;;  %v4087_v41 = vsub.f32 %v12222_v52, %v4061_v58  ;;  %10279 = vpow2.f32 %v4112_v20 }
 0x44c   :  { %v4106_v59 = vmul.f32 1.442695, %v4086_v61  ;;  %4134 = vadd.xlane.f32.xlu0 %v12484_v40  ;;  %v12488_v44 = vpop.eup %10271 }
 0x44d   :  { %v4108_v45 = vmul.f32 1.442695, %v4087_v41  ;;  %v4071_v1 = vpop.xlane.xlu0 %4070 }
 0x44e   :  { %10281 = vpow2.f32 %v4106_v59  ;;  %v4092_v33 = vsub.f32 %v12234_v47, %v4071_v1  ;;  %v4073_v9 = vpop.xlane.xlu1 %4072 }
 0x44f   :  { %v12491_v7 = vpop.eup %10273  ;;  %v4093_v2 = vsub.f32 %v12248_v13, %v4073_v9  ;;  %10283 = vpow2.f32 %v4108_v45 }
 0x450   :  { %v4118_v50 = vmul.f32 1.442695, %v4092_v33  ;;  %4130 = vadd.xlane.f32.xlu0 %v12488_v44  ;;  %4136 = vadd.xlane.f32.xlu1 %v12491_v7  ;;  %v12497_v35 = vpop.eup %10275 }
 0x451   :  { %v4120_v52 = vmul.f32 1.442695, %v4093_v2  ;;  %v4067_v38 = vpop.xlane.xlu0 %4066 }
 0x452   :  { %10285 = vpow2.f32 %v4118_v50  ;;  %v4090_v53 = vsub.f32 %v12259_v56, %v4067_v38  ;;  %v4069_v26 = vpop.xlane.xlu1 %4068 }
 0x453   :  { %v4091_v47 = vsub.f32 %v12270_v28, %v4069_v26  ;;  %10287 = vpow2.f32 %v4120_v52 }
 0x454   :  { %v12500_v51 = vpop.eup %10277  ;;  %v4114_v4 = vmul.f32 1.442695, %v4090_v53  ;;  %4132 = vadd.xlane.f32.xlu1 %v12497_v35 }
 0x455   :  { %v4116_v13 = vmul.f32 1.442695, %v4091_v47  ;;  %v4079_v20 = vpop.xlane.xlu0 %4078  ;;  %4142 = vadd.xlane.f32.xlu0 %v12500_v51  ;;  %v12505_v56 = vpop.eup %10279 }
 0x456   :  { %10289 = vpow2.f32 %v4114_v4  ;;  %v4096_v34 = vsub.f32 %v12280_v0, %v4079_v20  ;;  %v4081_v61 = vpop.xlane.xlu1 %4080 }
 0x457   :  { %v4097_v58 = vsub.f32 %v12292_v42, %v4081_v61  ;;  %10291 = vpow2.f32 %v4116_v13 }
 0x458   :  { %v12508_v41 = vpop.eup %10281  ;;  %v4126_v28 = vmul.f32 1.442695, %v4096_v34  ;;  %4144 = vadd.xlane.f32.xlu1 %v12505_v56 }
 0x459   :  { %v4128_v59 = vmul.f32 1.442695, %v4097_v58  ;;  %v4075_v45 = vpop.xlane.xlu0 %4074  ;;  %4138 = vadd.xlane.f32.xlu0 %v12508_v41  ;;  %v12513_v0 = vpop.eup %10283 }
 0x45a   :  { %10293 = vpow2.f32 %v4126_v28  ;;  %v4094_v1 = vsub.f32 %v12302_v43, %v4075_v45  ;;  %v4077_v33 = vpop.xlane.xlu1 %4076 }
 0x45b   :  { %v4095_v9 = vsub.f32 %v12312_v48, %v4077_v33  ;;  %10295 = vpow2.f32 %v4128_v59 }
 0x45c   :  { %v12516_v2 = vpop.eup %10285  ;;  %v4122_v42 = vmul.f32 1.442695, %v4094_v1  ;;  %4140 = vadd.xlane.f32.xlu1 %v12513_v0 }
 0x45d   :  { %v4124_v50 = vmul.f32 1.442695, %v4095_v9  ;;  %v4453_v52 = vpop.xlane.xlu0 %4452  ;;  %4150 = vadd.xlane.f32.xlu0 %v12516_v2  ;;  %v12521_v43 = vpop.eup %10287 }
 0x45e   :  { %10297 = vpow2.f32 %v4122_v42  ;;  %v4484_v38 = vsub.f32 %v12318_v49, %v4453_v52  ;;  %v4455_v53 = vpop.xlane.xlu1 %4454 }
 0x45f   :  { %v4485_v26 = vsub.f32 %v12324_v63, %v4455_v53  ;;  %10299 = vpow2.f32 %v4124_v50 }
 0x460   :  { %v12524_v47 = vpop.eup %10289  ;;  %v4500_v48 = vmul.f32 1.442695, %v4484_v38  ;;  %4152 = vadd.xlane.f32.xlu1 %v12521_v43 }
 0x461   :  { %v4502_v4 = vmul.f32 1.442695, %v4485_v26  ;;  %v4457_v13 = vpop.xlane.xlu0 %4456  ;;  %4146 = vadd.xlane.f32.xlu0 %v12524_v47  ;;  %v12529_v49 = vpop.eup %10291 }
 0x462   :  { %10301 = vpow2.f32 %v4500_v48  ;;  %v4486_v20 = vsub.f32 %v12330_v36, %v4457_v13  ;;  %v4459_v34 = vpop.xlane.xlu1 %4458 }
 0x463   :  { %v4487_v61 = vsub.f32 %v12336_v27, %v4459_v34  ;;  %10303 = vpow2.f32 %v4502_v4 }
 0x464   :  { %v12532_v58 = vpop.eup %10293  ;;  %v4504_v63 = vmul.f32 1.442695, %v4486_v20  ;;  %4148 = vadd.xlane.f32.xlu1 %v12529_v49 }
 0x465   :  { %v4506_v28 = vmul.f32 1.442695, %v4487_v61  ;;  %v4461_v59 = vpop.xlane.xlu0 %4460  ;;  %4158 = vadd.xlane.f32.xlu0 %v12532_v58  ;;  %v12536_v1 = vpop.eup %10295 }
 0x466   :  { %10305 = vpow2.f32 %v4504_v63  ;;  %v4463_v45 = vpop.xlane.xlu1 %4462  ;;  %v4488_v33 = vsub.f32 %v12342_v62, %v4461_v59 }
 0x467   :  { %10307 = vpow2.f32 %v4506_v28  ;;  %v4489_v52 = vsub.f32 %v12348_v22, %v4463_v45 }
 0x468   :  { %v12538_v36 = vpop.eup %10297  ;;  %4160 = vadd.xlane.f32.xlu1 %v12536_v1  ;;  %v4508_v53 = vmul.f32 1.442695, %v4488_v33 }
 0x469   :  { %v4465_v27 = vpop.xlane.xlu0 %4464  ;;  %4154 = vadd.xlane.f32.xlu0 %v12538_v36  ;;  %v12543_v42 = vpop.eup %10299  ;;  %v4510_v62 = vmul.f32 1.442695, %v4489_v52 }
 0x46a   :  { %v4467_v9 = vpop.xlane.xlu1 %4466  ;;  %v4490_v26 = vsub.f32 %v12354_v31, %v4465_v27  ;;  %10309 = vpow2.f32 %v4508_v53  ;;  %v12565_v31 = vsel %vm12296_vm14, %v12455_v19, -inf  ;;  %v12579_v19 = vsel %vm12274_vm12, %v12449_v54, -inf }
 0x46b   :  { %v4491_v20 = vsub.f32 %v12360_v14, %v4467_v9  ;;  %10311 = vpow2.f32 %v4510_v62  ;;  %v12573_v9 = vsel %vm12305_vm15, %v12465_v17, -inf }
 0x46c   :  { %v12545_v50 = vpop.eup %10301  ;;  %4156 = vadd.xlane.f32.xlu1 %v12543_v42  ;;  %v4512_v22 = vmul.f32 1.442695, %v4490_v26  ;;  %v12587_v26 = vsel %vm12284_vm13, %v12462_v18, -inf }
 0x46d   :  { %v4469_v38 = vpop.xlane.xlu0 %4468  ;;  %4532 = vadd.xlane.f32.xlu0 %v12545_v50  ;;  %v12551_v4 = vpop.eup %10303  ;;  %v4514_v59 = vmul.f32 1.442695, %v4491_v20 }
 0x46e   :  { %v4471_v48 = vpop.xlane.xlu1 %4470  ;;  %v4492_v61 = vsub.f32 %v12366_v60, %v4469_v38  ;;  %10313 = vpow2.f32 %v4512_v22 }
 0x46f   :  { %v4493_v14 = vsub.f32 %v12372_v32, %v4471_v48  ;;  %10315 = vpow2.f32 %v4514_v59 }
 0x470   :  { %v12553_v13 = vpop.eup %10305  ;;  %4534 = vadd.xlane.f32.xlu1 %v12551_v4  ;;  %v4516_v27 = vmul.f32 1.442695, %v4492_v61 }
 0x471   :  { %v4473_v34 = vpop.xlane.xlu0 %4472  ;;  %4536 = vadd.xlane.f32.xlu0 %v12553_v13  ;;  %v12559_v28 = vpop.eup %10307  ;;  %v4518_v32 = vmul.f32 1.442695, %v4493_v14 }
 0x472   :  { %v4475_v63 = vpop.xlane.xlu1 %4474  ;;  %v4494_v60 = vsub.f32 %v12378_v23, %v4473_v34  ;;  %10317 = vpow2.f32 %v4516_v27 }
 0x473   :  { %v4495_v52 = vsub.f32 %v12384_v29, %v4475_v63  ;;  %10319 = vpow2.f32 %v4518_v32 }
 0x474   :  { %4538 = vadd.xlane.f32.xlu1 %v12559_v28  ;;  %v4520_v23 = vmul.f32 1.442695, %v4494_v60  ;;  %v12589_v48 = vpop.eup %10309 }
 0x475   :  { %v4477_v45 = vpop.xlane.xlu0 %4476  ;;  %4878 = vmax.xlane.f32.xlu0 %v12565_v31  ;;  %v4522_v54 = vmul.f32 1.442695, %v4495_v52  ;;  %v12595_v22 = vpop.eup %10311 }
 0x476   :  { %v4479_v33 = vpop.xlane.xlu1 %4478  ;;  %v4496_v53 = vsub.f32 %v12389_v21, %v4477_v45  ;;  %10321 = vpow2.f32 %v4520_v23 }
 0x477   :  { %v4497_v29 = vsub.f32 %v12394_v46, %v4479_v33  ;;  %10323 = vpow2.f32 %v4522_v54 }
 0x478   :  { %4880 = vmax.xlane.f32.xlu1 %v12573_v9  ;;  %v4524_v20 = vmul.f32 1.442695, %v4496_v53  ;;  %v12597_v18 = vpop.eup %10313 }
 0x479   :  { %v4481_v38 = vpop.xlane.xlu0 %4480  ;;  %4882 = vmax.xlane.f32.xlu0 %v12579_v19  ;;  %v4526_v61 = vmul.f32 1.442695, %v4497_v29 }
 0x47a   :  { %v4483_v17 = vpop.xlane.xlu1 %4482  ;;  %v4498_v21 = vsub.f32 %v12400_v8, %v4481_v38  ;;  %10325 = vpow2.f32 %v4524_v20  ;;  %v12603_v8 = vpop.eup %10315 }
 0x47b   :  { %v4499_v63 = vsub.f32 %v12406_v39, %v4483_v17  ;;  %10327 = vpow2.f32 %v4526_v61 }
 0x47c   :  { %4884 = vmax.xlane.f32.xlu1 %v12587_v26  ;;  %v4528_v46 = vmul.f32 1.442695, %v4498_v21  ;;  %v12605_v27 = vpop.eup %10317 }
 0x47d   :  { %v4859_v62 = vpop.xlane.xlu0 %4858  ;;  %4540 = vadd.xlane.f32.xlu0 %v12589_v48  ;;  %v4530_v60 = vmul.f32 1.442695, %v4499_v63 }
 0x47e   :  { %v4861_v34 = vpop.xlane.xlu1 %4860  ;;  %10329 = vpow2.f32 %v4528_v46  ;;  %v4888_v39 = vsub.f32 %v12411_v24, %v4859_v62 }
 0x47f   :  { %10331 = vpow2.f32 %v4530_v60  ;;  %v4889_v53 = vsub.f32 %v12416_v11, %v4861_v34 }
 0x480   :  { %4542 = vadd.xlane.f32.xlu1 %v12595_v22 }
 0x481   :  { %v4855_v59 = vpop.xlane.xlu0 %4854  ;;  %4544 = vadd.xlane.f32.xlu0 %v12597_v18  ;;  %v4908_v21 = vmul.f32 1.442695, %v4889_v53 }
 0x482   :  { %v4886_v14 = vsub.f32 %v12421_v10, %v4855_v59  ;;  %v4857_v45 = vpop.xlane.xlu1 %4856  ;;  %v12611_v10 = vpop.eup %10319 }
 0x483   :  { %v4887_v33 = vsub.f32 %v12426_v30, %v4857_v45  ;;  %v12613_v23 = vpop.eup %10321  ;;  %v4906_v30 = vmul.f32 1.442695, %v4888_v39 }
 0x484   :  { %4546 = vadd.xlane.f32.xlu1 %v12603_v8  ;;  %v4902_v52 = vmul.f32 1.442695, %v4886_v14  ;;  %v12619_v62 = vpop.eup %10323 }
 0x485   :  { %v4867_v32 = vpop.xlane.xlu0 %4866  ;;  %4548 = vadd.xlane.f32.xlu0 %v12605_v27  ;;  %v4904_v17 = vmul.f32 1.442695, %v4887_v33  ;;  %v12621_v20 = vpop.eup %10325 }
 0x486   :  { %v4869_v38 = vpop.xlane.xlu1 %4868  ;;  %10333 = vpow2.f32 %v4902_v52  ;;  %v4892_v34 = vsub.f32 %v12431_v6, %v4867_v32 }
 0x487   :  { %10335 = vpow2.f32 %v4904_v17  ;;  %v4893_v14 = vsub.f32 %v12436_v5, %v4869_v38  ;;  %v14298_v5 = vld [vmem:[#allocation137_spill] sm:$0xff] }
 0x488   :  { %4550 = vadd.xlane.f32.xlu1 %v12611_v10  ;;  %10337 = vpow2.f32 %v4906_v30  ;;  %v14299_v30 = vld [vmem:[#allocation138_spill] sm:$0xff] }
 0x489   :  { %v4863_v54 = vpop.xlane.xlu0 %4862  ;;  %4552 = vadd.xlane.f32.xlu0 %v12613_v23  ;;  %10339 = vpow2.f32 %v4908_v21  ;;  %v4916_v52 = vmul.f32 1.442695, %v4893_v14 }
 0x48a   :  { %v4890_v29 = vsub.f32 %v12441_v3, %v4863_v54  ;;  %v4865_v24 = vpop.xlane.xlu1 %4864  ;;  %v12627_v3 = vpop.eup %10327 }
 0x48b   :  { %v4891_v61 = vsub.f32 %v12446_v16, %v4865_v24  ;;  %v12629_v46 = vpop.eup %10329  ;;  %v4914_v16 = vmul.f32 1.442695, %v4892_v34 }
 0x48c   :  { %4554 = vadd.xlane.f32.xlu1 %v12619_v62  ;;  %v4910_v63 = vmul.f32 1.442695, %v4890_v29  ;;  %v12635_v32 = vpop.eup %10331 }
 0x48d   :  { %v4875_v11 = vpop.xlane.xlu0 %4874  ;;  %4556 = vadd.xlane.f32.xlu0 %v12621_v20  ;;  %v4912_v45 = vmul.f32 1.442695, %v4891_v61 }
 0x48e   :  { %v4877_v59 = vpop.xlane.xlu1 %4876  ;;  %10341 = vpow2.f32 %v4910_v63  ;;  %v4896_v38 = vsub.f32 %v14298_v5, %v4875_v11 }
 0x48f   :  { %10343 = vpow2.f32 %v4912_v45  ;;  %v4897_v29 = vsub.f32 %v14299_v30, %v4877_v59 }
 0x490   :  { %4558 = vadd.xlane.f32.xlu1 %v12627_v3  ;;  %v12637_v39 = vpop.eup %10333  ;;  %10345 = vpow2.f32 %v4914_v16  ;;  %v4922_v21 = vmul.f32 1.442695, %v4896_v38 }
 0x491   :  { %v4871_v60 = vpop.xlane.xlu0 %4870  ;;  %4560 = vadd.xlane.f32.xlu0 %v12629_v46  ;;  %v12643_v54 = vpop.eup %10335  ;;  %10347 = vpow2.f32 %v4916_v52  ;;  %v4924_v11 = vmul.f32 1.442695, %v4897_v29 }
 0x492   :  { %v4894_v33 = vsub.f32 %v12469_v25, %v4871_v60  ;;  %v4873_v6 = vpop.xlane.xlu1 %4872  ;;  %v12645_v25 = vpop.eup %10337 }
 0x493   :  { %v4895_v53 = vsub.f32 %v12474_v37, %v4873_v6  ;;  %v12650_v37 = vpop.eup %10339 }
 0x494   :  { %4562 = vadd.xlane.f32.xlu1 %v12635_v32  ;;  %v4918_v17 = vmul.f32 1.442695, %v4894_v33 }
 0x495   :  { %4934 = vadd.xlane.f32.xlu0 %v12637_v39  ;;  %v4920_v24 = vmul.f32 1.442695, %v4895_v53 }
 0x496   :  { %10349 = vpow2.f32 %v4918_v17 }
 0x497   :  { %10351 = vpow2.f32 %v4920_v24 }
 0x498   :  { %4936 = vadd.xlane.f32.xlu1 %v12643_v54  ;;  %v12652_v61 = vpop.eup %10341  ;;  %10353 = vpow2.f32 %v4922_v21 }
 0x499   :  { %4938 = vadd.xlane.f32.xlu0 %v12645_v25  ;;  %v12656_v34 = vpop.eup %10343  ;;  %10355 = vpow2.f32 %v4924_v11 }
 0x49a   :  { %v12658_v63 = vpop.eup %10345 }
 0x49b   :  { %v12662_v59 = vpop.eup %10347 }
 0x49c   :  { %4940 = vadd.xlane.f32.xlu1 %v12650_v37 }
 0x49d   :  { %4942 = vadd.xlane.f32.xlu0 %v12652_v61 }
 0x4a0   :  { %4944 = vadd.xlane.f32.xlu1 %v12656_v34  ;;  %v12664_v14 = vpop.eup %10349 }
 0x4a1   :  { %4946 = vadd.xlane.f32.xlu0 %v12658_v63  ;;  %v12668_v45 = vpop.eup %10351 }
 0x4a2   :  { %v12670_v60 = vpop.eup %10353 }
 0x4a3   :  { %v12674_v16 = vpop.eup %10355 }
 0x4a4   :  { %4948 = vadd.xlane.f32.xlu1 %v12662_v59  ;;  %14300 = vst [vmem:[#allocation137_spill] sm:$0xff] %v12674_v16 }
 0x4a5   :  { %4950 = vadd.xlane.f32.xlu0 %v12664_v14 }
 0x4a8   :  { %4952 = vadd.xlane.f32.xlu1 %v12668_v45 }
 0x4a9   :  { %4954 = vadd.xlane.f32.xlu0 %v12670_v60 }
 0x4ac   :  { %4956 = vadd.xlane.f32.xlu1 %v12674_v16 }
 0x4d9   :  { %v4135_v33 = vpop.xlane.xlu0 %4134 }
 0x4dd   :  { %v4131_v6 = vpop.xlane.xlu0 %4130  ;;  %v4137_v52 = vpop.xlane.xlu1 %4136 }
 0x4de   :  { %10357 = vrcp.f32 %v4137_v52 }
 0x4df   :  { %10359 = vrcp.f32 %v4131_v6 }
 0x4e0   :  { %10361 = vrcp.f32 %v4135_v33 }
 0x4e1   :  { %v4133_v53 = vpop.xlane.xlu1 %4132 }
 0x4e2   :  { %10363 = vrcp.f32 %v4133_v53  ;;  %v4143_v5 = vpop.xlane.xlu0 %4142 }
 0x4e5   :  { %v4145_v38 = vpop.xlane.xlu1 %4144 }
 0x4e6   :  { %v4139_v17 = vpop.xlane.xlu0 %4138  ;;  %10365 = vrcp.f32 %v4145_v38 }
 0x4e7   :  { %10367 = vrcp.f32 %v4139_v17 }
 0x4e8   :  { %v10358_v30 = vpop.eup %10357  ;;  %10369 = vrcp.f32 %v4143_v5 }
 0x4e9   :  { %v4141_v29 = vpop.xlane.xlu1 %4140  ;;  %v10360_v24 = vpop.eup %10359  ;;  %v4181_v55 = vmul.f32 %v10358_v30, %v12491_v7  ;;  %v14301_v30 = vld [vmem:[#allocation68_spill] sm:$0xff] }
 0x4ea   :  { %10371 = vrcp.f32 %v4141_v29  ;;  %v4151_v21 = vpop.xlane.xlu0 %4150  ;;  %v10362_v11 = vpop.eup %10361  ;;  %v4178_v33 = vmul.f32 %v10360_v24, %v12488_v44 }
 0x4eb   :  { %v4180_v53 = vmul.f32 %v10362_v11, %v12484_v40 }
 0x4ec   :  { %v10364_v12 = vpop.eup %10363 }
 0x4ed   :  { %v4153_v52 = vpop.xlane.xlu1 %4152  ;;  %v4179_v6 = vmul.f32 %v10364_v12, %v12497_v35  ;;  %v4195_v5 = vpack.c.bf16 %v4181_v55, %v4180_v53  ;;  %v14302_v12 = vld [vmem:[#allocation16_spill] sm:$0xff] }
 0x4ee   :  { %v4147_v57 = vpop.xlane.xlu0 %4146  ;;  %10373 = vrcp.f32 %v4153_v52  ;;  %v14303_v52 = vld [vmem:[#allocation67_spill] sm:$0xff] }
 0x4ef   :  { %v4194_v38 = vpack.c.bf16 %v4179_v6, %v4178_v33  ;;  %10375 = vrcp.f32 %v4147_v57 }
 0x4f0   :  { %v10366_v17 = vpop.eup %10365  ;;  %10377 = vrcp.f32 %v4151_v21 }
 0x4f1   :  { %9004 = vmatprep.mubr.bf16.mxu1 %v4194_v38  ;;  %v4149_v29 = vpop.xlane.xlu1 %4148  ;;  %v10368_v15 = vpop.eup %10367  ;;  %v4185_v40 = vmul.f32 %v10366_v17, %v12505_v56 }
 0x4f2   :  { %10379 = vrcp.f32 %v4149_v29  ;;  %v4159_v16 = vpop.xlane.xlu0 %4158  ;;  %9005 = vmatmul.mubr.bf16.vlgmr.msra.gmra.mrb[208].mxu1 %v4195_v5  ;;  %v10370_v7 = vpop.eup %10369  ;;  %v4182_v57 = vmul.f32 %v10368_v15, %v12508_v41 }
 0x4f3   :  { %9053 = vmatpush3.bf16.msra.mxu1 %v14301_v30  ;;  %v4184_v21 = vmul.f32 %v10370_v7, %v12500_v51 }
 0x4f4   :  { %v10372_v44 = vpop.eup %10371  ;;  %9054 = vmatprep.subr.bf16.mxu1 %v14302_v12 }
 0x4f5   :  { %v4161_v35 = vpop.xlane.xlu1 %4160  ;;  %v4183_v55 = vmul.f32 %v10372_v44, %v12513_v0  ;;  %v4197_v33 = vpack.c.bf16 %v4185_v40, %v4184_v21  ;;  %v14304_v0 = vld [vmem:[#allocation75_spill] sm:$0xff] }
 0x4f6   :  { %v4155_v24 = vpop.xlane.xlu0 %4154  ;;  %10381 = vrcp.f32 %v4161_v35  ;;  %v14305_v44 = vld [vmem:[#allocation71_spill] sm:$0xff] }
 0x4f7   :  { %9055 = vmatpush3.bf16.msra.mxu1 %v14302_v12  ;;  %v4196_v11 = vpack.c.bf16 %v4183_v55, %v4182_v57  ;;  %10383 = vrcp.f32 %v4155_v24  ;;  %v14306_v55 = vld [vmem:[#allocation18_spill] sm:$0xff] }
 0x4f8   :  { %9056 = vmatprep.subr.bf16.mxu1 %v14303_v52  ;;  %v10374_v6 = vpop.eup %10373  ;;  %10385 = vrcp.f32 %v4159_v16 }
 0x4f9   :  { %9008 = vmatprep.mubr.bf16.mxu1 %v4196_v11  ;;  %v4157_v56 = vpop.xlane.xlu1 %4156  ;;  %v10376_v53 = vpop.eup %10375  ;;  %v4189_v38 = vmul.f32 %v10374_v6, %v12521_v43 }
 0x4fa   :  { %10387 = vrcp.f32 %v4157_v56  ;;  %v4533_v15 = vpop.xlane.xlu0 %4532  ;;  %9009 = vmatmul.mubr.bf16.gmra.mrb[212].mxu1 %v4197_v33  ;;  %v10378_v41 = vpop.eup %10377  ;;  %v4186_v17 = vmul.f32 %v10376_v53, %v12524_v47 }
 0x4fb   :  { %9057 = vmatpush3.bf16.msra.mxu1 %v14303_v52  ;;  %10389 = vrcp.f32 %v4533_v15  ;;  %v4188_v7 = vmul.f32 %v10378_v41, %v12516_v2 }
 0x4fc   :  { %v10380_v51 = vpop.eup %10379  ;;  %9058 = vmatprep.subr.bf16.mxu1 %v14304_v0 }
 0x4fd   :  { %v4535_v5 = vpop.xlane.xlu1 %4534  ;;  %v4187_v16 = vmul.f32 %v10380_v51, %v12529_v49  ;;  %v4199_v12 = vpack.c.bf16 %v4189_v38, %v4188_v7 }
 0x4fe   :  { %10391 = vrcp.f32 %v4535_v5  ;;  %v4537_v29 = vpop.xlane.xlu0 %4536 }
 0x4ff   :  { %9059 = vmatpush3.bf16.msra.mxu1 %v14304_v0  ;;  %v4198_v30 = vpack.c.bf16 %v4187_v16, %v4186_v17  ;;  %10393 = vrcp.f32 %v4537_v29  ;;  %v14307_v0 = vld [vmem:[#allocation83_spill] sm:$0xff] }
 0x500   :  { %9060 = vmatprep.subr.bf16.mxu1 %v14305_v44  ;;  %v10382_v40 = vpop.eup %10381 }
 0x501   :  { %9012 = vmatprep.mubr.bf16.mxu1 %v4198_v30  ;;  %v4539_v35 = vpop.xlane.xlu1 %4538  ;;  %v10384_v43 = vpop.eup %10383  ;;  %v4193_v24 = vmul.f32 %v10382_v40, %v12536_v1  ;;  %v14308_v30 = vld [vmem:[#allocation80_spill] sm:$0xff]  ;;  %v14309_v40 = vld [vmem:[#allocation82_spill] sm:$0xff] }
 0x502   :  { %10395 = vrcp.f32 %v4539_v35  ;;  %v4879_v57 = vpop.xlane.xlu0 %4878  ;;  %9013 = vmatmul.mubr.bf16.gmra.mrb[216].mxu1 %v4199_v12  ;;  %v10386_v47 = vpop.eup %10385  ;;  %v4190_v52 = vmul.f32 %v10384_v43, %v12538_v36 }
 0x503   :  { %v4898_v49 = vsub.f32 %v12565_v31, %v4879_v57  ;;  %9061 = vmatpush3.bf16.msra.mxu1 %v14305_v44  ;;  %v4192_v15 = vmul.f32 %v10386_v47, %v12532_v58  ;;  %v14310_v57 = vld [vmem:[#allocation74_spill] sm:$0xff] }
 0x504   :  { %v10388_v2 = vpop.eup %10387  ;;  %9062 = vmatprep.subr.bf16.mxu1 %v14306_v55 }
 0x505   :  { %v4926_v21 = vmul.f32 1.442695, %v4898_v49  ;;  %v4881_v11 = vpop.xlane.xlu1 %4880  ;;  %v4191_v33 = vmul.f32 %v10388_v2, %v12543_v42  ;;  %v10390_v6 = vpop.eup %10389  ;;  %v4201_v38 = vpack.c.bf16 %v4193_v24, %v4192_v15 }
 0x506   :  { %v4899_v56 = vsub.f32 %v12573_v9, %v4881_v11  ;;  %v4883_v53 = vpop.xlane.xlu0 %4882  ;;  %v4580_v5 = vmul.f32 %v10390_v6, %v12545_v50 }
 0x507   :  { %10397 = vpow2.f32 %v4926_v21  ;;  %v4900_v31 = vsub.f32 %v12579_v19, %v4883_v53  ;;  %9063 = vmatpush3.bf16.msra.mxu1 %v14306_v55  ;;  %v4200_v41 = vpack.c.bf16 %v4191_v33, %v4190_v52  ;;  %v14311_v21 = vld [vmem:[#allocation87_spill] sm:$0xff] }
 0x508   :  { %v10392_v51 = vpop.eup %10391  ;;  %v4928_v1 = vmul.f32 1.442695, %v4899_v56  ;;  %9064 = vmatprep.subr.bf16.mxu1 %v14307_v0 }
 0x509   :  { %v4930_v36 = vmul.f32 1.442695, %v4900_v31  ;;  %9016 = vmatprep.mubr.bf16.mxu1 %v4200_v41  ;;  %v4885_v42 = vpop.xlane.xlu1 %4884  ;;  %v4581_v9 = vmul.f32 %v10392_v51, %v12551_v4  ;;  %v10394_v17 = vpop.eup %10393  ;;  %v14312_v31 = vld [vmem:[#allocation79_spill] sm:$0xff] }
 0x50a   :  { %10399 = vpow2.f32 %v4928_v1  ;;  %v4901_v58 = vsub.f32 %v12587_v26, %v4885_v42  ;;  %v4541_v19 = vpop.xlane.xlu0 %4540  ;;  %9017 = vmatmul.mubr.bf16.gmra.mrb[220].mxu1 %v4201_v38  ;;  %v4582_v44 = vmul.f32 %v10394_v17, %v12553_v13  ;;  %v14313_v42 = vld [vmem:[#allocation89_spill] sm:$0xff] }
 0x50b   :  { %10401 = vpow2.f32 %v4930_v36  ;;  %9065 = vmatpush3.bf16.msra.mxu1 %v14307_v0  ;;  %v4596_v16 = vpack.c.bf16 %v4581_v9, %v4580_v5 }
 0x50c   :  { %v10396_v29 = vpop.eup %10395  ;;  %v4932_v7 = vmul.f32 1.442695, %v4901_v58  ;;  %9066 = vmatprep.subr.bf16.mxu1 %v14308_v30  ;;  %10403 = vrcp.f32 %v4541_v19 }
 0x50d   :  { %v4583_v50 = vmul.f32 %v10396_v29, %v12559_v28  ;;  %9068 = vmatprep.mubr.bf16.mxu1 %v4596_v16  ;;  %v4543_v4 = vpop.xlane.xlu1 %4542  ;;  %v14314_v16 = vld [vmem:[#allocation84_spill] sm:$0xff] }
 0x50e   :  { %10405 = vpow2.f32 %v4932_v7  ;;  %v4545_v12 = vpop.xlane.xlu0 %4544 }
 0x50f   :  { %10407 = vrcp.f32 %v4543_v4  ;;  %9067 = vmatpush3.bf16.msra.mxu1 %v14308_v30  ;;  %v4597_v26 = vpack.c.bf16 %v4583_v50, %v4582_v44  ;;  %v14315_v4 = vld [vmem:[#allocation90_spill] sm:$0xff] }
 0x510   :  { %10409 = vrcp.f32 %v4545_v12  ;;  %9116 = vmatprep.subr.bf16.mxu1 %v14309_v40 }
 0x511   :  { %v12717_v35 = vpop.eup %10397  ;;  %v4547_v43 = vpop.xlane.xlu1 %4546 }
 0x512   :  { %10411 = vrcp.f32 %v4547_v43  ;;  %4958 = vadd.xlane.f32.xlu0 %v12717_v35  ;;  %v4549_v13 = vpop.xlane.xlu0 %4548  ;;  %9069 = vmatmul.mubr.bf16.vlgmr.msra.gmra.mrb[224].mxu1 %v4597_v26 }
 0x513   :  { %9117 = vmatpush3.bf16.msra.mxu1 %v14309_v40  ;;  %10413 = vrcp.f32 %v4549_v13 }
 0x514   :  { %v12721_v28 = vpop.eup %10399  ;;  %9118 = vmatprep.subr.bf16.mxu1 %v14310_v57 }
 0x515   :  { %v12724_v47 = vpop.eup %10401  ;;  %4960 = vadd.xlane.f32.xlu1 %v12721_v28  ;;  %v4551_v49 = vpop.xlane.xlu1 %4550 }
 0x516   :  { %10415 = vrcp.f32 %v4551_v49  ;;  %4962 = vadd.xlane.f32.xlu0 %v12724_v47  ;;  %v4553_v2 = vpop.xlane.xlu0 %4552  ;;  %v10404_v55 = vpop.eup %10403 }
 0x517   :  { %9119 = vmatpush3.bf16.msra.mxu1 %v14310_v57  ;;  %10417 = vrcp.f32 %v4553_v2  ;;  %v4584_v56 = vmul.f32 %v10404_v55, %v12589_v48  ;;  %v14316_v57 = vld [vmem:[#allocation26_spill] sm:$0xff] }
 0x518   :  { %v12729_v24 = vpop.eup %10405  ;;  %9120 = vmatprep.subr.bf16.mxu1 %v14311_v21 }
 0x519   :  { %v10408_v11 = vpop.eup %10407  ;;  %4964 = vadd.xlane.f32.xlu1 %v12729_v24  ;;  %v4555_v52 = vpop.xlane.xlu1 %4554 }
 0x51a   :  { %v10410_v33 = vpop.eup %10409  ;;  %10419 = vrcp.f32 %v4555_v52  ;;  %v4557_v6 = vpop.xlane.xlu0 %4556  ;;  %v4585_v53 = vmul.f32 %v10408_v11, %v12595_v22  ;;  %v14317_v52 = vld [vmem:[#allocation94_spill] sm:$0xff] }
 0x51b   :  { %9121 = vmatpush3.bf16.msra.mxu1 %v14311_v21  ;;  %10421 = vrcp.f32 %v4557_v6  ;;  %v4586_v1 = vmul.f32 %v10410_v33, %v12597_v18 }
 0x51c   :  { %v10412_v15 = vpop.eup %10411  ;;  %9122 = vmatprep.subr.bf16.mxu1 %v14312_v31  ;;  %v4598_v41 = vpack.c.bf16 %v4585_v53, %v4584_v56 }
 0x51d   :  { %v4559_v51 = vpop.xlane.xlu1 %4558  ;;  %v4587_v0 = vmul.f32 %v10412_v15, %v12603_v8  ;;  %v10414_v38 = vpop.eup %10413 }
 0x51e   :  { %9072 = vmatprep.mubr.bf16.mxu1 %v4598_v41  ;;  %10423 = vrcp.f32 %v4559_v51  ;;  %v4561_v36 = vpop.xlane.xlu0 %4560  ;;  %v4588_v9 = vmul.f32 %v10414_v38, %v12605_v27 }
 0x51f   :  { %9123 = vmatpush3.bf16.msra.mxu1 %v14312_v31  ;;  %v4599_v48 = vpack.c.bf16 %v4587_v0, %v4586_v1  ;;  %10425 = vrcp.f32 %v4561_v36 }
 0x520   :  { %v10416_v22 = vpop.eup %10415  ;;  %9124 = vmatprep.subr.bf16.mxu1 %v14313_v42 }
 0x521   :  { %9073 = vmatmul.mubr.bf16.gmra.mrb[228].mxu1 %v4599_v48  ;;  %v4563_v5 = vpop.xlane.xlu1 %4562  ;;  %v4589_v17 = vmul.f32 %v10416_v22, %v12611_v10  ;;  %v10418_v18 = vpop.eup %10417 }
 0x522   :  { %10427 = vrcp.f32 %v4563_v5  ;;  %v4935_v8 = vpop.xlane.xlu0 %4934  ;;  %v4590_v7 = vmul.f32 %v10418_v18, %v12613_v23 }
 0x523   :  { %9125 = vmatpush3.bf16.msra.mxu1 %v14313_v42  ;;  %v4600_v58 = vpack.c.bf16 %v4589_v17, %v4588_v9  ;;  %10429 = vrcp.f32 %v4935_v8 }
 0x524   :  { %v10420_v19 = vpop.eup %10419  ;;  %9126 = vmatprep.subr.bf16.mxu1 %v14314_v16 }
 0x525   :  { %9076 = vmatprep.mubr.bf16.mxu1 %v4600_v58  ;;  %v4937_v29 = vpop.xlane.xlu1 %4936  ;;  %v4591_v30 = vmul.f32 %v10420_v19, %v12619_v62  ;;  %v10422_v44 = vpop.eup %10421  ;;  %v14319_v19 = vld [vmem:[#allocation100_spill] sm:$0xff] }
 0x526   :  { %10431 = vrcp.f32 %v4937_v29  ;;  %v4939_v27 = vpop.xlane.xlu0 %4938  ;;  %v4592_v26 = vmul.f32 %v10422_v44, %v12621_v20  ;;  %v14321_v44 = vld [vmem:[#allocation103_spill] sm:$0xff] }
 0x527   :  { %9127 = vmatpush3.bf16.msra.mxu1 %v14314_v16  ;;  %v4601_v10 = vpack.c.bf16 %v4591_v30, %v4590_v7  ;;  %10433 = vrcp.f32 %v4939_v27  ;;  %v14320_v7 = vld [vmem:[#allocation137_spill] sm:$0xff]  ;;  %v14324_v27 = vld [vmem:[#allocation112_spill] sm:$0xff] }
 0x528   :  { %v10424_v50 = vpop.eup %10423  ;;  %9128 = vmatprep.subr.bf16.mxu1 %v14315_v4 }
 0x529   :  { %9077 = vmatmul.mubr.bf16.gmra.mrb[232].mxu1 %v4601_v10  ;;  %v4941_v12 = vpop.xlane.xlu1 %4940  ;;  %v4593_v40 = vmul.f32 %v10424_v50, %v12627_v3  ;;  %v10426_v43 = vpop.eup %10425  ;;  %v14326_v10 = vld [vmem:[#allocation19_spill] sm:$0xff] }
 0x52a   :  { %10435 = vrcp.f32 %v4941_v12  ;;  %v4943_v23 = vpop.xlane.xlu0 %4942  ;;  %v4594_v2 = vmul.f32 %v10426_v43, %v12629_v46 }
 0x52b   :  { %9129 = vmatpush3.bf16.msra.mxu1 %v14315_v4  ;;  %v4602_v62 = vpack.c.bf16 %v4593_v40, %v4592_v26  ;;  %10437 = vrcp.f32 %v4943_v23 }
 0x52c   :  { %v10428_v13 = vpop.eup %10427  ;;  %9130 = vmatprep.subr.bf16.mxu1 %v14316_v57 }
 0x52d   :  { %9080 = vmatprep.mubr.bf16.mxu1 %v4602_v62  ;;  %v4945_v49 = vpop.xlane.xlu1 %4944  ;;  %v4595_v55 = vmul.f32 %v10428_v13, %v12635_v32  ;;  %v10430_v21 = vpop.eup %10429 }
 0x52e   :  { %10439 = vrcp.f32 %v4945_v49  ;;  %v4947_v20 = vpop.xlane.xlu0 %4946  ;;  %v4982_v6 = vmul.f32 %v10430_v21, %v12637_v39 }
 0x52f   :  { %9131 = vmatpush3.bf16.msra.mxu1 %v14316_v57  ;;  %v4603_v3 = vpack.c.bf16 %v4595_v55, %v4594_v2  ;;  %10441 = vrcp.f32 %v4947_v20  ;;  %v14327_v20 = vld [vmem:[#allocation37_spill] sm:$0xff] }
 0x530   :  { %v10432_v11 = vpop.eup %10431  ;;  %9148 = vmatprep.subr.bf16.mxu1 %v14317_v52 }
 0x531   :  { %9081 = vmatmul.mubr.bf16.gmra.mrb[236].mxu1 %v4603_v3  ;;  %v4949_v33 = vpop.xlane.xlu1 %4948  ;;  %v4983_v56 = vmul.f32 %v10432_v11, %v12643_v54  ;;  %v10434_v53 = vpop.eup %10433  ;;  %v14328_v3 = vld [vmem:[#allocation35_spill] sm:$0xff] }
 0x532   :  { %10443 = vrcp.f32 %v4949_v33  ;;  %v4951_v46 = vpop.xlane.xlu0 %4950  ;;  %v4984_v31 = vmul.f32 %v10434_v53, %v12645_v25  ;;  %v14318_v25 = vld [vmem:[#allocation97_spill] sm:$0xff]  ;;  %v14329_v11 = vpack.c.bf16 %v14327_v20, %v14328_v3  ;;  %v14331_v33 = vld [vmem:[#allocation39_spill] sm:$0xff] }
 0x533   :  { %v4998_v32 = vpack.c.bf16 %v4983_v56, %v4982_v6  ;;  %10445 = vrcp.f32 %v4951_v46  ;;  %v14336_v53 = vld [vmem:[#allocation81_spill] sm:$0xff] }
 0x534   :  { %v10436_v15 = vpop.eup %10435 }
 0x535   :  { %v4985_v41 = vmul.f32 %v10436_v15, %v12650_v37  ;;  %9132 = vmatprep.mubr.bf16.mxu1 %v4998_v32  ;;  %v4953_v51 = vpop.xlane.xlu1 %4952  ;;  %v10438_v1 = vpop.eup %10437  ;;  %v14338_v32 = vld [vmem:[#allocation49_spill] sm:$0xff]  ;;  %v14339_v15 = vld [vmem:[#allocation47_spill] sm:$0xff] }
 0x536   :  { %10447 = vrcp.f32 %v4953_v51  ;;  %v4955_v0 = vpop.xlane.xlu0 %4954  ;;  %v4986_v54 = vmul.f32 %v10438_v1, %v12652_v61  ;;  %v14341_v51 = vld [vmem:[#allocation53_spill] sm:$0xff]  ;;  %v14342_v1 = vld [vmem:[#allocation51_spill] sm:$0xff] }
 0x537   :  { %v4999_v38 = vpack.c.bf16 %v4985_v41, %v4984_v31  ;;  %10449 = vrcp.f32 %v4955_v0  ;;  %v14340_v31 = vpack.c.bf16 %v14338_v32, %v14339_v15  ;;  %v14343_v0 = vpack.c.bf16 %v14341_v51, %v14342_v1 }
 0x538   :  { %v10440_v36 = vpop.eup %10439 }
 0x539   :  { %v4957_v39 = vpop.xlane.xlu1 %4956  ;;  %9133 = vmatmul.mubr.bf16.vlgmr.msra.gmra.mrb[240].mxu1 %v4999_v38  ;;  %v4987_v48 = vmul.f32 %v10440_v36, %v12656_v34  ;;  %v10442_v22 = vpop.eup %10441  ;;  %v14344_v36 = vld [vmem:[#allocation72_spill] sm:$0xff] }
 0x53a   :  { %10451 = vrcp.f32 %v4957_v39  ;;  %9149 = vmatpush3.bf16.xpose.msra.mxu1 %v14317_v52  ;;  %v4988_v5 = vmul.f32 %v10442_v22, %v12658_v63  ;;  %v14330_v52 = vld [vmem:[#allocation41_spill] sm:$0xff] }
 0x53b   :  { %9150 = vmatprep.subr.bf16.mxu1 %v14318_v25  ;;  %v5000_v37 = vpack.c.bf16 %v4987_v48, %v4986_v54  ;;  %v14332_v6 = vpack.c.bf16 %v14330_v52, %v14331_v33  ;;  %v14345_v48 = vld [vmem:[#allocation69_spill] sm:$0xff] }
 0x53c   :  { %v10444_v42 = vpop.eup %10443 }
 0x53d   :  { %9136 = vmatprep.mubr.bf16.mxu1 %v5000_v37  ;;  %v4989_v9 = vmul.f32 %v10444_v42, %v12662_v59  ;;  %v10446_v17 = vpop.eup %10445  ;;  %v14346_v37 = vld [vmem:[#allocation57_spill] sm:$0xff]  ;;  %v14347_v42 = vld [vmem:[#allocation55_spill] sm:$0xff] }
 0x53e   :  { %v4990_v61 = vmul.f32 %v10446_v17, %v12664_v14  ;;  %v14322_v14 = vld [vmem:[#allocation106_spill] sm:$0xff]  ;;  %v14349_v17 = vld [vmem:[#allocation61_spill] sm:$0xff] }
 0x53f   :  { %v5001_v18 = vpack.c.bf16 %v4989_v9, %v4988_v5  ;;  %v14348_v5 = vpack.c.bf16 %v14346_v37, %v14347_v42 }
 0x540   :  { %v10448_v8 = vpop.eup %10447 }
 0x541   :  { %9137 = vmatmul.mubr.bf16.gmra.mrb[244].mxu1 %v5001_v18  ;;  %v4991_v34 = vmul.f32 %v10448_v8, %v12668_v45  ;;  %v10450_v58 = vpop.eup %10449  ;;  %v14323_v45 = vld [vmem:[#allocation109_spill] sm:$0xff]  ;;  %v14350_v18 = vld [vmem:[#allocation59_spill] sm:$0xff] }
 0x542   :  { %9151 = vmatpush3.bf16.xpose.msra.mxu1 %v14318_v25  ;;  %v4992_v63 = vmul.f32 %v10450_v58, %v12670_v60  ;;  %v14325_v60 = vld [vmem:[#allocation115_spill] sm:$0xff]  ;;  %v14351_v8 = vpack.c.bf16 %v14349_v17, %v14350_v18 }
 0x543   :  { %9152 = vmatprep.subr.bf16.mxu1 %v14319_v19  ;;  %v5002_v16 = vpack.c.bf16 %v4991_v34, %v4990_v61  ;;  %v14352_v34 = vld [vmem:[#allocation86_spill] sm:$0xff] }
 0x544   :  { %v10452_v29 = vpop.eup %10451 }
 0x545   :  { %9140 = vmatprep.mubr.bf16.mxu1 %v5002_v16  ;;  %v4993_v59 = vmul.f32 %v10452_v29, %v14320_v7  ;;  %v14353_v16 = vld [vmem:[#allocation21_spill] sm:$0xff]  ;;  %v14354_v7 = vld [vmem:[#allocation24_spill] sm:$0xff] }
 0x547   :  { %v5003_v30 = vpack.c.bf16 %v4993_v59, %v4992_v63  ;;  %v14355_v59 = vld [vmem:[#allocation22_spill] sm:$0xff] }
 0x549   :  { %9141 = vmatmul.mubr.bf16.gmra.mrb[248].mxu1 %v5003_v30  ;;  %v14356_v30 = vpack.c.bf16 %v14354_v7, %v14355_v59 }
 0x54a   :  { %9153 = vmatpush3.bf16.xpose.msra.mxu1 %v14319_v19 }
 0x54b   :  { %9154 = vmatprep.subr.bf16.mxu1 %v14321_v44 }
 0x552   :  { %9155 = vmatpush3.bf16.xpose.msra.mxu1 %v14321_v44 }
 0x553   :  { %9156 = vmatprep.subr.bf16.mxu1 %v14322_v14 }
 0x55a   :  { %9157 = vmatpush3.bf16.xpose.msra.mxu1 %v14322_v14 }
 0x55b   :  { %9158 = vmatprep.subr.bf16.mxu1 %v14323_v45 }
 0x562   :  { %9159 = vmatpush3.bf16.xpose.msra.mxu1 %v14323_v45  ;;  %v14357_v45 = vld [vmem:[#allocation77_spill] sm:$0xff] }
 0x563   :  { %9160 = vmatprep.subr.bf16.mxu1 %v14324_v27 }
 0x56a   :  { %9161 = vmatpush3.bf16.xpose.msra.mxu1 %v14324_v27 }
 0x56b   :  { %9162 = vmatprep.subr.bf16.mxu1 %v14325_v60 }
 0x572   :  { %9163 = vmatpush3.bf16.xpose.msra.mxu1 %v14325_v60 }
 0x573   :  { %9244 = vmatprep.subr.bf16.mxu1 %v14326_v10 }
 0x59f   :  { %v4959_v50 = vpop.xlane.xlu0 %4958 }
 0x5a0   :  { %10453 = vrcp.f32 %v4959_v50 }
 0x5a2   :  { %v4961_v4 = vpop.xlane.xlu1 %4960 }
 0x5a3   :  { %10455 = vrcp.f32 %v4961_v4  ;;  %v4963_v12 = vpop.xlane.xlu0 %4962 }
 0x5a4   :  { %10457 = vrcp.f32 %v4963_v12 }
 0x5a6   :  { %v4965_v26 = vpop.xlane.xlu1 %4964 }
 0x5a7   :  { %10459 = vrcp.f32 %v4965_v26 }
 0x5aa   :  { %v10454_v40 = vpop.eup %10453 }
 0x5ab   :  { %v4994_v23 = vmul.f32 %v10454_v40, %v12717_v35  ;;  %v14333_v35 = vld [vmem:[#allocation45_spill] sm:$0xff] }
 0x5ad   :  { %v10456_v43 = vpop.eup %10455 }
 0x5ae   :  { %v4995_v62 = vmul.f32 %v10456_v43, %v12721_v28  ;;  %v10458_v13 = vpop.eup %10457  ;;  %v14334_v28 = vld [vmem:[#allocation43_spill] sm:$0xff] }
 0x5af   :  { %v4996_v2 = vmul.f32 %v10458_v13, %v12724_v47  ;;  %v14335_v56 = vpack.c.bf16 %v14333_v35, %v14334_v28  ;;  %v14337_v47 = vld [vmem:[#allocation20_spill] sm:$0xff] }
 0x5b0   :  { %v5004_v57 = vpack.c.bf16 %v4995_v62, %v4994_v23 }
 0x5b1   :  { %v10460_v49 = vpop.eup %10459 }
 0x5b2   :  { %9144 = vmatprep.mubr.bf16.mxu1 %v5004_v57  ;;  %v4997_v55 = vmul.f32 %v10460_v49, %v12729_v24 }
 0x5b4   :  { %v5005_v21 = vpack.c.bf16 %v4997_v55, %v4996_v2 }
 0x5b6   :  { %9145 = vmatmul.mubr.bf16.gmra.mrb[252].mxu1 %v5005_v21 }
 0x5b7   :  { %9164 = vmatprep.mubr.bf16.mxu1 %v14329_v11 }
 0x5be   :  { %9165 = vmatmul.mubr.bf16.vlgmr.msra.gmra.mrb[0].mxu1 %v14332_v6 }
 0x5bf   :  { %9245 = vmatpush3.bf16.msra.mxu1 %v14326_v10  ;;  %9168 = vmatprep.mubr.bf16.mxu1 %v14335_v56  ;;  %v14358_v10 = vld [vmem:[#allocation117_spill] sm:$0xff] }
 0x5c0   :  { %9246 = vmatprep.subr.bf16.mxu1 %v14336_v53 }
 0x5c3   :  { %9247 = vmatpush3.bf16.msra.mxu1 %v14336_v53 }
 0x5c4   :  { %9248 = vmatprep.subr.bf16.mxu1 %v14337_v47 }
 0x5c5   :  { %v9006_v24 = vpop.f32.mrb[208].mxu1 }
 0x5c6   :  { %v4236_v46 = vpop.f32.mrb[209].mxu1  ;;  %9169 = vmatmul.mubr.bf16.gmra.mrb[4].mxu1 %v14340_v31 }
 0x5c7   :  { %9249 = vmatpush3.bf16.msra.mxu1 %v14337_v47  ;;  %v9007_v41 = vpop.f32.mrb[210].mxu1  ;;  %9172 = vmatprep.mubr.bf16.mxu1 %v14343_v0 }
 0x5c8   :  { %v12809_v38 = vpack.c.bf16 %v9007_v41, %v9006_v24  ;;  %9250 = vmatprep.subr.bf16.mxu1 %v14344_v36  ;;  %v4239_v39 = vpop.f32.mrb[211].mxu1 }
 0x5c9   :  { %v12812_v54 = vpack.c.bf16 %v4239_v39, %v4236_v46 }
 0x5cb   :  { %9251 = vmatpush3.bf16.msra.mxu1 %v14344_v36 }
 0x5cc   :  { %9252 = vmatprep.subr.bf16.mxu1 %v14345_v48 }
 0x5cd   :  { %v9010_v22 = vpop.f32.mrb[212].mxu1 }
 0x5ce   :  { %v4252_v25 = vpop.f32.mrb[213].mxu1  ;;  %9173 = vmatmul.mubr.bf16.gmra.mrb[8].mxu1 %v14348_v5 }
 0x5cf   :  { %9253 = vmatpush3.bf16.msra.mxu1 %v14345_v48  ;;  %v9011_v9 = vpop.f32.mrb[214].mxu1  ;;  %9176 = vmatprep.mubr.bf16.mxu1 %v14351_v8 }
 0x5d0   :  { %v12823_v61 = vpack.c.bf16 %v9011_v9, %v9010_v22  ;;  %9254 = vmatprep.subr.bf16.mxu1 %v14352_v34  ;;  %v4255_v58 = vpop.f32.mrb[215].mxu1 }
 0x5d1   :  { %v12826_v19 = vpack.c.bf16 %v4255_v58, %v4252_v25 }
 0x5d3   :  { %9255 = vmatpush3.bf16.msra.mxu1 %v14352_v34 }
 0x5d4   :  { %9256 = vmatprep.subr.bf16.mxu1 %v14353_v16 }
 0x5d5   :  { %v9014_v29 = vpop.f32.mrb[216].mxu1 }
 0x5d6   :  { %v4268_v63 = vpop.f32.mrb[217].mxu1  ;;  %9177 = vmatmul.mubr.bf16.gmra.mrb[12].mxu1 %v14356_v30 }
 0x5d7   :  { %9257 = vmatpush3.bf16.msra.mxu1 %v14353_v16  ;;  %v9015_v44 = vpop.f32.mrb[218].mxu1 }
 0x5d8   :  { %v12834_v14 = vpack.c.bf16 %v9015_v44, %v9014_v29  ;;  %9258 = vmatprep.subr.bf16.mxu1 %v14357_v45  ;;  %v4271_v27 = vpop.f32.mrb[219].mxu1 }
 0x5d9   :  { %v12837_v60 = vpack.c.bf16 %v4271_v27, %v4268_v63 }
 0x5db   :  { %9259 = vmatpush3.bf16.msra.mxu1 %v14357_v45 }
 0x5dc   :  { %9276 = vmatprep.subr.bf16.mxu1 %v14358_v10 }
 0x5dd   :  { %v9018_v50 = vpop.f32.mrb[220].mxu1 }
 0x5de   :  { %v4284_v4 = vpop.f32.mrb[221].mxu1 }
 0x5df   :  { %v9019_v12 = vpop.f32.mrb[222].mxu1 }
 0x5e0   :  { %v12841_v26 = vpack.c.bf16 %v9019_v12, %v9018_v50  ;;  %v4287_v40 = vpop.f32.mrb[223].mxu1 }
 0x5e1   :  { %v12843_v43 = vpack.c.bf16 %v4287_v40, %v4284_v4 }
 0x5e2   :  { %14359 = vst [vmem:[#allocation138_spill] sm:$0xff] %v12841_v26 }
 0x5e5   :  { %v9070_v23 = vpop.f32.mrb[224].mxu1 }
 0x5e6   :  { %v4638_v62 = vpop.f32.mrb[225].mxu1 }
 0x5e7   :  { %v9071_v13 = vpop.f32.mrb[226].mxu1 }
 0x5e8   :  { %v12845_v57 = vpack.c.bf16 %v9071_v13, %v9070_v23  ;;  %v4641_v49 = vpop.f32.mrb[227].mxu1 }
 0x5e9   :  { %v12847_v2 = vpack.c.bf16 %v4641_v49, %v4638_v62 }
 0x5f4   :  { %v9074_v55 = vpop.f32.mrb[228].mxu1 }
 0x5f5   :  { %v4654_v21 = vpop.f32.mrb[229].mxu1 }
 0x5f6   :  { %v9075_v20 = vpop.f32.mrb[230].mxu1 }
 0x5f7   :  { %v12849_v3 = vpack.c.bf16 %v9075_v20, %v9074_v55  ;;  %v4657_v11 = vpop.f32.mrb[231].mxu1 }
 0x5f8   :  { %v12851_v52 = vpack.c.bf16 %v4657_v11, %v4654_v21 }
 0x5fc   :  { %v9078_v33 = vpop.f32.mrb[232].mxu1 }
 0x5fd   :  { %v4670_v6 = vpop.f32.mrb[233].mxu1 }
 0x5fe   :  { %v9079_v35 = vpop.f32.mrb[234].mxu1 }
 0x5ff   :  { %v12853_v28 = vpack.c.bf16 %v9079_v35, %v9078_v33  ;;  %v4673_v56 = vpop.f32.mrb[235].mxu1 }
 0x600   :  { %v12855_v53 = vpack.c.bf16 %v4673_v56, %v4670_v6 }
 0x604   :  { %v9082_v47 = vpop.f32.mrb[236].mxu1 }
 0x605   :  { %v4686_v24 = vpop.f32.mrb[237].mxu1 }
 0x606   :  { %v9083_v46 = vpop.f32.mrb[238].mxu1 }
 0x607   :  { %v12857_v32 = vpack.c.bf16 %v9083_v46, %v9082_v47  ;;  %v4689_v15 = vpop.f32.mrb[239].mxu1 }
 0x608   :  { %v12859_v31 = vpack.c.bf16 %v4689_v15, %v4686_v24 }
 0x609   :  { %14360 = vst [vmem:[#allocation68_spill] sm:$0xff] %v12857_v32 }
 0x60c   :  { %v9134_v41 = vpop.f32.mrb[240].mxu1 }
 0x60d   :  { %v5040_v51 = vpop.f32.mrb[241].mxu1 }
 0x60e   :  { %v9135_v1 = vpop.f32.mrb[242].mxu1 }
 0x60f   :  { %v12861_v0 = vpack.c.bf16 %v9135_v1, %v9134_v41  ;;  %v5043_v36 = vpop.f32.mrb[243].mxu1 }
 0x610   :  { %v12863_v39 = vpack.c.bf16 %v5043_v36, %v5040_v51 }
 0x611   :  { %14361 = vst [vmem:[#allocation16_spill] sm:$0xff] %v12861_v0 }
 0x612   :  { %14362 = vst [vmem:[#allocation67_spill] sm:$0xff] %v12863_v39 }
 0x614   :  { %v9138_v48 = vpop.f32.mrb[244].mxu1 }
 0x615   :  { %v5056_v22 = vpop.f32.mrb[245].mxu1 }
 0x616   :  { %v9139_v25 = vpop.f32.mrb[246].mxu1 }
 0x617   :  { %v12865_v37 = vpack.c.bf16 %v9139_v25, %v9138_v48  ;;  %v5059_v42 = vpop.f32.mrb[247].mxu1 }
 0x618   :  { %v12867_v5 = vpack.c.bf16 %v5059_v42, %v5056_v22 }
 0x619   :  { %14363 = vst [vmem:[#allocation75_spill] sm:$0xff] %v12865_v37 }
 0x61a   :  { %14364 = vst [vmem:[#allocation71_spill] sm:$0xff] %v12867_v5 }
 0x61c   :  { %v9142_v9 = vpop.f32.mrb[248].mxu1 }
 0x61d   :  { %v5072_v17 = vpop.f32.mrb[249].mxu1 }
 0x61e   :  { %v9143_v18 = vpop.f32.mrb[250].mxu1 }
 0x61f   :  { %v12869_v8 = vpack.c.bf16 %v9143_v18, %v9142_v9  ;;  %v5075_v34 = vpop.f32.mrb[251].mxu1 }
 0x620   :  { %v12871_v58 = vpack.c.bf16 %v5075_v34, %v5072_v17 }
 0x621   :  { %14365 = vst [vmem:[#allocation18_spill] sm:$0xff] %v12869_v8 }
 0x622   :  { %14366 = vst [vmem:[#allocation83_spill] sm:$0xff] %v12871_v58 }
 0x689   :  { %v9146_v16 = vpop.f32.mrb[252].mxu1 }
 0x68a   :  { %v5088_v29 = vpop.f32.mrb[253].mxu1 }
 0x68b   :  { %v9147_v63 = vpop.f32.mrb[254].mxu1 }
 0x68c   :  { %v12873_v7 = vpack.c.bf16 %v9147_v63, %v9146_v16  ;;  %v5091_v59 = vpop.f32.mrb[255].mxu1 }
 0x68d   :  { %v12875_v30 = vpack.c.bf16 %v5091_v59, %v5088_v29 }
 0x68e   :  { %14367 = vst [vmem:[#allocation80_spill] sm:$0xff] %v12873_v7 }
 0x68f   :  { %14368 = vst [vmem:[#allocation82_spill] sm:$0xff] %v12875_v30 }
 0x691   :  { %v9166_v44 = vpop.f32.mrb[0].mxu1 }
 0x692   :  { %v5177_v45 = vpop.f32.mrb[1].mxu1  ;;  %v5242_v13 = vsel %vm12121_vm0, %v9166_v44, -inf }
 0x693   :  { %v9167_v27 = vpop.f32.mrb[2].mxu1  ;;  %v5240_v4 = vsel %vm12134_vm1, %v5177_v45, -inf }
 0x694   :  { %5256 = vmax.xlane.f32.xlu0 %v5240_v4  ;;  %v5180_v12 = vpop.f32.mrb[3].mxu1  ;;  %v5243_v55 = vsel %vm12152_vm2, %v9167_v27, -inf }
 0x695   :  { %v5241_v23 = vsel %vm12162_vm3, %v5180_v12, -inf }
 0x696   :  { %5258 = vmax.xlane.f32.xlu1 %v5241_v23 }
 0x698   :  { %5260 = vmax.xlane.f32.xlu0 %v5242_v13 }
 0x699   :  { %v9170_v21 = vpop.f32.mrb[4].mxu1 }
 0x69a   :  { %5262 = vmax.xlane.f32.xlu1 %v5243_v55  ;;  %v5193_v20 = vpop.f32.mrb[5].mxu1  ;;  %v5246_v46 = vsel %vm12174_vm4, %v9170_v21, -inf }
 0x69b   :  { %v5244_v33 = vsel %vm12205_vm6, %v5193_v20, -inf  ;;  %v9171_v6 = vpop.f32.mrb[6].mxu1 }
 0x69c   :  { %5264 = vmax.xlane.f32.xlu0 %v5244_v33  ;;  %v5196_v35 = vpop.f32.mrb[7].mxu1  ;;  %v5247_v41 = vsel %vm12188_vm5, %v9171_v6, -inf }
 0x69d   :  { %v5245_v47 = vsel %vm12214_vm7, %v5196_v35, -inf }
 0x69e   :  { %5266 = vmax.xlane.f32.xlu1 %v5245_v47 }
 0x6a0   :  { %5268 = vmax.xlane.f32.xlu0 %v5246_v46 }
 0x6a1   :  { %v9174_v51 = vpop.f32.mrb[8].mxu1 }
 0x6a2   :  { %5270 = vmax.xlane.f32.xlu1 %v5247_v41  ;;  %v5209_v1 = vpop.f32.mrb[9].mxu1  ;;  %v12902_v18 = vsel %vm12226_vm8, %v9174_v51, -inf }
 0x6a3   :  { %v5248_v48 = vsel %vm12253_vm10, %v5209_v1, -inf  ;;  %v9175_v22 = vpop.f32.mrb[10].mxu1 }
 0x6a4   :  { %5272 = vmax.xlane.f32.xlu0 %v5248_v48  ;;  %v5212_v25 = vpop.f32.mrb[11].mxu1  ;;  %v12907_v16 = vsel %vm12238_vm9, %v9175_v22, -inf }
 0x6a5   :  { %v12897_v9 = vsel %vm12262_vm11, %v5212_v25, -inf }
 0x6a6   :  { %5274 = vmax.xlane.f32.xlu1 %v12897_v9 }
 0x6a8   :  { %5276 = vmax.xlane.f32.xlu0 %v12902_v18 }
 0x6a9   :  { %v9178_v29 = vpop.f32.mrb[12].mxu1 }
 0x6aa   :  { %5278 = vmax.xlane.f32.xlu1 %v12907_v16  ;;  %v5225_v63 = vpop.f32.mrb[13].mxu1  ;;  %v12922_v6 = vsel %vm12274_vm12, %v9178_v29, -inf }
 0x6ab   :  { %v12912_v44 = vsel %vm12296_vm14, %v5225_v63, -inf  ;;  %v9179_v45 = vpop.f32.mrb[14].mxu1 }
 0x6ac   :  { %5280 = vmax.xlane.f32.xlu0 %v12912_v44  ;;  %v5228_v27 = vpop.f32.mrb[15].mxu1  ;;  %v12927_v51 = vsel %vm12284_vm13, %v9179_v45, -inf }
 0x6ad   :  { %v12917_v21 = vsel %vm12305_vm15, %v5228_v27, -inf }
 0x6ae   :  { %5282 = vmax.xlane.f32.xlu1 %v12917_v21 }
 0x6b0   :  { %5284 = vmax.xlane.f32.xlu0 %v12922_v6 }
 0x6b2   :  { %5286 = vmax.xlane.f32.xlu1 %v12927_v51 }
 0x721   :  { %v5257_v1 = vpop.xlane.xlu0 %5256 }
 0x722   :  { %v5288_v22 = vsub.f32 %v5240_v4, %v5257_v1 }
 0x723   :  { %v5259_v25 = vpop.xlane.xlu1 %5258 }
 0x724   :  { %v5304_v63 = vmul.f32 1.442695, %v5288_v22  ;;  %v5289_v27 = vsub.f32 %v5241_v23, %v5259_v25 }
 0x725   :  { %v5261_v7 = vpop.xlane.xlu0 %5260 }
 0x726   :  { %10461 = vpow2.f32 %v5304_v63  ;;  %v5306_v30 = vmul.f32 1.442695, %v5289_v27  ;;  %v5290_v8 = vsub.f32 %v5242_v13, %v5261_v7 }
 0x727   :  { %v5263_v58 = vpop.xlane.xlu1 %5262 }
 0x728   :  { %10463 = vpow2.f32 %v5306_v30  ;;  %v5308_v29 = vmul.f32 1.442695, %v5290_v8  ;;  %v5291_v37 = vsub.f32 %v5243_v55, %v5263_v58 }
 0x729   :  { %v5265_v5 = vpop.xlane.xlu0 %5264 }
 0x72a   :  { %10465 = vpow2.f32 %v5308_v29  ;;  %v5310_v0 = vmul.f32 1.442695, %v5291_v37  ;;  %v5292_v45 = vsub.f32 %v5244_v33, %v5265_v5 }
 0x72b   :  { %v5267_v39 = vpop.xlane.xlu1 %5266 }
 0x72c   :  { %10467 = vpow2.f32 %v5310_v0  ;;  %v5312_v26 = vmul.f32 1.442695, %v5292_v45  ;;  %v5293_v32 = vsub.f32 %v5245_v47, %v5267_v39 }
 0x72d   :  { %v5269_v4 = vpop.xlane.xlu0 %5268 }
 0x72e   :  { %10469 = vpow2.f32 %v5312_v26  ;;  %v5314_v1 = vmul.f32 1.442695, %v5293_v32  ;;  %v5294_v23 = vsub.f32 %v5246_v46, %v5269_v4 }
 0x72f   :  { %v5271_v22 = vpop.xlane.xlu1 %5270 }
 0x730   :  { %v12930_v25 = vpop.eup %10461  ;;  %10471 = vpow2.f32 %v5314_v1  ;;  %v5316_v7 = vmul.f32 1.442695, %v5294_v23  ;;  %v5295_v30 = vsub.f32 %v5247_v41, %v5271_v22 }
 0x731   :  { %v5273_v8 = vpop.xlane.xlu0 %5272  ;;  %5336 = vadd.xlane.f32.xlu0 %v12930_v25 }
 0x732   :  { %v12933_v58 = vpop.eup %10463  ;;  %10473 = vpow2.f32 %v5316_v7  ;;  %v5318_v37 = vmul.f32 1.442695, %v5295_v30  ;;  %v5296_v0 = vsub.f32 %v5248_v48, %v5273_v8 }
 0x733   :  { %v5275_v5 = vpop.xlane.xlu1 %5274  ;;  %5338 = vadd.xlane.f32.xlu1 %v12933_v58 }
 0x734   :  { %v12936_v26 = vpop.eup %10465  ;;  %10475 = vpow2.f32 %v5318_v37  ;;  %v5320_v32 = vmul.f32 1.442695, %v5296_v0  ;;  %v5297_v39 = vsub.f32 %v12897_v9, %v5275_v5 }
 0x735   :  { %v5277_v13 = vpop.xlane.xlu0 %5276  ;;  %5340 = vadd.xlane.f32.xlu0 %v12936_v26 }
 0x736   :  { %v12940_v55 = vpop.eup %10467  ;;  %10477 = vpow2.f32 %v5320_v32  ;;  %v5322_v33 = vmul.f32 1.442695, %v5297_v39  ;;  %v5298_v47 = vsub.f32 %v12902_v18, %v5277_v13 }
 0x737   :  { %v5279_v46 = vpop.xlane.xlu1 %5278  ;;  %5342 = vadd.xlane.f32.xlu1 %v12940_v55 }
 0x738   :  { %v12944_v41 = vpop.eup %10469  ;;  %10479 = vpow2.f32 %v5322_v33  ;;  %v5324_v48 = vmul.f32 1.442695, %v5298_v47  ;;  %v5299_v63 = vsub.f32 %v12907_v16, %v5279_v46 }
 0x739   :  { %5344 = vadd.xlane.f32.xlu0 %v12944_v41  ;;  %v5281_v9 = vpop.xlane.xlu0 %5280 }
 0x73a   :  { %v12948_v27 = vpop.eup %10471  ;;  %10481 = vpow2.f32 %v5324_v48  ;;  %v5326_v29 = vmul.f32 1.442695, %v5299_v63  ;;  %v5300_v45 = vsub.f32 %v12912_v44, %v5281_v9 }
 0x73b   :  { %5346 = vadd.xlane.f32.xlu1 %v12948_v27  ;;  %v5283_v18 = vpop.xlane.xlu1 %5282 }
 0x73c   :  { %v12952_v4 = vpop.eup %10473  ;;  %10483 = vpow2.f32 %v5326_v29  ;;  %v5328_v1 = vmul.f32 1.442695, %v5300_v45  ;;  %v5301_v23 = vsub.f32 %v12917_v21, %v5283_v18 }
 0x73d   :  { %5348 = vadd.xlane.f32.xlu0 %v12952_v4  ;;  %v5285_v16 = vpop.xlane.xlu0 %5284 }
 0x73e   :  { %v12956_v22 = vpop.eup %10475  ;;  %10485 = vpow2.f32 %v5328_v1  ;;  %v5330_v7 = vmul.f32 1.442695, %v5301_v23  ;;  %v5302_v30 = vsub.f32 %v12922_v6, %v5285_v16 }
 0x73f   :  { %5350 = vadd.xlane.f32.xlu1 %v12956_v22  ;;  %v5287_v44 = vpop.xlane.xlu1 %5286 }
 0x740   :  { %v12960_v8 = vpop.eup %10477  ;;  %10487 = vpow2.f32 %v5330_v7  ;;  %v5332_v37 = vmul.f32 1.442695, %v5302_v30  ;;  %v5303_v0 = vsub.f32 %v12927_v51, %v5287_v44 }
 0x741   :  { %5352 = vadd.xlane.f32.xlu0 %v12960_v8 }
 0x742   :  { %v12964_v21 = vpop.eup %10479  ;;  %10489 = vpow2.f32 %v5332_v37  ;;  %v5334_v5 = vmul.f32 1.442695, %v5303_v0 }
 0x743   :  { %5354 = vadd.xlane.f32.xlu1 %v12964_v21 }
 0x744   :  { %v12967_v32 = vpop.eup %10481  ;;  %10491 = vpow2.f32 %v5334_v5 }
 0x745   :  { %5356 = vadd.xlane.f32.xlu0 %v12967_v32 }
 0x746   :  { %v12970_v6 = vpop.eup %10483 }
 0x747   :  { %5358 = vadd.xlane.f32.xlu1 %v12970_v6 }
 0x748   :  { %v12973_v39 = vpop.eup %10485 }
 0x749   :  { %5360 = vadd.xlane.f32.xlu0 %v12973_v39 }
 0x74a   :  { %v12976_v51 = vpop.eup %10487 }
 0x74b   :  { %5362 = vadd.xlane.f32.xlu1 %v12976_v51 }
 0x74c   :  { %v12979_v13 = vpop.eup %10489 }
 0x74d   :  { %5364 = vadd.xlane.f32.xlu0 %v12979_v13 }
 0x74e   :  { %v12982_v33 = vpop.eup %10491 }
 0x74f   :  { %5366 = vadd.xlane.f32.xlu1 %v12982_v33 }
 0x7be   :  { %v5337_v47 = vpop.xlane.xlu0 %5336 }
 0x7bf   :  { %10493 = vrcp.f32 %v5337_v47 }
 0x7c0   :  { %v5339_v46 = vpop.xlane.xlu1 %5338 }
 0x7c1   :  { %10495 = vrcp.f32 %v5339_v46 }
 0x7c2   :  { %v5341_v48 = vpop.xlane.xlu0 %5340 }
 0x7c3   :  { %10497 = vrcp.f32 %v5341_v48 }
 0x7c4   :  { %v5343_v63 = vpop.xlane.xlu1 %5342 }
 0x7c5   :  { %10499 = vrcp.f32 %v5343_v63 }
 0x7c6   :  { %v5345_v9 = vpop.xlane.xlu0 %5344 }
 0x7c7   :  { %10501 = vrcp.f32 %v5345_v9 }
 0x7c8   :  { %v5347_v29 = vpop.xlane.xlu1 %5346 }
 0x7c9   :  { %v10494_v45 = vpop.eup %10493  ;;  %10503 = vrcp.f32 %v5347_v29 }
 0x7ca   :  { %v5349_v18 = vpop.xlane.xlu0 %5348  ;;  %v5384_v16 = vmul.f32 %v10494_v45, %v12930_v25 }
 0x7cb   :  { %v10496_v1 = vpop.eup %10495  ;;  %10505 = vrcp.f32 %v5349_v18 }
 0x7cc   :  { %v5351_v23 = vpop.xlane.xlu1 %5350  ;;  %v5385_v7 = vmul.f32 %v10496_v1, %v12933_v58  ;;  %v14385_v1 = vld [vmem:[#allocation116_spill] sm:$0xff] }
 0x7cd   :  { %v10498_v30 = vpop.eup %10497  ;;  %10507 = vrcp.f32 %v5351_v23 }
 0x7ce   :  { %v5353_v44 = vpop.xlane.xlu0 %5352  ;;  %v5400_v37 = vpack.c.bf16 %v5385_v7, %v5384_v16  ;;  %v5386_v5 = vmul.f32 %v10498_v30, %v12936_v26  ;;  %v14386_v26 = vld [vmem:[#allocation63_spill] sm:$0xff] }
 0x7cf   :  { %v10500_v0 = vpop.eup %10499  ;;  %10509 = vrcp.f32 %v5353_v44 }
 0x7d0   :  { %v5387_v47 = vmul.f32 %v10500_v0, %v12940_v55  ;;  %9196 = vmatprep.mubr.bf16.mxu0 %v5400_v37  ;;  %v5355_v46 = vpop.xlane.xlu1 %5354 }
 0x7d1   :  { %v10502_v48 = vpop.eup %10501  ;;  %10511 = vrcp.f32 %v5355_v46 }
 0x7d2   :  { %v5357_v63 = vpop.xlane.xlu0 %5356  ;;  %v5401_v9 = vpack.c.bf16 %v5387_v47, %v5386_v5  ;;  %v5388_v58 = vmul.f32 %v10502_v48, %v12944_v41 }
 0x7d3   :  { %v10504_v29 = vpop.eup %10503  ;;  %10513 = vrcp.f32 %v5357_v63  ;;  %v14387_v63 = vld [vmem:[#allocation27_spill] sm:$0xff] }
 0x7d4   :  { %9197 = vmatmul.mubr.bf16.vlgmr.msra.gmra.mrb[224].mxu0 %v5401_v9  ;;  %v5359_v25 = vpop.xlane.xlu1 %5358  ;;  %v5389_v45 = vmul.f32 %v10504_v29, %v12948_v27 }
 0x7d5   :  { %v10506_v18 = vpop.eup %10505  ;;  %9213 = vmatpush3.bf16.xpose.msra.mxu0 %v14385_v1  ;;  %10515 = vrcp.f32 %v5359_v25  ;;  %v14388_v1 = vld [vmem:[#allocation65_spill] sm:$0xff] }
 0x7d6   :  { %9214 = vmatprep.subr.bf16.mxu0 %v14386_v26  ;;  %v5361_v55 = vpop.xlane.xlu0 %5360  ;;  %v5402_v23 = vpack.c.bf16 %v5389_v45, %v5388_v58  ;;  %v5390_v30 = vmul.f32 %v10506_v18, %v12952_v4 }
 0x7d7   :  { %v10508_v16 = vpop.eup %10507  ;;  %10517 = vrcp.f32 %v5361_v55 }
 0x7d8   :  { %9200 = vmatprep.mubr.bf16.mxu0 %v5402_v23  ;;  %v5363_v7 = vpop.xlane.xlu1 %5362  ;;  %v5391_v44 = vmul.f32 %v10508_v16, %v12956_v22  ;;  %v14389_v16 = vld [vmem:[#allocation38_spill] sm:$0xff] }
 0x7d9   :  { %v10510_v37 = vpop.eup %10509  ;;  %10519 = vrcp.f32 %v5363_v7 }
 0x7da   :  { %v5365_v41 = vpop.xlane.xlu0 %5364  ;;  %v5403_v27 = vpack.c.bf16 %v5391_v44, %v5390_v30  ;;  %v5392_v47 = vmul.f32 %v10510_v37, %v12960_v8  ;;  %v14393_v30 = vld [vmem:[#allocation66_spill] sm:$0xff]  ;;  %v14394_v44 = vld [vmem:[#allocation73_spill] sm:$0xff] }
 0x7db   :  { %v10512_v0 = vpop.eup %10511  ;;  %10521 = vrcp.f32 %v5365_v41  ;;  %v14397_v37 = vld [vmem:[#allocation42_spill] sm:$0xff]  ;;  %v14398_v41 = vld [vmem:[#allocation40_spill] sm:$0xff] }
 0x7dc   :  { %9201 = vmatmul.mubr.bf16.gmra.mrb[228].mxu0 %v5403_v27  ;;  %v5367_v5 = vpop.xlane.xlu1 %5366  ;;  %v5393_v46 = vmul.f32 %v10512_v0, %v12964_v21  ;;  %v14399_v27 = vpack.c.bf16 %v14397_v37, %v14398_v41  ;;  %v14400_v0 = vld [vmem:[#allocation46_spill] sm:$0xff] }
 0x7dd   :  { %v10514_v48 = vpop.eup %10513  ;;  %9215 = vmatpush3.bf16.xpose.msra.mxu0 %v14386_v26  ;;  %10523 = vrcp.f32 %v5367_v5  ;;  %v14401_v5 = vld [vmem:[#allocation44_spill] sm:$0xff] }
 0x7de   :  { %9216 = vmatprep.subr.bf16.mxu0 %v14387_v63  ;;  %v5404_v4 = vpack.c.bf16 %v5393_v46, %v5392_v47  ;;  %v5394_v9 = vmul.f32 %v10514_v48, %v12967_v32  ;;  %v14402_v47 = vpack.c.bf16 %v14400_v0, %v14401_v5  ;;  %v14403_v46 = vld [vmem:[#allocation28_spill] sm:$0xff] }
 0x7df   :  { %v10516_v22 = vpop.eup %10515  ;;  %v14404_v48 = vld [vmem:[#allocation92_spill] sm:$0xff] }
 0x7e0   :  { %9204 = vmatprep.mubr.bf16.mxu0 %v5404_v4  ;;  %v5395_v29 = vmul.f32 %v10516_v22, %v12970_v6  ;;  %v14406_v4 = vld [vmem:[#allocation48_spill] sm:$0xff] }
 0x7e1   :  { %v10518_v25 = vpop.eup %10517 }
 0x7e2   :  { %v5405_v58 = vpack.c.bf16 %v5395_v29, %v5394_v9  ;;  %v5396_v8 = vmul.f32 %v10518_v25, %v12973_v39  ;;  %v14390_v39 = vld [vmem:[#allocation36_spill] sm:$0xff]  ;;  %v14408_v9 = vld [vmem:[#allocation54_spill] sm:$0xff] }
 0x7e3   :  { %v10520_v45 = vpop.eup %10519  ;;  %v14391_v7 = vpack.c.bf16 %v14389_v16, %v14390_v39  ;;  %v14409_v29 = vld [vmem:[#allocation52_spill] sm:$0xff]  ;;  %v14422_v16 = vld [vmem:[#allocation23_spill] sm:$0xff] }
 0x7e4   :  { %9205 = vmatmul.mubr.bf16.gmra.mrb[232].mxu0 %v5405_v58  ;;  %v5397_v21 = vmul.f32 %v10520_v45, %v12976_v51  ;;  %v14392_v51 = vld [vmem:[#allocation30_spill] sm:$0xff]  ;;  %v14410_v25 = vpack.c.bf16 %v14408_v9, %v14409_v29  ;;  %v14411_v58 = vld [vmem:[#allocation31_spill] sm:$0xff] }
 0x7e5   :  { %v10522_v18 = vpop.eup %10521  ;;  %9217 = vmatpush3.bf16.xpose.msra.mxu0 %v14387_v63  ;;  %v14405_v63 = vld [vmem:[#allocation50_spill] sm:$0xff] }
 0x7e6   :  { %9218 = vmatprep.subr.bf16.mxu0 %v14388_v1  ;;  %v5406_v26 = vpack.c.bf16 %v5397_v21, %v5396_v8  ;;  %v5398_v32 = vmul.f32 %v10522_v18, %v12979_v13  ;;  %v14395_v13 = vld [vmem:[#allocation17_spill] sm:$0xff]  ;;  %v14407_v22 = vpack.c.bf16 %v14405_v63, %v14406_v4  ;;  %v14412_v45 = vld [vmem:[#allocation118_spill] sm:$0xff]  ;;  %v14414_v21 = vld [vmem:[#allocation56_spill] sm:$0xff] }
 0x7e7   :  { %v10524_v55 = vpop.eup %10523  ;;  %v14413_v8 = vld [vmem:[#allocation58_spill] sm:$0xff] }
 0x7e8   :  { %9208 = vmatprep.mubr.bf16.mxu0 %v5406_v26  ;;  %v5399_v6 = vmul.f32 %v10524_v55, %v12982_v33  ;;  %v14396_v33 = vld [vmem:[#allocation91_spill] sm:$0xff]  ;;  %v14415_v18 = vpack.c.bf16 %v14413_v8, %v14414_v21  ;;  %v14417_v26 = vld [vmem:[#allocation60_spill] sm:$0xff] }
 0x7ea   :  { %v5407_v23 = vpack.c.bf16 %v5399_v6, %v5398_v32  ;;  %v14419_v32 = vld [vmem:[#allocation33_spill] sm:$0xff]  ;;  %v14420_v6 = vld [vmem:[#allocation120_spill] sm:$0xff] }
 0x7ec   :  { %9209 = vmatmul.mubr.bf16.gmra.mrb[236].mxu0 %v5407_v23  ;;  %v14421_v23 = vld [vmem:[#allocation25_spill] sm:$0xff] }
 0x7ed   :  { %9219 = vmatpush3.bf16.xpose.msra.mxu0 %v14388_v1  ;;  %9228 = vmatprep.mubr.bf16.mxu0 %v14391_v7  ;;  %v14416_v1 = vld [vmem:[#allocation62_spill] sm:$0xff]  ;;  %v14423_v39 = vpack.c.bf16 %v14421_v23, %v14422_v16  ;;  %v14424_v7 = vld [vmem:[#allocation119_spill] sm:$0xff] }
 0x7ee   :  { %9220 = vmatprep.subr.bf16.mxu0 %v14392_v51  ;;  %v14418_v55 = vpack.c.bf16 %v14416_v1, %v14417_v26 }
 0x7f5   :  { %9221 = vmatpush3.bf16.xpose.msra.mxu0 %v14392_v51 }
 0x7f6   :  { %9222 = vmatprep.subr.bf16.mxu0 %v14393_v30 }
 0x7fd   :  { %9223 = vmatpush3.bf16.xpose.msra.mxu0 %v14393_v30 }
 0x7fe   :  { %9224 = vmatprep.subr.bf16.mxu0 %v14394_v44 }
 0x805   :  { %9225 = vmatpush3.bf16.xpose.msra.mxu0 %v14394_v44 }
 0x806   :  { %9226 = vmatprep.subr.bf16.mxu0 %v14395_v13 }
 0x80d   :  { %9227 = vmatpush3.bf16.xpose.msra.mxu0 %v14395_v13 }
 0x80e   :  { %9308 = vmatprep.subr.bf16.mxu0 %v14396_v33 }
 0x814   :  { %9229 = vmatmul.mubr.bf16.vlgmr.msra.gmra.mrb[240].mxu0 %v14399_v27 }
 0x815   :  { %9232 = vmatprep.mubr.bf16.mxu0 %v14402_v47  ;;  %9309 = vmatpush3.bf16.msra.mxu0 %v14396_v33 }
 0x816   :  { %9310 = vmatprep.subr.bf16.mxu0 %v14403_v46 }
 0x819   :  { %9311 = vmatpush3.bf16.msra.mxu0 %v14403_v46 }
 0x81a   :  { %9312 = vmatprep.subr.bf16.mxu0 %v14404_v48 }
 0x81c   :  { %9233 = vmatmul.mubr.bf16.gmra.mrb[244].mxu0 %v14407_v22 }
 0x81d   :  { %9236 = vmatprep.mubr.bf16.mxu0 %v14410_v25  ;;  %9313 = vmatpush3.bf16.msra.mxu0 %v14404_v48 }
 0x81e   :  { %9314 = vmatprep.subr.bf16.mxu0 %v14411_v58 }
 0x821   :  { %9315 = vmatpush3.bf16.msra.mxu0 %v14411_v58 }
 0x822   :  { %9316 = vmatprep.subr.bf16.mxu0 %v14412_v45 }
 0x824   :  { %9237 = vmatmul.mubr.bf16.gmra.mrb[248].mxu0 %v14415_v18 }
 0x825   :  { %9240 = vmatprep.mubr.bf16.mxu0 %v14418_v55  ;;  %9317 = vmatpush3.bf16.msra.mxu0 %v14412_v45 }
 0x826   :  { %9318 = vmatprep.subr.bf16.mxu0 %v14419_v32 }
 0x829   :  { %9319 = vmatpush3.bf16.msra.mxu0 %v14419_v32 }
 0x82a   :  { %9320 = vmatprep.subr.bf16.mxu0 %v14420_v6 }
 0x82c   :  { %9241 = vmatmul.mubr.bf16.gmra.mrb[252].mxu0 %v14423_v39 }
 0x82d   :  { %9321 = vmatpush3.bf16.msra.mxu0 %v14420_v6 }
 0x82e   :  { %9322 = vmatprep.subr.bf16.mxu0 %v14424_v7 }
 0x831   :  { %9323 = vmatpush3.bf16.msra.mxu0 %v14424_v7 }
 0x8a7   :  { %v9198_v51 = vpop.f32.mrb[224].mxu0 }
 0x8a8   :  { %v5442_v30 = vpop.f32.mrb[225].mxu0 }
 0x8a9   :  { %v9199_v44 = vpop.f32.mrb[226].mxu0 }
 0x8aa   :  { %v13056_v13 = vpack.c.bf16 %v9199_v44, %v9198_v51  ;;  %v5445_v33 = vpop.f32.mrb[227].mxu0 }
 0x8ab   :  { %v13058_v37 = vpack.c.bf16 %v5445_v33, %v5442_v30 }
 0x8ac   :  { %14425 = vst [vmem:[#allocation74_spill] sm:$0xff] %v13056_v13 }
 0x8ad   :  { %14426 = vst [vmem:[#allocation87_spill] sm:$0xff] %v13058_v37 }
 0x8af   :  { %v9202_v41 = vpop.f32.mrb[228].mxu0 }
 0x8b0   :  { %v5458_v27 = vpop.f32.mrb[229].mxu0 }
 0x8b1   :  { %v9203_v0 = vpop.f32.mrb[230].mxu0 }
 0x8b2   :  { %v13060_v5 = vpack.c.bf16 %v9203_v0, %v9202_v41  ;;  %v5461_v47 = vpop.f32.mrb[231].mxu0 }
 0x8b3   :  { %v13062_v46 = vpack.c.bf16 %v5461_v47, %v5458_v27 }
 0x8b4   :  { %14427 = vst [vmem:[#allocation79_spill] sm:$0xff] %v13060_v5 }
 0x8b5   :  { %14428 = vst [vmem:[#allocation89_spill] sm:$0xff] %v13062_v46 }
 0x8b7   :  { %v9206_v48 = vpop.f32.mrb[232].mxu0 }
 0x8b8   :  { %v5474_v63 = vpop.f32.mrb[233].mxu0 }
 0x8b9   :  { %v9207_v4 = vpop.f32.mrb[234].mxu0 }
 0x8ba   :  { %v13064_v22 = vpack.c.bf16 %v9207_v4, %v9206_v48  ;;  %v5477_v9 = vpop.f32.mrb[235].mxu0 }
 0x8bb   :  { %v13066_v29 = vpack.c.bf16 %v5477_v9, %v5474_v63 }
 0x8bc   :  { %14429 = vst [vmem:[#allocation84_spill] sm:$0xff] %v13064_v22 }
 0x8bd   :  { %14430 = vst [vmem:[#allocation90_spill] sm:$0xff] %v13066_v29 }
 0x8bf   :  { %v9210_v25 = vpop.f32.mrb[236].mxu0 }
 0x8c0   :  { %v5490_v58 = vpop.f32.mrb[237].mxu0 }
 0x8c1   :  { %v9211_v45 = vpop.f32.mrb[238].mxu0 }
 0x8c2   :  { %v13068_v8 = vpack.c.bf16 %v9211_v45, %v9210_v25  ;;  %v5493_v21 = vpop.f32.mrb[239].mxu0 }
 0x8c3   :  { %v13070_v18 = vpack.c.bf16 %v5493_v21, %v5490_v58 }
 0x8c4   :  { %14431 = vst [vmem:[#allocation26_spill] sm:$0xff] %v13068_v8 }
 0x8c5   :  { %14432 = vst [vmem:[#allocation94_spill] sm:$0xff] %v13070_v18 }
 0x8e7   :  { %v9230_v1 = vpop.f32.mrb[240].mxu0 }
 0x8e8   :  { %v5579_v26 = vpop.f32.mrb[241].mxu0  ;;  %v5644_v16 = vsel %vm12121_vm0, %v9230_v1, -inf }
 0x8e9   :  { %v5642_v55 = vsel %vm12134_vm1, %v5579_v26, -inf  ;;  %v9231_v32 = vpop.f32.mrb[242].mxu0 }
 0x8ea   :  { %5658 = vmax.xlane.f32.xlu0 %v5642_v55  ;;  %v5582_v6 = vpop.f32.mrb[243].mxu0  ;;  %v5645_v39 = vsel %vm12152_vm2, %v9231_v32, -inf }
 0x8eb   :  { %v5643_v23 = vsel %vm12162_vm3, %v5582_v6, -inf }
 0x8ec   :  { %5660 = vmax.xlane.f32.xlu1 %v5643_v23 }
 0x8ee   :  { %5662 = vmax.xlane.f32.xlu0 %v5644_v16 }
 0x8ef   :  { %v9234_v7 = vpop.f32.mrb[244].mxu0 }
 0x8f0   :  { %5664 = vmax.xlane.f32.xlu1 %v5645_v39  ;;  %v5595_v51 = vpop.f32.mrb[245].mxu0  ;;  %v5648_v27 = vsel %vm12174_vm4, %v9234_v7, -inf }
 0x8f1   :  { %v5646_v30 = vsel %vm12205_vm6, %v5595_v51, -inf  ;;  %v9235_v44 = vpop.f32.mrb[246].mxu0 }
 0x8f2   :  { %5666 = vmax.xlane.f32.xlu0 %v5646_v30  ;;  %v5598_v33 = vpop.f32.mrb[247].mxu0  ;;  %v5649_v0 = vsel %vm12188_vm5, %v9235_v44, -inf }
 0x8f3   :  { %v5647_v41 = vsel %vm12214_vm7, %v5598_v33, -inf }
 0x8f4   :  { %5668 = vmax.xlane.f32.xlu1 %v5647_v41 }
 0x8f6   :  { %5670 = vmax.xlane.f32.xlu0 %v5648_v27 }
 0x8f7   :  { %v9238_v47 = vpop.f32.mrb[248].mxu0 }
 0x8f8   :  { %5672 = vmax.xlane.f32.xlu1 %v5649_v0  ;;  %v5611_v48 = vpop.f32.mrb[249].mxu0  ;;  %v13097_v58 = vsel %vm12226_vm8, %v9238_v47, -inf }
 0x8f9   :  { %v5650_v63 = vsel %vm12253_vm10, %v5611_v48, -inf  ;;  %v9239_v4 = vpop.f32.mrb[250].mxu0 }
 0x8fa   :  { %5674 = vmax.xlane.f32.xlu0 %v5650_v63  ;;  %v5614_v9 = vpop.f32.mrb[251].mxu0  ;;  %v13102_v45 = vsel %vm12238_vm9, %v9239_v4, -inf }
 0x8fb   :  { %v13092_v25 = vsel %vm12262_vm11, %v5614_v9, -inf }
 0x8fc   :  { %5676 = vmax.xlane.f32.xlu1 %v13092_v25 }
 0x8fe   :  { %5678 = vmax.xlane.f32.xlu0 %v13097_v58 }
 0x8ff   :  { %v9242_v21 = vpop.f32.mrb[252].mxu0 }
 0x900   :  { %5680 = vmax.xlane.f32.xlu1 %v13102_v45  ;;  %v5627_v1 = vpop.f32.mrb[253].mxu0  ;;  %v13117_v51 = vsel %vm12274_vm12, %v9242_v21, -inf }
 0x901   :  { %v13107_v26 = vsel %vm12296_vm14, %v5627_v1, -inf  ;;  %v9243_v32 = vpop.f32.mrb[254].mxu0 }
 0x902   :  { %5682 = vmax.xlane.f32.xlu0 %v13107_v26  ;;  %v5630_v6 = vpop.f32.mrb[255].mxu0  ;;  %v13122_v44 = vsel %vm12284_vm13, %v9243_v32, -inf }
 0x903   :  { %v13112_v7 = vsel %vm12305_vm15, %v5630_v6, -inf }
 0x904   :  { %5684 = vmax.xlane.f32.xlu1 %v13112_v7 }
 0x906   :  { %5686 = vmax.xlane.f32.xlu0 %v13117_v51 }
 0x908   :  { %5688 = vmax.xlane.f32.xlu1 %v13122_v44 }
 0x977   :  { %v5659_v33 = vpop.xlane.xlu0 %5658 }
 0x978   :  { %v5690_v47 = vsub.f32 %v5642_v55, %v5659_v33 }
 0x979   :  { %v5661_v48 = vpop.xlane.xlu1 %5660 }
 0x97a   :  { %v5706_v4 = vmul.f32 1.442695, %v5690_v47  ;;  %v5691_v9 = vsub.f32 %v5643_v23, %v5661_v48 }
 0x97b   :  { %v5663_v1 = vpop.xlane.xlu0 %5662 }
 0x97c   :  { %10525 = vpow2.f32 %v5706_v4  ;;  %v5708_v6 = vmul.f32 1.442695, %v5691_v9  ;;  %v5692_v12 = vsub.f32 %v5644_v16, %v5663_v1 }
 0x97d   :  { %v5665_v20 = vpop.xlane.xlu1 %5664 }
 0x97e   :  { %10527 = vpow2.f32 %v5708_v6  ;;  %v5710_v21 = vmul.f32 1.442695, %v5692_v12  ;;  %v5693_v59 = vsub.f32 %v5645_v39, %v5665_v20 }
 0x97f   :  { %v5667_v34 = vpop.xlane.xlu0 %5666 }
 0x980   :  { %10529 = vpow2.f32 %v5710_v21  ;;  %v5712_v35 = vmul.f32 1.442695, %v5693_v59  ;;  %v5694_v32 = vsub.f32 %v5646_v30, %v5667_v34 }
 0x981   :  { %v5669_v17 = vpop.xlane.xlu1 %5668 }
 0x982   :  { %10531 = vpow2.f32 %v5712_v35  ;;  %v5714_v42 = vmul.f32 1.442695, %v5694_v32  ;;  %v5695_v36 = vsub.f32 %v5647_v41, %v5669_v17 }
 0x983   :  { %v5671_v55 = vpop.xlane.xlu0 %5670 }
 0x984   :  { %10533 = vpow2.f32 %v5714_v42  ;;  %v5716_v33 = vmul.f32 1.442695, %v5695_v36  ;;  %v5696_v23 = vsub.f32 %v5648_v27, %v5671_v55 }
 0x985   :  { %v5673_v47 = vpop.xlane.xlu1 %5672 }
 0x986   :  { %v13125_v48 = vpop.eup %10525  ;;  %10535 = vpow2.f32 %v5716_v33  ;;  %v5718_v16 = vmul.f32 1.442695, %v5696_v23  ;;  %v5697_v4 = vsub.f32 %v5649_v0, %v5673_v47 }
 0x987   :  { %v5675_v12 = vpop.xlane.xlu0 %5674  ;;  %5738 = vadd.xlane.f32.xlu0 %v13125_v48 }
 0x988   :  { %v13128_v20 = vpop.eup %10527  ;;  %10537 = vpow2.f32 %v5718_v16  ;;  %v5720_v34 = vmul.f32 1.442695, %v5697_v4  ;;  %v5698_v59 = vsub.f32 %v5650_v63, %v5675_v12 }
 0x989   :  { %v5677_v35 = vpop.xlane.xlu1 %5676  ;;  %5740 = vadd.xlane.f32.xlu1 %v13128_v20 }
 0x98a   :  { %v13131_v42 = vpop.eup %10529  ;;  %10539 = vpow2.f32 %v5720_v34  ;;  %v5722_v36 = vmul.f32 1.442695, %v5698_v59  ;;  %v5699_v17 = vsub.f32 %v13092_v25, %v5677_v35 }
 0x98b   :  { %v5679_v39 = vpop.xlane.xlu0 %5678  ;;  %5742 = vadd.xlane.f32.xlu0 %v13131_v42 }
 0x98c   :  { %v13135_v30 = vpop.eup %10531  ;;  %10541 = vpow2.f32 %v5722_v36  ;;  %v5724_v41 = vmul.f32 1.442695, %v5699_v17  ;;  %v5700_v27 = vsub.f32 %v13097_v58, %v5679_v39 }
 0x98d   :  { %v5681_v0 = vpop.xlane.xlu1 %5680  ;;  %5744 = vadd.xlane.f32.xlu1 %v13135_v30 }
 0x98e   :  { %v13139_v63 = vpop.eup %10533  ;;  %10543 = vpow2.f32 %v5724_v41  ;;  %v5726_v9 = vmul.f32 1.442695, %v5700_v27  ;;  %v5701_v1 = vsub.f32 %v13102_v45, %v5681_v0 }
 0x98f   :  { %5746 = vadd.xlane.f32.xlu0 %v13139_v63  ;;  %v5683_v25 = vpop.xlane.xlu0 %5682 }
 0x990   :  { %v13143_v6 = vpop.eup %10535  ;;  %10545 = vpow2.f32 %v5726_v9  ;;  %v5728_v21 = vmul.f32 1.442695, %v5701_v1  ;;  %v5702_v32 = vsub.f32 %v13107_v26, %v5683_v25 }
 0x991   :  { %5748 = vadd.xlane.f32.xlu1 %v13143_v6  ;;  %v5685_v58 = vpop.xlane.xlu1 %5684 }
 0x992   :  { %v13147_v55 = vpop.eup %10537  ;;  %10547 = vpow2.f32 %v5728_v21  ;;  %v5730_v33 = vmul.f32 1.442695, %v5702_v32  ;;  %v5703_v23 = vsub.f32 %v13112_v7, %v5685_v58 }
 0x993   :  { %5750 = vadd.xlane.f32.xlu0 %v13147_v55  ;;  %v5687_v45 = vpop.xlane.xlu0 %5686 }
 0x994   :  { %v13151_v47 = vpop.eup %10539  ;;  %10549 = vpow2.f32 %v5730_v33  ;;  %v5732_v16 = vmul.f32 1.442695, %v5703_v23  ;;  %v5704_v4 = vsub.f32 %v13117_v51, %v5687_v45 }
 0x995   :  { %5752 = vadd.xlane.f32.xlu1 %v13151_v47  ;;  %v5689_v26 = vpop.xlane.xlu1 %5688 }
 0x996   :  { %v13155_v12 = vpop.eup %10541  ;;  %10551 = vpow2.f32 %v5732_v16  ;;  %v5734_v34 = vmul.f32 1.442695, %v5704_v4  ;;  %v5705_v59 = vsub.f32 %v13122_v44, %v5689_v26 }
 0x997   :  { %5754 = vadd.xlane.f32.xlu0 %v13155_v12 }
 0x998   :  { %v13159_v7 = vpop.eup %10543  ;;  %10553 = vpow2.f32 %v5734_v34  ;;  %v5736_v35 = vmul.f32 1.442695, %v5705_v59 }
 0x999   :  { %5756 = vadd.xlane.f32.xlu1 %v13159_v7 }
 0x99a   :  { %v13162_v36 = vpop.eup %10545  ;;  %10555 = vpow2.f32 %v5736_v35 }
 0x99b   :  { %5758 = vadd.xlane.f32.xlu0 %v13162_v36 }
 0x99c   :  { %v13165_v51 = vpop.eup %10547 }
 0x99d   :  { %5760 = vadd.xlane.f32.xlu1 %v13165_v51 }
 0x99e   :  { %v13168_v17 = vpop.eup %10549 }
 0x99f   :  { %5762 = vadd.xlane.f32.xlu0 %v13168_v17 }
 0x9a0   :  { %v13171_v44 = vpop.eup %10551 }
 0x9a1   :  { %5764 = vadd.xlane.f32.xlu1 %v13171_v44 }
 0x9a2   :  { %v13174_v39 = vpop.eup %10553 }
 0x9a3   :  { %5766 = vadd.xlane.f32.xlu0 %v13174_v39 }
 0x9a4   :  { %v13177_v41 = vpop.eup %10555 }
 0x9a5   :  { %5768 = vadd.xlane.f32.xlu1 %v13177_v41 }
 0xa14   :  { %v5739_v27 = vpop.xlane.xlu0 %5738 }
 0xa15   :  { %10557 = vrcp.f32 %v5739_v27 }
 0xa16   :  { %v5741_v0 = vpop.xlane.xlu1 %5740 }
 0xa17   :  { %10559 = vrcp.f32 %v5741_v0 }
 0xa18   :  { %v5743_v9 = vpop.xlane.xlu0 %5742 }
 0xa19   :  { %10561 = vrcp.f32 %v5743_v9 }
 0xa1a   :  { %v5745_v1 = vpop.xlane.xlu1 %5744 }
 0xa1b   :  { %10563 = vrcp.f32 %v5745_v1 }
 0xa1c   :  { %v5747_v25 = vpop.xlane.xlu0 %5746 }
 0xa1d   :  { %10565 = vrcp.f32 %v5747_v25 }
 0xa1e   :  { %v5749_v21 = vpop.xlane.xlu1 %5748 }
 0xa1f   :  { %v10558_v32 = vpop.eup %10557  ;;  %10567 = vrcp.f32 %v5749_v21 }
 0xa20   :  { %v5751_v58 = vpop.xlane.xlu0 %5750  ;;  %v5786_v45 = vmul.f32 %v10558_v32, %v13125_v48 }
 0xa21   :  { %v10560_v33 = vpop.eup %10559  ;;  %10569 = vrcp.f32 %v5751_v58 }
 0xa22   :  { %v5753_v23 = vpop.xlane.xlu1 %5752  ;;  %v5787_v16 = vmul.f32 %v10560_v33, %v13128_v20 }
 0xa23   :  { %v10562_v4 = vpop.eup %10561  ;;  %10571 = vrcp.f32 %v5753_v23 }
 0xa24   :  { %v5755_v26 = vpop.xlane.xlu0 %5754  ;;  %v5802_v34 = vpack.c.bf16 %v5787_v16, %v5786_v45  ;;  %v5788_v35 = vmul.f32 %v10562_v4, %v13131_v42  ;;  %v14433_v42 = vld [vmem:[#allocation29_spill] sm:$0xff] }
 0xa25   :  { %v10564_v59 = vpop.eup %10563  ;;  %10573 = vrcp.f32 %v5755_v26 }
 0xa26   :  { %v5789_v27 = vmul.f32 %v10564_v59, %v13135_v30  ;;  %9260 = vmatprep.mubr.bf16.mxu1 %v5802_v34  ;;  %v5757_v0 = vpop.xlane.xlu1 %5756 }
 0xa27   :  { %v10566_v9 = vpop.eup %10565  ;;  %10575 = vrcp.f32 %v5757_v0 }
 0xa28   :  { %v5803_v1 = vpack.c.bf16 %v5789_v27, %v5788_v35  ;;  %v5759_v25 = vpop.xlane.xlu0 %5758  ;;  %v5790_v20 = vmul.f32 %v10566_v9, %v13139_v63 }
 0xa29   :  { %v10568_v21 = vpop.eup %10567  ;;  %10577 = vrcp.f32 %v5759_v25 }
 0xa2a   :  { %9261 = vmatmul.mubr.bf16.vlgmr.msra.gmra.mrb[16].mxu1 %v5803_v1  ;;  %v5761_v48 = vpop.xlane.xlu1 %5760  ;;  %v5791_v32 = vmul.f32 %v10568_v21, %v13143_v6 }
 0xa2b   :  { %v10570_v58 = vpop.eup %10569  ;;  %9277 = vmatpush3.bf16.xpose.msra.mxu1 %v14358_v10  ;;  %10579 = vrcp.f32 %v5761_v48 }
 0xa2c   :  { %9278 = vmatprep.subr.bf16.mxu1 %v14433_v42  ;;  %v5763_v30 = vpop.xlane.xlu0 %5762  ;;  %v5804_v33 = vpack.c.bf16 %v5791_v32, %v5790_v20  ;;  %v5792_v45 = vmul.f32 %v10570_v58, %v13147_v55  ;;  %v14434_v55 = vld [vmem:[#allocation14_spill] sm:$0xff]  ;;  %v14435_v32 = vld [vmem:[#allocation32_spill] sm:$0xff] }
 0xa2d   :  { %v10572_v23 = vpop.eup %10571  ;;  %10581 = vrcp.f32 %v5763_v30 }
 0xa2e   :  { %v5793_v16 = vmul.f32 %v10572_v23, %v13151_v47  ;;  %9264 = vmatprep.mubr.bf16.mxu1 %v5804_v33  ;;  %v5765_v4 = vpop.xlane.xlu1 %5764  ;;  %v14436_v33 = vld [vmem:[#allocation93_spill] sm:$0xff] }
 0xa2f   :  { %v10574_v26 = vpop.eup %10573  ;;  %10583 = vrcp.f32 %v5765_v4  ;;  %v10174_v4 = vld [vmem:[#allocation9 + $0x8] ss:$12 sps:$4 sm:$0xff]  }
 0xa30   :  { %v5805_v63 = vpack.c.bf16 %v5793_v16, %v5792_v45  ;;  %v5767_v6 = vpop.xlane.xlu0 %5766  ;;  %v5794_v59 = vmul.f32 %v10574_v26, %v13155_v12  ;;  %v14440_v45 = vld [vmem:[#allocation64_spill] sm:$0xff]  ;;  %v10175_v26 = vld [vmem:[#allocation9 + $0xe0] ss:$12 sps:$4 sm:$0xff]  }
 0xa31   :  { %v10576_v34 = vpop.eup %10575  ;;  %10585 = vrcp.f32 %v5767_v6  ;;  %v10173_v16 = vld [vmem:[#allocation9 + $0xc8] ss:$12 sps:$4 sm:$0xff]  }
 0xa32   :  { %9265 = vmatmul.mubr.bf16.gmra.mrb[20].mxu1 %v5805_v63  ;;  %v5769_v10 = vpop.xlane.xlu1 %5768  ;;  %v5795_v35 = vmul.f32 %v10576_v34, %v13159_v7  ;;  %v14443_v63 = vld [vmem:[#allocation96_spill] sm:$0xff]  ;;  %v14444_v6 = vld [vmem:[#allocation95_spill] sm:$0xff] }
 0xa33   :  { %v10578_v27 = vpop.eup %10577  ;;  %9279 = vmatpush3.bf16.xpose.msra.mxu1 %v14433_v42  ;;  %10587 = vrcp.f32 %v5769_v10  ;;  %v14445_v34 = vpack.c.bf16 %v14443_v63, %v14444_v6  ;;  %v14446_v10 = vld [vmem:[#allocation99_spill] sm:$0xff] }
 0xa34   :  { %9280 = vmatprep.subr.bf16.mxu1 %v14434_v55  ;;  %v5806_v47 = vpack.c.bf16 %v5795_v35, %v5794_v59  ;;  %v5796_v9 = vmul.f32 %v10578_v27, %v13162_v36  ;;  %v14447_v59 = vld [vmem:[#allocation98_spill] sm:$0xff]  ;;  %v10189_v63 = vld [vmem:[#allocation9 + $0x188] ss:$12 sps:$4 sm:$0xff]  }
 0xa35   :  { %v10580_v0 = vpop.eup %10579  ;;  %v14448_v35 = vpack.c.bf16 %v14446_v10, %v14447_v59  ;;  %v10176_v27 = vld [vmem:[#allocation9 + $0x20] ss:$12 sps:$4 sm:$0xff]   ;;  %v10192_v10 = vld [vmem:[#allocation9 + $0x1d0] ss:$12 sps:$4 sm:$0xff]   ;;  %v10193_v59 = vld [vmem:[#allocation9 + $0x1e8] ss:$12 sps:$4 sm:$0xff]  }
 0xa36   :  { %v5797_v1 = vmul.f32 %v10580_v0, %v13165_v51  ;;  %9268 = vmatprep.mubr.bf16.mxu1 %v5806_v47  ;;  %v10178_v47 = vld [vmem:[#allocation9 + $0x38] ss:$12 sps:$4 sm:$0xff]   ;;  %v10179_v0 = vld [vmem:[#allocation9 + $0x110] ss:$12 sps:$4 sm:$0xff]   ;;  %v10190_v6 = vld [vmem:[#allocation9 + $0x1a0] ss:$12 sps:$4 sm:$0xff]  }
 0xa37   :  { %v10582_v25 = vpop.eup %10581 }
 0xa38   :  { %v5807_v21 = vpack.c.bf16 %v5797_v1, %v5796_v9  ;;  %v5798_v12 = vmul.f32 %v10582_v25, %v13168_v17  ;;  %v14437_v17 = vld [vmem:[#allocation34_spill] sm:$0xff]  ;;  %v14450_v1 = vld [vmem:[#allocation101_spill] sm:$0xff] }
 0xa39   :  { %v10584_v48 = vpop.eup %10583  ;;  %v14438_v23 = vpack.c.bf16 %v14436_v33, %v14437_v17  ;;  %v14449_v9 = vld [vmem:[#allocation102_spill] sm:$0xff] }
 0xa3a   :  { %9269 = vmatmul.mubr.bf16.gmra.mrb[24].mxu1 %v5807_v21  ;;  %v5799_v7 = vmul.f32 %v10584_v48, %v13171_v44  ;;  %v14439_v44 = vld [vmem:[#allocation15_spill] sm:$0xff]  ;;  %v14451_v25 = vpack.c.bf16 %v14449_v9, %v14450_v1  ;;  %v14452_v21 = vld [vmem:[#allocation105_spill] sm:$0xff]  ;;  %v14453_v48 = vld [vmem:[#allocation104_spill] sm:$0xff] }
 0xa3b   :  { %v10586_v20 = vpop.eup %10585  ;;  %9281 = vmatpush3.bf16.xpose.msra.mxu1 %v14434_v55  ;;  %v10177_v55 = vld [vmem:[#allocation9 + $0xf8] ss:$12 sps:$4 sm:$0xff]  }
 0xa3c   :  { %9282 = vmatprep.subr.bf16.mxu1 %v14435_v32  ;;  %v5808_v58 = vpack.c.bf16 %v5799_v7, %v5798_v12  ;;  %v5800_v36 = vmul.f32 %v10586_v20, %v13174_v39  ;;  %v14441_v39 = vld [vmem:[#allocation70_spill] sm:$0xff]  ;;  %v14454_v12 = vpack.c.bf16 %v14452_v21, %v14453_v48  ;;  %v10180_v7 = vld [vmem:[#allocation9 + $0x50] ss:$12 sps:$4 sm:$0xff]   ;;  %v10181_v20 = vld [vmem:[#allocation9 + $0x128] ss:$12 sps:$4 sm:$0xff]  }
 0xa3d   :  { %v10588_v42 = vpop.eup %10587  ;;  %v14459_v33 = vld [vmem:[#allocation110_spill] sm:$0xff] }
 0xa3e   :  { %v5801_v51 = vmul.f32 %v10588_v42, %v13177_v41  ;;  %9272 = vmatprep.mubr.bf16.mxu1 %v5808_v58  ;;  %v14442_v41 = vld [vmem:[#allocation78_spill] sm:$0xff]  ;;  %v14455_v42 = vld [vmem:[#allocation108_spill] sm:$0xff] }
 0xa3f   :  { %v10183_v58 = vld [vmem:[#allocation9 + $0x140] ss:$12 sps:$4 sm:$0xff]  }
 0xa40   :  { %v5809_v30 = vpack.c.bf16 %v5801_v51, %v5800_v36  ;;  %v14456_v36 = vld [vmem:[#allocation107_spill] sm:$0xff] }
 0xa41   :  { %v14457_v51 = vpack.c.bf16 %v14455_v42, %v14456_v36 }
 0xa42   :  { %9273 = vmatmul.mubr.bf16.gmra.mrb[28].mxu1 %v5809_v30  ;;  %v14458_v30 = vld [vmem:[#allocation111_spill] sm:$0xff] }
 0xa43   :  { %9283 = vmatpush3.bf16.xpose.msra.mxu1 %v14435_v32  ;;  %9292 = vmatprep.mubr.bf16.mxu1 %v14438_v23  ;;  %v10182_v32 = vld [vmem:[#allocation9 + $0x68] ss:$12 sps:$4 sm:$0xff]   ;;  %v14460_v17 = vpack.c.bf16 %v14458_v30, %v14459_v33  ;;  %v10184_v23 = vld [vmem:[#allocation9 + $0x80] ss:$12 sps:$4 sm:$0xff]  }
 0xa44   :  { %9284 = vmatprep.subr.bf16.mxu1 %v14439_v44 }
 0xa4b   :  { %9285 = vmatpush3.bf16.xpose.msra.mxu1 %v14439_v44  ;;  %v10185_v44 = vld [vmem:[#allocation9 + $0x158] ss:$12 sps:$4 sm:$0xff]  }
 0xa4c   :  { %9286 = vmatprep.subr.bf16.mxu1 %v14440_v45 }
 0xa53   :  { %9287 = vmatpush3.bf16.xpose.msra.mxu1 %v14440_v45  ;;  %v10186_v45 = vld [vmem:[#allocation9 + $0x98] ss:$12 sps:$4 sm:$0xff]  }
 0xa54   :  { %9288 = vmatprep.subr.bf16.mxu1 %v14441_v39 }
 0xa5b   :  { %9289 = vmatpush3.bf16.xpose.msra.mxu1 %v14441_v39  ;;  %v10187_v39 = vld [vmem:[#allocation9 + $0x170] ss:$12 sps:$4 sm:$0xff]  }
 0xa5c   :  { %9290 = vmatprep.subr.bf16.mxu1 %v14442_v41 }
 0xa63   :  { %9291 = vmatpush3.bf16.xpose.msra.mxu1 %v14442_v41  ;;  %v14461_v41 = vld [vmem:[#allocation114_spill] sm:$0xff] }
 0xa64   :  { %8772 = vmatprep.subr.bf16.mxu1 %v10173_v16  ;;  %v14462_v16 = vld [vmem:[#allocation113_spill] sm:$0xff] }
 0xa6a   :  { %9293 = vmatmul.mubr.bf16.vlgmr.msra.gmra.mrb[32].mxu1 %v14445_v34  ;;  %v10191_v34 = vld [vmem:[#allocation9 + $0x1b8] ss:$12 sps:$4 sm:$0xff]  }
 0xa6b   :  { %9296 = vmatprep.mubr.bf16.mxu1 %v14448_v35  ;;  %8773 = vmatpush3.bf16.msra.mxu1 %v10174_v4  ;;  %v14463_v4 = vpack.c.bf16 %v14461_v41, %v14462_v16  ;;  %v10194_v35 = vld [vmem:[#allocation9 + $0x200] ss:$12 sps:$4 sm:$0xff]  }
 0xa6c   :  { %8774 = vmatprep.subr.bf16.mxu1 %v10175_v26  ;;  %v10188_v26 = vld [vmem:[#allocation9 + $0xb0] ss:$12 sps:$4 sm:$0xff]  }
 0xa6f   :  { %8775 = vmatpush3.bf16.msra.mxu1 %v10176_v27  ;;  %v14464_v27 = vld [vmem:[#allocation68_spill] sm:$0xff] }
 0xa70   :  { %8776 = vmatprep.subr.bf16.mxu1 %v10177_v55  ;;  %v10195_v55 = vld [vmem:[#allocation9 + $0x218] ss:$12 sps:$4 sm:$0xff]  }
 0xa72   :  { %9297 = vmatmul.mubr.bf16.gmra.mrb[36].mxu1 %v14451_v25 }
 0xa73   :  { %9300 = vmatprep.mubr.bf16.mxu1 %v14454_v12  ;;  %8777 = vmatpush3.bf16.msra.mxu1 %v10178_v47  ;;  %v10196_v47 = vld [vmem:[#allocation9 + $0x230] ss:$12 sps:$4 sm:$0xff]  }
 0xa74   :  { %8778 = vmatprep.subr.bf16.mxu1 %v10179_v0  ;;  %v14465_v0 = vld [vmem:[#allocation138_spill] sm:$0xff] }
 0xa77   :  { %8779 = vmatpush3.bf16.msra.mxu1 %v10180_v7 }
 0xa78   :  { %8780 = vmatprep.subr.bf16.mxu1 %v10181_v20 }
 0xa7a   :  { %9301 = vmatmul.mubr.bf16.gmra.mrb[40].mxu1 %v14457_v51 }
 0xa7b   :  { %9304 = vmatprep.mubr.bf16.mxu1 %v14460_v17  ;;  %8781 = vmatpush3.bf16.msra.mxu1 %v10182_v32 }
 0xa7c   :  { %8782 = vmatprep.subr.bf16.mxu1 %v10183_v58 }
 0xa7f   :  { %8783 = vmatpush3.bf16.msra.mxu1 %v10184_v23 }
 0xa80   :  { %8784 = vmatprep.subr.bf16.mxu1 %v10185_v44 }
 0xa82   :  { %9305 = vmatmul.mubr.bf16.gmra.mrb[44].mxu1 %v14463_v4 }
 0xa83   :  { %8785 = vmatpush3.bf16.msra.mxu1 %v10186_v45  ;;  %7288 = vmatprep.mubr.bf16.mxu1 %v12847_v2 }
 0xa84   :  { %8786 = vmatprep.subr.bf16.mxu1 %v10187_v39 }
 0xa87   :  { %8787 = vmatpush3.bf16.msra.mxu1 %v10188_v26 }
 0xa88   :  { %9340 = vmatprep.subr.bf16.mxu1 %v10189_v63 }
 0xa8a   :  { %7289 = vmatmul.mubr.bf16.vlgmr.msra.gmra.mrb[48].mxu1 %v12812_v54 }
 0xa8b   :  { %7296 = vmatprep.mubr.bf16.mxu1 %v12845_v57  ;;  %9341 = vmatpush3.bf16.msra.mxu1 %v10189_v63 }
 0xa8c   :  { %9342 = vmatprep.subr.bf16.mxu1 %v10190_v6 }
 0xa8f   :  { %9343 = vmatpush3.bf16.msra.mxu1 %v10190_v6  ;;  %v14474_v6 = vld [vmem:[#allocation67_spill] sm:$0xff] }
 0xa90   :  { %9344 = vmatprep.subr.bf16.mxu1 %v10191_v34 }
 0xa92   :  { %7297 = vmatmul.mubr.bf16.gmra.mrb[52].mxu1 %v12809_v38 }
 0xa93   :  { %7304 = vmatprep.mubr.bf16.mxu1 %v12851_v52  ;;  %9345 = vmatpush3.bf16.msra.mxu1 %v10191_v34 }
 0xa94   :  { %9346 = vmatprep.subr.bf16.mxu1 %v10192_v10 }
 0xa97   :  { %9347 = vmatpush3.bf16.msra.mxu1 %v10192_v10 }
 0xa98   :  { %9348 = vmatprep.subr.bf16.mxu1 %v10193_v59 }
 0xa9a   :  { %7305 = vmatmul.mubr.bf16.gmra.mrb[56].mxu1 %v12826_v19 }
 0xa9b   :  { %7312 = vmatprep.mubr.bf16.mxu1 %v12849_v3  ;;  %9349 = vmatpush3.bf16.msra.mxu1 %v10193_v59 }
 0xa9c   :  { %9350 = vmatprep.subr.bf16.mxu1 %v10194_v35 }
 0xa9f   :  { %9351 = vmatpush3.bf16.msra.mxu1 %v10194_v35 }
 0xaa0   :  { %9352 = vmatprep.subr.bf16.mxu1 %v10195_v55 }
 0xaa2   :  { %7313 = vmatmul.mubr.bf16.gmra.mrb[60].mxu1 %v12823_v61 }
 0xaa3   :  { %7320 = vmatprep.mubr.bf16.mxu1 %v12855_v53  ;;  %9353 = vmatpush3.bf16.msra.mxu1 %v10195_v55 }
 0xaa4   :  { %9354 = vmatprep.subr.bf16.mxu1 %v10196_v47 }
 0xaa7   :  { %9355 = vmatpush3.bf16.msra.mxu1 %v10196_v47 }
 0xaaa   :  { %7321 = vmatmul.mubr.bf16.gmra.mrb[64].mxu1 %v12837_v60 }
 0xaab   :  { %7328 = vmatprep.mubr.bf16.mxu1 %v12853_v28 }
 0xab2   :  { %7329 = vmatmul.mubr.bf16.gmra.mrb[68].mxu1 %v12834_v14 }
 0xab3   :  { %7336 = vmatprep.mubr.bf16.mxu1 %v12859_v31 }
 0xaba   :  { %7337 = vmatmul.mubr.bf16.gmra.mrb[72].mxu1 %v12843_v43 }
 0xabb   :  { %7344 = vmatprep.mubr.bf16.mxu1 %v14464_v27 }
 0xac2   :  { %7345 = vmatmul.mubr.bf16.gmra.mrb[76].mxu1 %v14465_v0 }
 0xafd   :  { %v9262_v9 = vpop.f32.mrb[16].mxu1 }
 0xafe   :  { %v5844_v1 = vpop.f32.mrb[17].mxu1 }
 0xaff   :  { %v9263_v25 = vpop.f32.mrb[18].mxu1 }
 0xb00   :  { %v13251_v21 = vpack.c.bf16 %v9263_v25, %v9262_v9  ;;  %v5847_v48 = vpop.f32.mrb[19].mxu1  ;;  %v14475_v9 = vld [vmem:[#allocation16_spill] sm:$0xff]  ;;  %v14476_v25 = vld [vmem:[#allocation71_spill] sm:$0xff] }
 0xb01   :  { %v13253_v12 = vpack.c.bf16 %v5847_v48, %v5844_v1 }
 0xb02   :  { %14466 = vst [vmem:[#allocation97_spill] sm:$0xff] %v13251_v21 }
 0xb03   :  { %14467 = vst [vmem:[#allocation100_spill] sm:$0xff] %v13253_v12  ;;  %7352 = vmatprep.mubr.bf16.mxu1 %v13253_v12 }
 0xb04   :  { %7353 = vmatmul.mubr.bf16.gmra.mrb[80].mxu1 %v13058_v37 }
 0xb05   :  { %v9266_v7 = vpop.f32.mrb[20].mxu1  ;;  %7360 = vmatprep.mubr.bf16.mxu1 %v13251_v21 }
 0xb06   :  { %v5860_v20 = vpop.f32.mrb[21].mxu1 }
 0xb07   :  { %v9267_v32 = vpop.f32.mrb[22].mxu1 }
 0xb08   :  { %v13258_v58 = vpack.c.bf16 %v9267_v32, %v9266_v7  ;;  %v5863_v42 = vpop.f32.mrb[23].mxu1  ;;  %v14477_v32 = vld [vmem:[#allocation75_spill] sm:$0xff] }
 0xb09   :  { %v13260_v36 = vpack.c.bf16 %v5863_v42, %v5860_v20 }
 0xb0a   :  { %14468 = vst [vmem:[#allocation137_spill] sm:$0xff] %v13258_v58 }
 0xb0b   :  { %14469 = vst [vmem:[#allocation103_spill] sm:$0xff] %v13260_v36 }
 0xb0c   :  { %7361 = vmatmul.mubr.bf16.gmra.mrb[84].mxu1 %v13056_v13 }
 0xb0d   :  { %v9270_v51 = vpop.f32.mrb[24].mxu1  ;;  %7368 = vmatprep.mubr.bf16.mxu1 %v13260_v36 }
 0xb0e   :  { %v5876_v30 = vpop.f32.mrb[25].mxu1 }
 0xb0f   :  { %v9271_v33 = vpop.f32.mrb[26].mxu1 }
 0xb10   :  { %v13264_v17 = vpack.c.bf16 %v9271_v33, %v9270_v51  ;;  %v5879_v23 = vpop.f32.mrb[27].mxu1  ;;  %v14478_v51 = vld [vmem:[#allocation83_spill] sm:$0xff] }
 0xb11   :  { %v13266_v44 = vpack.c.bf16 %v5879_v23, %v5876_v30 }
 0xb12   :  { %14470 = vst [vmem:[#allocation106_spill] sm:$0xff] %v13264_v17 }
 0xb13   :  { %14471 = vst [vmem:[#allocation109_spill] sm:$0xff] %v13266_v44 }
 0xb14   :  { %7369 = vmatmul.mubr.bf16.gmra.mrb[88].mxu1 %v13062_v46 }
 0xb15   :  { %v9274_v45 = vpop.f32.mrb[28].mxu1  ;;  %7376 = vmatprep.mubr.bf16.mxu1 %v13258_v58 }
 0xb16   :  { %v5892_v39 = vpop.f32.mrb[29].mxu1 }
 0xb17   :  { %v9275_v41 = vpop.f32.mrb[30].mxu1 }
 0xb18   :  { %v13270_v16 = vpack.c.bf16 %v9275_v41, %v9274_v45  ;;  %v5895_v4 = vpop.f32.mrb[31].mxu1  ;;  %v14488_v45 = vld [vmem:[#allocation80_spill] sm:$0xff] }
 0xb19   :  { %v13272_v26 = vpack.c.bf16 %v5895_v4, %v5892_v39  ;;  %v14482_v4 = vld [vmem:[#allocation18_spill] sm:$0xff] }
 0xb1a   :  { %14472 = vst [vmem:[#allocation112_spill] sm:$0xff] %v13270_v16 }
 0xb1b   :  { %14473 = vst [vmem:[#allocation115_spill] sm:$0xff] %v13272_v26 }
 0xb1c   :  { %7377 = vmatmul.mubr.bf16.gmra.mrb[92].mxu1 %v13060_v5 }
 0xb1d   :  { %7384 = vmatprep.mubr.bf16.mxu1 %v13266_v44 }
 0xb24   :  { %7385 = vmatmul.mubr.bf16.gmra.mrb[96].mxu1 %v13066_v29 }
 0xb25   :  { %7392 = vmatprep.mubr.bf16.mxu1 %v13264_v17 }
 0xb2c   :  { %7393 = vmatmul.mubr.bf16.gmra.mrb[100].mxu1 %v13064_v22 }
 0xb2d   :  { %7400 = vmatprep.mubr.bf16.mxu1 %v13272_v26 }
 0xb34   :  { %7401 = vmatmul.mubr.bf16.gmra.mrb[104].mxu1 %v13070_v18 }
 0xb35   :  { %7408 = vmatprep.mubr.bf16.mxu1 %v13270_v16 }
 0xb3c   :  { %7409 = vmatmul.mubr.bf16.gmra.mrb[108].mxu1 %v13068_v8 }
 0xb3d   :  { %v9294_v63 = vpop.f32.mrb[32].mxu1  ;;  %9356 = vmatprep.mubr.bf16.mxu1 %v14474_v6 }
 0xb3e   :  { %v5981_v34 = vpop.f32.mrb[33].mxu1  ;;  %v13296_v47 = vsel %vm12121_vm0, %v9294_v63, -inf }
 0xb3f   :  { %v13286_v10 = vsel %vm12134_vm1, %v5981_v34, -inf  ;;  %v9295_v59 = vpop.f32.mrb[34].mxu1 }
 0xb40   :  { %6060 = vmax.xlane.f32.xlu0 %v13286_v10  ;;  %v5984_v35 = vpop.f32.mrb[35].mxu1  ;;  %v13302_v50 = vsel %vm12152_vm2, %v9295_v59, -inf }
 0xb41   :  { %v13291_v55 = vsel %vm12162_vm3, %v5984_v35, -inf  ;;  %v14484_v35 = vld [vmem:[#allocation82_spill] sm:$0xff] }
 0xb42   :  { %6062 = vmax.xlane.f32.xlu1 %v13291_v55 }
 0xb44   :  { %6064 = vmax.xlane.f32.xlu0 %v13296_v47  ;;  %9357 = vmatmul.mubr.bf16.vlgmr.msra.gmra.mrb[112].mxu1 %v14475_v9 }
 0xb45   :  { %v9298_v1 = vpop.f32.mrb[36].mxu1  ;;  %9360 = vmatprep.mubr.bf16.mxu1 %v14476_v25 }
 0xb46   :  { %6066 = vmax.xlane.f32.xlu1 %v13302_v50  ;;  %v5997_v40 = vpop.f32.mrb[37].mxu1  ;;  %v13318_v49 = vsel %vm12174_vm4, %v9298_v1, -inf }
 0xb47   :  { %v13308_v48 = vsel %vm12205_vm6, %v5997_v40, -inf  ;;  %v9299_v62 = vpop.f32.mrb[38].mxu1 }
 0xb48   :  { %6068 = vmax.xlane.f32.xlu0 %v13308_v48  ;;  %v6000_v7 = vpop.f32.mrb[39].mxu1  ;;  %v13324_v11 = vsel %vm12188_vm5, %v9299_v62, -inf }
 0xb49   :  { %v13313_v20 = vsel %vm12214_vm7, %v6000_v7, -inf }
 0xb4a   :  { %6070 = vmax.xlane.f32.xlu1 %v13313_v20 }
 0xb4c   :  { %6072 = vmax.xlane.f32.xlu0 %v13318_v49  ;;  %9361 = vmatmul.mubr.bf16.gmra.mrb[116].mxu1 %v14477_v32 }
 0xb4d   :  { %v9302_v42 = vpop.f32.mrb[40].mxu1  ;;  %9364 = vmatprep.mubr.bf16.mxu1 %v14478_v51 }
 0xb4e   :  { %6074 = vmax.xlane.f32.xlu1 %v13324_v11  ;;  %v6013_v56 = vpop.f32.mrb[41].mxu1  ;;  %v13340_v41 = vsel %vm12226_vm8, %v9302_v42, -inf }
 0xb4f   :  { %v13330_v33 = vsel %vm12253_vm10, %v6013_v56, -inf  ;;  %v9303_v24 = vpop.f32.mrb[42].mxu1 }
 0xb50   :  { %6076 = vmax.xlane.f32.xlu0 %v13330_v33  ;;  %v6016_v23 = vpop.f32.mrb[43].mxu1  ;;  %v13346_v34 = vsel %vm12238_vm9, %v9303_v24, -inf }
 0xb51   :  { %v13335_v39 = vsel %vm12262_vm11, %v6016_v23, -inf }
 0xb52   :  { %6078 = vmax.xlane.f32.xlu1 %v13335_v39 }
 0xb54   :  { %6080 = vmax.xlane.f32.xlu0 %v13340_v41  ;;  %9365 = vmatmul.mubr.bf16.gmra.mrb[120].mxu1 %v14482_v4 }
 0xb55   :  { %v9306_v59 = vpop.f32.mrb[44].mxu1  ;;  %9368 = vmatprep.mubr.bf16.mxu1 %v14484_v35 }
 0xb56   :  { %6082 = vmax.xlane.f32.xlu1 %v13346_v34  ;;  %v6029_v1 = vpop.f32.mrb[45].mxu1  ;;  %v13362_v23 = vsel %vm12274_vm12, %v9306_v59, -inf }
 0xb57   :  { %v13352_v62 = vsel %vm12296_vm14, %v6029_v1, -inf  ;;  %v9307_v7 = vpop.f32.mrb[46].mxu1 }
 0xb58   :  { %6084 = vmax.xlane.f32.xlu0 %v13352_v62  ;;  %v6032_v42 = vpop.f32.mrb[47].mxu1  ;;  %v13368_v63 = vsel %vm12284_vm13, %v9307_v7, -inf }
 0xb59   :  { %v13357_v30 = vsel %vm12305_vm15, %v6032_v42, -inf }
 0xb5a   :  { %6086 = vmax.xlane.f32.xlu1 %v13357_v30 }
 0xb5c   :  { %6088 = vmax.xlane.f32.xlu0 %v13362_v23  ;;  %9369 = vmatmul.mubr.bf16.gmra.mrb[124].mxu1 %v14488_v45 }
 0xb5d   :  { %v8788_v1 = vpop.f32.mrb[48].mxu1 }
 0xb5e   :  { %v8789_v40 = vpop.f32.mrb[49].mxu1  ;;  %6090 = vmax.xlane.f32.xlu1 %v13368_v63 }
 0xb5f   :  { %v13371_v42 = vadd.f32 %v8789_v40, %v8788_v1  ;;  %v8791_v56 = vpop.f32.mrb[50].mxu1 }
 0xb60   :  { %v8792_v35 = vpop.f32.mrb[51].mxu1 }
 0xb61   :  { %v13373_v4 = vadd.f32 %v8792_v35, %v8791_v56 }
 0xb65   :  { %v8794_v59 = vpop.f32.mrb[52].mxu1 }
 0xb66   :  { %v8795_v24 = vpop.f32.mrb[53].mxu1 }
 0xb67   :  { %v13375_v51 = vadd.f32 %v8795_v24, %v8794_v59  ;;  %v8797_v32 = vpop.f32.mrb[54].mxu1 }
 0xb68   :  { %v8798_v45 = vpop.f32.mrb[55].mxu1 }
 0xb69   :  { %v13377_v25 = vadd.f32 %v8798_v45, %v8797_v32 }
 0xb6d   :  { %v8800_v7 = vpop.f32.mrb[56].mxu1 }
 0xb6e   :  { %v8801_v15 = vpop.f32.mrb[57].mxu1 }
 0xb6f   :  { %v13379_v9 = vadd.f32 %v8801_v15, %v8800_v7  ;;  %v8803_v6 = vpop.f32.mrb[58].mxu1 }
 0xb70   :  { %v8804_v8 = vpop.f32.mrb[59].mxu1 }
 0xb71   :  { %v13381_v1 = vadd.f32 %v8804_v8, %v8803_v6 }
 0xb75   :  { %v8806_v40 = vpop.f32.mrb[60].mxu1 }
 0xb76   :  { %v8807_v16 = vpop.f32.mrb[61].mxu1 }
 0xb77   :  { %v13383_v35 = vadd.f32 %v8807_v16, %v8806_v40  ;;  %v8809_v56 = vpop.f32.mrb[62].mxu1 }
 0xb78   :  { %v8810_v18 = vpop.f32.mrb[63].mxu1 }
 0xb79   :  { %v13385_v59 = vadd.f32 %v8810_v18, %v8809_v56 }
 0xb7d   :  { %v8812_v24 = vpop.f32.mrb[64].mxu1 }
 0xb7e   :  { %v8813_v26 = vpop.f32.mrb[65].mxu1 }
 0xb7f   :  { %v13387_v32 = vadd.f32 %v8813_v26, %v8812_v24  ;;  %v8815_v45 = vpop.f32.mrb[66].mxu1 }
 0xb80   :  { %v8816_v22 = vpop.f32.mrb[67].mxu1 }
 0xb81   :  { %v13389_v7 = vadd.f32 %v8816_v22, %v8815_v45 }
 0xb85   :  { %v8818_v15 = vpop.f32.mrb[68].mxu1 }
 0xb86   :  { %v8819_v17 = vpop.f32.mrb[69].mxu1 }
 0xb87   :  { %v13391_v8 = vadd.f32 %v8819_v17, %v8818_v15  ;;  %v8821_v6 = vpop.f32.mrb[70].mxu1 }
 0xb88   :  { %v8822_v29 = vpop.f32.mrb[71].mxu1 }
 0xb89   :  { %v13393_v16 = vadd.f32 %v8822_v29, %v8821_v6 }
 0xb8d   :  { %v8824_v40 = vpop.f32.mrb[72].mxu1 }
 0xb8e   :  { %v8825_v44 = vpop.f32.mrb[73].mxu1 }
 0xb8f   :  { %v13395_v18 = vadd.f32 %v8825_v44, %v8824_v40  ;;  %v8827_v56 = vpop.f32.mrb[74].mxu1 }
 0xb90   :  { %v8828_v5 = vpop.f32.mrb[75].mxu1 }
 0xb91   :  { %v13397_v26 = vadd.f32 %v8828_v5, %v8827_v56 }
 0xb95   :  { %v8830_v24 = vpop.f32.mrb[76].mxu1 }
 0xb96   :  { %v8831_v58 = vpop.f32.mrb[77].mxu1 }
 0xb97   :  { %v13399_v22 = vadd.f32 %v8831_v58, %v8830_v24  ;;  %v8833_v45 = vpop.f32.mrb[78].mxu1 }
 0xb98   :  { %v8834_v46 = vpop.f32.mrb[79].mxu1 }
 0xb99   :  { %v13401_v17 = vadd.f32 %v8834_v46, %v8833_v45 }
 0xbcd   :  { %v6061_v15 = vpop.xlane.xlu0 %6060 }
 0xbce   :  { %v6092_v29 = vsub.f32 %v13286_v10, %v6061_v15 }
 0xbcf   :  { %v6063_v6 = vpop.xlane.xlu1 %6062 }
 0xbd0   :  { %v6108_v36 = vmul.f32 1.442695, %v6092_v29  ;;  %v6093_v44 = vsub.f32 %v13291_v55, %v6063_v6 }
 0xbd1   :  { %v6065_v40 = vpop.xlane.xlu0 %6064 }
 0xbd2   :  { %10589 = vpow2.f32 %v6108_v36  ;;  %v6110_v13 = vmul.f32 1.442695, %v6093_v44  ;;  %v6094_v5 = vsub.f32 %v13296_v47, %v6065_v40 }
 0xbd3   :  { %v6067_v56 = vpop.xlane.xlu1 %6066 }
 0xbd4   :  { %10591 = vpow2.f32 %v6110_v13  ;;  %v6112_v58 = vmul.f32 1.442695, %v6094_v5  ;;  %v6095_v24 = vsub.f32 %v13302_v50, %v6067_v56 }
 0xbd5   :  { %v6069_v21 = vpop.xlane.xlu0 %6068 }
 0xbd6   :  { %10593 = vpow2.f32 %v6112_v58  ;;  %v6114_v46 = vmul.f32 1.442695, %v6095_v24  ;;  %v6096_v45 = vsub.f32 %v13308_v48, %v6069_v21 }
 0xbd7   :  { %v6071_v10 = vpop.xlane.xlu1 %6070  ;;  %v8836_v15 = vpop.f32.mrb[80].mxu1 }
 0xbd8   :  { %10595 = vpow2.f32 %v6114_v46  ;;  %v6116_v29 = vmul.f32 1.442695, %v6096_v45  ;;  %v6097_v55 = vsub.f32 %v13313_v20, %v6071_v10  ;;  %v8837_v36 = vpop.f32.mrb[81].mxu1 }
 0xbd9   :  { %v6073_v6 = vpop.xlane.xlu0 %6072  ;;  %v13409_v44 = vadd.f32 %v8837_v36, %v8836_v15  ;;  %v8839_v47 = vpop.f32.mrb[82].mxu1 }
 0xbda   :  { %10597 = vpow2.f32 %v6116_v29  ;;  %v6118_v13 = vmul.f32 1.442695, %v6097_v55  ;;  %v6098_v50 = vsub.f32 %v13318_v49, %v6073_v6  ;;  %v8840_v40 = vpop.f32.mrb[83].mxu1 }
 0xbdb   :  { %14490 = vst [vmem:[#allocation19_spill] sm:$0xff] %v13409_v44  ;;  %v6075_v5 = vpop.xlane.xlu1 %6074  ;;  %v13412_v56 = vadd.f32 %v8840_v40, %v8839_v47 }
 0xbdc   :  { %v13414_v21 = vpop.eup %10589  ;;  %10599 = vpow2.f32 %v6118_v13  ;;  %v6120_v48 = vmul.f32 1.442695, %v6098_v50  ;;  %v6099_v58 = vsub.f32 %v13324_v11, %v6075_v5 }
 0xbdd   :  { %14491 = vst [vmem:[#allocation37_spill] sm:$0xff] %v13412_v56  ;;  %v6077_v20 = vpop.xlane.xlu0 %6076  ;;  %6140 = vadd.xlane.f32.xlu0 %v13414_v21 }
 0xbde   :  { %v13418_v24 = vpop.eup %10591  ;;  %10601 = vpow2.f32 %v6120_v48  ;;  %v6122_v46 = vmul.f32 1.442695, %v6099_v58  ;;  %v6100_v45 = vsub.f32 %v13330_v33, %v6077_v20 }
 0xbdf   :  { %v6079_v49 = vpop.xlane.xlu1 %6078  ;;  %6142 = vadd.xlane.f32.xlu1 %v13418_v24  ;;  %v8842_v10 = vpop.f32.mrb[84].mxu1 }
 0xbe0   :  { %v13422_v15 = vpop.eup %10593  ;;  %10603 = vpow2.f32 %v6122_v46  ;;  %v6124_v29 = vmul.f32 1.442695, %v6100_v45  ;;  %v6101_v55 = vsub.f32 %v13335_v39, %v6079_v49  ;;  %v8843_v11 = vpop.f32.mrb[85].mxu1 }
 0xbe1   :  { %v6081_v36 = vpop.xlane.xlu0 %6080  ;;  %6144 = vadd.xlane.f32.xlu0 %v13422_v15  ;;  %v13426_v6 = vadd.f32 %v8843_v11, %v8842_v10  ;;  %v8845_v47 = vpop.f32.mrb[86].mxu1 }
 0xbe2   :  { %v13428_v13 = vpop.eup %10595  ;;  %10605 = vpow2.f32 %v6124_v29  ;;  %v6126_v33 = vmul.f32 1.442695, %v6101_v55  ;;  %v6102_v50 = vsub.f32 %v13340_v41, %v6081_v36  ;;  %v8846_v40 = vpop.f32.mrb[87].mxu1 }
 0xbe3   :  { %14492 = vst [vmem:[#allocation35_spill] sm:$0xff] %v13426_v6  ;;  %v6083_v5 = vpop.xlane.xlu1 %6082  ;;  %v13431_v48 = vadd.f32 %v8846_v40, %v8845_v47  ;;  %6146 = vadd.xlane.f32.xlu1 %v13428_v13 }
 0xbe4   :  { %v13434_v39 = vpop.eup %10597  ;;  %10607 = vpow2.f32 %v6126_v33  ;;  %v6128_v58 = vmul.f32 1.442695, %v6102_v50  ;;  %v6103_v20 = vsub.f32 %v13346_v34, %v6083_v5 }
 0xbe5   :  { %14493 = vst [vmem:[#allocation41_spill] sm:$0xff] %v13431_v48  ;;  %6148 = vadd.xlane.f32.xlu0 %v13434_v39  ;;  %v6085_v46 = vpop.xlane.xlu0 %6084 }
 0xbe6   :  { %v13438_v45 = vpop.eup %10599  ;;  %10609 = vpow2.f32 %v6128_v58  ;;  %v6130_v49 = vmul.f32 1.442695, %v6103_v20  ;;  %v6104_v41 = vsub.f32 %v13352_v62, %v6085_v46 }
 0xbe7   :  { %6150 = vadd.xlane.f32.xlu1 %v13438_v45  ;;  %v6087_v10 = vpop.xlane.xlu1 %6086  ;;  %v8848_v29 = vpop.f32.mrb[88].mxu1 }
 0xbe8   :  { %v13442_v55 = vpop.eup %10601  ;;  %10611 = vpow2.f32 %v6130_v49  ;;  %v6132_v11 = vmul.f32 1.442695, %v6104_v41  ;;  %v6105_v36 = vsub.f32 %v13357_v30, %v6087_v10  ;;  %v8849_v34 = vpop.f32.mrb[89].mxu1 }
 0xbe9   :  { %6152 = vadd.xlane.f32.xlu0 %v13442_v55  ;;  %v6089_v47 = vpop.xlane.xlu0 %6088  ;;  %v13446_v33 = vadd.f32 %v8849_v34, %v8848_v29  ;;  %v8851_v50 = vpop.f32.mrb[90].mxu1 }
 0xbea   :  { %v13448_v40 = vpop.eup %10603  ;;  %10613 = vpow2.f32 %v6132_v11  ;;  %v6134_v62 = vmul.f32 1.442695, %v6105_v36  ;;  %v6106_v5 = vsub.f32 %v13362_v23, %v6089_v47  ;;  %v8852_v58 = vpop.f32.mrb[91].mxu1 }
 0xbeb   :  { %14494 = vst [vmem:[#allocation39_spill] sm:$0xff] %v13446_v33  ;;  %v13451_v20 = vadd.f32 %v8852_v58, %v8851_v50  ;;  %6154 = vadd.xlane.f32.xlu1 %v13448_v40  ;;  %v6091_v46 = vpop.xlane.xlu1 %6090 }
 0xbec   :  { %v13454_v30 = vpop.eup %10605  ;;  %10615 = vpow2.f32 %v6134_v62  ;;  %v6136_v49 = vmul.f32 1.442695, %v6106_v5  ;;  %v6107_v41 = vsub.f32 %v13368_v63, %v6091_v46 }
 0xbed   :  { %14495 = vst [vmem:[#allocation45_spill] sm:$0xff] %v13451_v20  ;;  %6156 = vadd.xlane.f32.xlu0 %v13454_v30  ;;  %v10199_v20 = vld [vmem:[#allocation9 + $0x4] ss:$12 sps:$4 sm:$0xff]  }
 0xbee   :  { %v13458_v10 = vpop.eup %10607  ;;  %10617 = vpow2.f32 %v6136_v49  ;;  %v6138_v29 = vmul.f32 1.442695, %v6107_v41  ;;  %6870 = vmatprep.subr.bf16.mxu0 %v10199_v20 }
 0xbef   :  { %6158 = vadd.xlane.f32.xlu1 %v13458_v10  ;;  %v8854_v23 = vpop.f32.mrb[92].mxu1 }
 0xbf0   :  { %v13461_v11 = vpop.eup %10609  ;;  %10619 = vpow2.f32 %v6138_v29  ;;  %v8855_v36 = vpop.f32.mrb[93].mxu1 }
 0xbf1   :  { %6160 = vadd.xlane.f32.xlu0 %v13461_v11  ;;  %v13464_v34 = vadd.f32 %v8855_v36, %v8854_v23  ;;  %v8857_v47 = vpop.f32.mrb[94].mxu1 }
 0xbf2   :  { %v13466_v50 = vpop.eup %10611  ;;  %v8858_v63 = vpop.f32.mrb[95].mxu1 }
 0xbf3   :  { %14496 = vst [vmem:[#allocation43_spill] sm:$0xff] %v13464_v34  ;;  %v13468_v62 = vadd.f32 %v8858_v63, %v8857_v47  ;;  %6162 = vadd.xlane.f32.xlu1 %v13466_v50 }
 0xbf4   :  { %v13471_v5 = vpop.eup %10613 }
 0xbf5   :  { %14497 = vst [vmem:[#allocation81_spill] sm:$0xff] %v13468_v62  ;;  %6164 = vadd.xlane.f32.xlu0 %v13471_v5 }
 0xbf6   :  { %v13474_v58 = vpop.eup %10615 }
 0xbf7   :  { %6166 = vadd.xlane.f32.xlu1 %v13474_v58  ;;  %v8860_v46 = vpop.f32.mrb[96].mxu1 }
 0xbf8   :  { %v13477_v49 = vpop.eup %10617  ;;  %v8861_v41 = vpop.f32.mrb[97].mxu1 }
 0xbf9   :  { %6168 = vadd.xlane.f32.xlu0 %v13477_v49  ;;  %v13480_v29 = vadd.f32 %v8861_v41, %v8860_v46  ;;  %v8863_v23 = vpop.f32.mrb[98].mxu1 }
 0xbfa   :  { %v13482_v36 = vpop.eup %10619  ;;  %v8864_v47 = vpop.f32.mrb[99].mxu1 }
 0xbfb   :  { %14498 = vst [vmem:[#allocation20_spill] sm:$0xff] %v13480_v29  ;;  %v13484_v63 = vadd.f32 %v8864_v47, %v8863_v23  ;;  %6170 = vadd.xlane.f32.xlu1 %v13482_v36  ;;  %v14503_v47 = vld [vmem:[#allocation76_spill] sm:$0xff] }
 0xbfd   :  { %14499 = vst [vmem:[#allocation49_spill] sm:$0xff] %v13484_v63  ;;  %v6481_v63 = vsub.s32 2, %v14503_v47 }
 0xbff   :  { %v8866_v62 = vpop.f32.mrb[100].mxu1 }
 0xc00   :  { %v8867_v33 = vpop.f32.mrb[101].mxu1 }
 0xc01   :  { %v13487_v34 = vadd.f32 %v8867_v33, %v8866_v62  ;;  %v8869_v56 = vpop.f32.mrb[102].mxu1 }
 0xc02   :  { %v8870_v48 = vpop.f32.mrb[103].mxu1 }
 0xc03   :  { %v13489_v44 = vadd.f32 %v8870_v48, %v8869_v56  ;;  %v10709_v56 = vld [vmem:[%s13723_s3] sm:$0x7]  ;;  %s10812_s3 = smov [#allocation10]  }
 0xc04   :  { %v13501_v48 = vrot.slane %v10709_v56, %v6481_v63  ;;  %s7967_s30 = sshll.u32 %s10812_s3, 4  ;;  %s7968_s30 = int_to_ptr.vmem [resolvable:$true] %s7967_s30 }
 0xc05   :  { %14500 = vst [vmem:[#allocation47_spill] sm:$0xff] %v13489_v44  ;;  %s10776_s5 = scalar_lea.vmem %s7968_s30, 6144  ;;  %p10781_p11 = scmp.lt.s32.totalorder %s7968_s30, %s7968_s30 }
 0xc06   :  { %v7294_v63 = vadd.f32 %v13373_v4, %v13501_v48  ;;  %p10777_p10 = scmp.ne.s32.totalorder %s7968_s30, %s10776_s5  ;;  %p10782_p12 = scmp.lt.s32.totalorder %s10776_s5, %s10776_s5 }
 0xc07   :  { %v8872_v46 = vpop.f32.mrb[104].mxu1 }
 0xc08   :  { %v8873_v41 = vpop.f32.mrb[105].mxu1  ;;  %p10783_p13 = por %p10782_p12, %p10781_p11 }
 0xc09   :  { %v13491_v29 = vadd.f32 %v8873_v41, %v8872_v46  ;;  %v8875_v6 = vpop.f32.mrb[106].mxu1  ;;  %v7291_v41 = vadd.f32 %v13371_v42, %v13501_v48  ;;  %v7315_v42 = vadd.f32 %v13383_v35, %v13501_v48 }
 0xc0a   :  { %v8876_v37 = vpop.f32.mrb[107].mxu1  ;;  %p10784_p0 = pnand %p10783_p13, %p10777_p10 }
 0xc0b   :  { %14501 = vst [vmem:[#allocation53_spill] sm:$0xff] %v13491_v29  ;;  %v13493_v23 = vadd.f32 %v8876_v37, %v8875_v6  ;;  %v7299_v37 = vadd.f32 %v13375_v51, %v13501_v48 }
 0xc0d   :  { %14502 = vst [vmem:[#allocation51_spill] sm:$0xff] %v13493_v23 }
 0xc0f   :  { %v8878_v12 = vpop.f32.mrb[108].mxu1 }
 0xc10   :  { %v8879_v0 = vpop.f32.mrb[109].mxu1 }
 0xc11   :  { %v13496_v20 = vadd.f32 %v8879_v0, %v8878_v12  ;;  %v8881_v33 = vpop.f32.mrb[110].mxu1  ;;  %v7302_v12 = vadd.f32 %v13377_v25, %v13501_v48 }
 0xc12   :  { %v8882_v62 = vpop.f32.mrb[111].mxu1 }
 0xc13   :  { %14504 = vst [vmem:[#allocation72_spill] sm:$0xff] %v13496_v20  ;;  %v13503_v46 = vadd.f32 %v8882_v62, %v8881_v33 }
 0xc15   :  { %14505 = vst [vmem:[#allocation69_spill] sm:$0xff] %v13503_v46 }
 0xc17   :  { %v9358_v6 = vpop.f32.mrb[112].mxu1 }
 0xc18   :  { %v7460_v47 = vadd.f32 %v9358_v6, %v7299_v37  ;;  %v7451_v0 = vpop.f32.mrb[113].mxu1  ;;  %v7307_v37 = vadd.f32 %v13379_v9, %v13501_v48  ;;  %v7331_v9 = vadd.f32 %v13391_v8, %v13501_v48 }
 0xc19   :  { %v7452_v23 = vadd.f32 %v7451_v0, %v7291_v41  ;;  %v9359_v29 = vpop.f32.mrb[114].mxu1 }
 0xc1a   :  { %v8385_v56 = vpack.c.bf16 %v7460_v47, %v7460_v47  ;;  %v7463_v33 = vadd.f32 %v9359_v29, %v7302_v12  ;;  %v7454_v62 = vpop.f32.mrb[115].mxu1  ;;  %v7318_v29 = vadd.f32 %v13385_v59, %v13501_v48 }
 0xc1b   :  { %v8381_v46 = vpack.c.bf16 %v7452_v23, %v7452_v23  ;;  %v7455_v20 = vadd.f32 %v7454_v62, %v7294_v63  ;;  %v7334_v62 = vadd.f32 %v13393_v16, %v13501_v48 }
 0xc1c   :  { %7903 = vst [vmem:[#allocation10 + $0x20] sm:$0xf] %v8385_v56  ;;  %v8387_v51 = vpack.c.bf16 %v7463_v33, %v7463_v33  ;;  %v7323_v56 = vadd.f32 %v13387_v32, %v13501_v48  ;;  %v7347_v32 = vadd.f32 %v13399_v22, %v13501_v48 }
 0xc1d   :  { %7899 = vst [vmem:[#allocation10 + $0x8] sm:$0xf] %v8381_v46  ;;  %v8383_v44 = vpack.c.bf16 %v7455_v20, %v7455_v20  ;;  %v7310_v46 = vadd.f32 %v13381_v1, %v13501_v48 }
 0xc1e   :  { %7905 = vst [vmem:[#allocation10 + $0x2c] sm:$0xf] %v8387_v51 }
 0xc1f   :  { %7901 = vst [vmem:[#allocation10 + $0x14] sm:$0xf] %v8383_v44  ;;  %v9362_v25 = vpop.f32.mrb[116].mxu1 }
 0xc20   :  { %v7476_v6 = vadd.f32 %v9362_v25, %v7315_v42  ;;  %v7467_v4 = vpop.f32.mrb[117].mxu1  ;;  %v7326_v25 = vadd.f32 %v13389_v7, %v13501_v48 }
 0xc21   :  { %v7468_v23 = vadd.f32 %v7467_v4, %v7307_v37  ;;  %v9363_v41 = vpop.f32.mrb[118].mxu1 }
 0xc22   :  { %v8393_v20 = vpack.c.bf16 %v7476_v6, %v7476_v6  ;;  %v7479_v47 = vadd.f32 %v9363_v41, %v7318_v29  ;;  %v7470_v0 = vpop.f32.mrb[119].mxu1 }
 0xc23   :  { %v8389_v12 = vpack.c.bf16 %v7468_v23, %v7468_v23  ;;  %v7471_v35 = vadd.f32 %v7470_v0, %v7310_v46  ;;  %v7339_v46 = vadd.f32 %v13395_v18, %v13501_v48 }
 0xc24   :  { %7911 = vst [vmem:[#allocation10 + $0x50] sm:$0xf] %v8393_v20  ;;  %v8395_v44 = vpack.c.bf16 %v7479_v47, %v7479_v47  ;;  %v7350_v47 = vadd.f32 %v13401_v17, %v13501_v48 }
 0xc25   :  { %7907 = vst [vmem:[#allocation10 + $0x38] sm:$0xf] %v8389_v12  ;;  %v8391_v63 = vpack.c.bf16 %v7471_v35, %v7471_v35  ;;  %v7342_v35 = vadd.f32 %v13397_v26, %v13501_v48 }
 0xc26   :  { %7913 = vst [vmem:[#allocation10 + $0x5c] sm:$0xf] %v8395_v44 }
 0xc27   :  { %7909 = vst [vmem:[#allocation10 + $0x44] sm:$0xf] %v8391_v63  ;;  %v9366_v59 = vpop.f32.mrb[120].mxu1 }
 0xc28   :  { %v7492_v33 = vadd.f32 %v9366_v59, %v7331_v9  ;;  %v7483_v1 = vpop.f32.mrb[121].mxu1 }
 0xc29   :  { %v7484_v51 = vadd.f32 %v7483_v1, %v7323_v56  ;;  %v9367_v42 = vpop.f32.mrb[122].mxu1 }
 0xc2a   :  { %v8401_v37 = vpack.c.bf16 %v7492_v33, %v7492_v33  ;;  %v7495_v6 = vadd.f32 %v9367_v42, %v7334_v62  ;;  %v7486_v4 = vpop.f32.mrb[123].mxu1 }
 0xc2b   :  { %v8397_v29 = vpack.c.bf16 %v7484_v51, %v7484_v51  ;;  %v7487_v8 = vadd.f32 %v7486_v4, %v7326_v25 }
 0xc2c   :  { %7919 = vst [vmem:[#allocation10 + $0x80] sm:$0xf] %v8401_v37  ;;  %v8403_v23 = vpack.c.bf16 %v7495_v6, %v7495_v6 }
 0xc2d   :  { %7915 = vst [vmem:[#allocation10 + $0x68] sm:$0xf] %v8397_v29  ;;  %v8399_v41 = vpack.c.bf16 %v7487_v8, %v7487_v8 }
 0xc2e   :  { %7921 = vst [vmem:[#allocation10 + $0x8c] sm:$0xf] %v8403_v23 }
 0xc2f   :  { %7917 = vst [vmem:[#allocation10 + $0x74] sm:$0xf] %v8399_v41  ;;  %v9370_v16 = vpop.f32.mrb[124].mxu1 }
 0xc30   :  { %v7508_v20 = vadd.f32 %v9370_v16, %v7347_v32  ;;  %v7499_v7 = vpop.f32.mrb[125].mxu1 }
 0xc31   :  { %v7500_v0 = vadd.f32 %v7499_v7, %v7339_v46  ;;  %v9371_v12 = vpop.f32.mrb[126].mxu1 }
 0xc32   :  { %v8409_v44 = vpack.c.bf16 %v7508_v20, %v7508_v20  ;;  %v7511_v63 = vadd.f32 %v9371_v12, %v7350_v47  ;;  %v7502_v9 = vpop.f32.mrb[127].mxu1  ;;  %v10197_v47 = vld [vmem:[#allocation9] ss:$12 sps:$4 sm:$0xff]  }
 0xc33   :  { %v8405_v59 = vpack.c.bf16 %v7500_v0, %v7500_v0  ;;  %v7503_v22 = vadd.f32 %v7502_v9, %v7342_v35 }
 0xc34   :  { %7927 = vst [vmem:[#allocation10 + $0xb0] sm:$0xf] %v8409_v44  ;;  %v8411_v56 = vpack.c.bf16 %v7511_v63, %v7511_v63 }
 0xc35   :  { %7923 = vst [vmem:[#allocation10 + $0x98] sm:$0xf] %v8405_v59  ;;  %v8407_v33 = vpack.c.bf16 %v7503_v22, %v7503_v22  ;;  %v10205_v22 = vld [vmem:[#allocation9 + $0x34] ss:$12 sps:$4 sm:$0xff]  }
 0xc36   :  { %7929 = vst [vmem:[#allocation10 + $0xbc] sm:$0xf] %v8411_v56 }
 0xc37   :  { %7925 = vst [vmem:[#allocation10 + $0xa4] sm:$0xf] %v8407_v33 }
 0xc6a   :  { %v6141_v18 = vpop.xlane.xlu0 %6140 }
 0xc6b   :  { %10621 = vrcp.f32 %v6141_v18 }
 0xc6c   :  { %v6143_v1 = vpop.xlane.xlu1 %6142 }
 0xc6d   :  { %10623 = vrcp.f32 %v6143_v1 }
 0xc6e   :  { %v6145_v17 = vpop.xlane.xlu0 %6144 }
 0xc6f   :  { %10625 = vrcp.f32 %v6145_v17 }
 0xc70   :  { %v6147_v62 = vpop.xlane.xlu1 %6146 }
 0xc71   :  { %10627 = vrcp.f32 %v6147_v62 }
 0xc72   :  { %v6149_v26 = vpop.xlane.xlu0 %6148 }
 0xc73   :  { %10629 = vrcp.f32 %v6149_v26  ;;  %v10208_v26 = vld [vmem:[#allocation9 + $0x4c] ss:$12 sps:$4 sm:$0xff]  }
 0xc74   :  { %v6151_v51 = vpop.xlane.xlu1 %6150 }
 0xc75   :  { %v10622_v42 = vpop.eup %10621  ;;  %10631 = vrcp.f32 %v6151_v51 }
 0xc76   :  { %v6153_v25 = vpop.xlane.xlu0 %6152  ;;  %v6188_v4 = vmul.f32 %v10622_v42, %v13414_v21  ;;  %v10202_v21 = vld [vmem:[#allocation9 + $0x1c] ss:$12 sps:$4 sm:$0xff]  }
 0xc77   :  { %v10624_v37 = vpop.eup %10623  ;;  %10633 = vrcp.f32 %v6153_v25 }
 0xc78   :  { %v6155_v6 = vpop.xlane.xlu1 %6154  ;;  %v6189_v29 = vmul.f32 %v10624_v37, %v13418_v24 }
 0xc79   :  { %v10626_v8 = vpop.eup %10625  ;;  %10635 = vrcp.f32 %v6155_v6 }
 0xc7a   :  { %v6157_v23 = vpop.xlane.xlu0 %6156  ;;  %v6204_v41 = vpack.c.bf16 %v6189_v29, %v6188_v4  ;;  %v6190_v16 = vmul.f32 %v10626_v8, %v13422_v15  ;;  %v10200_v15 = vld [vmem:[#allocation9 + $0x18] ss:$12 sps:$4 sm:$0xff]  }
 0xc7b   :  { %v10628_v32 = vpop.eup %10627  ;;  %10637 = vrcp.f32 %v6157_v23  ;;  %v10211_v4 = vld [vmem:[#allocation9 + $0x64] ss:$12 sps:$4 sm:$0xff]  }
 0xc7c   :  { %v6191_v46 = vmul.f32 %v10628_v32, %v13428_v13  ;;  %9324 = vmatprep.mubr.bf16.mxu0 %v6204_v41  ;;  %v6159_v20 = vpop.xlane.xlu1 %6158  ;;  %v10209_v32 = vld [vmem:[#allocation9 + $0x60] ss:$12 sps:$4 sm:$0xff]  }
 0xc7d   :  { %v10630_v7 = vpop.eup %10629  ;;  %10639 = vrcp.f32 %v6159_v20 }
 0xc7e   :  { %v6205_v0 = vpack.c.bf16 %v6191_v46, %v6190_v16  ;;  %v6161_v12 = vpop.xlane.xlu0 %6160  ;;  %v6192_v44 = vmul.f32 %v10630_v7, %v13434_v39  ;;  %v10203_v39 = vld [vmem:[#allocation9 + $0x30] ss:$12 sps:$4 sm:$0xff]  }
 0xc7f   :  { %v10632_v35 = vpop.eup %10631  ;;  %10641 = vrcp.f32 %v6161_v12 }
 0xc80   :  { %9325 = vmatmul.mubr.bf16.vlgmr.msra.gmra.mrb[0].mxu0 %v6205_v0  ;;  %v6163_v24 = vpop.xlane.xlu1 %6162  ;;  %v6193_v63 = vmul.f32 %v10632_v35, %v13438_v45  ;;  %v10217_v0 = vld [vmem:[#allocation9 + $0x94] ss:$12 sps:$4 sm:$0xff]   ;;  %v10215_v35 = vld [vmem:[#allocation9 + $0x90] ss:$12 sps:$4 sm:$0xff]  }
 0xc81   :  { %v10634_v9 = vpop.eup %10633  ;;  %6871 = vmatpush1.bf16.msra.mxu0 %v10197_v47  ;;  %10643 = vrcp.f32 %v6163_v24  ;;  %v10212_v47 = vld [vmem:[#allocation9 + $0x78] ss:$12 sps:$4 sm:$0xff]  }
 0xc82   :  { %v6165_v13 = vpop.xlane.xlu0 %6164  ;;  %6872 = vmatprep.subr.bf16.mxu0 %v10202_v21  ;;  %v6206_v59 = vpack.c.bf16 %v6193_v63, %v6192_v44  ;;  %v6194_v33 = vmul.f32 %v10634_v9, %v13442_v55  ;;  %v10220_v44 = vld [vmem:[#allocation9 + $0xac] ss:$12 sps:$4 sm:$0xff]   ;;  %v10226_v9 = vld [vmem:[#allocation9 + $0xdc] ss:$12 sps:$4 sm:$0xff]  }
 0xc83   :  { %v10636_v56 = vpop.eup %10635  ;;  %10645 = vrcp.f32 %v6165_v13  ;;  %v10221_v63 = vld [vmem:[#allocation9 + $0xc0] ss:$12 sps:$4 sm:$0xff]  }
 0xc84   :  { %v6195_v18 = vmul.f32 %v10636_v56, %v13448_v40  ;;  %9328 = vmatprep.mubr.bf16.mxu0 %v6206_v59  ;;  %v6167_v1 = vpop.xlane.xlu1 %6166  ;;  %v10206_v40 = vld [vmem:[#allocation9 + $0x48] ss:$12 sps:$4 sm:$0xff]   ;;  %v10232_v13 = vld [vmem:[#allocation9 + $0x10c] ss:$12 sps:$4 sm:$0xff]  }
 0xc85   :  { %v10638_v17 = vpop.eup %10637  ;;  %6873 = vmatpush1.bf16.msra.mxu0 %v10200_v15  ;;  %10647 = vrcp.f32 %v6167_v1  ;;  %v10227_v15 = vld [vmem:[#allocation9 + $0xf0] ss:$12 sps:$4 sm:$0xff]   ;;  %v10230_v59 = vld [vmem:[#allocation9 + $0x108] ss:$12 sps:$4 sm:$0xff]  }
 0xc86   :  { %v6207_v45 = vpack.c.bf16 %v6195_v18, %v6194_v33  ;;  %v6169_v62 = vpop.xlane.xlu0 %6168  ;;  %6874 = vmatprep.subr.bf16.mxu0 %v10205_v22  ;;  %v6196_v25 = vmul.f32 %v10638_v17, %v13454_v30  ;;  %v10214_v30 = vld [vmem:[#allocation9 + $0x7c] ss:$12 sps:$4 sm:$0xff]   ;;  %v10235_v22 = vld [vmem:[#allocation9 + $0x124] ss:$12 sps:$4 sm:$0xff]   ;;  %v10241_v18 = vld [vmem:[#allocation9 + $0x154] ss:$12 sps:$4 sm:$0xff]  }
 0xc87   :  { %v10640_v51 = vpop.eup %10639  ;;  %10649 = vrcp.f32 %v6169_v62  ;;  %v10238_v56 = vld [vmem:[#allocation9 + $0x13c] ss:$12 sps:$4 sm:$0xff]   ;;  %v10236_v33 = vld [vmem:[#allocation9 + $0x138] ss:$12 sps:$4 sm:$0xff]   ;;  %v10245_v62 = vld [vmem:[#allocation9 + $0x180] ss:$12 sps:$4 sm:$0xff]  }
 0xc88   :  { %9329 = vmatmul.mubr.bf16.gmra.mrb[4].mxu0 %v6207_v45  ;;  %v6171_v42 = vpop.xlane.xlu1 %6170  ;;  %v6197_v55 = vmul.f32 %v10640_v51, %v13458_v10  ;;  %v10239_v1 = vld [vmem:[#allocation9 + $0x150] ss:$12 sps:$4 sm:$0xff]   ;;  %v10244_v17 = vld [vmem:[#allocation9 + $0x16c] ss:$12 sps:$4 sm:$0xff]  }
 0xc89   :  { %v10642_v37 = vpop.eup %10641  ;;  %6875 = vmatpush1.bf16.msra.mxu0 %v10203_v39  ;;  %10651 = vrcp.f32 %v6171_v42  ;;  %v10242_v39 = vld [vmem:[#allocation9 + $0x168] ss:$12 sps:$4 sm:$0xff]   ;;  %v10247_v45 = vld [vmem:[#allocation9 + $0x184] ss:$12 sps:$4 sm:$0xff]  }
 0xc8a   :  { %6876 = vmatprep.subr.bf16.mxu0 %v10208_v26  ;;  %v6208_v6 = vpack.c.bf16 %v6197_v55, %v6196_v25  ;;  %v6198_v8 = vmul.f32 %v10642_v37, %v13461_v11  ;;  %v10250_v26 = vld [vmem:[#allocation9 + $0x19c] ss:$12 sps:$4 sm:$0xff]   ;;  %v10248_v51 = vld [vmem:[#allocation9 + $0x198] ss:$12 sps:$4 sm:$0xff]   ;;  %v10253_v42 = vld [vmem:[#allocation9 + $0x1b4] ss:$12 sps:$4 sm:$0xff]  }
 0xc8b   :  { %v10644_v29 = vpop.eup %10643  ;;  %v10251_v25 = vld [vmem:[#allocation9 + $0x1b0] ss:$12 sps:$4 sm:$0xff]   ;;  %v10256_v55 = vld [vmem:[#allocation9 + $0x1cc] ss:$12 sps:$4 sm:$0xff]   ;;  %v10254_v37 = vld [vmem:[#allocation9 + $0x1c8] ss:$12 sps:$4 sm:$0xff]  }
 0xc8c   :  { %v6199_v23 = vmul.f32 %v10644_v29, %v13466_v50  ;;  %9332 = vmatprep.mubr.bf16.mxu0 %v6208_v6  ;;  %v10260_v6 = vld [vmem:[#allocation9 + $0x1f8] ss:$12 sps:$4 sm:$0xff]   ;;  %v10266_v29 = vld [vmem:[#allocation9 + $0x228] ss:$12 sps:$4 sm:$0xff]  }
 0xc8d   :  { %v10646_v41 = vpop.eup %10645  ;;  %6877 = vmatpush1.bf16.msra.mxu0 %v10206_v40  ;;  %v10259_v40 = vld [vmem:[#allocation9 + $0x1e4] ss:$12 sps:$4 sm:$0xff]  }
 0xc8e   :  { %v6209_v16 = vpack.c.bf16 %v6199_v23, %v6198_v8  ;;  %6878 = vmatprep.subr.bf16.mxu0 %v10211_v4  ;;  %v6200_v46 = vmul.f32 %v10646_v41, %v13471_v5  ;;  %v10218_v5 = vld [vmem:[#allocation9 + $0xa8] ss:$12 sps:$4 sm:$0xff]   ;;  %v14510_v8 = vld [vmem:[#allocation74_spill] sm:$0xff] }
 0xc8f   :  { %v10648_v10 = vpop.eup %10647  ;;  %v10265_v4 = vld [vmem:[#allocation9 + $0x214] ss:$12 sps:$4 sm:$0xff]  }
 0xc90   :  { %9333 = vmatmul.mubr.bf16.gmra.mrb[8].mxu0 %v6209_v16  ;;  %v6201_v20 = vmul.f32 %v10648_v10, %v13474_v58  ;;  %v10223_v58 = vld [vmem:[#allocation9 + $0xc4] ss:$12 sps:$4 sm:$0xff]  }
 0xc91   :  { %v10650_v7 = vpop.eup %10649  ;;  %6879 = vmatpush1.bf16.msra.mxu0 %v10209_v32  ;;  %v14517_v23 = vld [vmem:[#allocation106_spill] sm:$0xff]  ;;  %v14518_v41 = vld [vmem:[#allocation84_spill] sm:$0xff]  ;;  %v14519_v32 = vld [vmem:[#allocation115_spill] sm:$0xff] }
 0xc92   :  { %6880 = vmatprep.subr.bf16.mxu0 %v10214_v30  ;;  %v6210_v11 = vpack.c.bf16 %v6201_v20, %v6200_v46  ;;  %v6202_v12 = vmul.f32 %v10650_v7, %v13477_v49  ;;  %v10224_v49 = vld [vmem:[#allocation9 + $0xd8] ss:$12 sps:$4 sm:$0xff]   ;;  %v14521_v30 = vld [vmem:[#allocation112_spill] sm:$0xff]  ;;  %v14523_v46 = vmov 0   ;;  %v14524_v20 = vld [vmem:[#allocation67_spill] sm:$0xff] }
 0xc93   :  { %v10652_v50 = vpop.eup %10651  ;;  %v14520_v16 = vld [vmem:[#allocation94_spill] sm:$0xff]  ;;  %v14525_v7 = vld [vmem:[#allocation16_spill] sm:$0xff] }
 0xc94   :  { %v6203_v21 = vmul.f32 %v10652_v50, %v13482_v36  ;;  %9336 = vmatprep.mubr.bf16.mxu0 %v6210_v11  ;;  %v10229_v36 = vld [vmem:[#allocation9 + $0xf4] ss:$12 sps:$4 sm:$0xff]  }
 0xc95   :  { %6881 = vmatpush1.bf16.msra.mxu0 %v10212_v47  ;;  %v14522_v10 = vld [vmem:[#allocation26_spill] sm:$0xff]  ;;  %v14526_v47 = vld [vmem:[#allocation71_spill] sm:$0xff] }
 0xc96   :  { %v6211_v24 = vpack.c.bf16 %v6203_v21, %v6202_v12  ;;  %6882 = vmatprep.subr.bf16.mxu0 %v10217_v0 }
 0xc98   :  { %9337 = vmatmul.mubr.bf16.gmra.mrb[12].mxu0 %v6211_v24  ;;  %v14527_v24 = vld [vmem:[#allocation75_spill] sm:$0xff] }
 0xc99   :  { %6883 = vmatpush1.bf16.msra.mxu0 %v10215_v35  ;;  %6902 = vmatprep.mubr.bf16.mxu0 %v12847_v2  ;;  %v10233_v2 = vld [vmem:[#allocation9 + $0x120] ss:$12 sps:$4 sm:$0xff]  }
 0xc9a   :  { %6884 = vmatprep.subr.bf16.mxu0 %v10220_v44 }
 0xc9d   :  { %6885 = vmatpush1.bf16.msra.mxu0 %v10218_v5 }
 0xc9e   :  { %6886 = vmatprep.subr.bf16.mxu0 %v10223_v58 }
 0xca1   :  { %6887 = vmatpush1.bf16.msra.mxu0 %v10221_v63 }
 0xca2   :  { %6888 = vmatprep.subr.bf16.mxu0 %v10226_v9 }
 0xca5   :  { %6889 = vmatpush1.bf16.msra.mxu0 %v10224_v49 }
 0xca6   :  { %6890 = vmatprep.subr.bf16.mxu0 %v10229_v36  ;;  %v14528_v36 = vld [vmem:[#allocation83_spill] sm:$0xff] }
 0xca9   :  { %6891 = vmatpush1.bf16.msra.mxu0 %v10227_v15 }
 0xcaa   :  { %6892 = vmatprep.subr.bf16.mxu0 %v10232_v13 }
 0xcad   :  { %6893 = vmatpush1.bf16.msra.mxu0 %v10230_v59 }
 0xcae   :  { %6894 = vmatprep.subr.bf16.mxu0 %v10235_v22 }
 0xcb1   :  { %6895 = vmatpush1.bf16.msra.mxu0 %v10233_v2 }
 0xcb2   :  { %6896 = vmatprep.subr.bf16.mxu0 %v10238_v56 }
 0xcb5   :  { %6897 = vmatpush1.bf16.msra.mxu0 %v10236_v33  ;;  %v14529_v33 = vld [vmem:[#allocation18_spill] sm:$0xff] }
 0xcb6   :  { %6898 = vmatprep.subr.bf16.mxu0 %v10241_v18 }
 0xcb9   :  { %6899 = vmatpush1.bf16.msra.mxu0 %v10239_v1 }
 0xcba   :  { %6900 = vmatprep.subr.bf16.mxu0 %v10244_v17 }
 0xcbd   :  { %6901 = vmatpush1.bf16.msra.mxu0 %v10242_v39 }
 0xcbe   :  { %7063 = vmatprep.subr.bf16.mxu0 %v10247_v45 }
 0xcc0   :  { %6903 = vmatmul.mubr.bf16.vlgmr.msra.gmra.mrb[16].mxu0 %v12812_v54  ;;  %v10257_v54 = vld [vmem:[#allocation9 + $0x1e0] ss:$12 sps:$4 sm:$0xff]  }
 0xcc1   :  { %6912 = vmatprep.mubr.bf16.mxu0 %v12845_v57  ;;  %7064 = vmatpush1.bf16.msra.mxu0 %v10245_v62  ;;  %v10262_v57 = vld [vmem:[#allocation9 + $0x1fc] ss:$12 sps:$4 sm:$0xff]  }
 0xcc2   :  { %7065 = vmatprep.subr.bf16.mxu0 %v10250_v26  ;;  %v14530_v26 = vld [vmem:[#allocation82_spill] sm:$0xff] }
 0xcc5   :  { %7066 = vmatpush1.bf16.msra.mxu0 %v10248_v51  ;;  %v14531_v51 = vld [vmem:[#allocation80_spill] sm:$0xff] }
 0xcc6   :  { %7067 = vmatprep.subr.bf16.mxu0 %v10253_v42 }
 0xcc8   :  { %6913 = vmatmul.mubr.bf16.gmra.mrb[20].mxu0 %v12809_v38  ;;  %v10263_v38 = vld [vmem:[#allocation9 + $0x210] ss:$12 sps:$4 sm:$0xff]  }
 0xcc9   :  { %6922 = vmatprep.mubr.bf16.mxu0 %v12851_v52  ;;  %7068 = vmatpush1.bf16.msra.mxu0 %v10251_v25  ;;  %v10268_v52 = vld [vmem:[#allocation9 + $0x22c] ss:$12 sps:$4 sm:$0xff]   ;;  %v14532_v25 = vld [vmem:[#allocation88_spill] sm:$0xff] }
 0xcca   :  { %7069 = vmatprep.subr.bf16.mxu0 %v10256_v55 }
 0xccd   :  { %7070 = vmatpush1.bf16.msra.mxu0 %v10254_v37 }
 0xcce   :  { %7071 = vmatprep.subr.bf16.mxu0 %v10259_v40  ;;  %v14533_v40 = vld [vmem:[#allocation85_spill] sm:$0xff] }
 0xcd0   :  { %6923 = vmatmul.mubr.bf16.gmra.mrb[24].mxu0 %v12826_v19  ;;  %v14506_v19 = vld [vmem:[#allocation138_spill] sm:$0xff] }
 0xcd1   :  { %6932 = vmatprep.mubr.bf16.mxu0 %v12849_v3  ;;  %7072 = vmatpush1.bf16.msra.mxu0 %v10257_v54  ;;  %v14508_v3 = vld [vmem:[#allocation87_spill] sm:$0xff] }
 0xcd2   :  { %7073 = vmatprep.subr.bf16.mxu0 %v10262_v57 }
 0xcd5   :  { %7074 = vmatpush1.bf16.msra.mxu0 %v10260_v6 }
 0xcd6   :  { %7075 = vmatprep.subr.bf16.mxu0 %v10265_v4 }
 0xcd8   :  { %6933 = vmatmul.mubr.bf16.gmra.mrb[32].mxu0 %v12823_v61  ;;  %v14507_v61 = vld [vmem:[#allocation100_spill] sm:$0xff] }
 0xcd9   :  { %6942 = vmatprep.mubr.bf16.mxu0 %v12855_v53  ;;  %7076 = vmatpush1.bf16.msra.mxu0 %v10263_v38  ;;  %v14509_v53 = vld [vmem:[#allocation97_spill] sm:$0xff] }
 0xcda   :  { %7077 = vmatprep.subr.bf16.mxu0 %v10268_v52 }
 0xcdd   :  { %7078 = vmatpush1.bf16.msra.mxu0 %v10266_v29 }
 0xce0   :  { %6943 = vmatmul.mubr.bf16.gmra.mrb[28].mxu0 %v12837_v60  ;;  %v14511_v60 = vld [vmem:[#allocation103_spill] sm:$0xff] }
 0xce1   :  { %6952 = vmatprep.mubr.bf16.mxu0 %v12853_v28  ;;  %v14512_v28 = vld [vmem:[#allocation89_spill] sm:$0xff] }
 0xce8   :  { %6953 = vmatmul.mubr.bf16.gmra.mrb[36].mxu0 %v12834_v14  ;;  %v14513_v14 = vld [vmem:[#allocation137_spill] sm:$0xff] }
 0xce9   :  { %6962 = vmatprep.mubr.bf16.mxu0 %v12859_v31  ;;  %v14514_v31 = vld [vmem:[#allocation79_spill] sm:$0xff] }
 0xcf0   :  { %6963 = vmatmul.mubr.bf16.gmra.mrb[40].mxu0 %v12843_v43  ;;  %v14515_v43 = vld [vmem:[#allocation109_spill] sm:$0xff] }
 0xcf1   :  { %6972 = vmatprep.mubr.bf16.mxu0 %v14464_v27  ;;  %v14516_v27 = vld [vmem:[#allocation90_spill] sm:$0xff] }
 0xcf8   :  { %6973 = vmatmul.mubr.bf16.gmra.mrb[44].mxu0 %v14506_v19 }
 0xcf9   :  { %6982 = vmatprep.mubr.bf16.mxu0 %v14507_v61 }
 0xd00   :  { %6983 = vmatmul.mubr.bf16.gmra.mrb[48].mxu0 %v14508_v3 }
 0xd01   :  { %6992 = vmatprep.mubr.bf16.mxu0 %v14509_v53 }
 0xd08   :  { %6993 = vmatmul.mubr.bf16.gmra.mrb[52].mxu0 %v14510_v8 }
 0xd09   :  { %7002 = vmatprep.mubr.bf16.mxu0 %v14511_v60 }
 0xd10   :  { %7003 = vmatmul.mubr.bf16.gmra.mrb[56].mxu0 %v14512_v28 }
 0xd11   :  { %7012 = vmatprep.mubr.bf16.mxu0 %v14513_v14 }
 0xd18   :  { %7013 = vmatmul.mubr.bf16.gmra.mrb[60].mxu0 %v14514_v31 }
 0xd19   :  { %7022 = vmatprep.mubr.bf16.mxu0 %v14515_v43 }
 0xd20   :  { %7023 = vmatmul.mubr.bf16.gmra.mrb[64].mxu0 %v14516_v27 }
 0xd21   :  { %7032 = vmatprep.mubr.bf16.mxu0 %v14517_v23 }
 0xd28   :  { %7033 = vmatmul.mubr.bf16.gmra.mrb[68].mxu0 %v14518_v41 }
 0xd29   :  { %7042 = vmatprep.mubr.bf16.mxu0 %v14519_v32 }
 0xd30   :  { %7043 = vmatmul.mubr.bf16.gmra.mrb[72].mxu0 %v14520_v16 }
 0xd31   :  { %7052 = vmatprep.mubr.bf16.mxu0 %v14521_v30 }
 0xd38   :  { %7053 = vmatmul.mubr.bf16.gmra.mrb[76].mxu0 %v14522_v10 }
 0xd39   :  { %7095 = vmatprep.mubr.bf16.mxu0 %v14523_v46 }
 0xd40   :  { %7096 = vmatmul.mubr.bf16.vlgmr.msra.gmra.mrb[16].mxu0 %v14524_v20 }
 0xd41   :  { %7105 = vmatprep.mubr.bf16.mxu0 %v14523_v46 }
 0xd48   :  { %7106 = vmatmul.mubr.bf16.gmra.mrb[20].mxu0 %v14525_v7 }
 0xd49   :  { %7115 = vmatprep.mubr.bf16.mxu0 %v14523_v46 }
 0xd50   :  { %7116 = vmatmul.mubr.bf16.gmra.mrb[24].mxu0 %v14526_v47 }
 0xd51   :  { %7125 = vmatprep.mubr.bf16.mxu0 %v14523_v46 }
 0xd53   :  { %v9326_v11 = vpop.f32.mrb[0].mxu0 }
 0xd54   :  { %v6246_v0 = vpop.f32.mrb[1].mxu0 }
 0xd55   :  { %v9327_v50 = vpop.f32.mrb[2].mxu0 }
 0xd56   :  { %v6310_v12 = vpack.c.bf16 %v9327_v50, %v9326_v11  ;;  %v6249_v21 = vpop.f32.mrb[3].mxu0  ;;  %v14534_v50 = vld [vmem:[#allocation35_spill] sm:$0xff] }
 0xd57   :  { %v6309_v35 = vpack.c.bf16 %v6249_v21, %v6246_v0 }
 0xd58   :  { %7126 = vmatmul.mubr.bf16.gmra.mrb[32].mxu0 %v14527_v24 }
 0xd59   :  { %9372 = vmatprep.mubr.bf16.mxu1 %v6309_v35  ;;  %7135 = vmatprep.mubr.bf16.mxu0 %v14523_v46 }
 0xd5a   :  { %9373 = vmatmul.mubr.bf16.gmra.mrb[128].mxu1 %v6310_v12 }
 0xd5b   :  { %v9330_v44 = vpop.f32.mrb[4].mxu0 }
 0xd5c   :  { %v6262_v5 = vpop.f32.mrb[5].mxu0 }
 0xd5d   :  { %v9331_v58 = vpop.f32.mrb[6].mxu0 }
 0xd5e   :  { %v6312_v63 = vpack.c.bf16 %v9331_v58, %v9330_v44  ;;  %v6265_v9 = vpop.f32.mrb[7].mxu0  ;;  %v14535_v44 = vld [vmem:[#allocation19_spill] sm:$0xff] }
 0xd5f   :  { %v6311_v49 = vpack.c.bf16 %v6265_v9, %v6262_v5  ;;  %v7355_v5 = vadd.f32 %v14535_v44, %v13501_v48 }
 0xd60   :  { %7136 = vmatmul.mubr.bf16.gmra.mrb[28].mxu0 %v14528_v36  ;;  %v14536_v36 = vld [vmem:[#allocation41_spill] sm:$0xff] }
 0xd61   :  { %9376 = vmatprep.mubr.bf16.mxu1 %v6311_v49  ;;  %7145 = vmatprep.mubr.bf16.mxu0 %v14523_v46 }
 0xd62   :  { %9377 = vmatmul.mubr.bf16.gmra.mrb[132].mxu1 %v6312_v63 }
 0xd63   :  { %v9334_v15 = vpop.f32.mrb[8].mxu0 }
 0xd64   :  { %v6278_v13 = vpop.f32.mrb[9].mxu0 }
 0xd65   :  { %v9335_v59 = vpop.f32.mrb[10].mxu0 }
 0xd66   :  { %v6314_v22 = vpack.c.bf16 %v9335_v59, %v9334_v15  ;;  %v6281_v2 = vpop.f32.mrb[11].mxu0  ;;  %v7366_v15 = vadd.f32 %v14536_v36, %v13501_v48 }
 0xd67   :  { %v6313_v56 = vpack.c.bf16 %v6281_v2, %v6278_v13 }
 0xd68   :  { %7146 = vmatmul.mubr.bf16.gmra.mrb[36].mxu0 %v14529_v33 }
 0xd69   :  { %9380 = vmatprep.mubr.bf16.mxu1 %v6313_v56  ;;  %7155 = vmatprep.mubr.bf16.mxu0 %v14523_v46 }
 0xd6a   :  { %9381 = vmatmul.mubr.bf16.gmra.mrb[136].mxu1 %v6314_v22 }
 0xd6b   :  { %v9338_v18 = vpop.f32.mrb[12].mxu0 }
 0xd6c   :  { %v6294_v1 = vpop.f32.mrb[13].mxu0 }
 0xd6d   :  { %v9339_v17 = vpop.f32.mrb[14].mxu0 }
 0xd6e   :  { %v6316_v39 = vpack.c.bf16 %v9339_v17, %v9338_v18  ;;  %v6297_v45 = vpop.f32.mrb[15].mxu0 }
 0xd6f   :  { %v6315_v62 = vpack.c.bf16 %v6297_v45, %v6294_v1 }
 0xd70   :  { %7156 = vmatmul.mubr.bf16.gmra.mrb[40].mxu0 %v14530_v26 }
 0xd71   :  { %9384 = vmatprep.mubr.bf16.mxu1 %v6315_v62  ;;  %7165 = vmatprep.mubr.bf16.mxu0 %v14523_v46 }
 0xd72   :  { %9385 = vmatmul.mubr.bf16.gmra.mrb[140].mxu1 %v6316_v39 }
 0xd78   :  { %7166 = vmatmul.mubr.bf16.gmra.mrb[44].mxu0 %v14531_v51 }
 0xd79   :  { %7175 = vmatprep.mubr.bf16.mxu0 %v14523_v46 }
 0xd80   :  { %7176 = vmatmul.mubr.bf16.gmra.mrb[48].mxu0 %v6309_v35 }
 0xd81   :  { %7185 = vmatprep.mubr.bf16.mxu0 %v14523_v46 }
 0xd88   :  { %7186 = vmatmul.mubr.bf16.gmra.mrb[52].mxu0 %v6310_v12  ;;  %v7363_v12 = vadd.f32 %v14534_v50, %v13501_v48  ;;  %v7395_v50 = vadd.f32 %v13487_v34, %v13501_v48 }
 0xd89   :  { %7195 = vmatprep.mubr.bf16.mxu0 %v14523_v46 }
 0xd90   :  { %7196 = vmatmul.mubr.bf16.gmra.mrb[56].mxu0 %v6311_v49 }
 0xd91   :  { %7205 = vmatprep.mubr.bf16.mxu0 %v14523_v46 }
 0xd98   :  { %7206 = vmatmul.mubr.bf16.gmra.mrb[60].mxu0 %v6312_v63 }
 0xd99   :  { %7215 = vmatprep.mubr.bf16.mxu0 %v14523_v46 }
 0xda0   :  { %7216 = vmatmul.mubr.bf16.gmra.mrb[64].mxu0 %v6313_v56  ;;  %v14537_v56 = vld [vmem:[#allocation37_spill] sm:$0xff] }
 0xda1   :  { %7225 = vmatprep.mubr.bf16.mxu0 %v14523_v46  ;;  %v7358_v33 = vadd.f32 %v14537_v56, %v13501_v48 }
 0xda8   :  { %7226 = vmatmul.mubr.bf16.gmra.mrb[68].mxu0 %v6314_v22 }
 0xda9   :  { %7235 = vmatprep.mubr.bf16.mxu0 %v14523_v46 }
 0xdb0   :  { %7236 = vmatmul.mubr.bf16.gmra.mrb[72].mxu0 %v6315_v62 }
 0xdb1   :  { %7245 = vmatprep.mubr.bf16.mxu0 %v14523_v46 }
 0xdb8   :  { %7246 = vmatmul.mubr.bf16.gmra.mrb[76].mxu0 %v6316_v39 }
 0xe13   :  { %v7097_v42 = vpop.f32.mrb[16].mxu0 }
 0xe14   :  { %v9436_v55 = vadd.f32 %v7097_v42, %v14532_v25  ;;  %v7099_v37 = vpop.f32.mrb[17].mxu0 }
 0xe15   :  { %v9437_v54 = vadd.f32 %v7099_v37, %v14533_v40  ;;  %v7101_v57 = vpop.f32.mrb[18].mxu0 }
 0xe16   :  { %v9438_v6 = vadd.f32 %v7101_v57, %v14532_v25  ;;  %v7103_v4 = vpop.f32.mrb[19].mxu0 }
 0xe17   :  { %v8380_v38 = vpack.c.bf16 %v9437_v54, %v9436_v55  ;;  %v9439_v52 = vadd.f32 %v7103_v4, %v14533_v40  ;;  %v14538_v54 = vld [vmem:[#allocation43_spill] sm:$0xff] }
 0xe18   :  { %v7379_v57 = vadd.f32 %v14538_v54, %v13501_v48 }
 0xe19   :  { %7898 = vst [vmem:[#allocation10] sm:$0xff] %v8380_v38  ;;  %v8382_v29 = vpack.c.bf16 %v9439_v52, %v9438_v6  ;;  %v14539_v52 = vld [vmem:[#allocation39_spill] sm:$0xff] }
 0xe1b   :  { %7900 = vst [vmem:[#allocation10 + $0xc] sm:$0xff] %v8382_v29  ;;  %v7107_v19 = vpop.f32.mrb[20].mxu0  ;;  %v7371_v29 = vadd.f32 %v14539_v52, %v13501_v48 }
 0xe1c   :  { %v9440_v61 = vadd.f32 %v7107_v19, %v14532_v25  ;;  %v7109_v3 = vpop.f32.mrb[21].mxu0 }
 0xe1d   :  { %v9441_v53 = vadd.f32 %v7109_v3, %v14533_v40  ;;  %v7111_v8 = vpop.f32.mrb[22].mxu0 }
 0xe1e   :  { %v9442_v60 = vadd.f32 %v7111_v8, %v14532_v25  ;;  %v7113_v28 = vpop.f32.mrb[23].mxu0  ;;  %v14540_v8 = vld [vmem:[#allocation81_spill] sm:$0xff] }
 0xe1f   :  { %v8384_v14 = vpack.c.bf16 %v9441_v53, %v9440_v61  ;;  %v9443_v31 = vadd.f32 %v7113_v28, %v14533_v40 }
 0xe21   :  { %7902 = vst [vmem:[#allocation10 + $0x18] sm:$0xff] %v8384_v14  ;;  %v8386_v43 = vpack.c.bf16 %v9443_v31, %v9442_v60  ;;  %v7382_v60 = vadd.f32 %v14540_v8, %v13501_v48 }
 0xe23   :  { %7904 = vst [vmem:[#allocation10 + $0x24] sm:$0xff] %v8386_v43  ;;  %v7117_v27 = vpop.f32.mrb[24].mxu0 }
 0xe24   :  { %v9444_v23 = vadd.f32 %v7117_v27, %v14532_v25  ;;  %v7119_v41 = vpop.f32.mrb[25].mxu0  ;;  %v14541_v27 = vld [vmem:[#allocation45_spill] sm:$0xff] }
 0xe25   :  { %v9445_v32 = vadd.f32 %v7119_v41, %v14533_v40  ;;  %v7121_v16 = vpop.f32.mrb[26].mxu0 }
 0xe26   :  { %v9446_v30 = vadd.f32 %v7121_v16, %v14532_v25  ;;  %v7123_v10 = vpop.f32.mrb[27].mxu0 }
 0xe27   :  { %v8388_v46 = vpack.c.bf16 %v9445_v32, %v9444_v23  ;;  %v9447_v20 = vadd.f32 %v7123_v10, %v14533_v40  ;;  %v7374_v23 = vadd.f32 %v14541_v27, %v13501_v48 }
 0xe29   :  { %7906 = vst [vmem:[#allocation10 + $0x30] sm:$0xff] %v8388_v46  ;;  %v8390_v7 = vpack.c.bf16 %v9447_v20, %v9446_v30 }
 0xe2b   :  { %7908 = vst [vmem:[#allocation10 + $0x3c] sm:$0xff] %v8390_v7  ;;  %v7127_v47 = vpop.f32.mrb[32].mxu0 }
 0xe2c   :  { %v9448_v11 = vadd.f32 %v7127_v47, %v14532_v25  ;;  %v7129_v0 = vpop.f32.mrb[33].mxu0 }
 0xe2d   :  { %v9449_v21 = vadd.f32 %v7129_v0, %v14533_v40  ;;  %v7131_v35 = vpop.f32.mrb[34].mxu0  ;;  %v9374_v24 = vpop.f32.mrb[128].mxu1 }
 0xe2e   :  { %v9450_v58 = vadd.f32 %v7131_v35, %v14532_v25  ;;  %v7133_v63 = vpop.f32.mrb[35].mxu0  ;;  %v7524_v9 = vadd.f32 %v9374_v24, %v7363_v12  ;;  %v7515_v49 = vpop.f32.mrb[129].mxu1  ;;  %v14542_v24 = vld [vmem:[#allocation20_spill] sm:$0xff] }
 0xe2f   :  { %v8392_v13 = vpack.c.bf16 %v9449_v21, %v9448_v11  ;;  %v9451_v59 = vadd.f32 %v7133_v63, %v14533_v40  ;;  %v7516_v22 = vadd.f32 %v7515_v49, %v7355_v5  ;;  %v9375_v2 = vpop.f32.mrb[130].mxu1  ;;  %v7387_v44 = vadd.f32 %v14542_v24, %v13501_v48  ;;  %v14543_v49 = vld [vmem:[#allocation47_spill] sm:$0xff] }
 0xe30   :  { %v8417_v18 = vpack.c.bf16 %v7524_v9, %v7524_v9  ;;  %v7527_v1 = vadd.f32 %v9375_v2, %v7366_v15  ;;  %v7518_v17 = vpop.f32.mrb[131].mxu1  ;;  %v7398_v36 = vadd.f32 %v14543_v49, %v13501_v48 }
 0xe31   :  { %7910 = vst [vmem:[#allocation10 + $0x48] sm:$0xff] %v8392_v13  ;;  %v8394_v39 = vpack.c.bf16 %v9451_v59, %v9450_v58  ;;  %v8413_v45 = vpack.c.bf16 %v7516_v22, %v7516_v22  ;;  %v7519_v62 = vadd.f32 %v7518_v17, %v7358_v33  ;;  %v14544_v22 = vld [vmem:[#allocation49_spill] sm:$0xff] }
 0xe32   :  { %7935 = vst [vmem:[#allocation10 + $0xe0] sm:$0xf] %v8417_v18  ;;  %v8419_v26 = vpack.c.bf16 %v7527_v1, %v7527_v1  ;;  %v7390_v2 = vadd.f32 %v14544_v22, %v13501_v48 }
 0xe33   :  { %7912 = vst [vmem:[#allocation10 + $0x54] sm:$0xff] %v8394_v39  ;;  %7931 = vst [vmem:[#allocation10 + $0xc8] sm:$0xf] %v8413_v45  ;;  %v8415_v51 = vpack.c.bf16 %v7519_v62, %v7519_v62  ;;  %v7137_v42 = vpop.f32.mrb[28].mxu0 }
 0xe34   :  { %7937 = vst [vmem:[#allocation10 + $0xec] sm:$0xf] %v8419_v26  ;;  %v9452_v55 = vadd.f32 %v7137_v42, %v14532_v25  ;;  %v7139_v37 = vpop.f32.mrb[29].mxu0 }
 0xe35   :  { %7933 = vst [vmem:[#allocation10 + $0xd4] sm:$0xf] %v8415_v51  ;;  %v9453_v6 = vadd.f32 %v7139_v37, %v14533_v40  ;;  %v7141_v4 = vpop.f32.mrb[30].mxu0  ;;  %v9378_v38 = vpop.f32.mrb[132].mxu1 }
 0xe36   :  { %v9454_v19 = vadd.f32 %v7141_v4, %v14532_v25  ;;  %v7143_v61 = vpop.f32.mrb[31].mxu0  ;;  %v7540_v3 = vadd.f32 %v9378_v38, %v7379_v57  ;;  %v7531_v53 = vpop.f32.mrb[133].mxu1  ;;  %v14546_v4 = vld [vmem:[#allocation53_spill] sm:$0xff] }
 0xe37   :  { %v8396_v28 = vpack.c.bf16 %v9453_v6, %v9452_v55  ;;  %v9455_v14 = vadd.f32 %v7143_v61, %v14533_v40  ;;  %v7532_v31 = vadd.f32 %v7531_v53, %v7371_v29  ;;  %v9379_v43 = vpop.f32.mrb[134].mxu1  ;;  %v14545_v55 = vld [vmem:[#allocation72_spill] sm:$0xff]  ;;  %v7403_v38 = vadd.f32 %v14546_v4, %v13501_v48 }
 0xe38   :  { %v8425_v41 = vpack.c.bf16 %v7540_v3, %v7540_v3  ;;  %v7543_v32 = vadd.f32 %v9379_v43, %v7382_v60  ;;  %v7534_v16 = vpop.f32.mrb[135].mxu1  ;;  %v7411_v37 = vadd.f32 %v14545_v55, %v13501_v48  ;;  %v14547_v3 = vld [vmem:[#allocation69_spill] sm:$0xff] }
 0xe39   :  { %7914 = vst [vmem:[#allocation10 + $0x60] sm:$0xff] %v8396_v28  ;;  %v8398_v30 = vpack.c.bf16 %v9455_v14, %v9454_v19  ;;  %v8421_v10 = vpack.c.bf16 %v7532_v31, %v7532_v31  ;;  %v7535_v46 = vadd.f32 %v7534_v16, %v7374_v23  ;;  %v7414_v53 = vadd.f32 %v14547_v3, %v13501_v48  ;;  %v14548_v31 = vld [vmem:[#allocation51_spill] sm:$0xff] }
 0xe3a   :  { %7943 = vst [vmem:[#allocation10 + $0x110] sm:$0xf] %v8425_v41  ;;  %v8427_v20 = vpack.c.bf16 %v7543_v32, %v7543_v32  ;;  %v7406_v43 = vadd.f32 %v14548_v31, %v13501_v48 }
 0xe3b   :  { %7916 = vst [vmem:[#allocation10 + $0x6c] sm:$0xff] %v8398_v30  ;;  %7939 = vst [vmem:[#allocation10 + $0xf8] sm:$0xf] %v8421_v10  ;;  %v8423_v7 = vpack.c.bf16 %v7535_v46, %v7535_v46  ;;  %v7147_v47 = vpop.f32.mrb[36].mxu0 }
 0xe3c   :  { %7945 = vst [vmem:[#allocation10 + $0x11c] sm:$0xf] %v8427_v20  ;;  %v9456_v11 = vadd.f32 %v7147_v47, %v14532_v25  ;;  %v7149_v0 = vpop.f32.mrb[37].mxu0 }
 0xe3d   :  { %7941 = vst [vmem:[#allocation10 + $0x104] sm:$0xf] %v8423_v7  ;;  %v9457_v12 = vadd.f32 %v7149_v0, %v14533_v40  ;;  %v7151_v21 = vpop.f32.mrb[38].mxu0  ;;  %v9382_v35 = vpop.f32.mrb[136].mxu1 }
 0xe3e   :  { %v9458_v5 = vadd.f32 %v7151_v21, %v14532_v25  ;;  %v7153_v58 = vpop.f32.mrb[39].mxu0  ;;  %v7556_v63 = vadd.f32 %v9382_v35, %v7395_v50  ;;  %v7547_v9 = vpop.f32.mrb[137].mxu1 }
 0xe3f   :  { %v8400_v15 = vpack.c.bf16 %v9457_v12, %v9456_v11  ;;  %v9459_v13 = vadd.f32 %v7153_v58, %v14533_v40  ;;  %v7548_v34 = vadd.f32 %v7547_v9, %v7387_v44  ;;  %v9383_v59 = vpop.f32.mrb[138].mxu1 }
 0xe40   :  { %v8433_v56 = vpack.c.bf16 %v7556_v63, %v7556_v63  ;;  %v7559_v33 = vadd.f32 %v9383_v59, %v7398_v36  ;;  %v7550_v18 = vpop.f32.mrb[139].mxu1 }
 0xe41   :  { %7918 = vst [vmem:[#allocation10 + $0x78] sm:$0xff] %v8400_v15  ;;  %v8402_v1 = vpack.c.bf16 %v9459_v13, %v9458_v5  ;;  %v8429_v17 = vpack.c.bf16 %v7548_v34, %v7548_v34  ;;  %v7551_v39 = vadd.f32 %v7550_v18, %v7390_v2 }
 0xe42   :  { %7951 = vst [vmem:[#allocation10 + $0x140] sm:$0xf] %v8433_v56  ;;  %v8435_v45 = vpack.c.bf16 %v7559_v33, %v7559_v33 }
 0xe43   :  { %7920 = vst [vmem:[#allocation10 + $0x84] sm:$0xff] %v8402_v1  ;;  %7947 = vst [vmem:[#allocation10 + $0x128] sm:$0xf] %v8429_v17  ;;  %v8431_v62 = vpack.c.bf16 %v7551_v39, %v7551_v39  ;;  %v7157_v26 = vpop.f32.mrb[40].mxu0 }
 0xe44   :  { %7953 = vst [vmem:[#allocation10 + $0x14c] sm:$0xf] %v8435_v45  ;;  %v9460_v51 = vadd.f32 %v7157_v26, %v14532_v25  ;;  %v7159_v42 = vpop.f32.mrb[41].mxu0 }
 0xe45   :  { %7949 = vst [vmem:[#allocation10 + $0x134] sm:$0xf] %v8431_v62  ;;  %v9461_v54 = vadd.f32 %v7159_v42, %v14533_v40  ;;  %v7161_v57 = vpop.f32.mrb[42].mxu0  ;;  %v9386_v6 = vpop.f32.mrb[140].mxu1 }
 0xe46   :  { %v9462_v52 = vadd.f32 %v7161_v57, %v14532_v25  ;;  %v7163_v29 = vpop.f32.mrb[43].mxu0  ;;  %v7572_v19 = vadd.f32 %v9386_v6, %v7411_v37  ;;  %v7563_v61 = vpop.f32.mrb[141].mxu1 }
 0xe47   :  { %v8404_v8 = vpack.c.bf16 %v9461_v54, %v9460_v51  ;;  %v9463_v60 = vadd.f32 %v7163_v29, %v14533_v40  ;;  %v7564_v28 = vadd.f32 %v7563_v61, %v7403_v38  ;;  %v9387_v14 = vpop.f32.mrb[142].mxu1 }
 0xe48   :  { %v8441_v27 = vpack.c.bf16 %v7572_v19, %v7572_v19  ;;  %v7575_v23 = vadd.f32 %v9387_v14, %v7414_v53  ;;  %v7566_v41 = vpop.f32.mrb[143].mxu1 }
 0xe49   :  { %7922 = vst [vmem:[#allocation10 + $0x90] sm:$0xff] %v8404_v8  ;;  %v8406_v32 = vpack.c.bf16 %v9463_v60, %v9462_v52  ;;  %v8437_v16 = vpack.c.bf16 %v7564_v28, %v7564_v28  ;;  %v7567_v30 = vadd.f32 %v7566_v41, %v7406_v43 }
 0xe4a   :  { %7959 = vst [vmem:[#allocation10 + $0x170] sm:$0xf] %v8441_v27  ;;  %v8443_v10 = vpack.c.bf16 %v7575_v23, %v7575_v23 }
 0xe4b   :  { %7924 = vst [vmem:[#allocation10 + $0x9c] sm:$0xff] %v8406_v32  ;;  %7955 = vst [vmem:[#allocation10 + $0x158] sm:$0xf] %v8437_v16  ;;  %v8439_v46 = vpack.c.bf16 %v7567_v30, %v7567_v30  ;;  %v7167_v20 = vpop.f32.mrb[44].mxu0 }
 0xe4c   :  { %7961 = vst [vmem:[#allocation10 + $0x17c] sm:$0xf] %v8443_v10  ;;  %v9464_v7 = vadd.f32 %v7167_v20, %v14532_v25  ;;  %v7169_v47 = vpop.f32.mrb[45].mxu0 }
 0xe4d   :  { %7957 = vst [vmem:[#allocation10 + $0x164] sm:$0xf] %v8439_v46  ;;  %v9465_v48 = vadd.f32 %v7169_v47, %v14533_v40  ;;  %v7171_v11 = vpop.f32.mrb[46].mxu0 }
 0xe4e   :  { %v9466_v0 = vadd.f32 %v7171_v11, %v14532_v25  ;;  %v7173_v50 = vpop.f32.mrb[47].mxu0 }
 0xe4f   :  { %v8408_v12 = vpack.c.bf16 %v9465_v48, %v9464_v7  ;;  %v9467_v21 = vadd.f32 %v7173_v50, %v14533_v40 }
 0xe51   :  { %7926 = vst [vmem:[#allocation10 + $0xa8] sm:$0xff] %v8408_v12  ;;  %v8410_v35 = vpack.c.bf16 %v9467_v21, %v9466_v0 }
 0xe53   :  { %7928 = vst [vmem:[#allocation10 + $0xb4] sm:$0xff] %v8410_v35  ;;  %v7177_v24 = vpop.f32.mrb[48].mxu0 }
 0xe54   :  { %v9468_v44 = vadd.f32 %v7177_v24, %v14532_v25  ;;  %v7179_v5 = vpop.f32.mrb[49].mxu0 }
 0xe55   :  { %v9469_v58 = vadd.f32 %v7179_v5, %v14533_v40  ;;  %v7181_v63 = vpop.f32.mrb[50].mxu0 }
 0xe56   :  { %v9470_v9 = vadd.f32 %v7181_v63, %v14532_v25  ;;  %v7183_v49 = vpop.f32.mrb[51].mxu0 }
 0xe57   :  { %v8412_v36 = vpack.c.bf16 %v9469_v58, %v9468_v44  ;;  %v9471_v15 = vadd.f32 %v7183_v49, %v14533_v40 }
 0xe59   :  { %7930 = vst [vmem:[#allocation10 + $0xc0] sm:$0xff] %v8412_v36  ;;  %v8414_v13 = vpack.c.bf16 %v9471_v15, %v9470_v9 }
 0xe5b   :  { %7932 = vst [vmem:[#allocation10 + $0xcc] sm:$0xff] %v8414_v13  ;;  %v7187_v34 = vpop.f32.mrb[52].mxu0 }
 0xe5c   :  { %v9472_v59 = vadd.f32 %v7187_v34, %v14532_v25  ;;  %v7189_v22 = vpop.f32.mrb[53].mxu0 }
 0xe5d   :  { %v9473_v2 = vadd.f32 %v7189_v22, %v14533_v40  ;;  %v7191_v56 = vpop.f32.mrb[54].mxu0 }
 0xe5e   :  { %v9474_v33 = vadd.f32 %v7191_v56, %v14532_v25  ;;  %v7193_v18 = vpop.f32.mrb[55].mxu0 }
 0xe5f   :  { %v8416_v1 = vpack.c.bf16 %v9473_v2, %v9472_v59  ;;  %v9475_v17 = vadd.f32 %v7193_v18, %v14533_v40 }
 0xe61   :  { %7934 = vst [vmem:[#allocation10 + $0xd8] sm:$0xff] %v8416_v1  ;;  %v8418_v39 = vpack.c.bf16 %v9475_v17, %v9474_v33 }
 0xe63   :  { %7936 = vst [vmem:[#allocation10 + $0xe4] sm:$0xff] %v8418_v39  ;;  %v7197_v45 = vpop.f32.mrb[56].mxu0 }
 0xe64   :  { %v9476_v62 = vadd.f32 %v7197_v45, %v14532_v25  ;;  %v7199_v26 = vpop.f32.mrb[57].mxu0 }
 0xe65   :  { %v9477_v51 = vadd.f32 %v7199_v26, %v14533_v40  ;;  %v7201_v42 = vpop.f32.mrb[58].mxu0 }
 0xe66   :  { %v9478_v55 = vadd.f32 %v7201_v42, %v14532_v25  ;;  %v7203_v37 = vpop.f32.mrb[59].mxu0 }
 0xe67   :  { %v8420_v54 = vpack.c.bf16 %v9477_v51, %v9476_v62  ;;  %v9479_v57 = vadd.f32 %v7203_v37, %v14533_v40 }
 0xe69   :  { %7938 = vst [vmem:[#allocation10 + $0xf0] sm:$0xff] %v8420_v54  ;;  %v8422_v6 = vpack.c.bf16 %v9479_v57, %v9478_v55 }
 0xe6b   :  { %7940 = vst [vmem:[#allocation10 + $0xfc] sm:$0xff] %v8422_v6  ;;  %v7207_v4 = vpop.f32.mrb[60].mxu0 }
 0xe6c   :  { %v9480_v38 = vadd.f32 %v7207_v4, %v14532_v25  ;;  %v7209_v52 = vpop.f32.mrb[61].mxu0 }
 0xe6d   :  { %v9481_v29 = vadd.f32 %v7209_v52, %v14533_v40  ;;  %v7211_v19 = vpop.f32.mrb[62].mxu0 }
 0xe6e   :  { %v9482_v61 = vadd.f32 %v7211_v19, %v14532_v25  ;;  %v7213_v3 = vpop.f32.mrb[63].mxu0 }
 0xe6f   :  { %v8424_v53 = vpack.c.bf16 %v9481_v29, %v9480_v38  ;;  %v9483_v8 = vadd.f32 %v7213_v3, %v14533_v40 }
 0xe71   :  { %7942 = vst [vmem:[#allocation10 + $0x108] sm:$0xff] %v8424_v53  ;;  %v8426_v60 = vpack.c.bf16 %v9483_v8, %v9482_v61 }
 0xe73   :  { %7944 = vst [vmem:[#allocation10 + $0x114] sm:$0xff] %v8426_v60  ;;  %v7217_v28 = vpop.f32.mrb[64].mxu0 }
 0xe74   :  { %v9484_v14 = vadd.f32 %v7217_v28, %v14532_v25  ;;  %v7219_v31 = vpop.f32.mrb[65].mxu0 }
 0xe75   :  { %v9485_v43 = vadd.f32 %v7219_v31, %v14533_v40  ;;  %v7221_v27 = vpop.f32.mrb[66].mxu0 }
 0xe76   :  { %v9486_v23 = vadd.f32 %v7221_v27, %v14532_v25  ;;  %v7223_v41 = vpop.f32.mrb[67].mxu0 }
 0xe77   :  { %v8428_v32 = vpack.c.bf16 %v9485_v43, %v9484_v14  ;;  %v9487_v16 = vadd.f32 %v7223_v41, %v14533_v40 }
 0xe79   :  { %7946 = vst [vmem:[#allocation10 + $0x120] sm:$0xff] %v8428_v32  ;;  %v8430_v30 = vpack.c.bf16 %v9487_v16, %v9486_v23 }
 0xe7b   :  { %7948 = vst [vmem:[#allocation10 + $0x12c] sm:$0xff] %v8430_v30  ;;  %v7227_v10 = vpop.f32.mrb[68].mxu0 }
 0xe7c   :  { %v9488_v46 = vadd.f32 %v7227_v10, %v14532_v25  ;;  %v7229_v20 = vpop.f32.mrb[69].mxu0 }
 0xe7d   :  { %v9489_v7 = vadd.f32 %v7229_v20, %v14533_v40  ;;  %v7231_v47 = vpop.f32.mrb[70].mxu0 }
 0xe7e   :  { %v9490_v48 = vadd.f32 %v7231_v47, %v14532_v25  ;;  %v7233_v11 = vpop.f32.mrb[71].mxu0 }
 0xe7f   :  { %v8432_v0 = vpack.c.bf16 %v9489_v7, %v9488_v46  ;;  %v9491_v50 = vadd.f32 %v7233_v11, %v14533_v40 }
 0xe81   :  { %7950 = vst [vmem:[#allocation10 + $0x138] sm:$0xff] %v8432_v0  ;;  %v8434_v12 = vpack.c.bf16 %v9491_v50, %v9490_v48 }
 0xe83   :  { %7952 = vst [vmem:[#allocation10 + $0x144] sm:$0xff] %v8434_v12  ;;  %v7237_v21 = vpop.f32.mrb[72].mxu0 }
 0xe84   :  { %v9492_v35 = vadd.f32 %v7237_v21, %v14532_v25  ;;  %v7239_v24 = vpop.f32.mrb[73].mxu0 }
 0xe85   :  { %v9493_v44 = vadd.f32 %v7239_v24, %v14533_v40  ;;  %v7241_v5 = vpop.f32.mrb[74].mxu0 }
 0xe86   :  { %v9494_v58 = vadd.f32 %v7241_v5, %v14532_v25  ;;  %v7243_v63 = vpop.f32.mrb[75].mxu0 }
 0xe87   :  { %v8436_v9 = vpack.c.bf16 %v9493_v44, %v9492_v35  ;;  %v9495_v49 = vadd.f32 %v7243_v63, %v14533_v40 }
 0xe89   :  { %7954 = vst [vmem:[#allocation10 + $0x150] sm:$0xff] %v8436_v9  ;;  %v8438_v36 = vpack.c.bf16 %v9495_v49, %v9494_v58 }
 0xe8b   :  { %7956 = vst [vmem:[#allocation10 + $0x15c] sm:$0xff] %v8438_v36  ;;  %v7247_v15 = vpop.f32.mrb[76].mxu0 }
 0xe8c   :  { %v9496_v13 = vadd.f32 %v7247_v15, %v14532_v25  ;;  %v7249_v34 = vpop.f32.mrb[77].mxu0 }
 0xe8d   :  { %v9497_v59 = vadd.f32 %v7249_v34, %v14533_v40  ;;  %v7251_v22 = vpop.f32.mrb[78].mxu0 }
 0xe8e   :  { %v9498_v2 = vadd.f32 %v7251_v22, %v14532_v25  ;;  %v7253_v56 = vpop.f32.mrb[79].mxu0 }
 0xe8f   :  { %v8440_v33 = vpack.c.bf16 %v9497_v59, %v9496_v13  ;;  %v9499_v18 = vadd.f32 %v7253_v56, %v14533_v40 }
 0xe91   :  { %7958 = vst [vmem:[#allocation10 + $0x168] sm:$0xff] %v8440_v33  ;;  %v8442_v1 = vpack.c.bf16 %v9499_v18, %v9498_v2 }
 0xe93   :  { %7960 = vst [vmem:[#allocation10 + $0x174] sm:$0xff] %v8442_v1 }
 0xe94   :  { %10787 = shalt.err (!%p10784_p0)
}
 0xe95   :  { %s10788_s8 = scalar_lea.hbm %s13724_s4, 6144 }
 0xe96   :  { %p10789_p1 = scmp.ne.s32.totalorder %s13724_s4, %s10788_s8  ;;  %p10792_p2 = scmp.lt.u32.totalorder %s10788_s8, %s13724_s4 }
 0xe98   :  { %p10794_p3 = pnand %p10792_p2, %p10789_p1 }
 0xe9a   :  { %10797 = shalt.err (!%p10794_p3)
}
 0xe9b   :  { %7973 = dma.vmem_to_hbm [thread:$0]  %s7968_s30, 6144, %s13724_s4, [#allocation6], %s10808_s1, %s10808_s1, %s10809_s13  }
 0xe9c   :  { %10802 = dma.done.wait [#allocation6], 6144  }
 0xe9d   :  { %10803 = vsyncadd [#allocation6], 4294961152 }
 0xe9e   :  { %7977 = vsyncpa [#allocation5], 1 }
 0xe9f   :  { %7978 = vsyncpa [#allocation8], 1 }
 0xea0   :  { %7979 = vsyncpa [#allocation6], 1 }

</bundles_post_ra>
